<compile_context>
chip_gen: v6e
topology: v6e:2x2x1
jax: 0.10.0
libtpu: 0.0.40
codegen_flags: <defaults>
</compile_context>

<pallas_src>
import numpy as np
import jax
import jax.numpy as jnp
from jax.experimental import pallas as pl
from jax.experimental.pallas import tpu as pltpu


def _round_up(x, m):
    return (x + m - 1) // m * m


# ----------------------------------------------------------------------------
# Pallas kernel: one grid step = Tb time steps of a 2-layer LSTM + output MLP
# ----------------------------------------------------------------------------
def make_decoder_kernel(Hp, Tb):
    def kernel(x_ref,                        # (Tb, Bp, Ep)   f32
               w0_ref, b0_ref,               # (Ep+Hp, 4Hp) bf16, (1, 4Hp) f32
               w1_ref, b1_ref,               # (2Hp,   4Hp) bf16, (1, 4Hp) f32
               wo1_ref, bo1_ref,             # (Hp, Hp) bf16, (1, Hp) f32
               wo2_ref, bo2_ref,             # (Hp, Vp) bf16, (1, Vp) f32
               out_ref,                      # (Tb, Bp, Vp)   f32
               h0, c0, h1, c1):              # VMEM scratch (Bp, Hp) f32 each
        @pl.when(pl.program_id(0) == 0)
        def _():
            h0[...] = jnp.zeros_like(h0)
            c0[...] = jnp.zeros_like(c0)
            h1[...] = jnp.zeros_like(h1)
            c1[...] = jnp.zeros_like(c1)

        # Hoist weight/bias loads out of the time loop.
        w0 = w0_ref[...]
        b0 = b0_ref[...]
        w1 = w1_ref[...]
        b1 = b1_ref[...]
        wo1 = wo1_ref[...]
        bo1 = bo1_ref[...]
        wo2 = wo2_ref[...]
        bo2 = bo2_ref[...]

        def cell(xh_bf16, c, w, b):
            # gates: (Bp, 4Hp), PyTorch gate order [i, f, g, o]; f32 accumulate.
            gates = jnp.dot(xh_bf16, w, preferred_element_type=jnp.float32) + b
            i = jax.nn.sigmoid(gates[:, 0 * Hp:1 * Hp])
            f = jax.nn.sigmoid(gates[:, 1 * Hp:2 * Hp])
            g = jnp.tanh(gates[:, 2 * Hp:3 * Hp])
            o = jax.nn.sigmoid(gates[:, 3 * Hp:4 * Hp])
            c_new = f * c + i * g
            h_new = o * jnp.tanh(c_new)
            return h_new, c_new

        def step(t, carry):
            x = x_ref[t].astype(jnp.bfloat16)                        # (Bp, Ep)
            # Layer 0: fused [x, h0] @ [Wih0; Whh0]
            xh0 = jnp.concatenate([x, h0[...].astype(jnp.bfloat16)], axis=-1)
            h0n, c0n = cell(xh0, c0[...], w0, b0)
            h0[...] = h0n
            c0[...] = c0n
            # Layer 1: fused [h0, h1] @ [Wih1; Whh1]
            xh1 = jnp.concatenate([h0n.astype(jnp.bfloat16),
                                   h1[...].astype(jnp.bfloat16)], axis=-1)
            h1n, c1n = cell(xh1, c1[...], w1, b1)
            h1[...] = h1n
            c1[...] = c1n
            # Output MLP: Linear -> ReLU -> Linear
            z = jnp.maximum(
                jnp.dot(h1n.astype(jnp.bfloat16), wo1,
                        preferred_element_type=jnp.float32) + bo1, 0.0)
            logits = jnp.dot(z.astype(jnp.bfloat16), wo2,
                             preferred_element_type=jnp.float32) + bo2
            out_ref[t] = logits.astype(out_ref.dtype)
            return carry

        jax.lax.fori_loop(0, Tb, step, 0, unroll=True)

    return kernel


def decoder_lstm_mlp(embeddings, kparams, hidden_size, vocab_size,
                     time_block=8):
    """embeddings: (T, B, E) f32 -> logits (T, B, V) f32 via Pallas kernel."""
    T, B, E = embeddings.shape
    H, V = hidden_size, vocab_size
    Ep = _round_up(E, 128)
    Hp = _round_up(H, 128)
    Vp = _round_up(V, 128)
    Bp = _round_up(B, 8)
    Tb = time_block
    Tp = _round_up(T, Tb)

    w0, b0, w1, b1, wo1, bo1, wo2, bo2 = kparams
    assert w0.shape == (Ep + Hp, 4 * Hp) and w1.shape == (2 * Hp, 4 * Hp)
    assert wo2.shape == (Hp, Vp)

    # Zero-pad input to (Tp, Bp, Ep): padded batch/time rows are garbage that
    # gets sliced off; padded hidden/state columns stay exactly zero.
    x = jnp.zeros((Tp, Bp, Ep), jnp.float32)
    x = x.at[:T, :B, :E].set(embeddings.astype(jnp.float32))

    rep = lambda a: pl.BlockSpec(a.shape, lambda s, _nd=a.ndim: (0,) * _nd)

    out = pl.pallas_call(
        make_decoder_kernel(Hp, Tb),
        out_shape=jax.ShapeDtypeStruct((Tp, Bp, Vp), jnp.float32),
        grid_spec=pltpu.PrefetchScalarGridSpec(
            num_scalar_prefetch=0,
            grid=(Tp // Tb,),
            in_specs=[
                pl.BlockSpec((Tb, Bp, Ep), lambda s: (s, 0, 0)),   # x chunk
                rep(w0), rep(b0),
                rep(w1), rep(b1),
                rep(wo1), rep(bo1),
                rep(wo2), rep(bo2),
            ],
            out_specs=pl.BlockSpec((Tb, Bp, Vp), lambda s: (s, 0, 0)),
            scratch_shapes=[pltpu.VMEM((Bp, Hp), jnp.float32)] * 4,
        ),
        compiler_params=pltpu.CompilerParams(
            dimension_semantics=("arbitrary",)),
    )(x, w0, b0, w1, b1, wo1, bo1, wo2, bo2)

    return out[:T, :B, :V]


# ----------------------------------------------------------------------------
# Parameter init (deterministic, mirrors init_weights shapes/distributions)
# ----------------------------------------------------------------------------
def init_params(key, chars_size, hidden_size, embed_size):
    V = chars_size + 2
    H, E = hidden_size, embed_size
    ks = jax.random.split(key, 10)

    def xavier_normal(k, shape):
        fan_in, fan_out = shape
        std = np.sqrt(2.0 / (fan_in + fan_out))
        return std * jax.random.normal(k, shape, jnp.float32)

    def xavier_uniform(k, shape):
        fan_in, fan_out = shape
        lim = np.sqrt(6.0 / (fan_in + fan_out))
        return jax.random.uniform(k, shape, jnp.float32, -lim, lim)

    # Embedding: uniform(-1, 1)
    emb = jax.random.uniform(ks[0], (V, E), jnp.float32, -1.0, 1.0)

    # LSTM weights stored pre-transposed (in, 4H) so kernel does x @ W
    wih0 = xavier_normal(ks[1], (E, 4 * H))
    whh0 = xavier_normal(ks[2], (H, 4 * H))
    b0 = jnp.zeros((1, 4 * H), jnp.float32)     # bias_ih + bias_hh (both zero)
    wih1 = xavier_normal(ks[3], (H, 4 * H))
    whh1 = xavier_normal(ks[4], (H, 4 * H))
    b1 = jnp.zeros((1, 4 * H), jnp.float32)

    # output MLP: Linear(H,H) -> ReLU -> Linear(H,V), biases zero
    wout1 = xavier_uniform(ks[5], (H, H))
    bout1 = jnp.zeros((1, H), jnp.float32)
    wout2 = xavier_uniform(ks[6], (H, V))
    bout2 = jnp.zeros((1, V), jnp.float32)

    raw_params = (wih0, whh0, b0, wih1, whh1, b1, wout1, bout1, wout2, bout2)
    return emb, raw_params


def pack_decoder_params(raw_params, embed_size, hidden_size, vocab_size):
    """Fuse [Wih; Whh], pad every hidden/vocab axis to 128 lanes, cast weights
    to bf16 (biases stay f32).  Gate order [i,f,g,o] is preserved, with each
    gate occupying a full 128-lane-aligned Hp block."""
    wih0, whh0, b0, wih1, whh1, b1, wout1, bout1, wout2, bout2 = raw_params
    E, H, V = embed_size, hidden_size, vocab_size
    Ep = _round_up(E, 128)
    Hp = _round_up(H, 128)
    Vp = _round_up(V, 128)

    def pad_gate_cols(w, rows_pad):
        # w: (rows, 4H) -> (rows_pad, 4Hp); gate k's H columns land at k*Hp.
        out = jnp.zeros((rows_pad, 4 * Hp), jnp.float32)
        for k in range(4):
            out = out.at[:w.shape[0], k * Hp:k * Hp + H].set(
                w[:, k * H:(k + 1) * H])
        return out

    def pad2(w, rp, cp):
        return jnp.zeros((rp, cp), jnp.float32).at[
            :w.shape[0], :w.shape[1]].set(w)

    bf16 = jnp.bfloat16
    w0 = jnp.concatenate(
        [pad_gate_cols(wih0, Ep), pad_gate_cols(whh0, Hp)], axis=0).astype(bf16)
    w1 = jnp.concatenate(
        [pad_gate_cols(wih1, Hp), pad_gate_cols(whh1, Hp)], axis=0).astype(bf16)
    b0p = pad_gate_cols(b0, 1)
    b1p = pad_gate_cols(b1, 1)
    wo1 = pad2(wout1, Hp, Hp).astype(bf16)
    bo1 = pad2(bout1, 1, Hp)
    wo2 = pad2(wout2, Hp, Vp).astype(bf16)
    bo2 = pad2(bout2, 1, Vp)
    return (w0, b0p, w1, b1p, wo1, bo1, wo2, bo2)


# ----------------------------------------------------------------------------
# Full forward (glue in JAX + host index math; hot path in Pallas)
# ----------------------------------------------------------------------------
def decoder_forward(features, titles, lengths, emb, kparams,
                    hidden_size, chars_size):
    """
    features: (B, E) f32      titles: (T, B) int32      lengths: (B,) host int
    Returns packed logits (sum(lengths), V) + PackedSequence-style metadata,
    mirroring the PyTorch forward (dropout = eval identity).
    """
    V = chars_size + 2
    title_emb = jnp.take(emb, titles, axis=0)                 # (T, B, E)
    embeddings = jnp.concatenate(
        [features[None, :, :], title_emb], axis=0)            # (T+1, B, E)
    # Dropout(0.5) applied as identity (eval mode).

    logits_full = decoder_lstm_mlp(embeddings, kparams, hidden_size, V)

    T, B = embeddings.shape[0], embeddings.shape[1]

    # pack_padded_sequence(enforce_sorted=False) bookkeeping: indices built on
    # the host from lengths (host metadata); single device-side gather.
    lengths_np = np.asarray(lengths)
    sorted_idx = np.argsort(-lengths_np, kind="stable")
    max_len = int(lengths_np.max())
    batch_sizes = np.array(
        [int((lengths_np > t).sum()) for t in range(max_len)], dtype=np.int64)
    flat_idx = np.concatenate(
        [t * B + sorted_idx[:bs] for t, bs in enumerate(batch_sizes)]
    ).astype(np.int32)
    packed_data = jnp.take(logits_full.reshape(T * B, V),
                           jnp.asarray(flat_idx), axis=0)     # (sum(len), V)

    unsorted_idx = np.argsort(sorted_idx, kind="stable")
    packed = {
        "data": packed_data,
        "batch_sizes": batch_sizes,
        "sorted_indices": sorted_idx,
        "unsorted_indices": unsorted_idx,
    }
    return packed_data, packed


# ----------------------------------------------------------------------------
# Pure-JAX reference of the kernel path (same bf16-matmul / f32-state policy)
# ----------------------------------------------------------------------------
def reference_lstm_mlp(embeddings, raw_params, hidden_size):
    wih0, whh0, b0, wih1, whh1, b1, wout1, bout1, wout2, bout2 = raw_params
    H = hidden_size
    T, B, _ = embeddings.shape

    bf = lambda a: a.astype(jnp.bfloat16)
    mm = lambda a, b: jnp.dot(bf(a), bf(b), preferred_element_type=jnp.float32)

    def cell(x, h, c, wih, whh, b):
        g = mm(x, wih) + mm(h, whh) + b
        i = jax.nn.sigmoid(g[:, :H])
        f = jax.nn.sigmoid(g[:, H:2 * H])
        gg = jnp.tanh(g[:, 2 * H:3 * H])
        o = jax.nn.sigmoid(g[:, 3 * H:])
        cn = f * c + i * gg
        return o * jnp.tanh(cn), cn

    def step(carry, x):
        h0, c0, h1, c1 = carry
        h0, c0 = cell(x, h0, c0, wih0, whh0, b0)
        h1, c1 = cell(h0, h1, c1, wih1, whh1, b1)
        z = jnp.maximum(mm(h1, wout1) + bout1, 0.0)
        return (h0, c0, h1, c1), mm(z, wout2) + bout2

    zeros = jnp.zeros((B, H), jnp.float32)
    _, out = jax.lax.scan(step, (zeros, zeros, zeros, zeros), embeddings)
    return out


if __name__ == "__main__":
    # Small shapes consistent with the module
    chars_size, hidden_size, embed_size = 30, 32, 32
    B, T_titles = 8, 7                       # total sequence length = T_titles + 1

    key = jax.random.PRNGKey(0)
    k_feat, k_title, k_param = jax.random.split(key, 3)

    emb, raw_params = init_params(k_param, chars_size, hidden_size, embed_size)
    kparams = pack_decoder_params(raw_params, embed_size, hidden_size,
                                  chars_size + 2)

    features = jax.random.normal(k_feat, (B, embed_size), jnp.float32)
    titles = jax.random.randint(k_title, (T_titles, B), 0, chars_size + 2,
                                jnp.int32)
    lengths = np.array([8, 7, 6, 5, 5, 4, 3, 2], dtype=np.int64)  # <= T_titles+1

    packed_data, packed = decoder_forward(
        features, titles, lengths, emb, kparams, hidden_size, chars_size)
    jax.block_until_ready(packed_data)

    # Sanity check against pure-JAX reference of the kernel hot path
    title_emb = jnp.take(emb, titles, axis=0)
    embeddings = jnp.concatenate([features[None], title_emb], axis=0)
    ref_full = reference_lstm_mlp(embeddings, raw_params, hidden_size)
    ker_full = decoder_lstm_mlp(embeddings, kparams, hidden_size,
                                chars_size + 2)
    np.testing.assert_allclose(np.asarray(ker_full), np.asarray(ref_full),
                               rtol=1e-2, atol=1e-2)

    assert packed_data.shape == (int(lengths.sum()), chars_size + 2)
    print("KERNEL_OK")
</pallas_src>

<mosaic_0001>
module attributes {stable_mosaic.version = 11 : i64} {
  func.func @kernel(%arg0: i32, %arg1: memref<8x8x128xf32, #tpu.memory_space<vmem>>, %arg2: memref<256x512xbf16, #tpu.memory_space<vmem>>, %arg3: memref<1x512xf32, #tpu.memory_space<vmem>>, %arg4: memref<256x512xbf16, #tpu.memory_space<vmem>>, %arg5: memref<1x512xf32, #tpu.memory_space<vmem>>, %arg6: memref<128x128xbf16, #tpu.memory_space<vmem>>, %arg7: memref<1x128xf32, #tpu.memory_space<vmem>>, %arg8: memref<128x128xbf16, #tpu.memory_space<vmem>>, %arg9: memref<1x128xf32, #tpu.memory_space<vmem>>, %arg10: memref<8x8x128xf32, #tpu.memory_space<vmem>>, %arg11: memref<8x128xf32, #tpu.memory_space<vmem>>, %arg12: memref<8x128xf32, #tpu.memory_space<vmem>>, %arg13: memref<8x128xf32, #tpu.memory_space<vmem>>, %arg14: memref<8x128xf32, #tpu.memory_space<vmem>>) attributes {dimension_semantics = [#tpu.dimension_semantics<arbitrary>], iteration_bounds = array<i64: 1>, scalar_prefetch = 0 : i64, scratch_operands = 4 : i64, tpu.core_type = #tpu.core_type<tc>, window_params = [{transform_indices = @transform_0, window_bounds = array<i64: 8, 8, 128>}, {pipeline_mode = #tpu.pipeline_mode<synchronous>, transform_indices = @transform_1, window_bounds = array<i64: 256, 512>}, {pipeline_mode = #tpu.pipeline_mode<synchronous>, transform_indices = @transform_2, window_bounds = array<i64: 1, 512>}, {pipeline_mode = #tpu.pipeline_mode<synchronous>, transform_indices = @transform_3, window_bounds = array<i64: 256, 512>}, {pipeline_mode = #tpu.pipeline_mode<synchronous>, transform_indices = @transform_4, window_bounds = array<i64: 1, 512>}, {pipeline_mode = #tpu.pipeline_mode<synchronous>, transform_indices = @transform_5, window_bounds = array<i64: 128, 128>}, {pipeline_mode = #tpu.pipeline_mode<synchronous>, transform_indices = @transform_6, window_bounds = array<i64: 1, 128>}, {pipeline_mode = #tpu.pipeline_mode<synchronous>, transform_indices = @transform_7, window_bounds = array<i64: 128, 128>}, {pipeline_mode = #tpu.pipeline_mode<synchronous>, transform_indices = @transform_8, window_bounds = array<i64: 1, 128>}, {transform_indices = @transform_9, window_bounds = array<i64: 8, 8, 128>}]} {
    %c0_i32 = arith.constant 0 : i32
    %0 = arith.cmpi eq, %arg0, %c0_i32 : i32
    %1 = arith.extui %0 : i1 to i32
    %c0_i32_0 = arith.constant 0 : i32
    %2 = arith.cmpi ne, %1, %c0_i32_0 : i32
    scf.if %2 {
      %cst_264 = arith.constant 0.000000e+00 : f32
      %707 = vector.broadcast %cst_264 : f32 to vector<8x128xf32>
      %c0_265 = arith.constant 0 : index
      %c0_266 = arith.constant 0 : index
      %708 = vector.load %arg11[%c0_265, %c0_266] : memref<8x128xf32, #tpu.memory_space<vmem>>, vector<8x128xf32>
      tpu.vector_store %arg11[%c0_265, %c0_266], %707 {strides = array<i32>} : memref<8x128xf32, #tpu.memory_space<vmem>>, vector<8x128xf32>,
      %cst_267 = arith.constant 0.000000e+00 : f32
      %709 = vector.broadcast %cst_267 : f32 to vector<8x128xf32>
      %c0_268 = arith.constant 0 : index
      %c0_269 = arith.constant 0 : index
      %710 = vector.load %arg12[%c0_268, %c0_269] : memref<8x128xf32, #tpu.memory_space<vmem>>, vector<8x128xf32>
      tpu.vector_store %arg12[%c0_268, %c0_269], %709 {strides = array<i32>} : memref<8x128xf32, #tpu.memory_space<vmem>>, vector<8x128xf32>,
      %cst_270 = arith.constant 0.000000e+00 : f32
      %711 = vector.broadcast %cst_270 : f32 to vector<8x128xf32>
      %c0_271 = arith.constant 0 : index
      %c0_272 = arith.constant 0 : index
      %712 = vector.load %arg13[%c0_271, %c0_272] : memref<8x128xf32, #tpu.memory_space<vmem>>, vector<8x128xf32>
      tpu.vector_store %arg13[%c0_271, %c0_272], %711 {strides = array<i32>} : memref<8x128xf32, #tpu.memory_space<vmem>>, vector<8x128xf32>,
      %cst_273 = arith.constant 0.000000e+00 : f32
      %713 = vector.broadcast %cst_273 : f32 to vector<8x128xf32>
      %c0_274 = arith.constant 0 : index
      %c0_275 = arith.constant 0 : index
      %714 = vector.load %arg14[%c0_274, %c0_275] : memref<8x128xf32, #tpu.memory_space<vmem>>, vector<8x128xf32>
      tpu.vector_store %arg14[%c0_274, %c0_275], %713 {strides = array<i32>} : memref<8x128xf32, #tpu.memory_space<vmem>>, vector<8x128xf32>,
    } else {
    }
    %c0 = arith.constant 0 : index
    %c0_1 = arith.constant 0 : index
    %3 = vector.load %arg2[%c0, %c0_1] : memref<256x512xbf16, #tpu.memory_space<vmem>>, vector<256x512xbf16>
    %c0_2 = arith.constant 0 : index
    %c0_3 = arith.constant 0 : index
    %4 = vector.load %arg3[%c0_2, %c0_3] : memref<1x512xf32, #tpu.memory_space<vmem>>, vector<1x512xf32>
    %c0_4 = arith.constant 0 : index
    %c0_5 = arith.constant 0 : index
    %5 = vector.load %arg4[%c0_4, %c0_5] : memref<256x512xbf16, #tpu.memory_space<vmem>>, vector<256x512xbf16>
    %c0_6 = arith.constant 0 : index
    %c0_7 = arith.constant 0 : index
    %6 = vector.load %arg5[%c0_6, %c0_7] : memref<1x512xf32, #tpu.memory_space<vmem>>, vector<1x512xf32>
    %c0_8 = arith.constant 0 : index
    %c0_9 = arith.constant 0 : index
    %7 = vector.load %arg6[%c0_8, %c0_9] : memref<128x128xbf16, #tpu.memory_space<vmem>>, vector<128x128xbf16>
    %c0_10 = arith.constant 0 : index
    %c0_11 = arith.constant 0 : index
    %8 = vector.load %arg7[%c0_10, %c0_11] : memref<1x128xf32, #tpu.memory_space<vmem>>, vector<1x128xf32>
    %c0_12 = arith.constant 0 : index
    %c0_13 = arith.constant 0 : index
    %9 = vector.load %arg8[%c0_12, %c0_13] : memref<128x128xbf16, #tpu.memory_space<vmem>>, vector<128x128xbf16>
    %c0_14 = arith.constant 0 : index
    %c0_15 = arith.constant 0 : index
    %10 = vector.load %arg9[%c0_14, %c0_15] : memref<1x128xf32, #tpu.memory_space<vmem>>, vector<1x128xf32>
    %c0_i32_16 = arith.constant 0 : i32
    %11 = arith.index_cast %c0_i32_16 : i32 to index
    %c0_17 = arith.constant 0 : index
    %c0_18 = arith.constant 0 : index
    %12 = vector.load %arg1[%11, %c0_17, %c0_18] : memref<8x8x128xf32, #tpu.memory_space<vmem>>, vector<1x8x128xf32>
    %13 = vector.shape_cast %12 : vector<1x8x128xf32> to vector<8x128xf32>
    %14 = arith.truncf %13 : vector<8x128xf32> to vector<8x128xbf16>
    %c0_19 = arith.constant 0 : index
    %c0_20 = arith.constant 0 : index
    %15 = vector.load %arg11[%c0_19, %c0_20] : memref<8x128xf32, #tpu.memory_space<vmem>>, vector<8x128xf32>
    %16 = arith.truncf %15 : vector<8x128xf32> to vector<8x128xbf16>
    %17 = tpu.concatenate %14, %16 in 1 : vector<8x128xbf16>, vector<8x128xbf16> -> vector<8x256xbf16>
    %c0_21 = arith.constant 0 : index
    %c0_22 = arith.constant 0 : index
    %18 = vector.load %arg12[%c0_21, %c0_22] : memref<8x128xf32, #tpu.memory_space<vmem>>, vector<8x128xf32>
    %cst = arith.constant dense<0.000000e+00> : vector<8x512xf32>
    %19 = tpu.matmul %17, %3, %cst {dimension_numbers = #tpu.dot_dimension_numbers<[1], [0], [0], [1], [0, 0, 1, 1], [], []>} : vector<8x256xbf16>, vector<256x512xbf16>, vector<8x512xf32> -> vector<8x512xf32>
    %20 = vector.broadcast %4 : vector<1x512xf32> to vector<8x512xf32>
    %21 = arith.addf %19, %20 : vector<8x512xf32>
    %22 = vector.extract_strided_slice %21 {offsets = [0, 0], sizes = [8, 128], strides = [1, 1]} : vector<8x512xf32> to vector<8x128xf32>
    %23 = arith.negf %22 : vector<8x128xf32>
    %24 = math.exp %23 : vector<8x128xf32>
    %cst_23 = arith.constant 1.000000e+00 : f32
    %25 = vector.broadcast %cst_23 : f32 to vector<8x128xf32>
    %26 = arith.addf %25, %24 : vector<8x128xf32>
    %27 = arith.divf %25, %26 : vector<8x128xf32>
    %28 = vector.extract_strided_slice %21 {offsets = [0, 128], sizes = [8, 128], strides = [1, 1]} : vector<8x512xf32> to vector<8x128xf32>
    %29 = arith.negf %28 : vector<8x128xf32>
    %30 = math.exp %29 : vector<8x128xf32>
    %cst_24 = arith.constant 1.000000e+00 : f32
    %31 = vector.broadcast %cst_24 : f32 to vector<8x128xf32>
    %32 = arith.addf %31, %30 : vector<8x128xf32>
    %33 = arith.divf %31, %32 : vector<8x128xf32>
    %34 = vector.extract_strided_slice %21 {offsets = [0, 256], sizes = [8, 128], strides = [1, 1]} : vector<8x512xf32> to vector<8x128xf32>
    %35 = math.tanh %34 : vector<8x128xf32>
    %36 = vector.extract_strided_slice %21 {offsets = [0, 384], sizes = [8, 128], strides = [1, 1]} : vector<8x512xf32> to vector<8x128xf32>
    %37 = arith.negf %36 : vector<8x128xf32>
    %38 = math.exp %37 : vector<8x128xf32>
    %cst_25 = arith.constant 1.000000e+00 : f32
    %39 = vector.broadcast %cst_25 : f32 to vector<8x128xf32>
    %40 = arith.addf %39, %38 : vector<8x128xf32>
    %41 = arith.divf %39, %40 : vector<8x128xf32>
    %42 = arith.mulf %33, %18 : vector<8x128xf32>
    %43 = arith.mulf %27, %35 : vector<8x128xf32>
    %44 = arith.addf %42, %43 : vector<8x128xf32>
    %45 = math.tanh %44 : vector<8x128xf32>
    %46 = arith.mulf %41, %45 : vector<8x128xf32>
    %c0_26 = arith.constant 0 : index
    %c0_27 = arith.constant 0 : index
    %47 = vector.load %arg11[%c0_26, %c0_27] : memref<8x128xf32, #tpu.memory_space<vmem>>, vector<8x128xf32>
    tpu.vector_store %arg11[%c0_26, %c0_27], %46 {strides = array<i32>} : memref<8x128xf32, #tpu.memory_space<vmem>>, vector<8x128xf32>,
    %c0_28 = arith.constant 0 : index
    %c0_29 = arith.constant 0 : index
    %48 = vector.load %arg12[%c0_28, %c0_29] : memref<8x128xf32, #tpu.memory_space<vmem>>, vector<8x128xf32>
    tpu.vector_store %arg12[%c0_28, %c0_29], %44 {strides = array<i32>} : memref<8x128xf32, #tpu.memory_space<vmem>>, vector<8x128xf32>,
    %49 = arith.truncf %46 : vector<8x128xf32> to vector<8x128xbf16>
    %c0_30 = arith.constant 0 : index
    %c0_31 = arith.constant 0 : index
    %50 = vector.load %arg13[%c0_30, %c0_31] : memref<8x128xf32, #tpu.memory_space<vmem>>, vector<8x128xf32>
    %51 = arith.truncf %50 : vector<8x128xf32> to vector<8x128xbf16>
    %52 = tpu.concatenate %49, %51 in 1 : vector<8x128xbf16>, vector<8x128xbf16> -> vector<8x256xbf16>
    %c0_32 = arith.constant 0 : index
    %c0_33 = arith.constant 0 : index
    %53 = vector.load %arg14[%c0_32, %c0_33] : memref<8x128xf32, #tpu.memory_space<vmem>>, vector<8x128xf32>
    %cst_34 = arith.constant dense<0.000000e+00> : vector<8x512xf32>
    %54 = tpu.matmul %52, %5, %cst_34 {dimension_numbers = #tpu.dot_dimension_numbers<[1], [0], [0], [1], [0, 0, 1, 1], [], []>} : vector<8x256xbf16>, vector<256x512xbf16>, vector<8x512xf32> -> vector<8x512xf32>
    %55 = vector.broadcast %6 : vector<1x512xf32> to vector<8x512xf32>
    %56 = arith.addf %54, %55 : vector<8x512xf32>
    %57 = vector.extract_strided_slice %56 {offsets = [0, 0], sizes = [8, 128], strides = [1, 1]} : vector<8x512xf32> to vector<8x128xf32>
    %58 = arith.negf %57 : vector<8x128xf32>
    %59 = math.exp %58 : vector<8x128xf32>
    %cst_35 = arith.constant 1.000000e+00 : f32
    %60 = vector.broadcast %cst_35 : f32 to vector<8x128xf32>
    %61 = arith.addf %60, %59 : vector<8x128xf32>
    %62 = arith.divf %60, %61 : vector<8x128xf32>
    %63 = vector.extract_strided_slice %56 {offsets = [0, 128], sizes = [8, 128], strides = [1, 1]} : vector<8x512xf32> to vector<8x128xf32>
    %64 = arith.negf %63 : vector<8x128xf32>
    %65 = math.exp %64 : vector<8x128xf32>
    %cst_36 = arith.constant 1.000000e+00 : f32
    %66 = vector.broadcast %cst_36 : f32 to vector<8x128xf32>
    %67 = arith.addf %66, %65 : vector<8x128xf32>
    %68 = arith.divf %66, %67 : vector<8x128xf32>
    %69 = vector.extract_strided_slice %56 {offsets = [0, 256], sizes = [8, 128], strides = [1, 1]} : vector<8x512xf32> to vector<8x128xf32>
    %70 = math.tanh %69 : vector<8x128xf32>
    %71 = vector.extract_strided_slice %56 {offsets = [0, 384], sizes = [8, 128], strides = [1, 1]} : vector<8x512xf32> to vector<8x128xf32>
    %72 = arith.negf %71 : vector<8x128xf32>
    %73 = math.exp %72 : vector<8x128xf32>
    %cst_37 = arith.constant 1.000000e+00 : f32
    %74 = vector.broadcast %cst_37 : f32 to vector<8x128xf32>
    %75 = arith.addf %74, %73 : vector<8x128xf32>
    %76 = arith.divf %74, %75 : vector<8x128xf32>
    %77 = arith.mulf %68, %53 : vector<8x128xf32>
    %78 = arith.mulf %62, %70 : vector<8x128xf32>
    %79 = arith.addf %77, %78 : vector<8x128xf32>
    %80 = math.tanh %79 : vector<8x128xf32>
    %81 = arith.mulf %76, %80 : vector<8x128xf32>
    %c0_38 = arith.constant 0 : index
    %c0_39 = arith.constant 0 : index
    %82 = vector.load %arg13[%c0_38, %c0_39] : memref<8x128xf32, #tpu.memory_space<vmem>>, vector<8x128xf32>
    tpu.vector_store %arg13[%c0_38, %c0_39], %81 {strides = array<i32>} : memref<8x128xf32, #tpu.memory_space<vmem>>, vector<8x128xf32>,
    %c0_40 = arith.constant 0 : index
    %c0_41 = arith.constant 0 : index
    %83 = vector.load %arg14[%c0_40, %c0_41] : memref<8x128xf32, #tpu.memory_space<vmem>>, vector<8x128xf32>
    tpu.vector_store %arg14[%c0_40, %c0_41], %79 {strides = array<i32>} : memref<8x128xf32, #tpu.memory_space<vmem>>, vector<8x128xf32>,
    %84 = arith.truncf %81 : vector<8x128xf32> to vector<8x128xbf16>
    %cst_42 = arith.constant dense<0.000000e+00> : vector<8x128xf32>
    %85 = tpu.matmul %84, %7, %cst_42 {dimension_numbers = #tpu.dot_dimension_numbers<[1], [0], [0], [1], [0, 0, 1, 1], [], []>} : vector<8x128xbf16>, vector<128x128xbf16>, vector<8x128xf32> -> vector<8x128xf32>
    %86 = vector.broadcast %8 : vector<1x128xf32> to vector<8x128xf32>
    %87 = arith.addf %85, %86 : vector<8x128xf32>
    %cst_43 = arith.constant 0.000000e+00 : f32
    %88 = vector.broadcast %cst_43 : f32 to vector<8x128xf32>
    %89 = arith.maximumf %87, %88 : vector<8x128xf32>
    %90 = arith.truncf %89 : vector<8x128xf32> to vector<8x128xbf16>
    %cst_44 = arith.constant dense<0.000000e+00> : vector<8x128xf32>
    %91 = tpu.matmul %90, %9, %cst_44 {dimension_numbers = #tpu.dot_dimension_numbers<[1], [0], [0], [1], [0, 0, 1, 1], [], []>} : vector<8x128xbf16>, vector<128x128xbf16>, vector<8x128xf32> -> vector<8x128xf32>
    %92 = vector.broadcast %10 : vector<1x128xf32> to vector<8x128xf32>
    %93 = arith.addf %91, %92 : vector<8x128xf32>
    %94 = arith.index_cast %c0_i32_16 : i32 to index
    %c0_45 = arith.constant 0 : index
    %c0_46 = arith.constant 0 : index
    %95 = vector.load %arg10[%94, %c0_45, %c0_46] : memref<8x8x128xf32, #tpu.memory_space<vmem>>, vector<1x8x128xf32>
    %96 = vector.shape_cast %95 : vector<1x8x128xf32> to vector<8x128xf32>
    %97 = vector.shape_cast %93 : vector<8x128xf32> to vector<1x8x128xf32>
    tpu.vector_store %arg10[%94, %c0_45, %c0_46], %97 {strides = array<i32>} : memref<8x8x128xf32, #tpu.memory_space<vmem>>, vector<1x8x128xf32>,
    %c1_i32 = arith.constant 1 : i32
    %98 = arith.index_cast %c1_i32 : i32 to index
    %c0_47 = arith.constant 0 : index
    %c0_48 = arith.constant 0 : index
    %99 = vector.load %arg1[%98, %c0_47, %c0_48] : memref<8x8x128xf32, #tpu.memory_space<vmem>>, vector<1x8x128xf32>
    %100 = vector.shape_cast %99 : vector<1x8x128xf32> to vector<8x128xf32>
    %101 = arith.truncf %100 : vector<8x128xf32> to vector<8x128xbf16>
    %c0_49 = arith.constant 0 : index
    %c0_50 = arith.constant 0 : index
    %102 = vector.load %arg11[%c0_49, %c0_50] : memref<8x128xf32, #tpu.memory_space<vmem>>, vector<8x128xf32>
    %103 = arith.truncf %102 : vector<8x128xf32> to vector<8x128xbf16>
    %104 = tpu.concatenate %101, %103 in 1 : vector<8x128xbf16>, vector<8x128xbf16> -> vector<8x256xbf16>
    %c0_51 = arith.constant 0 : index
    %c0_52 = arith.constant 0 : index
    %105 = vector.load %arg12[%c0_51, %c0_52] : memref<8x128xf32, #tpu.memory_space<vmem>>, vector<8x128xf32>
    %cst_53 = arith.constant dense<0.000000e+00> : vector<8x512xf32>
    %106 = tpu.matmul %104, %3, %cst_53 {dimension_numbers = #tpu.dot_dimension_numbers<[1], [0], [0], [1], [0, 0, 1, 1], [], []>} : vector<8x256xbf16>, vector<256x512xbf16>, vector<8x512xf32> -> vector<8x512xf32>
    %107 = vector.broadcast %4 : vector<1x512xf32> to vector<8x512xf32>
    %108 = arith.addf %106, %107 : vector<8x512xf32>
    %109 = vector.extract_strided_slice %108 {offsets = [0, 0], sizes = [8, 128], strides = [1, 1]} : vector<8x512xf32> to vector<8x128xf32>
    %110 = arith.negf %109 : vector<8x128xf32>
    %111 = math.exp %110 : vector<8x128xf32>
    %cst_54 = arith.constant 1.000000e+00 : f32
    %112 = vector.broadcast %cst_54 : f32 to vector<8x128xf32>
    %113 = arith.addf %112, %111 : vector<8x128xf32>
    %114 = arith.divf %112, %113 : vector<8x128xf32>
    %115 = vector.extract_strided_slice %108 {offsets = [0, 128], sizes = [8, 128], strides = [1, 1]} : vector<8x512xf32> to vector<8x128xf32>
    %116 = arith.negf %115 : vector<8x128xf32>
    %117 = math.exp %116 : vector<8x128xf32>
    %cst_55 = arith.constant 1.000000e+00 : f32
    %118 = vector.broadcast %cst_55 : f32 to vector<8x128xf32>
    %119 = arith.addf %118, %117 : vector<8x128xf32>
    %120 = arith.divf %118, %119 : vector<8x128xf32>
    %121 = vector.extract_strided_slice %108 {offsets = [0, 256], sizes = [8, 128], strides = [1, 1]} : vector<8x512xf32> to vector<8x128xf32>
    %122 = math.tanh %121 : vector<8x128xf32>
    %123 = vector.extract_strided_slice %108 {offsets = [0, 384], sizes = [8, 128], strides = [1, 1]} : vector<8x512xf32> to vector<8x128xf32>
    %124 = arith.negf %123 : vector<8x128xf32>
    %125 = math.exp %124 : vector<8x128xf32>
    %cst_56 = arith.constant 1.000000e+00 : f32
    %126 = vector.broadcast %cst_56 : f32 to vector<8x128xf32>
    %127 = arith.addf %126, %125 : vector<8x128xf32>
    %128 = arith.divf %126, %127 : vector<8x128xf32>
    %129 = arith.mulf %120, %105 : vector<8x128xf32>
    %130 = arith.mulf %114, %122 : vector<8x128xf32>
    %131 = arith.addf %129, %130 : vector<8x128xf32>
    %132 = math.tanh %131 : vector<8x128xf32>
    %133 = arith.mulf %128, %132 : vector<8x128xf32>
    %c0_57 = arith.constant 0 : index
    %c0_58 = arith.constant 0 : index
    %134 = vector.load %arg11[%c0_57, %c0_58] : memref<8x128xf32, #tpu.memory_space<vmem>>, vector<8x128xf32>
    tpu.vector_store %arg11[%c0_57, %c0_58], %133 {strides = array<i32>} : memref<8x128xf32, #tpu.memory_space<vmem>>, vector<8x128xf32>,
    %c0_59 = arith.constant 0 : index
    %c0_60 = arith.constant 0 : index
    %135 = vector.load %arg12[%c0_59, %c0_60] : memref<8x128xf32, #tpu.memory_space<vmem>>, vector<8x128xf32>
    tpu.vector_store %arg12[%c0_59, %c0_60], %131 {strides = array<i32>} : memref<8x128xf32, #tpu.memory_space<vmem>>, vector<8x128xf32>,
    %136 = arith.truncf %133 : vector<8x128xf32> to vector<8x128xbf16>
    %c0_61 = arith.constant 0 : index
    %c0_62 = arith.constant 0 : index
    %137 = vector.load %arg13[%c0_61, %c0_62] : memref<8x128xf32, #tpu.memory_space<vmem>>, vector<8x128xf32>
    %138 = arith.truncf %137 : vector<8x128xf32> to vector<8x128xbf16>
    %139 = tpu.concatenate %136, %138 in 1 : vector<8x128xbf16>, vector<8x128xbf16> -> vector<8x256xbf16>
    %c0_63 = arith.constant 0 : index
    %c0_64 = arith.constant 0 : index
    %140 = vector.load %arg14[%c0_63, %c0_64] : memref<8x128xf32, #tpu.memory_space<vmem>>, vector<8x128xf32>
    %cst_65 = arith.constant dense<0.000000e+00> : vector<8x512xf32>
    %141 = tpu.matmul %139, %5, %cst_65 {dimension_numbers = #tpu.dot_dimension_numbers<[1], [0], [0], [1], [0, 0, 1, 1], [], []>} : vector<8x256xbf16>, vector<256x512xbf16>, vector<8x512xf32> -> vector<8x512xf32>
    %142 = vector.broadcast %6 : vector<1x512xf32> to vector<8x512xf32>
    %143 = arith.addf %141, %142 : vector<8x512xf32>
    %144 = vector.extract_strided_slice %143 {offsets = [0, 0], sizes = [8, 128], strides = [1, 1]} : vector<8x512xf32> to vector<8x128xf32>
    %145 = arith.negf %144 : vector<8x128xf32>
    %146 = math.exp %145 : vector<8x128xf32>
    %cst_66 = arith.constant 1.000000e+00 : f32
    %147 = vector.broadcast %cst_66 : f32 to vector<8x128xf32>
    %148 = arith.addf %147, %146 : vector<8x128xf32>
    %149 = arith.divf %147, %148 : vector<8x128xf32>
    %150 = vector.extract_strided_slice %143 {offsets = [0, 128], sizes = [8, 128], strides = [1, 1]} : vector<8x512xf32> to vector<8x128xf32>
    %151 = arith.negf %150 : vector<8x128xf32>
    %152 = math.exp %151 : vector<8x128xf32>
    %cst_67 = arith.constant 1.000000e+00 : f32
    %153 = vector.broadcast %cst_67 : f32 to vector<8x128xf32>
    %154 = arith.addf %153, %152 : vector<8x128xf32>
    %155 = arith.divf %153, %154 : vector<8x128xf32>
    %156 = vector.extract_strided_slice %143 {offsets = [0, 256], sizes = [8, 128], strides = [1, 1]} : vector<8x512xf32> to vector<8x128xf32>
    %157 = math.tanh %156 : vector<8x128xf32>
    %158 = vector.extract_strided_slice %143 {offsets = [0, 384], sizes = [8, 128], strides = [1, 1]} : vector<8x512xf32> to vector<8x128xf32>
    %159 = arith.negf %158 : vector<8x128xf32>
    %160 = math.exp %159 : vector<8x128xf32>
    %cst_68 = arith.constant 1.000000e+00 : f32
    %161 = vector.broadcast %cst_68 : f32 to vector<8x128xf32>
    %162 = arith.addf %161, %160 : vector<8x128xf32>
    %163 = arith.divf %161, %162 : vector<8x128xf32>
    %164 = arith.mulf %155, %140 : vector<8x128xf32>
    %165 = arith.mulf %149, %157 : vector<8x128xf32>
    %166 = arith.addf %164, %165 : vector<8x128xf32>
    %167 = math.tanh %166 : vector<8x128xf32>
    %168 = arith.mulf %163, %167 : vector<8x128xf32>
    %c0_69 = arith.constant 0 : index
    %c0_70 = arith.constant 0 : index
    %169 = vector.load %arg13[%c0_69, %c0_70] : memref<8x128xf32, #tpu.memory_space<vmem>>, vector<8x128xf32>
    tpu.vector_store %arg13[%c0_69, %c0_70], %168 {strides = array<i32>} : memref<8x128xf32, #tpu.memory_space<vmem>>, vector<8x128xf32>,
    %c0_71 = arith.constant 0 : index
    %c0_72 = arith.constant 0 : index
    %170 = vector.load %arg14[%c0_71, %c0_72] : memref<8x128xf32, #tpu.memory_space<vmem>>, vector<8x128xf32>
    tpu.vector_store %arg14[%c0_71, %c0_72], %166 {strides = array<i32>} : memref<8x128xf32, #tpu.memory_space<vmem>>, vector<8x128xf32>,
    %171 = arith.truncf %168 : vector<8x128xf32> to vector<8x128xbf16>
    %cst_73 = arith.constant dense<0.000000e+00> : vector<8x128xf32>
    %172 = tpu.matmul %171, %7, %cst_73 {dimension_numbers = #tpu.dot_dimension_numbers<[1], [0], [0], [1], [0, 0, 1, 1], [], []>} : vector<8x128xbf16>, vector<128x128xbf16>, vector<8x128xf32> -> vector<8x128xf32>
    %173 = vector.broadcast %8 : vector<1x128xf32> to vector<8x128xf32>
    %174 = arith.addf %172, %173 : vector<8x128xf32>
    %cst_74 = arith.constant 0.000000e+00 : f32
    %175 = vector.broadcast %cst_74 : f32 to vector<8x128xf32>
    %176 = arith.maximumf %174, %175 : vector<8x128xf32>
    %177 = arith.truncf %176 : vector<8x128xf32> to vector<8x128xbf16>
    %cst_75 = arith.constant dense<0.000000e+00> : vector<8x128xf32>
    %178 = tpu.matmul %177, %9, %cst_75 {dimension_numbers = #tpu.dot_dimension_numbers<[1], [0], [0], [1], [0, 0, 1, 1], [], []>} : vector<8x128xbf16>, vector<128x128xbf16>, vector<8x128xf32> -> vector<8x128xf32>
    %179 = vector.broadcast %10 : vector<1x128xf32> to vector<8x128xf32>
    %180 = arith.addf %178, %179 : vector<8x128xf32>
    %181 = arith.index_cast %c1_i32 : i32 to index
    %c0_76 = arith.constant 0 : index
    %c0_77 = arith.constant 0 : index
    %182 = vector.load %arg10[%181, %c0_76, %c0_77] : memref<8x8x128xf32, #tpu.memory_space<vmem>>, vector<1x8x128xf32>
    %183 = vector.shape_cast %182 : vector<1x8x128xf32> to vector<8x128xf32>
    %184 = vector.shape_cast %180 : vector<8x128xf32> to vector<1x8x128xf32>
    tpu.vector_store %arg10[%181, %c0_76, %c0_77], %184 {strides = array<i32>} : memref<8x8x128xf32, #tpu.memory_space<vmem>>, vector<1x8x128xf32>,
    %c2_i32 = arith.constant 2 : i32
    %185 = arith.index_cast %c2_i32 : i32 to index
    %c0_78 = arith.constant 0 : index
    %c0_79 = arith.constant 0 : index
    %186 = vector.load %arg1[%185, %c0_78, %c0_79] : memref<8x8x128xf32, #tpu.memory_space<vmem>>, vector<1x8x128xf32>
    %187 = vector.shape_cast %186 : vector<1x8x128xf32> to vector<8x128xf32>
    %188 = arith.truncf %187 : vector<8x128xf32> to vector<8x128xbf16>
    %c0_80 = arith.constant 0 : index
    %c0_81 = arith.constant 0 : index
    %189 = vector.load %arg11[%c0_80, %c0_81] : memref<8x128xf32, #tpu.memory_space<vmem>>, vector<8x128xf32>
    %190 = arith.truncf %189 : vector<8x128xf32> to vector<8x128xbf16>
    %191 = tpu.concatenate %188, %190 in 1 : vector<8x128xbf16>, vector<8x128xbf16> -> vector<8x256xbf16>
    %c0_82 = arith.constant 0 : index
    %c0_83 = arith.constant 0 : index
    %192 = vector.load %arg12[%c0_82, %c0_83] : memref<8x128xf32, #tpu.memory_space<vmem>>, vector<8x128xf32>
    %cst_84 = arith.constant dense<0.000000e+00> : vector<8x512xf32>
    %193 = tpu.matmul %191, %3, %cst_84 {dimension_numbers = #tpu.dot_dimension_numbers<[1], [0], [0], [1], [0, 0, 1, 1], [], []>} : vector<8x256xbf16>, vector<256x512xbf16>, vector<8x512xf32> -> vector<8x512xf32>
    %194 = vector.broadcast %4 : vector<1x512xf32> to vector<8x512xf32>
    %195 = arith.addf %193, %194 : vector<8x512xf32>
    %196 = vector.extract_strided_slice %195 {offsets = [0, 0], sizes = [8, 128], strides = [1, 1]} : vector<8x512xf32> to vector<8x128xf32>
    %197 = arith.negf %196 : vector<8x128xf32>
    %198 = math.exp %197 : vector<8x128xf32>
    %cst_85 = arith.constant 1.000000e+00 : f32
    %199 = vector.broadcast %cst_85 : f32 to vector<8x128xf32>
    %200 = arith.addf %199, %198 : vector<8x128xf32>
    %201 = arith.divf %199, %200 : vector<8x128xf32>
    %202 = vector.extract_strided_slice %195 {offsets = [0, 128], sizes = [8, 128], strides = [1, 1]} : vector<8x512xf32> to vector<8x128xf32>
    %203 = arith.negf %202 : vector<8x128xf32>
    %204 = math.exp %203 : vector<8x128xf32>
    %cst_86 = arith.constant 1.000000e+00 : f32
    %205 = vector.broadcast %cst_86 : f32 to vector<8x128xf32>
    %206 = arith.addf %205, %204 : vector<8x128xf32>
    %207 = arith.divf %205, %206 : vector<8x128xf32>
    %208 = vector.extract_strided_slice %195 {offsets = [0, 256], sizes = [8, 128], strides = [1, 1]} : vector<8x512xf32> to vector<8x128xf32>
    %209 = math.tanh %208 : vector<8x128xf32>
    %210 = vector.extract_strided_slice %195 {offsets = [0, 384], sizes = [8, 128], strides = [1, 1]} : vector<8x512xf32> to vector<8x128xf32>
    %211 = arith.negf %210 : vector<8x128xf32>
    %212 = math.exp %211 : vector<8x128xf32>
    %cst_87 = arith.constant 1.000000e+00 : f32
    %213 = vector.broadcast %cst_87 : f32 to vector<8x128xf32>
    %214 = arith.addf %213, %212 : vector<8x128xf32>
    %215 = arith.divf %213, %214 : vector<8x128xf32>
    %216 = arith.mulf %207, %192 : vector<8x128xf32>
    %217 = arith.mulf %201, %209 : vector<8x128xf32>
    %218 = arith.addf %216, %217 : vector<8x128xf32>
    %219 = math.tanh %218 : vector<8x128xf32>
    %220 = arith.mulf %215, %219 : vector<8x128xf32>
    %c0_88 = arith.constant 0 : index
    %c0_89 = arith.constant 0 : index
    %221 = vector.load %arg11[%c0_88, %c0_89] : memref<8x128xf32, #tpu.memory_space<vmem>>, vector<8x128xf32>
    tpu.vector_store %arg11[%c0_88, %c0_89], %220 {strides = array<i32>} : memref<8x128xf32, #tpu.memory_space<vmem>>, vector<8x128xf32>,
    %c0_90 = arith.constant 0 : index
    %c0_91 = arith.constant 0 : index
    %222 = vector.load %arg12[%c0_90, %c0_91] : memref<8x128xf32, #tpu.memory_space<vmem>>, vector<8x128xf32>
    tpu.vector_store %arg12[%c0_90, %c0_91], %218 {strides = array<i32>} : memref<8x128xf32, #tpu.memory_space<vmem>>, vector<8x128xf32>,
    %223 = arith.truncf %220 : vector<8x128xf32> to vector<8x128xbf16>
    %c0_92 = arith.constant 0 : index
    %c0_93 = arith.constant 0 : index
    %224 = vector.load %arg13[%c0_92, %c0_93] : memref<8x128xf32, #tpu.memory_space<vmem>>, vector<8x128xf32>
    %225 = arith.truncf %224 : vector<8x128xf32> to vector<8x128xbf16>
    %226 = tpu.concatenate %223, %225 in 1 : vector<8x128xbf16>, vector<8x128xbf16> -> vector<8x256xbf16>
    %c0_94 = arith.constant 0 : index
    %c0_95 = arith.constant 0 : index
    %227 = vector.load %arg14[%c0_94, %c0_95] : memref<8x128xf32, #tpu.memory_space<vmem>>, vector<8x128xf32>
    %cst_96 = arith.constant dense<0.000000e+00> : vector<8x512xf32>
    %228 = tpu.matmul %226, %5, %cst_96 {dimension_numbers = #tpu.dot_dimension_numbers<[1], [0], [0], [1], [0, 0, 1, 1], [], []>} : vector<8x256xbf16>, vector<256x512xbf16>, vector<8x512xf32> -> vector<8x512xf32>
    %229 = vector.broadcast %6 : vector<1x512xf32> to vector<8x512xf32>
    %230 = arith.addf %228, %229 : vector<8x512xf32>
    %231 = vector.extract_strided_slice %230 {offsets = [0, 0], sizes = [8, 128], strides = [1, 1]} : vector<8x512xf32> to vector<8x128xf32>
    %232 = arith.negf %231 : vector<8x128xf32>
    %233 = math.exp %232 : vector<8x128xf32>
    %cst_97 = arith.constant 1.000000e+00 : f32
    %234 = vector.broadcast %cst_97 : f32 to vector<8x128xf32>
    %235 = arith.addf %234, %233 : vector<8x128xf32>
    %236 = arith.divf %234, %235 : vector<8x128xf32>
    %237 = vector.extract_strided_slice %230 {offsets = [0, 128], sizes = [8, 128], strides = [1, 1]} : vector<8x512xf32> to vector<8x128xf32>
    %238 = arith.negf %237 : vector<8x128xf32>
    %239 = math.exp %238 : vector<8x128xf32>
    %cst_98 = arith.constant 1.000000e+00 : f32
    %240 = vector.broadcast %cst_98 : f32 to vector<8x128xf32>
    %241 = arith.addf %240, %239 : vector<8x128xf32>
    %242 = arith.divf %240, %241 : vector<8x128xf32>
    %243 = vector.extract_strided_slice %230 {offsets = [0, 256], sizes = [8, 128], strides = [1, 1]} : vector<8x512xf32> to vector<8x128xf32>
    %244 = math.tanh %243 : vector<8x128xf32>
    %245 = vector.extract_strided_slice %230 {offsets = [0, 384], sizes = [8, 128], strides = [1, 1]} : vector<8x512xf32> to vector<8x128xf32>
    %246 = arith.negf %245 : vector<8x128xf32>
    %247 = math.exp %246 : vector<8x128xf32>
    %cst_99 = arith.constant 1.000000e+00 : f32
    %248 = vector.broadcast %cst_99 : f32 to vector<8x128xf32>
    %249 = arith.addf %248, %247 : vector<8x128xf32>
    %250 = arith.divf %248, %249 : vector<8x128xf32>
    %251 = arith.mulf %242, %227 : vector<8x128xf32>
    %252 = arith.mulf %236, %244 : vector<8x128xf32>
    %253 = arith.addf %251, %252 : vector<8x128xf32>
    %254 = math.tanh %253 : vector<8x128xf32>
    %255 = arith.mulf %250, %254 : vector<8x128xf32>
    %c0_100 = arith.constant 0 : index
    %c0_101 = arith.constant 0 : index
    %256 = vector.load %arg13[%c0_100, %c0_101] : memref<8x128xf32, #tpu.memory_space<vmem>>, vector<8x128xf32>
    tpu.vector_store %arg13[%c0_100, %c0_101], %255 {strides = array<i32>} : memref<8x128xf32, #tpu.memory_space<vmem>>, vector<8x128xf32>,
    %c0_102 = arith.constant 0 : index
    %c0_103 = arith.constant 0 : index
    %257 = vector.load %arg14[%c0_102, %c0_103] : memref<8x128xf32, #tpu.memory_space<vmem>>, vector<8x128xf32>
    tpu.vector_store %arg14[%c0_102, %c0_103], %253 {strides = array<i32>} : memref<8x128xf32, #tpu.memory_space<vmem>>, vector<8x128xf32>,
    %258 = arith.truncf %255 : vector<8x128xf32> to vector<8x128xbf16>
    %cst_104 = arith.constant dense<0.000000e+00> : vector<8x128xf32>
    %259 = tpu.matmul %258, %7, %cst_104 {dimension_numbers = #tpu.dot_dimension_numbers<[1], [0], [0], [1], [0, 0, 1, 1], [], []>} : vector<8x128xbf16>, vector<128x128xbf16>, vector<8x128xf32> -> vector<8x128xf32>
    %260 = vector.broadcast %8 : vector<1x128xf32> to vector<8x128xf32>
    %261 = arith.addf %259, %260 : vector<8x128xf32>
    %cst_105 = arith.constant 0.000000e+00 : f32
    %262 = vector.broadcast %cst_105 : f32 to vector<8x128xf32>
    %263 = arith.maximumf %261, %262 : vector<8x128xf32>
    %264 = arith.truncf %263 : vector<8x128xf32> to vector<8x128xbf16>
    %cst_106 = arith.constant dense<0.000000e+00> : vector<8x128xf32>
    %265 = tpu.matmul %264, %9, %cst_106 {dimension_numbers = #tpu.dot_dimension_numbers<[1], [0], [0], [1], [0, 0, 1, 1], [], []>} : vector<8x128xbf16>, vector<128x128xbf16>, vector<8x128xf32> -> vector<8x128xf32>
    %266 = vector.broadcast %10 : vector<1x128xf32> to vector<8x128xf32>
    %267 = arith.addf %265, %266 : vector<8x128xf32>
    %268 = arith.index_cast %c2_i32 : i32 to index
    %c0_107 = arith.constant 0 : index
    %c0_108 = arith.constant 0 : index
    %269 = vector.load %arg10[%268, %c0_107, %c0_108] : memref<8x8x128xf32, #tpu.memory_space<vmem>>, vector<1x8x128xf32>
    %270 = vector.shape_cast %269 : vector<1x8x128xf32> to vector<8x128xf32>
    %271 = vector.shape_cast %267 : vector<8x128xf32> to vector<1x8x128xf32>
    tpu.vector_store %arg10[%268, %c0_107, %c0_108], %271 {strides = array<i32>} : memref<8x8x128xf32, #tpu.memory_space<vmem>>, vector<1x8x128xf32>,
    %c3_i32 = arith.constant 3 : i32
    %272 = arith.index_cast %c3_i32 : i32 to index
    %c0_109 = arith.constant 0 : index
    %c0_110 = arith.constant 0 : index
    %273 = vector.load %arg1[%272, %c0_109, %c0_110] : memref<8x8x128xf32, #tpu.memory_space<vmem>>, vector<1x8x128xf32>
    %274 = vector.shape_cast %273 : vector<1x8x128xf32> to vector<8x128xf32>
    %275 = arith.truncf %274 : vector<8x128xf32> to vector<8x128xbf16>
    %c0_111 = arith.constant 0 : index
    %c0_112 = arith.constant 0 : index
    %276 = vector.load %arg11[%c0_111, %c0_112] : memref<8x128xf32, #tpu.memory_space<vmem>>, vector<8x128xf32>
    %277 = arith.truncf %276 : vector<8x128xf32> to vector<8x128xbf16>
    %278 = tpu.concatenate %275, %277 in 1 : vector<8x128xbf16>, vector<8x128xbf16> -> vector<8x256xbf16>
    %c0_113 = arith.constant 0 : index
    %c0_114 = arith.constant 0 : index
    %279 = vector.load %arg12[%c0_113, %c0_114] : memref<8x128xf32, #tpu.memory_space<vmem>>, vector<8x128xf32>
    %cst_115 = arith.constant dense<0.000000e+00> : vector<8x512xf32>
    %280 = tpu.matmul %278, %3, %cst_115 {dimension_numbers = #tpu.dot_dimension_numbers<[1], [0], [0], [1], [0, 0, 1, 1], [], []>} : vector<8x256xbf16>, vector<256x512xbf16>, vector<8x512xf32> -> vector<8x512xf32>
    %281 = vector.broadcast %4 : vector<1x512xf32> to vector<8x512xf32>
    %282 = arith.addf %280, %281 : vector<8x512xf32>
    %283 = vector.extract_strided_slice %282 {offsets = [0, 0], sizes = [8, 128], strides = [1, 1]} : vector<8x512xf32> to vector<8x128xf32>
    %284 = arith.negf %283 : vector<8x128xf32>
    %285 = math.exp %284 : vector<8x128xf32>
    %cst_116 = arith.constant 1.000000e+00 : f32
    %286 = vector.broadcast %cst_116 : f32 to vector<8x128xf32>
    %287 = arith.addf %286, %285 : vector<8x128xf32>
    %288 = arith.divf %286, %287 : vector<8x128xf32>
    %289 = vector.extract_strided_slice %282 {offsets = [0, 128], sizes = [8, 128], strides = [1, 1]} : vector<8x512xf32> to vector<8x128xf32>
    %290 = arith.negf %289 : vector<8x128xf32>
    %291 = math.exp %290 : vector<8x128xf32>
    %cst_117 = arith.constant 1.000000e+00 : f32
    %292 = vector.broadcast %cst_117 : f32 to vector<8x128xf32>
    %293 = arith.addf %292, %291 : vector<8x128xf32>
    %294 = arith.divf %292, %293 : vector<8x128xf32>
    %295 = vector.extract_strided_slice %282 {offsets = [0, 256], sizes = [8, 128], strides = [1, 1]} : vector<8x512xf32> to vector<8x128xf32>
    %296 = math.tanh %295 : vector<8x128xf32>
    %297 = vector.extract_strided_slice %282 {offsets = [0, 384], sizes = [8, 128], strides = [1, 1]} : vector<8x512xf32> to vector<8x128xf32>
    %298 = arith.negf %297 : vector<8x128xf32>
    %299 = math.exp %298 : vector<8x128xf32>
    %cst_118 = arith.constant 1.000000e+00 : f32
    %300 = vector.broadcast %cst_118 : f32 to vector<8x128xf32>
    %301 = arith.addf %300, %299 : vector<8x128xf32>
    %302 = arith.divf %300, %301 : vector<8x128xf32>
    %303 = arith.mulf %294, %279 : vector<8x128xf32>
    %304 = arith.mulf %288, %296 : vector<8x128xf32>
    %305 = arith.addf %303, %304 : vector<8x128xf32>
    %306 = math.tanh %305 : vector<8x128xf32>
    %307 = arith.mulf %302, %306 : vector<8x128xf32>
    %c0_119 = arith.constant 0 : index
    %c0_120 = arith.constant 0 : index
    %308 = vector.load %arg11[%c0_119, %c0_120] : memref<8x128xf32, #tpu.memory_space<vmem>>, vector<8x128xf32>
    tpu.vector_store %arg11[%c0_119, %c0_120], %307 {strides = array<i32>} : memref<8x128xf32, #tpu.memory_space<vmem>>, vector<8x128xf32>,
    %c0_121 = arith.constant 0 : index
    %c0_122 = arith.constant 0 : index
    %309 = vector.load %arg12[%c0_121, %c0_122] : memref<8x128xf32, #tpu.memory_space<vmem>>, vector<8x128xf32>
    tpu.vector_store %arg12[%c0_121, %c0_122], %305 {strides = array<i32>} : memref<8x128xf32, #tpu.memory_space<vmem>>, vector<8x128xf32>,
    %310 = arith.truncf %307 : vector<8x128xf32> to vector<8x128xbf16>
    %c0_123 = arith.constant 0 : index
    %c0_124 = arith.constant 0 : index
    %311 = vector.load %arg13[%c0_123, %c0_124] : memref<8x128xf32, #tpu.memory_space<vmem>>, vector<8x128xf32>
    %312 = arith.truncf %311 : vector<8x128xf32> to vector<8x128xbf16>
    %313 = tpu.concatenate %310, %312 in 1 : vector<8x128xbf16>, vector<8x128xbf16> -> vector<8x256xbf16>
    %c0_125 = arith.constant 0 : index
    %c0_126 = arith.constant 0 : index
    %314 = vector.load %arg14[%c0_125, %c0_126] : memref<8x128xf32, #tpu.memory_space<vmem>>, vector<8x128xf32>
    %cst_127 = arith.constant dense<0.000000e+00> : vector<8x512xf32>
    %315 = tpu.matmul %313, %5, %cst_127 {dimension_numbers = #tpu.dot_dimension_numbers<[1], [0], [0], [1], [0, 0, 1, 1], [], []>} : vector<8x256xbf16>, vector<256x512xbf16>, vector<8x512xf32> -> vector<8x512xf32>
    %316 = vector.broadcast %6 : vector<1x512xf32> to vector<8x512xf32>
    %317 = arith.addf %315, %316 : vector<8x512xf32>
    %318 = vector.extract_strided_slice %317 {offsets = [0, 0], sizes = [8, 128], strides = [1, 1]} : vector<8x512xf32> to vector<8x128xf32>
    %319 = arith.negf %318 : vector<8x128xf32>
    %320 = math.exp %319 : vector<8x128xf32>
    %cst_128 = arith.constant 1.000000e+00 : f32
    %321 = vector.broadcast %cst_128 : f32 to vector<8x128xf32>
    %322 = arith.addf %321, %320 : vector<8x128xf32>
    %323 = arith.divf %321, %322 : vector<8x128xf32>
    %324 = vector.extract_strided_slice %317 {offsets = [0, 128], sizes = [8, 128], strides = [1, 1]} : vector<8x512xf32> to vector<8x128xf32>
    %325 = arith.negf %324 : vector<8x128xf32>
    %326 = math.exp %325 : vector<8x128xf32>
    %cst_129 = arith.constant 1.000000e+00 : f32
    %327 = vector.broadcast %cst_129 : f32 to vector<8x128xf32>
    %328 = arith.addf %327, %326 : vector<8x128xf32>
    %329 = arith.divf %327, %328 : vector<8x128xf32>
    %330 = vector.extract_strided_slice %317 {offsets = [0, 256], sizes = [8, 128], strides = [1, 1]} : vector<8x512xf32> to vector<8x128xf32>
    %331 = math.tanh %330 : vector<8x128xf32>
    %332 = vector.extract_strided_slice %317 {offsets = [0, 384], sizes = [8, 128], strides = [1, 1]} : vector<8x512xf32> to vector<8x128xf32>
    %333 = arith.negf %332 : vector<8x128xf32>
    %334 = math.exp %333 : vector<8x128xf32>
    %cst_130 = arith.constant 1.000000e+00 : f32
    %335 = vector.broadcast %cst_130 : f32 to vector<8x128xf32>
    %336 = arith.addf %335, %334 : vector<8x128xf32>
    %337 = arith.divf %335, %336 : vector<8x128xf32>
    %338 = arith.mulf %329, %314 : vector<8x128xf32>
    %339 = arith.mulf %323, %331 : vector<8x128xf32>
    %340 = arith.addf %338, %339 : vector<8x128xf32>
    %341 = math.tanh %340 : vector<8x128xf32>
    %342 = arith.mulf %337, %341 : vector<8x128xf32>
    %c0_131 = arith.constant 0 : index
    %c0_132 = arith.constant 0 : index
    %343 = vector.load %arg13[%c0_131, %c0_132] : memref<8x128xf32, #tpu.memory_space<vmem>>, vector<8x128xf32>
    tpu.vector_store %arg13[%c0_131, %c0_132], %342 {strides = array<i32>} : memref<8x128xf32, #tpu.memory_space<vmem>>, vector<8x128xf32>,
    %c0_133 = arith.constant 0 : index
    %c0_134 = arith.constant 0 : index
    %344 = vector.load %arg14[%c0_133, %c0_134] : memref<8x128xf32, #tpu.memory_space<vmem>>, vector<8x128xf32>
    tpu.vector_store %arg14[%c0_133, %c0_134], %340 {strides = array<i32>} : memref<8x128xf32, #tpu.memory_space<vmem>>, vector<8x128xf32>,
    %345 = arith.truncf %342 : vector<8x128xf32> to vector<8x128xbf16>
    %cst_135 = arith.constant dense<0.000000e+00> : vector<8x128xf32>
    %346 = tpu.matmul %345, %7, %cst_135 {dimension_numbers = #tpu.dot_dimension_numbers<[1], [0], [0], [1], [0, 0, 1, 1], [], []>} : vector<8x128xbf16>, vector<128x128xbf16>, vector<8x128xf32> -> vector<8x128xf32>
    %347 = vector.broadcast %8 : vector<1x128xf32> to vector<8x128xf32>
    %348 = arith.addf %346, %347 : vector<8x128xf32>
    %cst_136 = arith.constant 0.000000e+00 : f32
    %349 = vector.broadcast %cst_136 : f32 to vector<8x128xf32>
    %350 = arith.maximumf %348, %349 : vector<8x128xf32>
    %351 = arith.truncf %350 : vector<8x128xf32> to vector<8x128xbf16>
    %cst_137 = arith.constant dense<0.000000e+00> : vector<8x128xf32>
    %352 = tpu.matmul %351, %9, %cst_137 {dimension_numbers = #tpu.dot_dimension_numbers<[1], [0], [0], [1], [0, 0, 1, 1], [], []>} : vector<8x128xbf16>, vector<128x128xbf16>, vector<8x128xf32> -> vector<8x128xf32>
    %353 = vector.broadcast %10 : vector<1x128xf32> to vector<8x128xf32>
    %354 = arith.addf %352, %353 : vector<8x128xf32>
    %355 = arith.index_cast %c3_i32 : i32 to index
    %c0_138 = arith.constant 0 : index
    %c0_139 = arith.constant 0 : index
    %356 = vector.load %arg10[%355, %c0_138, %c0_139] : memref<8x8x128xf32, #tpu.memory_space<vmem>>, vector<1x8x128xf32>
    %357 = vector.shape_cast %356 : vector<1x8x128xf32> to vector<8x128xf32>
    %358 = vector.shape_cast %354 : vector<8x128xf32> to vector<1x8x128xf32>
    tpu.vector_store %arg10[%355, %c0_138, %c0_139], %358 {strides = array<i32>} : memref<8x8x128xf32, #tpu.memory_space<vmem>>, vector<1x8x128xf32>,
    %c4_i32 = arith.constant 4 : i32
    %359 = arith.index_cast %c4_i32 : i32 to index
    %c0_140 = arith.constant 0 : index
    %c0_141 = arith.constant 0 : index
    %360 = vector.load %arg1[%359, %c0_140, %c0_141] : memref<8x8x128xf32, #tpu.memory_space<vmem>>, vector<1x8x128xf32>
    %361 = vector.shape_cast %360 : vector<1x8x128xf32> to vector<8x128xf32>
    %362 = arith.truncf %361 : vector<8x128xf32> to vector<8x128xbf16>
    %c0_142 = arith.constant 0 : index
    %c0_143 = arith.constant 0 : index
    %363 = vector.load %arg11[%c0_142, %c0_143] : memref<8x128xf32, #tpu.memory_space<vmem>>, vector<8x128xf32>
    %364 = arith.truncf %363 : vector<8x128xf32> to vector<8x128xbf16>
    %365 = tpu.concatenate %362, %364 in 1 : vector<8x128xbf16>, vector<8x128xbf16> -> vector<8x256xbf16>
    %c0_144 = arith.constant 0 : index
    %c0_145 = arith.constant 0 : index
    %366 = vector.load %arg12[%c0_144, %c0_145] : memref<8x128xf32, #tpu.memory_space<vmem>>, vector<8x128xf32>
    %cst_146 = arith.constant dense<0.000000e+00> : vector<8x512xf32>
    %367 = tpu.matmul %365, %3, %cst_146 {dimension_numbers = #tpu.dot_dimension_numbers<[1], [0], [0], [1], [0, 0, 1, 1], [], []>} : vector<8x256xbf16>, vector<256x512xbf16>, vector<8x512xf32> -> vector<8x512xf32>
    %368 = vector.broadcast %4 : vector<1x512xf32> to vector<8x512xf32>
    %369 = arith.addf %367, %368 : vector<8x512xf32>
    %370 = vector.extract_strided_slice %369 {offsets = [0, 0], sizes = [8, 128], strides = [1, 1]} : vector<8x512xf32> to vector<8x128xf32>
    %371 = arith.negf %370 : vector<8x128xf32>
    %372 = math.exp %371 : vector<8x128xf32>
    %cst_147 = arith.constant 1.000000e+00 : f32
    %373 = vector.broadcast %cst_147 : f32 to vector<8x128xf32>
    %374 = arith.addf %373, %372 : vector<8x128xf32>
    %375 = arith.divf %373, %374 : vector<8x128xf32>
    %376 = vector.extract_strided_slice %369 {offsets = [0, 128], sizes = [8, 128], strides = [1, 1]} : vector<8x512xf32> to vector<8x128xf32>
    %377 = arith.negf %376 : vector<8x128xf32>
    %378 = math.exp %377 : vector<8x128xf32>
    %cst_148 = arith.constant 1.000000e+00 : f32
    %379 = vector.broadcast %cst_148 : f32 to vector<8x128xf32>
    %380 = arith.addf %379, %378 : vector<8x128xf32>
    %381 = arith.divf %379, %380 : vector<8x128xf32>
    %382 = vector.extract_strided_slice %369 {offsets = [0, 256], sizes = [8, 128], strides = [1, 1]} : vector<8x512xf32> to vector<8x128xf32>
    %383 = math.tanh %382 : vector<8x128xf32>
    %384 = vector.extract_strided_slice %369 {offsets = [0, 384], sizes = [8, 128], strides = [1, 1]} : vector<8x512xf32> to vector<8x128xf32>
    %385 = arith.negf %384 : vector<8x128xf32>
    %386 = math.exp %385 : vector<8x128xf32>
    %cst_149 = arith.constant 1.000000e+00 : f32
    %387 = vector.broadcast %cst_149 : f32 to vector<8x128xf32>
    %388 = arith.addf %387, %386 : vector<8x128xf32>
    %389 = arith.divf %387, %388 : vector<8x128xf32>
    %390 = arith.mulf %381, %366 : vector<8x128xf32>
    %391 = arith.mulf %375, %383 : vector<8x128xf32>
    %392 = arith.addf %390, %391 : vector<8x128xf32>
    %393 = math.tanh %392 : vector<8x128xf32>
    %394 = arith.mulf %389, %393 : vector<8x128xf32>
    %c0_150 = arith.constant 0 : index
    %c0_151 = arith.constant 0 : index
    %395 = vector.load %arg11[%c0_150, %c0_151] : memref<8x128xf32, #tpu.memory_space<vmem>>, vector<8x128xf32>
    tpu.vector_store %arg11[%c0_150, %c0_151], %394 {strides = array<i32>} : memref<8x128xf32, #tpu.memory_space<vmem>>, vector<8x128xf32>,
    %c0_152 = arith.constant 0 : index
    %c0_153 = arith.constant 0 : index
    %396 = vector.load %arg12[%c0_152, %c0_153] : memref<8x128xf32, #tpu.memory_space<vmem>>, vector<8x128xf32>
    tpu.vector_store %arg12[%c0_152, %c0_153], %392 {strides = array<i32>} : memref<8x128xf32, #tpu.memory_space<vmem>>, vector<8x128xf32>,
    %397 = arith.truncf %394 : vector<8x128xf32> to vector<8x128xbf16>
    %c0_154 = arith.constant 0 : index
    %c0_155 = arith.constant 0 : index
    %398 = vector.load %arg13[%c0_154, %c0_155] : memref<8x128xf32, #tpu.memory_space<vmem>>, vector<8x128xf32>
    %399 = arith.truncf %398 : vector<8x128xf32> to vector<8x128xbf16>
    %400 = tpu.concatenate %397, %399 in 1 : vector<8x128xbf16>, vector<8x128xbf16> -> vector<8x256xbf16>
    %c0_156 = arith.constant 0 : index
    %c0_157 = arith.constant 0 : index
    %401 = vector.load %arg14[%c0_156, %c0_157] : memref<8x128xf32, #tpu.memory_space<vmem>>, vector<8x128xf32>
    %cst_158 = arith.constant dense<0.000000e+00> : vector<8x512xf32>
    %402 = tpu.matmul %400, %5, %cst_158 {dimension_numbers = #tpu.dot_dimension_numbers<[1], [0], [0], [1], [0, 0, 1, 1], [], []>} : vector<8x256xbf16>, vector<256x512xbf16>, vector<8x512xf32> -> vector<8x512xf32>
    %403 = vector.broadcast %6 : vector<1x512xf32> to vector<8x512xf32>
    %404 = arith.addf %402, %403 : vector<8x512xf32>
    %405 = vector.extract_strided_slice %404 {offsets = [0, 0], sizes = [8, 128], strides = [1, 1]} : vector<8x512xf32> to vector<8x128xf32>
    %406 = arith.negf %405 : vector<8x128xf32>
    %407 = math.exp %406 : vector<8x128xf32>
    %cst_159 = arith.constant 1.000000e+00 : f32
    %408 = vector.broadcast %cst_159 : f32 to vector<8x128xf32>
    %409 = arith.addf %408, %407 : vector<8x128xf32>
    %410 = arith.divf %408, %409 : vector<8x128xf32>
    %411 = vector.extract_strided_slice %404 {offsets = [0, 128], sizes = [8, 128], strides = [1, 1]} : vector<8x512xf32> to vector<8x128xf32>
    %412 = arith.negf %411 : vector<8x128xf32>
    %413 = math.exp %412 : vector<8x128xf32>
    %cst_160 = arith.constant 1.000000e+00 : f32
    %414 = vector.broadcast %cst_160 : f32 to vector<8x128xf32>
    %415 = arith.addf %414, %413 : vector<8x128xf32>
    %416 = arith.divf %414, %415 : vector<8x128xf32>
    %417 = vector.extract_strided_slice %404 {offsets = [0, 256], sizes = [8, 128], strides = [1, 1]} : vector<8x512xf32> to vector<8x128xf32>
    %418 = math.tanh %417 : vector<8x128xf32>
    %419 = vector.extract_strided_slice %404 {offsets = [0, 384], sizes = [8, 128], strides = [1, 1]} : vector<8x512xf32> to vector<8x128xf32>
    %420 = arith.negf %419 : vector<8x128xf32>
    %421 = math.exp %420 : vector<8x128xf32>
    %cst_161 = arith.constant 1.000000e+00 : f32
    %422 = vector.broadcast %cst_161 : f32 to vector<8x128xf32>
    %423 = arith.addf %422, %421 : vector<8x128xf32>
    %424 = arith.divf %422, %423 : vector<8x128xf32>
    %425 = arith.mulf %416, %401 : vector<8x128xf32>
    %426 = arith.mulf %410, %418 : vector<8x128xf32>
    %427 = arith.addf %425, %426 : vector<8x128xf32>
    %428 = math.tanh %427 : vector<8x128xf32>
    %429 = arith.mulf %424, %428 : vector<8x128xf32>
    %c0_162 = arith.constant 0 : index
    %c0_163 = arith.constant 0 : index
    %430 = vector.load %arg13[%c0_162, %c0_163] : memref<8x128xf32, #tpu.memory_space<vmem>>, vector<8x128xf32>
    tpu.vector_store %arg13[%c0_162, %c0_163], %429 {strides = array<i32>} : memref<8x128xf32, #tpu.memory_space<vmem>>, vector<8x128xf32>,
    %c0_164 = arith.constant 0 : index
    %c0_165 = arith.constant 0 : index
    %431 = vector.load %arg14[%c0_164, %c0_165] : memref<8x128xf32, #tpu.memory_space<vmem>>, vector<8x128xf32>
    tpu.vector_store %arg14[%c0_164, %c0_165], %427 {strides = array<i32>} : memref<8x128xf32, #tpu.memory_space<vmem>>, vector<8x128xf32>,
    %432 = arith.truncf %429 : vector<8x128xf32> to vector<8x128xbf16>
    %cst_166 = arith.constant dense<0.000000e+00> : vector<8x128xf32>
    %433 = tpu.matmul %432, %7, %cst_166 {dimension_numbers = #tpu.dot_dimension_numbers<[1], [0], [0], [1], [0, 0, 1, 1], [], []>} : vector<8x128xbf16>, vector<128x128xbf16>, vector<8x128xf32> -> vector<8x128xf32>
    %434 = vector.broadcast %8 : vector<1x128xf32> to vector<8x128xf32>
    %435 = arith.addf %433, %434 : vector<8x128xf32>
    %cst_167 = arith.constant 0.000000e+00 : f32
    %436 = vector.broadcast %cst_167 : f32 to vector<8x128xf32>
    %437 = arith.maximumf %435, %436 : vector<8x128xf32>
    %438 = arith.truncf %437 : vector<8x128xf32> to vector<8x128xbf16>
    %cst_168 = arith.constant dense<0.000000e+00> : vector<8x128xf32>
    %439 = tpu.matmul %438, %9, %cst_168 {dimension_numbers = #tpu.dot_dimension_numbers<[1], [0], [0], [1], [0, 0, 1, 1], [], []>} : vector<8x128xbf16>, vector<128x128xbf16>, vector<8x128xf32> -> vector<8x128xf32>
    %440 = vector.broadcast %10 : vector<1x128xf32> to vector<8x128xf32>
    %441 = arith.addf %439, %440 : vector<8x128xf32>
    %442 = arith.index_cast %c4_i32 : i32 to index
    %c0_169 = arith.constant 0 : index
    %c0_170 = arith.constant 0 : index
    %443 = vector.load %arg10[%442, %c0_169, %c0_170] : memref<8x8x128xf32, #tpu.memory_space<vmem>>, vector<1x8x128xf32>
    %444 = vector.shape_cast %443 : vector<1x8x128xf32> to vector<8x128xf32>
    %445 = vector.shape_cast %441 : vector<8x128xf32> to vector<1x8x128xf32>
    tpu.vector_store %arg10[%442, %c0_169, %c0_170], %445 {strides = array<i32>} : memref<8x8x128xf32, #tpu.memory_space<vmem>>, vector<1x8x128xf32>,
    %c5_i32 = arith.constant 5 : i32
    %446 = arith.index_cast %c5_i32 : i32 to index
    %c0_171 = arith.constant 0 : index
    %c0_172 = arith.constant 0 : index
    %447 = vector.load %arg1[%446, %c0_171, %c0_172] : memref<8x8x128xf32, #tpu.memory_space<vmem>>, vector<1x8x128xf32>
    %448 = vector.shape_cast %447 : vector<1x8x128xf32> to vector<8x128xf32>
    %449 = arith.truncf %448 : vector<8x128xf32> to vector<8x128xbf16>
    %c0_173 = arith.constant 0 : index
    %c0_174 = arith.constant 0 : index
    %450 = vector.load %arg11[%c0_173, %c0_174] : memref<8x128xf32, #tpu.memory_space<vmem>>, vector<8x128xf32>
    %451 = arith.truncf %450 : vector<8x128xf32> to vector<8x128xbf16>
    %452 = tpu.concatenate %449, %451 in 1 : vector<8x128xbf16>, vector<8x128xbf16> -> vector<8x256xbf16>
    %c0_175 = arith.constant 0 : index
    %c0_176 = arith.constant 0 : index
    %453 = vector.load %arg12[%c0_175, %c0_176] : memref<8x128xf32, #tpu.memory_space<vmem>>, vector<8x128xf32>
    %cst_177 = arith.constant dense<0.000000e+00> : vector<8x512xf32>
    %454 = tpu.matmul %452, %3, %cst_177 {dimension_numbers = #tpu.dot_dimension_numbers<[1], [0], [0], [1], [0, 0, 1, 1], [], []>} : vector<8x256xbf16>, vector<256x512xbf16>, vector<8x512xf32> -> vector<8x512xf32>
    %455 = vector.broadcast %4 : vector<1x512xf32> to vector<8x512xf32>
    %456 = arith.addf %454, %455 : vector<8x512xf32>
    %457 = vector.extract_strided_slice %456 {offsets = [0, 0], sizes = [8, 128], strides = [1, 1]} : vector<8x512xf32> to vector<8x128xf32>
    %458 = arith.negf %457 : vector<8x128xf32>
    %459 = math.exp %458 : vector<8x128xf32>
    %cst_178 = arith.constant 1.000000e+00 : f32
    %460 = vector.broadcast %cst_178 : f32 to vector<8x128xf32>
    %461 = arith.addf %460, %459 : vector<8x128xf32>
    %462 = arith.divf %460, %461 : vector<8x128xf32>
    %463 = vector.extract_strided_slice %456 {offsets = [0, 128], sizes = [8, 128], strides = [1, 1]} : vector<8x512xf32> to vector<8x128xf32>
    %464 = arith.negf %463 : vector<8x128xf32>
    %465 = math.exp %464 : vector<8x128xf32>
    %cst_179 = arith.constant 1.000000e+00 : f32
    %466 = vector.broadcast %cst_179 : f32 to vector<8x128xf32>
    %467 = arith.addf %466, %465 : vector<8x128xf32>
    %468 = arith.divf %466, %467 : vector<8x128xf32>
    %469 = vector.extract_strided_slice %456 {offsets = [0, 256], sizes = [8, 128], strides = [1, 1]} : vector<8x512xf32> to vector<8x128xf32>
    %470 = math.tanh %469 : vector<8x128xf32>
    %471 = vector.extract_strided_slice %456 {offsets = [0, 384], sizes = [8, 128], strides = [1, 1]} : vector<8x512xf32> to vector<8x128xf32>
    %472 = arith.negf %471 : vector<8x128xf32>
    %473 = math.exp %472 : vector<8x128xf32>
    %cst_180 = arith.constant 1.000000e+00 : f32
    %474 = vector.broadcast %cst_180 : f32 to vector<8x128xf32>
    %475 = arith.addf %474, %473 : vector<8x128xf32>
    %476 = arith.divf %474, %475 : vector<8x128xf32>
    %477 = arith.mulf %468, %453 : vector<8x128xf32>
    %478 = arith.mulf %462, %470 : vector<8x128xf32>
    %479 = arith.addf %477, %478 : vector<8x128xf32>
    %480 = math.tanh %479 : vector<8x128xf32>
    %481 = arith.mulf %476, %480 : vector<8x128xf32>
    %c0_181 = arith.constant 0 : index
    %c0_182 = arith.constant 0 : index
    %482 = vector.load %arg11[%c0_181, %c0_182] : memref<8x128xf32, #tpu.memory_space<vmem>>, vector<8x128xf32>
    tpu.vector_store %arg11[%c0_181, %c0_182], %481 {strides = array<i32>} : memref<8x128xf32, #tpu.memory_space<vmem>>, vector<8x128xf32>,
    %c0_183 = arith.constant 0 : index
    %c0_184 = arith.constant 0 : index
    %483 = vector.load %arg12[%c0_183, %c0_184] : memref<8x128xf32, #tpu.memory_space<vmem>>, vector<8x128xf32>
    tpu.vector_store %arg12[%c0_183, %c0_184], %479 {strides = array<i32>} : memref<8x128xf32, #tpu.memory_space<vmem>>, vector<8x128xf32>,
    %484 = arith.truncf %481 : vector<8x128xf32> to vector<8x128xbf16>
    %c0_185 = arith.constant 0 : index
    %c0_186 = arith.constant 0 : index
    %485 = vector.load %arg13[%c0_185, %c0_186] : memref<8x128xf32, #tpu.memory_space<vmem>>, vector<8x128xf32>
    %486 = arith.truncf %485 : vector<8x128xf32> to vector<8x128xbf16>
    %487 = tpu.concatenate %484, %486 in 1 : vector<8x128xbf16>, vector<8x128xbf16> -> vector<8x256xbf16>
    %c0_187 = arith.constant 0 : index
    %c0_188 = arith.constant 0 : index
    %488 = vector.load %arg14[%c0_187, %c0_188] : memref<8x128xf32, #tpu.memory_space<vmem>>, vector<8x128xf32>
    %cst_189 = arith.constant dense<0.000000e+00> : vector<8x512xf32>
    %489 = tpu.matmul %487, %5, %cst_189 {dimension_numbers = #tpu.dot_dimension_numbers<[1], [0], [0], [1], [0, 0, 1, 1], [], []>} : vector<8x256xbf16>, vector<256x512xbf16>, vector<8x512xf32> -> vector<8x512xf32>
    %490 = vector.broadcast %6 : vector<1x512xf32> to vector<8x512xf32>
    %491 = arith.addf %489, %490 : vector<8x512xf32>
    %492 = vector.extract_strided_slice %491 {offsets = [0, 0], sizes = [8, 128], strides = [1, 1]} : vector<8x512xf32> to vector<8x128xf32>
    %493 = arith.negf %492 : vector<8x128xf32>
    %494 = math.exp %493 : vector<8x128xf32>
    %cst_190 = arith.constant 1.000000e+00 : f32
    %495 = vector.broadcast %cst_190 : f32 to vector<8x128xf32>
    %496 = arith.addf %495, %494 : vector<8x128xf32>
    %497 = arith.divf %495, %496 : vector<8x128xf32>
    %498 = vector.extract_strided_slice %491 {offsets = [0, 128], sizes = [8, 128], strides = [1, 1]} : vector<8x512xf32> to vector<8x128xf32>
    %499 = arith.negf %498 : vector<8x128xf32>
    %500 = math.exp %499 : vector<8x128xf32>
    %cst_191 = arith.constant 1.000000e+00 : f32
    %501 = vector.broadcast %cst_191 : f32 to vector<8x128xf32>
    %502 = arith.addf %501, %500 : vector<8x128xf32>
    %503 = arith.divf %501, %502 : vector<8x128xf32>
    %504 = vector.extract_strided_slice %491 {offsets = [0, 256], sizes = [8, 128], strides = [1, 1]} : vector<8x512xf32> to vector<8x128xf32>
    %505 = math.tanh %504 : vector<8x128xf32>
    %506 = vector.extract_strided_slice %491 {offsets = [0, 384], sizes = [8, 128], strides = [1, 1]} : vector<8x512xf32> to vector<8x128xf32>
    %507 = arith.negf %506 : vector<8x128xf32>
    %508 = math.exp %507 : vector<8x128xf32>
    %cst_192 = arith.constant 1.000000e+00 : f32
    %509 = vector.broadcast %cst_192 : f32 to vector<8x128xf32>
    %510 = arith.addf %509, %508 : vector<8x128xf32>
    %511 = arith.divf %509, %510 : vector<8x128xf32>
    %512 = arith.mulf %503, %488 : vector<8x128xf32>
    %513 = arith.mulf %497, %505 : vector<8x128xf32>
    %514 = arith.addf %512, %513 : vector<8x128xf32>
    %515 = math.tanh %514 : vector<8x128xf32>
    %516 = arith.mulf %511, %515 : vector<8x128xf32>
    %c0_193 = arith.constant 0 : index
    %c0_194 = arith.constant 0 : index
    %517 = vector.load %arg13[%c0_193, %c0_194] : memref<8x128xf32, #tpu.memory_space<vmem>>, vector<8x128xf32>
    tpu.vector_store %arg13[%c0_193, %c0_194], %516 {strides = array<i32>} : memref<8x128xf32, #tpu.memory_space<vmem>>, vector<8x128xf32>,
    %c0_195 = arith.constant 0 : index
    %c0_196 = arith.constant 0 : index
    %518 = vector.load %arg14[%c0_195, %c0_196] : memref<8x128xf32, #tpu.memory_space<vmem>>, vector<8x128xf32>
    tpu.vector_store %arg14[%c0_195, %c0_196], %514 {strides = array<i32>} : memref<8x128xf32, #tpu.memory_space<vmem>>, vector<8x128xf32>,
    %519 = arith.truncf %516 : vector<8x128xf32> to vector<8x128xbf16>
    %cst_197 = arith.constant dense<0.000000e+00> : vector<8x128xf32>
    %520 = tpu.matmul %519, %7, %cst_197 {dimension_numbers = #tpu.dot_dimension_numbers<[1], [0], [0], [1], [0, 0, 1, 1], [], []>} : vector<8x128xbf16>, vector<128x128xbf16>, vector<8x128xf32> -> vector<8x128xf32>
    %521 = vector.broadcast %8 : vector<1x128xf32> to vector<8x128xf32>
    %522 = arith.addf %520, %521 : vector<8x128xf32>
    %cst_198 = arith.constant 0.000000e+00 : f32
    %523 = vector.broadcast %cst_198 : f32 to vector<8x128xf32>
    %524 = arith.maximumf %522, %523 : vector<8x128xf32>
    %525 = arith.truncf %524 : vector<8x128xf32> to vector<8x128xbf16>
    %cst_199 = arith.constant dense<0.000000e+00> : vector<8x128xf32>
    %526 = tpu.matmul %525, %9, %cst_199 {dimension_numbers = #tpu.dot_dimension_numbers<[1], [0], [0], [1], [0, 0, 1, 1], [], []>} : vector<8x128xbf16>, vector<128x128xbf16>, vector<8x128xf32> -> vector<8x128xf32>
    %527 = vector.broadcast %10 : vector<1x128xf32> to vector<8x128xf32>
    %528 = arith.addf %526, %527 : vector<8x128xf32>
    %529 = arith.index_cast %c5_i32 : i32 to index
    %c0_200 = arith.constant 0 : index
    %c0_201 = arith.constant 0 : index
    %530 = vector.load %arg10[%529, %c0_200, %c0_201] : memref<8x8x128xf32, #tpu.memory_space<vmem>>, vector<1x8x128xf32>
    %531 = vector.shape_cast %530 : vector<1x8x128xf32> to vector<8x128xf32>
    %532 = vector.shape_cast %528 : vector<8x128xf32> to vector<1x8x128xf32>
    tpu.vector_store %arg10[%529, %c0_200, %c0_201], %532 {strides = array<i32>} : memref<8x8x128xf32, #tpu.memory_space<vmem>>, vector<1x8x128xf32>,
    %c6_i32 = arith.constant 6 : i32
    %533 = arith.index_cast %c6_i32 : i32 to index
    %c0_202 = arith.constant 0 : index
    %c0_203 = arith.constant 0 : index
    %534 = vector.load %arg1[%533, %c0_202, %c0_203] : memref<8x8x128xf32, #tpu.memory_space<vmem>>, vector<1x8x128xf32>
    %535 = vector.shape_cast %534 : vector<1x8x128xf32> to vector<8x128xf32>
    %536 = arith.truncf %535 : vector<8x128xf32> to vector<8x128xbf16>
    %c0_204 = arith.constant 0 : index
    %c0_205 = arith.constant 0 : index
    %537 = vector.load %arg11[%c0_204, %c0_205] : memref<8x128xf32, #tpu.memory_space<vmem>>, vector<8x128xf32>
    %538 = arith.truncf %537 : vector<8x128xf32> to vector<8x128xbf16>
    %539 = tpu.concatenate %536, %538 in 1 : vector<8x128xbf16>, vector<8x128xbf16> -> vector<8x256xbf16>
    %c0_206 = arith.constant 0 : index
    %c0_207 = arith.constant 0 : index
    %540 = vector.load %arg12[%c0_206, %c0_207] : memref<8x128xf32, #tpu.memory_space<vmem>>, vector<8x128xf32>
    %cst_208 = arith.constant dense<0.000000e+00> : vector<8x512xf32>
    %541 = tpu.matmul %539, %3, %cst_208 {dimension_numbers = #tpu.dot_dimension_numbers<[1], [0], [0], [1], [0, 0, 1, 1], [], []>} : vector<8x256xbf16>, vector<256x512xbf16>, vector<8x512xf32> -> vector<8x512xf32>
    %542 = vector.broadcast %4 : vector<1x512xf32> to vector<8x512xf32>
    %543 = arith.addf %541, %542 : vector<8x512xf32>
    %544 = vector.extract_strided_slice %543 {offsets = [0, 0], sizes = [8, 128], strides = [1, 1]} : vector<8x512xf32> to vector<8x128xf32>
    %545 = arith.negf %544 : vector<8x128xf32>
    %546 = math.exp %545 : vector<8x128xf32>
    %cst_209 = arith.constant 1.000000e+00 : f32
    %547 = vector.broadcast %cst_209 : f32 to vector<8x128xf32>
    %548 = arith.addf %547, %546 : vector<8x128xf32>
    %549 = arith.divf %547, %548 : vector<8x128xf32>
    %550 = vector.extract_strided_slice %543 {offsets = [0, 128], sizes = [8, 128], strides = [1, 1]} : vector<8x512xf32> to vector<8x128xf32>
    %551 = arith.negf %550 : vector<8x128xf32>
    %552 = math.exp %551 : vector<8x128xf32>
    %cst_210 = arith.constant 1.000000e+00 : f32
    %553 = vector.broadcast %cst_210 : f32 to vector<8x128xf32>
    %554 = arith.addf %553, %552 : vector<8x128xf32>
    %555 = arith.divf %553, %554 : vector<8x128xf32>
    %556 = vector.extract_strided_slice %543 {offsets = [0, 256], sizes = [8, 128], strides = [1, 1]} : vector<8x512xf32> to vector<8x128xf32>
    %557 = math.tanh %556 : vector<8x128xf32>
    %558 = vector.extract_strided_slice %543 {offsets = [0, 384], sizes = [8, 128], strides = [1, 1]} : vector<8x512xf32> to vector<8x128xf32>
    %559 = arith.negf %558 : vector<8x128xf32>
    %560 = math.exp %559 : vector<8x128xf32>
    %cst_211 = arith.constant 1.000000e+00 : f32
    %561 = vector.broadcast %cst_211 : f32 to vector<8x128xf32>
    %562 = arith.addf %561, %560 : vector<8x128xf32>
    %563 = arith.divf %561, %562 : vector<8x128xf32>
    %564 = arith.mulf %555, %540 : vector<8x128xf32>
    %565 = arith.mulf %549, %557 : vector<8x128xf32>
    %566 = arith.addf %564, %565 : vector<8x128xf32>
    %567 = math.tanh %566 : vector<8x128xf32>
    %568 = arith.mulf %563, %567 : vector<8x128xf32>
    %c0_212 = arith.constant 0 : index
    %c0_213 = arith.constant 0 : index
    %569 = vector.load %arg11[%c0_212, %c0_213] : memref<8x128xf32, #tpu.memory_space<vmem>>, vector<8x128xf32>
    tpu.vector_store %arg11[%c0_212, %c0_213], %568 {strides = array<i32>} : memref<8x128xf32, #tpu.memory_space<vmem>>, vector<8x128xf32>,
    %c0_214 = arith.constant 0 : index
    %c0_215 = arith.constant 0 : index
    %570 = vector.load %arg12[%c0_214, %c0_215] : memref<8x128xf32, #tpu.memory_space<vmem>>, vector<8x128xf32>
    tpu.vector_store %arg12[%c0_214, %c0_215], %566 {strides = array<i32>} : memref<8x128xf32, #tpu.memory_space<vmem>>, vector<8x128xf32>,
    %571 = arith.truncf %568 : vector<8x128xf32> to vector<8x128xbf16>
    %c0_216 = arith.constant 0 : index
    %c0_217 = arith.constant 0 : index
    %572 = vector.load %arg13[%c0_216, %c0_217] : memref<8x128xf32, #tpu.memory_space<vmem>>, vector<8x128xf32>
    %573 = arith.truncf %572 : vector<8x128xf32> to vector<8x128xbf16>
    %574 = tpu.concatenate %571, %573 in 1 : vector<8x128xbf16>, vector<8x128xbf16> -> vector<8x256xbf16>
    %c0_218 = arith.constant 0 : index
    %c0_219 = arith.constant 0 : index
    %575 = vector.load %arg14[%c0_218, %c0_219] : memref<8x128xf32, #tpu.memory_space<vmem>>, vector<8x128xf32>
    %cst_220 = arith.constant dense<0.000000e+00> : vector<8x512xf32>
    %576 = tpu.matmul %574, %5, %cst_220 {dimension_numbers = #tpu.dot_dimension_numbers<[1], [0], [0], [1], [0, 0, 1, 1], [], []>} : vector<8x256xbf16>, vector<256x512xbf16>, vector<8x512xf32> -> vector<8x512xf32>
    %577 = vector.broadcast %6 : vector<1x512xf32> to vector<8x512xf32>
    %578 = arith.addf %576, %577 : vector<8x512xf32>
    %579 = vector.extract_strided_slice %578 {offsets = [0, 0], sizes = [8, 128], strides = [1, 1]} : vector<8x512xf32> to vector<8x128xf32>
    %580 = arith.negf %579 : vector<8x128xf32>
    %581 = math.exp %580 : vector<8x128xf32>
    %cst_221 = arith.constant 1.000000e+00 : f32
    %582 = vector.broadcast %cst_221 : f32 to vector<8x128xf32>
    %583 = arith.addf %582, %581 : vector<8x128xf32>
    %584 = arith.divf %582, %583 : vector<8x128xf32>
    %585 = vector.extract_strided_slice %578 {offsets = [0, 128], sizes = [8, 128], strides = [1, 1]} : vector<8x512xf32> to vector<8x128xf32>
    %586 = arith.negf %585 : vector<8x128xf32>
    %587 = math.exp %586 : vector<8x128xf32>
    %cst_222 = arith.constant 1.000000e+00 : f32
    %588 = vector.broadcast %cst_222 : f32 to vector<8x128xf32>
    %589 = arith.addf %588, %587 : vector<8x128xf32>
    %590 = arith.divf %588, %589 : vector<8x128xf32>
    %591 = vector.extract_strided_slice %578 {offsets = [0, 256], sizes = [8, 128], strides = [1, 1]} : vector<8x512xf32> to vector<8x128xf32>
    %592 = math.tanh %591 : vector<8x128xf32>
    %593 = vector.extract_strided_slice %578 {offsets = [0, 384], sizes = [8, 128], strides = [1, 1]} : vector<8x512xf32> to vector<8x128xf32>
    %594 = arith.negf %593 : vector<8x128xf32>
    %595 = math.exp %594 : vector<8x128xf32>
    %cst_223 = arith.constant 1.000000e+00 : f32
    %596 = vector.broadcast %cst_223 : f32 to vector<8x128xf32>
    %597 = arith.addf %596, %595 : vector<8x128xf32>
    %598 = arith.divf %596, %597 : vector<8x128xf32>
    %599 = arith.mulf %590, %575 : vector<8x128xf32>
    %600 = arith.mulf %584, %592 : vector<8x128xf32>
    %601 = arith.addf %599, %600 : vector<8x128xf32>
    %602 = math.tanh %601 : vector<8x128xf32>
    %603 = arith.mulf %598, %602 : vector<8x128xf32>
    %c0_224 = arith.constant 0 : index
    %c0_225 = arith.constant 0 : index
    %604 = vector.load %arg13[%c0_224, %c0_225] : memref<8x128xf32, #tpu.memory_space<vmem>>, vector<8x128xf32>
    tpu.vector_store %arg13[%c0_224, %c0_225], %603 {strides = array<i32>} : memref<8x128xf32, #tpu.memory_space<vmem>>, vector<8x128xf32>,
    %c0_226 = arith.constant 0 : index
    %c0_227 = arith.constant 0 : index
    %605 = vector.load %arg14[%c0_226, %c0_227] : memref<8x128xf32, #tpu.memory_space<vmem>>, vector<8x128xf32>
    tpu.vector_store %arg14[%c0_226, %c0_227], %601 {strides = array<i32>} : memref<8x128xf32, #tpu.memory_space<vmem>>, vector<8x128xf32>,
    %606 = arith.truncf %603 : vector<8x128xf32> to vector<8x128xbf16>
    %cst_228 = arith.constant dense<0.000000e+00> : vector<8x128xf32>
    %607 = tpu.matmul %606, %7, %cst_228 {dimension_numbers = #tpu.dot_dimension_numbers<[1], [0], [0], [1], [0, 0, 1, 1], [], []>} : vector<8x128xbf16>, vector<128x128xbf16>, vector<8x128xf32> -> vector<8x128xf32>
    %608 = vector.broadcast %8 : vector<1x128xf32> to vector<8x128xf32>
    %609 = arith.addf %607, %608 : vector<8x128xf32>
    %cst_229 = arith.constant 0.000000e+00 : f32
    %610 = vector.broadcast %cst_229 : f32 to vector<8x128xf32>
    %611 = arith.maximumf %609, %610 : vector<8x128xf32>
    %612 = arith.truncf %611 : vector<8x128xf32> to vector<8x128xbf16>
    %cst_230 = arith.constant dense<0.000000e+00> : vector<8x128xf32>
    %613 = tpu.matmul %612, %9, %cst_230 {dimension_numbers = #tpu.dot_dimension_numbers<[1], [0], [0], [1], [0, 0, 1, 1], [], []>} : vector<8x128xbf16>, vector<128x128xbf16>, vector<8x128xf32> -> vector<8x128xf32>
    %614 = vector.broadcast %10 : vector<1x128xf32> to vector<8x128xf32>
    %615 = arith.addf %613, %614 : vector<8x128xf32>
    %616 = arith.index_cast %c6_i32 : i32 to index
    %c0_231 = arith.constant 0 : index
    %c0_232 = arith.constant 0 : index
    %617 = vector.load %arg10[%616, %c0_231, %c0_232] : memref<8x8x128xf32, #tpu.memory_space<vmem>>, vector<1x8x128xf32>
    %618 = vector.shape_cast %617 : vector<1x8x128xf32> to vector<8x128xf32>
    %619 = vector.shape_cast %615 : vector<8x128xf32> to vector<1x8x128xf32>
    tpu.vector_store %arg10[%616, %c0_231, %c0_232], %619 {strides = array<i32>} : memref<8x8x128xf32, #tpu.memory_space<vmem>>, vector<1x8x128xf32>,
    %c7_i32 = arith.constant 7 : i32
    %620 = arith.index_cast %c7_i32 : i32 to index
    %c0_233 = arith.constant 0 : index
    %c0_234 = arith.constant 0 : index
    %621 = vector.load %arg1[%620, %c0_233, %c0_234] : memref<8x8x128xf32, #tpu.memory_space<vmem>>, vector<1x8x128xf32>
    %622 = vector.shape_cast %621 : vector<1x8x128xf32> to vector<8x128xf32>
    %623 = arith.truncf %622 : vector<8x128xf32> to vector<8x128xbf16>
    %c0_235 = arith.constant 0 : index
    %c0_236 = arith.constant 0 : index
    %624 = vector.load %arg11[%c0_235, %c0_236] : memref<8x128xf32, #tpu.memory_space<vmem>>, vector<8x128xf32>
    %625 = arith.truncf %624 : vector<8x128xf32> to vector<8x128xbf16>
    %626 = tpu.concatenate %623, %625 in 1 : vector<8x128xbf16>, vector<8x128xbf16> -> vector<8x256xbf16>
    %c0_237 = arith.constant 0 : index
    %c0_238 = arith.constant 0 : index
    %627 = vector.load %arg12[%c0_237, %c0_238] : memref<8x128xf32, #tpu.memory_space<vmem>>, vector<8x128xf32>
    %cst_239 = arith.constant dense<0.000000e+00> : vector<8x512xf32>
    %628 = tpu.matmul %626, %3, %cst_239 {dimension_numbers = #tpu.dot_dimension_numbers<[1], [0], [0], [1], [0, 0, 1, 1], [], []>} : vector<8x256xbf16>, vector<256x512xbf16>, vector<8x512xf32> -> vector<8x512xf32>
    %629 = vector.broadcast %4 : vector<1x512xf32> to vector<8x512xf32>
    %630 = arith.addf %628, %629 : vector<8x512xf32>
    %631 = vector.extract_strided_slice %630 {offsets = [0, 0], sizes = [8, 128], strides = [1, 1]} : vector<8x512xf32> to vector<8x128xf32>
    %632 = arith.negf %631 : vector<8x128xf32>
    %633 = math.exp %632 : vector<8x128xf32>
    %cst_240 = arith.constant 1.000000e+00 : f32
    %634 = vector.broadcast %cst_240 : f32 to vector<8x128xf32>
    %635 = arith.addf %634, %633 : vector<8x128xf32>
    %636 = arith.divf %634, %635 : vector<8x128xf32>
    %637 = vector.extract_strided_slice %630 {offsets = [0, 128], sizes = [8, 128], strides = [1, 1]} : vector<8x512xf32> to vector<8x128xf32>
    %638 = arith.negf %637 : vector<8x128xf32>
    %639 = math.exp %638 : vector<8x128xf32>
    %cst_241 = arith.constant 1.000000e+00 : f32
    %640 = vector.broadcast %cst_241 : f32 to vector<8x128xf32>
    %641 = arith.addf %640, %639 : vector<8x128xf32>
    %642 = arith.divf %640, %641 : vector<8x128xf32>
    %643 = vector.extract_strided_slice %630 {offsets = [0, 256], sizes = [8, 128], strides = [1, 1]} : vector<8x512xf32> to vector<8x128xf32>
    %644 = math.tanh %643 : vector<8x128xf32>
    %645 = vector.extract_strided_slice %630 {offsets = [0, 384], sizes = [8, 128], strides = [1, 1]} : vector<8x512xf32> to vector<8x128xf32>
    %646 = arith.negf %645 : vector<8x128xf32>
    %647 = math.exp %646 : vector<8x128xf32>
    %cst_242 = arith.constant 1.000000e+00 : f32
    %648 = vector.broadcast %cst_242 : f32 to vector<8x128xf32>
    %649 = arith.addf %648, %647 : vector<8x128xf32>
    %650 = arith.divf %648, %649 : vector<8x128xf32>
    %651 = arith.mulf %642, %627 : vector<8x128xf32>
    %652 = arith.mulf %636, %644 : vector<8x128xf32>
    %653 = arith.addf %651, %652 : vector<8x128xf32>
    %654 = math.tanh %653 : vector<8x128xf32>
    %655 = arith.mulf %650, %654 : vector<8x128xf32>
    %c0_243 = arith.constant 0 : index
    %c0_244 = arith.constant 0 : index
    %656 = vector.load %arg11[%c0_243, %c0_244] : memref<8x128xf32, #tpu.memory_space<vmem>>, vector<8x128xf32>
    tpu.vector_store %arg11[%c0_243, %c0_244], %655 {strides = array<i32>} : memref<8x128xf32, #tpu.memory_space<vmem>>, vector<8x128xf32>,
    %c0_245 = arith.constant 0 : index
    %c0_246 = arith.constant 0 : index
    %657 = vector.load %arg12[%c0_245, %c0_246] : memref<8x128xf32, #tpu.memory_space<vmem>>, vector<8x128xf32>
    tpu.vector_store %arg12[%c0_245, %c0_246], %653 {strides = array<i32>} : memref<8x128xf32, #tpu.memory_space<vmem>>, vector<8x128xf32>,
    %658 = arith.truncf %655 : vector<8x128xf32> to vector<8x128xbf16>
    %c0_247 = arith.constant 0 : index
    %c0_248 = arith.constant 0 : index
    %659 = vector.load %arg13[%c0_247, %c0_248] : memref<8x128xf32, #tpu.memory_space<vmem>>, vector<8x128xf32>
    %660 = arith.truncf %659 : vector<8x128xf32> to vector<8x128xbf16>
    %661 = tpu.concatenate %658, %660 in 1 : vector<8x128xbf16>, vector<8x128xbf16> -> vector<8x256xbf16>
    %c0_249 = arith.constant 0 : index
    %c0_250 = arith.constant 0 : index
    %662 = vector.load %arg14[%c0_249, %c0_250] : memref<8x128xf32, #tpu.memory_space<vmem>>, vector<8x128xf32>
    %cst_251 = arith.constant dense<0.000000e+00> : vector<8x512xf32>
    %663 = tpu.matmul %661, %5, %cst_251 {dimension_numbers = #tpu.dot_dimension_numbers<[1], [0], [0], [1], [0, 0, 1, 1], [], []>} : vector<8x256xbf16>, vector<256x512xbf16>, vector<8x512xf32> -> vector<8x512xf32>
    %664 = vector.broadcast %6 : vector<1x512xf32> to vector<8x512xf32>
    %665 = arith.addf %663, %664 : vector<8x512xf32>
    %666 = vector.extract_strided_slice %665 {offsets = [0, 0], sizes = [8, 128], strides = [1, 1]} : vector<8x512xf32> to vector<8x128xf32>
    %667 = arith.negf %666 : vector<8x128xf32>
    %668 = math.exp %667 : vector<8x128xf32>
    %cst_252 = arith.constant 1.000000e+00 : f32
    %669 = vector.broadcast %cst_252 : f32 to vector<8x128xf32>
    %670 = arith.addf %669, %668 : vector<8x128xf32>
    %671 = arith.divf %669, %670 : vector<8x128xf32>
    %672 = vector.extract_strided_slice %665 {offsets = [0, 128], sizes = [8, 128], strides = [1, 1]} : vector<8x512xf32> to vector<8x128xf32>
    %673 = arith.negf %672 : vector<8x128xf32>
    %674 = math.exp %673 : vector<8x128xf32>
    %cst_253 = arith.constant 1.000000e+00 : f32
    %675 = vector.broadcast %cst_253 : f32 to vector<8x128xf32>
    %676 = arith.addf %675, %674 : vector<8x128xf32>
    %677 = arith.divf %675, %676 : vector<8x128xf32>
    %678 = vector.extract_strided_slice %665 {offsets = [0, 256], sizes = [8, 128], strides = [1, 1]} : vector<8x512xf32> to vector<8x128xf32>
    %679 = math.tanh %678 : vector<8x128xf32>
    %680 = vector.extract_strided_slice %665 {offsets = [0, 384], sizes = [8, 128], strides = [1, 1]} : vector<8x512xf32> to vector<8x128xf32>
    %681 = arith.negf %680 : vector<8x128xf32>
    %682 = math.exp %681 : vector<8x128xf32>
    %cst_254 = arith.constant 1.000000e+00 : f32
    %683 = vector.broadcast %cst_254 : f32 to vector<8x128xf32>
    %684 = arith.addf %683, %682 : vector<8x128xf32>
    %685 = arith.divf %683, %684 : vector<8x128xf32>
    %686 = arith.mulf %677, %662 : vector<8x128xf32>
    %687 = arith.mulf %671, %679 : vector<8x128xf32>
    %688 = arith.addf %686, %687 : vector<8x128xf32>
    %689 = math.tanh %688 : vector<8x128xf32>
    %690 = arith.mulf %685, %689 : vector<8x128xf32>
    %c0_255 = arith.constant 0 : index
    %c0_256 = arith.constant 0 : index
    %691 = vector.load %arg13[%c0_255, %c0_256] : memref<8x128xf32, #tpu.memory_space<vmem>>, vector<8x128xf32>
    tpu.vector_store %arg13[%c0_255, %c0_256], %690 {strides = array<i32>} : memref<8x128xf32, #tpu.memory_space<vmem>>, vector<8x128xf32>,
    %c0_257 = arith.constant 0 : index
    %c0_258 = arith.constant 0 : index
    %692 = vector.load %arg14[%c0_257, %c0_258] : memref<8x128xf32, #tpu.memory_space<vmem>>, vector<8x128xf32>
    tpu.vector_store %arg14[%c0_257, %c0_258], %688 {strides = array<i32>} : memref<8x128xf32, #tpu.memory_space<vmem>>, vector<8x128xf32>,
    %693 = arith.truncf %690 : vector<8x128xf32> to vector<8x128xbf16>
    %cst_259 = arith.constant dense<0.000000e+00> : vector<8x128xf32>
    %694 = tpu.matmul %693, %7, %cst_259 {dimension_numbers = #tpu.dot_dimension_numbers<[1], [0], [0], [1], [0, 0, 1, 1], [], []>} : vector<8x128xbf16>, vector<128x128xbf16>, vector<8x128xf32> -> vector<8x128xf32>
    %695 = vector.broadcast %8 : vector<1x128xf32> to vector<8x128xf32>
    %696 = arith.addf %694, %695 : vector<8x128xf32>
    %cst_260 = arith.constant 0.000000e+00 : f32
    %697 = vector.broadcast %cst_260 : f32 to vector<8x128xf32>
    %698 = arith.maximumf %696, %697 : vector<8x128xf32>
    %699 = arith.truncf %698 : vector<8x128xf32> to vector<8x128xbf16>
    %cst_261 = arith.constant dense<0.000000e+00> : vector<8x128xf32>
    %700 = tpu.matmul %699, %9, %cst_261 {dimension_numbers = #tpu.dot_dimension_numbers<[1], [0], [0], [1], [0, 0, 1, 1], [], []>} : vector<8x128xbf16>, vector<128x128xbf16>, vector<8x128xf32> -> vector<8x128xf32>
    %701 = vector.broadcast %10 : vector<1x128xf32> to vector<8x128xf32>
    %702 = arith.addf %700, %701 : vector<8x128xf32>
    %703 = arith.index_cast %c7_i32 : i32 to index
    %c0_262 = arith.constant 0 : index
    %c0_263 = arith.constant 0 : index
    %704 = vector.load %arg10[%703, %c0_262, %c0_263] : memref<8x8x128xf32, #tpu.memory_space<vmem>>, vector<1x8x128xf32>
    %705 = vector.shape_cast %704 : vector<1x8x128xf32> to vector<8x128xf32>
    %706 = vector.shape_cast %702 : vector<8x128xf32> to vector<1x8x128xf32>
    tpu.vector_store %arg10[%703, %c0_262, %c0_263], %706 {strides = array<i32>} : memref<8x8x128xf32, #tpu.memory_space<vmem>>, vector<1x8x128xf32>,
    %c8_i32 = arith.constant 8 : i32
    return
  }
  func.func @transform_0(%arg0: i32) -> (i32, i32, i32) {
    %c0_i32 = arith.constant 0 : i32
    %c0_i32_0 = arith.constant 0 : i32
    %c0_i32_1 = arith.constant 0 : i32
    return %arg0, %c0_i32, %c0_i32_0 : i32, i32, i32
  }
  func.func @transform_1(%arg0: i32) -> (i32, i32) {
    %c0_i32 = arith.constant 0 : i32
    %c0_i32_0 = arith.constant 0 : i32
    %c0_i32_1 = arith.constant 0 : i32
    return %c0_i32, %c0_i32_0 : i32, i32
  }
  func.func @transform_2(%arg0: i32) -> (i32, i32) {
    %c0_i32 = arith.constant 0 : i32
    %c0_i32_0 = arith.constant 0 : i32
    %c0_i32_1 = arith.constant 0 : i32
    return %c0_i32, %c0_i32_0 : i32, i32
  }
  func.func @transform_3(%arg0: i32) -> (i32, i32) {
    %c0_i32 = arith.constant 0 : i32
    %c0_i32_0 = arith.constant 0 : i32
    %c0_i32_1 = arith.constant 0 : i32
    return %c0_i32, %c0_i32_0 : i32, i32
  }
  func.func @transform_4(%arg0: i32) -> (i32, i32) {
    %c0_i32 = arith.constant 0 : i32
    %c0_i32_0 = arith.constant 0 : i32
    %c0_i32_1 = arith.constant 0 : i32
    return %c0_i32, %c0_i32_0 : i32, i32
  }
  func.func @transform_5(%arg0: i32) -> (i32, i32) {
    %c0_i32 = arith.constant 0 : i32
    %c0_i32_0 = arith.constant 0 : i32
    %c0_i32_1 = arith.constant 0 : i32
    return %c0_i32, %c0_i32_0 : i32, i32
  }
  func.func @transform_6(%arg0: i32) -> (i32, i32) {
    %c0_i32 = arith.constant 0 : i32
    %c0_i32_0 = arith.constant 0 : i32
    %c0_i32_1 = arith.constant 0 : i32
    return %c0_i32, %c0_i32_0 : i32, i32
  }
  func.func @transform_7(%arg0: i32) -> (i32, i32) {
    %c0_i32 = arith.constant 0 : i32
    %c0_i32_0 = arith.constant 0 : i32
    %c0_i32_1 = arith.constant 0 : i32
    return %c0_i32, %c0_i32_0 : i32, i32
  }
  func.func @transform_8(%arg0: i32) -> (i32, i32) {
    %c0_i32 = arith.constant 0 : i32
    %c0_i32_0 = arith.constant 0 : i32
    %c0_i32_1 = arith.constant 0 : i32
    return %c0_i32, %c0_i32_0 : i32, i32
  }
  func.func @transform_9(%arg0: i32) -> (i32, i32, i32) {
    %c0_i32 = arith.constant 0 : i32
    %c0_i32_0 = arith.constant 0 : i32
    %c0_i32_1 = arith.constant 0 : i32
    return %arg0, %c0_i32, %c0_i32_0 : i32, i32, i32
  }
}

</mosaic_0001>

<bundles_post_ra>
// kernel: tpu_custom_call.1
= control target key start
LH: loop header
LB: loop body
LE: loop exit
PB: predicated region body
PF: predicated region fallthrough
CT: control target
= control target key end

     0   :  { %14 = vsyncpa [#allocation7], 0  ;;  %s8077_s0 = inlined_call_operand.hbm [shape: f32[8,8,128], index: 0, kind: input, shape index: {}]   ;;  %s8078_s1 = inlined_call_operand.hbm [shape: bf16[256,512], index: 1, kind: input, shape index: {}]   ;;  %s8079_s2 = inlined_call_operand.hbm [shape: f32[1,512], index: 2, kind: input, shape index: {}]   ;;  %s8080_s3 = inlined_call_operand.hbm [shape: bf16[256,512], index: 3, kind: input, shape index: {}]   ;;  %s8081_s4 = inlined_call_operand.vmem [shape: f32[1,512], index: 4, kind: input, shape index: {}]   ;;  %s8082_s5 = inlined_call_operand.hbm [shape: bf16[128,128], index: 5, kind: input, shape index: {}]   ;;  %s8083_s6 = inlined_call_operand.vmem [shape: f32[1,128], index: 6, kind: input, shape index: {}]   ;;  %s8084_s7 = inlined_call_operand.hbm [shape: bf16[128,128], index: 7, kind: input, shape index: {}]   ;;  %s8085_s8 = inlined_call_operand.vmem [shape: f32[1,128], index: 8, kind: input, shape index: {}]   ;;  %s8086_s9 = inlined_call_operand.hbm [shape: f32[8,8,128], index: 9, kind: output, shape index: {}]  }
   0x1   :  { %15 = vsyncpa [#allocation10], 0 }
   0x2   :  { %16 = vsyncpa [#allocation13], 0 }
   0x3   :  { %17 = vsyncpa [#allocation16], 0 }
   0x4   :  { %18 = vsyncpa [#allocation8], 0  ;;  %s5342_s30 = smov [#allocation9]  }
   0x5   :  { %s36_s10 = sshll.u32 %s5342_s30, 4  ;;  %s37_s10 = int_to_ptr.vmem [resolvable:$true] %s36_s10 }
   0x6   :  { %s5200_s11 = scalar_lea.vmem %s37_s10, 8192  ;;  %p5205_p1 = scmp.lt.s32.totalorder %s37_s10, %s37_s10 }
   0x7   :  { %p5201_p0 = scmp.ne.s32.totalorder %s37_s10, %s5200_s11  ;;  %p5206_p2 = scmp.lt.s32.totalorder %s5200_s11, %s5200_s11 }
   0x9   :  { %p5207_p3 = por %p5206_p2, %p5205_p1 }
   0xb   :  { %p5208_p4 = pnand %p5207_p3, %p5201_p0 }
   0xd   :  { %5211 = shalt.err (!%p5208_p4)
}
   0xe   :  { %s5343_s12 = smov 256   ;;  %s5344_s13 = smov 16  }
   0xf   :  { %42 = dma.hbm_to_vmem [thread:$0]  %s8078_s1, 8192, %s37_s10, [#allocation10], %s5343_s12, %s5343_s12, %s5344_s13  }
  0x10   :  { %s5345_s16 = smov [#allocation12]   ;;  %s5346_s18 = smov [#allocation6]  }
  0x11   :  { %s58_s17 = sshll.u32 %s5345_s16, 4  ;;  %s24_s19 = sshll.u32 %s5346_s18, 4  ;;  %s59_s17 = int_to_ptr.vmem [resolvable:$true] %s58_s17  ;;  %s25_s19 = int_to_ptr.vmem [resolvable:$true] %s24_s19 }
  0x12   :  { %s5220_s20 = scalar_lea.vmem %s59_s17, 8192  ;;  %p5225_p6 = scmp.lt.s32.totalorder %s59_s17, %s59_s17 }
  0x13   :  { %p5221_p5 = scmp.ne.s32.totalorder %s59_s17, %s5220_s20  ;;  %p5226_p7 = scmp.lt.s32.totalorder %s5220_s20, %s5220_s20 }
  0x15   :  { %p5227_p8 = por %p5226_p7, %p5225_p6 }
  0x17   :  { %p5228_p9 = pnand %p5227_p8, %p5221_p5 }
  0x19   :  { %5231 = shalt.err (!%p5228_p9)
}
  0x1a   :  { %64 = dma.hbm_to_vmem [thread:$0]  %s8080_s3, 8192, %s59_s17, [#allocation13], %s5343_s12, %s5343_s12, %s5344_s13  }
  0x1b   :  { %s5240_s23 = scalar_lea.vmem %s25_s19, 1024  ;;  %p5245_p11 = scmp.lt.s32.totalorder %s25_s19, %s25_s19 }
  0x1c   :  { %p5241_p10 = scmp.ne.s32.totalorder %s25_s19, %s5240_s23  ;;  %p5246_p12 = scmp.lt.s32.totalorder %s5240_s23, %s5240_s23 }
  0x1e   :  { %p5247_p13 = por %p5246_p12, %p5245_p11 }
  0x20   :  { %p5248_p0 = pnand %p5247_p13, %p5241_p10 }
  0x22   :  { %5251 = shalt.err (!%p5248_p0)
}
  0x23   :  { %s5347_s1 = smov 128   ;;  %s5348_s24 = smov 8  }
  0x24   :  { %30 = dma.hbm_to_vmem [thread:$0]  %s8077_s0, 1024, %s25_s19, [#allocation7], %s5347_s1, %s5347_s1, %s5348_s24  }
  0x25   :  { %s5349_s27 = smov [#allocation11]   ;;  %s5350_s3 = smov [#allocation14]  }
  0x26   :  { %s49_s28 = sshll.u32 %s5349_s27, 4  ;;  %s72_s29 = sshll.u32 %s5350_s3, 4  ;;  %s50_s28 = int_to_ptr.vmem [resolvable:$true] %s49_s28  ;;  %s73_s29 = int_to_ptr.vmem [resolvable:$true] %s72_s29 }
  0x27   :  { %s5260_s30 = scalar_lea.vmem %s50_s28, 64  ;;  %p5265_p2 = scmp.lt.s32.totalorder %s50_s28, %s50_s28 }
  0x28   :  { %p5261_p1 = scmp.ne.s32.totalorder %s50_s28, %s5260_s30  ;;  %p5266_p3 = scmp.lt.s32.totalorder %s5260_s30, %s5260_s30 }
  0x2a   :  { %p5267_p4 = por %p5266_p3, %p5265_p2 }
  0x2c   :  { %p5268_p5 = pnand %p5267_p4, %p5261_p1 }
  0x2e   :  { %5271 = shalt.err (!%p5268_p5)
}
  0x2f   :  { %52 = dma.hbm_to_vmem [thread:$0]  %s8079_s2, 64, %s50_s28, [#allocation10]  }
  0x30   :  { %s5280_s12 = scalar_lea.vmem %s73_s29, 1024  ;;  %p5285_p7 = scmp.lt.s32.totalorder %s73_s29, %s73_s29 }
  0x31   :  { %p5281_p6 = scmp.ne.s32.totalorder %s73_s29, %s5280_s12  ;;  %p5286_p8 = scmp.lt.s32.totalorder %s5280_s12, %s5280_s12 }
  0x33   :  { %p5287_p9 = por %p5286_p8, %p5285_p7 }
  0x35   :  { %p5288_p10 = pnand %p5287_p9, %p5281_p6 }
  0x37   :  { %5291 = shalt.err (!%p5288_p10)
}
  0x38   :  { %s5351_s0 = smov 64   ;;  %s5352_s13 = smov 4  }
  0x39   :  { %78 = dma.hbm_to_vmem [thread:$0]  %s8082_s5, 1024, %s73_s29, [#allocation13], %s5351_s0, %s5351_s0, %s5352_s13  }
  0x3a   :  { %s5353_s16 = smov [#allocation15]  }
  0x3b   :  { %s86_s17 = sshll.u32 %s5353_s16, 4  ;;  %s87_s17 = int_to_ptr.vmem [resolvable:$true] %s86_s17 }
  0x3c   :  { %s5300_s18 = scalar_lea.vmem %s87_s17, 1024  ;;  %p5305_p12 = scmp.lt.s32.totalorder %s87_s17, %s87_s17 }
  0x3d   :  { %p5301_p11 = scmp.ne.s32.totalorder %s87_s17, %s5300_s18  ;;  %p5306_p13 = scmp.lt.s32.totalorder %s5300_s18, %s5300_s18 }
  0x3f   :  { %p5307_p0 = por %p5306_p13, %p5305_p12 }
  0x41   :  { %p5308_p1 = pnand %p5307_p0, %p5301_p11 }
  0x43   :  { %5311 = shalt.err (!%p5308_p1)
}
  0x44   :  { %92 = dma.hbm_to_vmem [thread:$0]  %s8084_s7, 1024, %s87_s17, [#allocation16], %s5351_s0, %s5351_s0, %s5352_s13  }
  0x45   :  { %5332 = dma.done.wait [#allocation7], 1024  }
  0x46   :  { %5333 = vsyncadd [#allocation7], 4294966272 }
  0x47   :  { %5334 = dma.done.wait [#allocation10], 8256  }
  0x48   :  { %5335 = vsyncadd [#allocation10], 4294959040 }
  0x49   :  { %5336 = dma.done.wait [#allocation13], 9216  }
  0x4a   :  { %5337 = vsyncadd [#allocation13], 4294958080 }
  0x4b   :  { %5338 = dma.done.wait [#allocation16], 1024  }
  0x4c   :  { %5339 = vsyncadd [#allocation16], 4294966272  ;;  %v5354_v0 = vmov 0.0|0.0   ;;  %v5431_v1 = vld [vmem:[#allocation9 + $0xe4] ss:$16 sps:$4 sm:$0xff]   ;;  %vm5356_vm0 = vmmov 0  }
  0x4d   :  { %664 = vmatprep.mubr.bf16.mxu0 %v5354_v0  ;;  %705 = vmatprep.mubr.bf16.mxu1 %v5354_v0  ;;  %v4258_v2 = vld [vmem:[#allocation9 + $0xe0] ss:$16 sps:$4 sm:$0xff]   ;;  %v4259_v3 = vld [vmem:[#allocation9 + $0xc4] ss:$16 sps:$4 sm:$0xff]   ;;  %v4267_v6 = vld [vmem:[#allocation9 + $0xec] ss:$16 sps:$4 sm:$0xff]  }
  0x4e   :  { %632 = vmatprep.subr.bf16.mxu0 %v5431_v1  ;;  %v4261_v4 = vld [vmem:[#allocation9 + $0xc0] ss:$16 sps:$4 sm:$0xff]   ;;  %v4262_v5 = vld [vmem:[#allocation9 + $0xa4] ss:$16 sps:$4 sm:$0xff]   ;;  %v4270_v7 = vld [vmem:[#allocation9 + $0xe8] ss:$16 sps:$4 sm:$0xff]   ;;  %673 = vmatprep.subr.bf16.mxu1 %v4267_v6 }
  0x4f   :  { %633 = vmatpush1.bf16.msra.mxu0 %v4258_v2  ;;  %v4264_v8 = vld [vmem:[#allocation9 + $0xa0] ss:$16 sps:$4 sm:$0xff]   ;;  %v4265_v9 = vld [vmem:[#allocation9 + $0x84] ss:$16 sps:$4 sm:$0xff]   ;;  %674 = vmatpush1.bf16.msra.mxu1 %v4270_v7  ;;  %v4273_v10 = vld [vmem:[#allocation9 + $0xcc] ss:$16 sps:$4 sm:$0xff]  }
  0x50   :  { %634 = vmatprep.subr.bf16.mxu0 %v4259_v3  ;;  %v4276_v11 = vld [vmem:[#allocation9 + $0xc8] ss:$16 sps:$4 sm:$0xff]   ;;  %675 = vmatprep.subr.bf16.mxu1 %v4273_v10  ;;  %v4269_v12 = vld [vmem:[#allocation9 + $0x80] ss:$16 sps:$4 sm:$0xff]   ;;  %v4271_v13 = vld [vmem:[#allocation9 + $0x64] ss:$16 sps:$4 sm:$0xff]  }
  0x51   :  { %v4279_v14 = vld [vmem:[#allocation9 + $0xac] ss:$16 sps:$4 sm:$0xff]   ;;  %v4282_v15 = vld [vmem:[#allocation9 + $0xa8] ss:$16 sps:$4 sm:$0xff]   ;;  %v4275_v17 = vld [vmem:[#allocation9 + $0x60] ss:$16 sps:$4 sm:$0xff]  }
  0x52   :  { %v4285_v16 = vld [vmem:[#allocation9 + $0x8c] ss:$16 sps:$4 sm:$0xff]   ;;  %v4277_v18 = vld [vmem:[#allocation9 + $0x44] ss:$16 sps:$4 sm:$0xff]   ;;  %v4288_v19 = vld [vmem:[#allocation9 + $0x88] ss:$16 sps:$4 sm:$0xff]  }
  0x53   :  { %635 = vmatpush1.bf16.msra.mxu0 %v4261_v4  ;;  %676 = vmatpush1.bf16.msra.mxu1 %v4276_v11  ;;  %v4291_v20 = vld [vmem:[#allocation9 + $0x6c] ss:$16 sps:$4 sm:$0xff]   ;;  %v4281_v21 = vld [vmem:[#allocation9 + $0x40] ss:$16 sps:$4 sm:$0xff]   ;;  %v4283_v22 = vld [vmem:[#allocation9 + $0x24] ss:$16 sps:$4 sm:$0xff]  }
  0x54   :  { %636 = vmatprep.subr.bf16.mxu0 %v4262_v5  ;;  %677 = vmatprep.subr.bf16.mxu1 %v4279_v14  ;;  %v4294_v23 = vld [vmem:[#allocation9 + $0x68] ss:$16 sps:$4 sm:$0xff]   ;;  %v4297_v24 = vld [vmem:[#allocation9 + $0x4c] ss:$16 sps:$4 sm:$0xff]   ;;  %v5434_v25 = vld [vmem:[#allocation9 + $0x20] ss:$16 sps:$4 sm:$0xff]  }
  0x55   :  { %v5436_v26 = vld [vmem:[#allocation9 + $0x4] ss:$16 sps:$4 sm:$0xff]   ;;  %v4300_v27 = vld [vmem:[#allocation9 + $0x48] ss:$16 sps:$4 sm:$0xff]   ;;  %v4303_v28 = vld [vmem:[#allocation9 + $0x2c] ss:$16 sps:$4 sm:$0xff]  }
  0x56   :  { %v5439_v29 = vld [vmem:[#allocation9] ss:$16 sps:$4 sm:$0xff]   ;;  %v5441_v30 = vld [vmem:[#allocation9 + $0x1e4] ss:$16 sps:$4 sm:$0xff]   ;;  %v4306_v31 = vld [vmem:[#allocation9 + $0x28] ss:$16 sps:$4 sm:$0xff]  }
  0x57   :  { %637 = vmatpush1.bf16.msra.mxu0 %v4264_v8  ;;  %678 = vmatpush1.bf16.msra.mxu1 %v4282_v15  ;;  %v4309_v32 = vld [vmem:[#allocation9 + $0xc] ss:$16 sps:$4 sm:$0xff]   ;;  %v5445_v33 = vld [vmem:[#allocation9 + $0x1e0] ss:$16 sps:$4 sm:$0xff]   ;;  %v5448_v34 = vld [vmem:[#allocation9 + $0x1c4] ss:$16 sps:$4 sm:$0xff]  }
  0x58   :  { %638 = vmatprep.subr.bf16.mxu0 %v4265_v9  ;;  %679 = vmatprep.subr.bf16.mxu1 %v4285_v16  ;;  %v4312_v35 = vld [vmem:[#allocation9 + $0x8] ss:$16 sps:$4 sm:$0xff]   ;;  %v4315_v36 = vld [vmem:[#allocation9 + $0x1ec] ss:$16 sps:$4 sm:$0xff]   ;;  %v5451_v37 = vld [vmem:[#allocation9 + $0x1c0] ss:$16 sps:$4 sm:$0xff]  }
  0x59   :  { %v5453_v38 = vld [vmem:[#allocation9 + $0x1a4] ss:$16 sps:$4 sm:$0xff]   ;;  %v4318_v39 = vld [vmem:[#allocation9 + $0x1e8] ss:$16 sps:$4 sm:$0xff]   ;;  %v4321_v40 = vld [vmem:[#allocation9 + $0x1cc] ss:$16 sps:$4 sm:$0xff]  }
  0x5a   :  { %v5456_v41 = vld [vmem:[#allocation9 + $0x1a0] ss:$16 sps:$4 sm:$0xff]   ;;  %v5459_v42 = vld [vmem:[#allocation9 + $0x184] ss:$16 sps:$4 sm:$0xff]   ;;  %v4324_v43 = vld [vmem:[#allocation9 + $0x1c8] ss:$16 sps:$4 sm:$0xff]  }
  0x5b   :  { %639 = vmatpush1.bf16.msra.mxu0 %v4269_v12  ;;  %680 = vmatpush1.bf16.msra.mxu1 %v4288_v19  ;;  %v4327_v44 = vld [vmem:[#allocation9 + $0x1ac] ss:$16 sps:$4 sm:$0xff]   ;;  %v5462_v45 = vld [vmem:[#allocation9 + $0x180] ss:$16 sps:$4 sm:$0xff]   ;;  %v5465_v46 = vld [vmem:[#allocation9 + $0x164] ss:$16 sps:$4 sm:$0xff]  }
  0x5c   :  { %640 = vmatprep.subr.bf16.mxu0 %v4271_v13  ;;  %681 = vmatprep.subr.bf16.mxu1 %v4291_v20  ;;  %v4330_v47 = vld [vmem:[#allocation9 + $0x1a8] ss:$16 sps:$4 sm:$0xff]   ;;  %v5468_v48 = vld [vmem:[#allocation9 + $0x160] ss:$16 sps:$4 sm:$0xff]   ;;  %v4333_v49 = vld [vmem:[#allocation9 + $0x18c] ss:$16 sps:$4 sm:$0xff]  }
  0x5d   :  { %v5470_v50 = vld [vmem:[#allocation9 + $0x144] ss:$16 sps:$4 sm:$0xff]   ;;  %v5473_v51 = vld [vmem:[#allocation9 + $0x188] ss:$16 sps:$4 sm:$0xff]   ;;  %v5475_v52 = vld [vmem:[#allocation9 + $0x16c] ss:$16 sps:$4 sm:$0xff]  }
  0x5e   :  { %8401 = vst [vmem:[#allocation23_spill] sm:$0xff] %v5473_v51  ;;  %8402 = vst [vmem:[#allocation24_spill] sm:$0xff] %v5475_v52  ;;  %v5478_v53 = vld [vmem:[#allocation9 + $0x140] ss:$16 sps:$4 sm:$0xff]   ;;  %v5480_v54 = vld [vmem:[#allocation9 + $0x124] ss:$16 sps:$4 sm:$0xff]  }
  0x5f   :  { %641 = vmatpush1.bf16.msra.mxu0 %v4275_v17  ;;  %682 = vmatpush1.bf16.msra.mxu1 %v4294_v23  ;;  %v5482_v55 = vld [vmem:[#allocation9 + $0x168] ss:$16 sps:$4 sm:$0xff]   ;;  %v5485_v56 = vld [vmem:[#allocation9 + $0x14c] ss:$16 sps:$4 sm:$0xff]   ;;  %v5489_v57 = vld [vmem:[#allocation9 + $0x120] ss:$16 sps:$4 sm:$0xff]  }
  0x60   :  { %642 = vmatprep.subr.bf16.mxu0 %v4277_v18  ;;  %683 = vmatprep.subr.bf16.mxu1 %v4297_v24  ;;  %8403 = vst [vmem:[#allocation25_spill] sm:$0xff] %v5482_v55  ;;  %8404 = vst [vmem:[#allocation26_spill] sm:$0xff] %v5485_v56  ;;  %v5492_v58 = vld [vmem:[#allocation9 + $0x104] ss:$16 sps:$4 sm:$0xff]   ;;  %v5494_v59 = vld [vmem:[#allocation9 + $0x148] ss:$16 sps:$4 sm:$0xff]  }
  0x61   :  { %8405 = vst [vmem:[#allocation27_spill] sm:$0xff] %v5494_v59  ;;  %v5497_v60 = vld [vmem:[#allocation9 + $0x12c] ss:$16 sps:$4 sm:$0xff]   ;;  %v5501_v61 = vld [vmem:[#allocation9 + $0x100] ss:$16 sps:$4 sm:$0xff]  }
  0x62   :  { %8406 = vst [vmem:[#allocation28_spill] sm:$0xff] %v5497_v60  ;;  %v286_v62 = vld [vmem:[#allocation6] sm:$0xff]  ;;  %v5504_v63 = vld [vmem:[#allocation9 + $0x128] ss:$16 sps:$4 sm:$0xff]   ;;  %v5509_v3 = vld [vmem:[#allocation9 + $0x10c] ss:$16 sps:$4 sm:$0xff]  }
  0x63   :  { %643 = vmatpush1.bf16.msra.mxu0 %v4281_v21  ;;  %684 = vmatpush1.bf16.msra.mxu1 %v4300_v27  ;;  %8407 = vst [vmem:[#allocation29_spill] sm:$0xff] %v5504_v63  ;;  %v5506_v2 = vld [vmem:[#allocation12 + $0xe4] ss:$16 sps:$4 sm:$0xff]   ;;  %8408 = vst [vmem:[#allocation30_spill] sm:$0xff] %v5509_v3  ;;  %v5514_v4 = vld [vmem:[#allocation12 + $0xe0] ss:$16 sps:$4 sm:$0xff]   ;;  %v287_v5 = vpack.c.bf16 %v286_v62, %v286_v62 }
  0x64   :  { %644 = vmatprep.subr.bf16.mxu0 %v4283_v22  ;;  %685 = vmatprep.subr.bf16.mxu1 %v4303_v28  ;;  %v5516_v6 = vld [vmem:[#allocation9 + $0x108] ss:$16 sps:$4 sm:$0xff]   ;;  %v5521_v8 = vld [vmem:[#allocation12 + $0xec] ss:$16 sps:$4 sm:$0xff]   ;;  %v5526_v9 = vld [vmem:[#allocation12 + $0xe8] ss:$16 sps:$4 sm:$0xff]  }
  0x65   :  { %8409 = vst [vmem:[#allocation31_spill] sm:$0xff] %v5516_v6  ;;  %v5518_v7 = vld [vmem:[#allocation12 + $0xc4] ss:$16 sps:$4 sm:$0xff]   ;;  %8410 = vst [vmem:[#allocation32_spill] sm:$0xff] %v5521_v8  ;;  %v5529_v10 = vld [vmem:[#allocation12 + $0xcc] ss:$16 sps:$4 sm:$0xff]  }
  0x66   :  { %8411 = vst [vmem:[#allocation33_spill] sm:$0xff] %v5526_v9  ;;  %8412 = vst [vmem:[#allocation34_spill] sm:$0xff] %v5529_v10  ;;  %v5538_v11 = vld [vmem:[#allocation12 + $0xc0] ss:$16 sps:$4 sm:$0xff]   ;;  %v5540_v12 = vld [vmem:[#allocation12 + $0xc8] ss:$16 sps:$4 sm:$0xff]  }
  0x67   :  { %645 = vmatpush1.bf16.msra.mxu0 %v5434_v25  ;;  %686 = vmatpush1.bf16.msra.mxu1 %v4306_v31  ;;  %8413 = vst [vmem:[#allocation35_spill] sm:$0xff] %v5540_v12  ;;  %v5544_v13 = vld [vmem:[#allocation12 + $0xa4] ss:$16 sps:$4 sm:$0xff]   ;;  %v5546_v14 = vld [vmem:[#allocation12 + $0xac] ss:$16 sps:$4 sm:$0xff]  }
  0x68   :  { %646 = vmatprep.subr.bf16.mxu0 %v5436_v26  ;;  %687 = vmatprep.subr.bf16.mxu1 %v4309_v32  ;;  %8414 = vst [vmem:[#allocation36_spill] sm:$0xff] %v5546_v14  ;;  %v5548_v15 = vld [vmem:[#allocation12 + $0xa0] ss:$16 sps:$4 sm:$0xff]   ;;  %v5550_v16 = vld [vmem:[#allocation12 + $0xa8] ss:$16 sps:$4 sm:$0xff]  }
  0x69   :  { %8415 = vst [vmem:[#allocation37_spill] sm:$0xff] %v5550_v16  ;;  %v5558_v17 = vld [vmem:[#allocation12 + $0x8c] ss:$16 sps:$4 sm:$0xff]   ;;  %v5560_v18 = vld [vmem:[#allocation12 + $0x80] ss:$16 sps:$4 sm:$0xff]  }
  0x6a   :  { %8416 = vst [vmem:[#allocation38_spill] sm:$0xff] %v5558_v17  ;;  %v5562_v19 = vld [vmem:[#allocation12 + $0x88] ss:$16 sps:$4 sm:$0xff]   ;;  %v5568_v20 = vld [vmem:[#allocation12 + $0x64] ss:$16 sps:$4 sm:$0xff]  }
  0x6b   :  { %647 = vmatpush1.bf16.msra.mxu0 %v5439_v29  ;;  %688 = vmatpush1.bf16.msra.mxu1 %v4312_v35  ;;  %8417 = vst [vmem:[#allocation39_spill] sm:$0xff] %v5562_v19  ;;  %v5570_v21 = vld [vmem:[#allocation12 + $0x6c] ss:$16 sps:$4 sm:$0xff]   ;;  %v5572_v22 = vld [vmem:[#allocation12 + $0x60] ss:$16 sps:$4 sm:$0xff]  }
  0x6c   :  { %648 = vmatprep.subr.bf16.mxu0 %v5441_v30  ;;  %689 = vmatprep.subr.bf16.mxu1 %v4315_v36  ;;  %8418 = vst [vmem:[#allocation40_spill] sm:$0xff] %v5570_v21  ;;  %v5574_v23 = vld [vmem:[#allocation12 + $0x68] ss:$16 sps:$4 sm:$0xff]   ;;  %v5580_v24 = vld [vmem:[#allocation12 + $0x44] ss:$16 sps:$4 sm:$0xff]  }
  0x6d   :  { %8419 = vst [vmem:[#allocation41_spill] sm:$0xff] %v5574_v23  ;;  %v5582_v27 = vld [vmem:[#allocation12 + $0x4c] ss:$16 sps:$4 sm:$0xff]   ;;  %v5584_v28 = vld [vmem:[#allocation12 + $0x40] ss:$16 sps:$4 sm:$0xff]  }
  0x6e   :  { %8420 = vst [vmem:[#allocation42_spill] sm:$0xff] %v5582_v27  ;;  %v5586_v31 = vld [vmem:[#allocation12 + $0x48] ss:$16 sps:$4 sm:$0xff]   ;;  %v5592_v32 = vld [vmem:[#allocation12 + $0x24] ss:$16 sps:$4 sm:$0xff]  }
  0x6f   :  { %649 = vmatpush2.bf16.msra.mxu0 %v5445_v33  ;;  %690 = vmatpush2.bf16.msra.mxu1 %v4318_v39  ;;  %8421 = vst [vmem:[#allocation43_spill] sm:$0xff] %v5586_v31  ;;  %v5594_v35 = vld [vmem:[#allocation12 + $0x2c] ss:$16 sps:$4 sm:$0xff]   ;;  %v5596_v36 = vld [vmem:[#allocation12 + $0x20] ss:$16 sps:$4 sm:$0xff]  }
  0x70   :  { %650 = vmatprep.subr.bf16.mxu0 %v5448_v34  ;;  %691 = vmatprep.subr.bf16.mxu1 %v4321_v40  ;;  %8422 = vst [vmem:[#allocation44_spill] sm:$0xff] %v5594_v35  ;;  %v5598_v39 = vld [vmem:[#allocation12 + $0x28] ss:$16 sps:$4 sm:$0xff]   ;;  %v5604_v40 = vld [vmem:[#allocation12 + $0x4] ss:$16 sps:$4 sm:$0xff]  }
  0x71   :  { %8423 = vst [vmem:[#allocation45_spill] sm:$0xff] %v5598_v39  ;;  %v5618_v62 = vld [vmem:[#allocation12 + $0x1ec] ss:$16 sps:$4 sm:$0xff]  }
  0x72   :  { %8426 = vst [vmem:[#allocation48_spill] sm:$0xff] %v5618_v62 }
  0x73   :  { %651 = vmatpush2.bf16.msra.mxu0 %v5451_v37  ;;  %692 = vmatpush2.bf16.msra.mxu1 %v4324_v43  ;;  %v5606_v43 = vld [vmem:[#allocation12 + $0xc] ss:$16 sps:$4 sm:$0xff]  }
  0x74   :  { %652 = vmatprep.subr.bf16.mxu0 %v5453_v38  ;;  %693 = vmatprep.subr.bf16.mxu1 %v4327_v44  ;;  %8424 = vst [vmem:[#allocation46_spill] sm:$0xff] %v5606_v43  ;;  %v5608_v44 = vld [vmem:[#allocation12] ss:$16 sps:$4 sm:$0xff]  }
  0x77   :  { %653 = vmatpush2.bf16.msra.mxu0 %v5456_v41  ;;  %694 = vmatpush2.bf16.msra.mxu1 %v4330_v47  ;;  %v5610_v47 = vld [vmem:[#allocation12 + $0x8] ss:$16 sps:$4 sm:$0xff]  }
  0x78   :  { %654 = vmatprep.subr.bf16.mxu0 %v5459_v42  ;;  %695 = vmatprep.subr.bf16.mxu1 %v4333_v49  ;;  %8425 = vst [vmem:[#allocation47_spill] sm:$0xff] %v5610_v47  ;;  %v5616_v49 = vld [vmem:[#allocation12 + $0x1e4] ss:$16 sps:$4 sm:$0xff]  }
  0x7b   :  { %655 = vmatpush2.bf16.msra.mxu0 %v5462_v45  ;;  %696 = vmatpush2.bf16.msra.mxu1 %v5473_v51 }
  0x7c   :  { %656 = vmatprep.subr.bf16.mxu0 %v5465_v46  ;;  %697 = vmatprep.subr.bf16.mxu1 %v5475_v52 }
  0x7f   :  { %657 = vmatpush2.bf16.msra.mxu0 %v5468_v48  ;;  %698 = vmatpush2.bf16.msra.mxu1 %v5482_v55 }
  0x80   :  { %658 = vmatprep.subr.bf16.mxu0 %v5470_v50  ;;  %699 = vmatprep.subr.bf16.mxu1 %v5485_v56 }
  0x83   :  { %659 = vmatpush2.bf16.msra.mxu0 %v5478_v53  ;;  %700 = vmatpush2.bf16.msra.mxu1 %v5494_v59 }
  0x84   :  { %660 = vmatprep.subr.bf16.mxu0 %v5480_v54  ;;  %701 = vmatprep.subr.bf16.mxu1 %v5497_v60  ;;  %v186_v60 = vld [vmem:[#allocation11] sm:$0xf] }
  0x87   :  { %661 = vmatpush2.bf16.msra.mxu0 %v5489_v57  ;;  %702 = vmatpush2.bf16.msra.mxu1 %v5504_v63 }
  0x88   :  { %662 = vmatprep.subr.bf16.mxu0 %v5492_v58  ;;  %703 = vmatprep.subr.bf16.mxu1 %v5509_v3  ;;  %v5706_v3 = vld [vmem:[#allocation12 + $0x108] ss:$16 sps:$4 sm:$0xff]  }
  0x89   :  { %8449 = vst [vmem:[#allocation71_spill] sm:$0xff] %v5706_v3 }
  0x8b   :  { %663 = vmatpush2.bf16.msra.mxu0 %v5501_v61  ;;  %704 = vmatpush2.bf16.msra.mxu1 %v5516_v6  ;;  %v5700_v6 = vld [vmem:[#allocation12 + $0x10c] ss:$16 sps:$4 sm:$0xff]  }
  0x8c   :  { %1085 = vmatprep.subr.bf16.mxu0 %v5506_v2  ;;  %1126 = vmatprep.subr.bf16.mxu1 %v5521_v8  ;;  %v5694_v8 = vld [vmem:[#allocation12 + $0x128] ss:$16 sps:$4 sm:$0xff]   ;;  %8447 = vst [vmem:[#allocation69_spill] sm:$0xff] %v5700_v6 }
  0x8d   :  { %8445 = vst [vmem:[#allocation67_spill] sm:$0xff] %v5694_v8 }
  0x8e   :  { %665 = vmatmul.mubr.bf16.vlgmr.msra.gmra.mxu0 %v287_v5  ;;  %706 = vmatmul.mubr.bf16.vlgmr.msra.gmra.mxu1 %v287_v5  ;;  %v5620_v5 = vld [vmem:[#allocation12 + $0x1e0] ss:$16 sps:$4 sm:$0xff]  }
  0x8f   :  { %1086 = vmatpush1.bf16.msra.mxu0 %v5514_v4  ;;  %1117 = vmatprep.mubr.bf16.mxu0 %v5354_v0 }
  0x90   :  { %1087 = vmatprep.subr.bf16.mxu0 %v5518_v7  ;;  %1127 = vmatpush1.bf16.msra.mxu1 %v5526_v9  ;;  %v5688_v9 = vld [vmem:[#allocation12 + $0x12c] ss:$16 sps:$4 sm:$0xff]  }
  0x91   :  { %1158 = vmatprep.mubr.bf16.mxu1 %v5354_v0  ;;  %1128 = vmatprep.subr.bf16.mxu1 %v5529_v10  ;;  %v5556_v0 = vld [vmem:[#allocation12 + $0x84] ss:$16 sps:$4 sm:$0xff]   ;;  %8443 = vst [vmem:[#allocation65_spill] sm:$0xff] %v5688_v9 }
  0x92   :  { %v5686_v10 = vld [vmem:[#allocation12 + $0x124] ss:$16 sps:$4 sm:$0xff]  }
  0x93   :  { %1088 = vmatpush1.bf16.msra.mxu0 %v5538_v11  ;;  %8442 = vst [vmem:[#allocation64_spill] sm:$0xff] %v5686_v10 }
  0x94   :  { %1129 = vmatpush1.bf16.msra.mxu1 %v5540_v12  ;;  %1089 = vmatprep.subr.bf16.mxu0 %v5544_v13  ;;  %v5674_v12 = vld [vmem:[#allocation12 + $0x14c] ss:$16 sps:$4 sm:$0xff]  }
  0x95   :  { %1130 = vmatprep.subr.bf16.mxu1 %v5546_v14  ;;  %v5672_v14 = vld [vmem:[#allocation12 + $0x144] ss:$16 sps:$4 sm:$0xff]   ;;  %8439 = vst [vmem:[#allocation61_spill] sm:$0xff] %v5674_v12 }
  0x96   :  { %8438 = vst [vmem:[#allocation60_spill] sm:$0xff] %v5672_v14 }
  0x97   :  { %1090 = vmatpush1.bf16.msra.mxu0 %v5548_v15 }
  0x98   :  { %1131 = vmatpush1.bf16.msra.mxu1 %v5550_v16  ;;  %1091 = vmatprep.subr.bf16.mxu0 %v5556_v0  ;;  %v5670_v16 = vld [vmem:[#allocation12 + $0x168] ss:$16 sps:$4 sm:$0xff]  }
  0x99   :  { %1132 = vmatprep.subr.bf16.mxu1 %v5558_v17  ;;  %v5666_v17 = vld [vmem:[#allocation12 + $0x16c] ss:$16 sps:$4 sm:$0xff]   ;;  %8437 = vst [vmem:[#allocation59_spill] sm:$0xff] %v5670_v16 }
  0x9a   :  { %8435 = vst [vmem:[#allocation57_spill] sm:$0xff] %v5666_v17 }
  0x9b   :  { %1092 = vmatpush1.bf16.msra.mxu0 %v5560_v18 }
  0x9c   :  { %1133 = vmatpush1.bf16.msra.mxu1 %v5562_v19  ;;  %1093 = vmatprep.subr.bf16.mxu0 %v5568_v20  ;;  %v5658_v19 = vld [vmem:[#allocation12 + $0x188] ss:$16 sps:$4 sm:$0xff]  }
  0x9d   :  { %1134 = vmatprep.subr.bf16.mxu1 %v5570_v21  ;;  %v5654_v21 = vld [vmem:[#allocation12 + $0x18c] ss:$16 sps:$4 sm:$0xff]   ;;  %8433 = vst [vmem:[#allocation55_spill] sm:$0xff] %v5658_v19 }
  0x9e   :  { %8432 = vst [vmem:[#allocation54_spill] sm:$0xff] %v5654_v21 }
  0x9f   :  { %1094 = vmatpush1.bf16.msra.mxu0 %v5572_v22 }
  0xa0   :  { %1135 = vmatpush1.bf16.msra.mxu1 %v5574_v23  ;;  %1095 = vmatprep.subr.bf16.mxu0 %v5580_v24  ;;  %v5646_v23 = vld [vmem:[#allocation12 + $0x1a8] ss:$16 sps:$4 sm:$0xff]  }
  0xa1   :  { %1136 = vmatprep.subr.bf16.mxu1 %v5582_v27  ;;  %v5642_v27 = vld [vmem:[#allocation12 + $0x1ac] ss:$16 sps:$4 sm:$0xff]   ;;  %8431 = vst [vmem:[#allocation53_spill] sm:$0xff] %v5646_v23 }
  0xa2   :  { %8430 = vst [vmem:[#allocation52_spill] sm:$0xff] %v5642_v27 }
  0xa3   :  { %1096 = vmatpush1.bf16.msra.mxu0 %v5584_v28 }
  0xa4   :  { %1137 = vmatpush1.bf16.msra.mxu1 %v5586_v31  ;;  %1097 = vmatprep.subr.bf16.mxu0 %v5592_v32  ;;  %v5634_v31 = vld [vmem:[#allocation12 + $0x1c8] ss:$16 sps:$4 sm:$0xff]  }
  0xa5   :  { %1138 = vmatprep.subr.bf16.mxu1 %v5594_v35  ;;  %v5630_v35 = vld [vmem:[#allocation12 + $0x1cc] ss:$16 sps:$4 sm:$0xff]   ;;  %8429 = vst [vmem:[#allocation51_spill] sm:$0xff] %v5634_v31 }
  0xa6   :  { %8428 = vst [vmem:[#allocation50_spill] sm:$0xff] %v5630_v35 }
  0xa7   :  { %1098 = vmatpush1.bf16.msra.mxu0 %v5596_v36 }
  0xa8   :  { %1139 = vmatpush1.bf16.msra.mxu1 %v5598_v39  ;;  %1099 = vmatprep.subr.bf16.mxu0 %v5604_v40  ;;  %v5622_v39 = vld [vmem:[#allocation12 + $0x1e8] ss:$16 sps:$4 sm:$0xff]  }
  0xa9   :  { %1140 = vmatprep.subr.bf16.mxu1 %v5606_v43  ;;  %8427 = vst [vmem:[#allocation49_spill] sm:$0xff] %v5622_v39  ;;  %v5628_v43 = vld [vmem:[#allocation12 + $0x1c4] ss:$16 sps:$4 sm:$0xff]  }
  0xab   :  { %1100 = vmatpush1.bf16.msra.mxu0 %v5608_v44 }
  0xac   :  { %1141 = vmatpush1.bf16.msra.mxu1 %v5610_v47  ;;  %1101 = vmatprep.subr.bf16.mxu0 %v5616_v49  ;;  %v5632_v47 = vld [vmem:[#allocation12 + $0x1c0] ss:$16 sps:$4 sm:$0xff]  }
  0xad   :  { %1142 = vmatprep.subr.bf16.mxu1 %v5618_v62  ;;  %v5640_v62 = vld [vmem:[#allocation12 + $0x1a4] ss:$16 sps:$4 sm:$0xff]  }
  0xaf   :  { %1102 = vmatpush2.bf16.msra.mxu0 %v5620_v5 }
  0xb0   :  { %1143 = vmatpush2.bf16.msra.mxu1 %v5622_v39  ;;  %1103 = vmatprep.subr.bf16.mxu0 %v5628_v43  ;;  %v5644_v39 = vld [vmem:[#allocation12 + $0x1a0] ss:$16 sps:$4 sm:$0xff]  }
  0xb1   :  { %1144 = vmatprep.subr.bf16.mxu1 %v5630_v35  ;;  %v5652_v35 = vld [vmem:[#allocation12 + $0x184] ss:$16 sps:$4 sm:$0xff]  }
  0xb3   :  { %1104 = vmatpush2.bf16.msra.mxu0 %v5632_v47 }
  0xb4   :  { %1145 = vmatpush2.bf16.msra.mxu1 %v5634_v31  ;;  %1105 = vmatprep.subr.bf16.mxu0 %v5640_v62  ;;  %v5656_v31 = vld [vmem:[#allocation12 + $0x180] ss:$16 sps:$4 sm:$0xff]  }
  0xb5   :  { %1146 = vmatprep.subr.bf16.mxu1 %v5642_v27  ;;  %v5664_v27 = vld [vmem:[#allocation12 + $0x164] ss:$16 sps:$4 sm:$0xff]  }
  0xb6   :  { %8434 = vst [vmem:[#allocation56_spill] sm:$0xff] %v5664_v27 }
  0xb7   :  { %1106 = vmatpush2.bf16.msra.mxu0 %v5644_v39 }
  0xb8   :  { %1147 = vmatpush2.bf16.msra.mxu1 %v5646_v23  ;;  %1107 = vmatprep.subr.bf16.mxu0 %v5652_v35  ;;  %v5668_v23 = vld [vmem:[#allocation12 + $0x160] ss:$16 sps:$4 sm:$0xff]  }
  0xb9   :  { %1148 = vmatprep.subr.bf16.mxu1 %v5654_v21  ;;  %8436 = vst [vmem:[#allocation58_spill] sm:$0xff] %v5668_v23  ;;  %v5682_v21 = vld [vmem:[#allocation12 + $0x148] ss:$16 sps:$4 sm:$0xff]  }
  0xba   :  { %8441 = vst [vmem:[#allocation63_spill] sm:$0xff] %v5682_v21 }
  0xbb   :  { %1108 = vmatpush2.bf16.msra.mxu0 %v5656_v31 }
  0xbc   :  { %1149 = vmatpush2.bf16.msra.mxu1 %v5658_v19  ;;  %1109 = vmatprep.subr.bf16.mxu0 %v5664_v27  ;;  %v5680_v19 = vld [vmem:[#allocation12 + $0x140] ss:$16 sps:$4 sm:$0xff]  }
  0xbd   :  { %1150 = vmatprep.subr.bf16.mxu1 %v5666_v17  ;;  %8440 = vst [vmem:[#allocation62_spill] sm:$0xff] %v5680_v19  ;;  %v5692_v17 = vld [vmem:[#allocation12 + $0x120] ss:$16 sps:$4 sm:$0xff]  }
  0xbe   :  { %8444 = vst [vmem:[#allocation66_spill] sm:$0xff] %v5692_v17 }
  0xbf   :  { %1110 = vmatpush2.bf16.msra.mxu0 %v5668_v23 }
  0xc0   :  { %1151 = vmatpush2.bf16.msra.mxu1 %v5670_v16  ;;  %1111 = vmatprep.subr.bf16.mxu0 %v5672_v14  ;;  %v5698_v16 = vld [vmem:[#allocation12 + $0x104] ss:$16 sps:$4 sm:$0xff]  }
  0xc1   :  { %1152 = vmatprep.subr.bf16.mxu1 %v5674_v12  ;;  %8446 = vst [vmem:[#allocation68_spill] sm:$0xff] %v5698_v16  ;;  %v5704_v12 = vld [vmem:[#allocation12 + $0x100] ss:$16 sps:$4 sm:$0xff]  }
  0xc2   :  { %8448 = vst [vmem:[#allocation70_spill] sm:$0xff] %v5704_v12 }
  0xc3   :  { %1112 = vmatpush2.bf16.msra.mxu0 %v5680_v19 }
  0xc4   :  { %1153 = vmatpush2.bf16.msra.mxu1 %v5682_v21  ;;  %1113 = vmatprep.subr.bf16.mxu0 %v5686_v10 }
  0xc5   :  { %1154 = vmatprep.subr.bf16.mxu1 %v5688_v9  ;;  %v292_v9 = vlaneseq }
  0xc7   :  { %1114 = vmatpush2.bf16.msra.mxu0 %v5692_v17  ;;  %v5712_v21 = vshrl.u32 %v292_v9, 7 }
  0xc8   :  { %1155 = vmatpush2.bf16.msra.mxu1 %v5694_v8  ;;  %1115 = vmatprep.subr.bf16.mxu0 %v5698_v16 }
  0xc9   :  { %1156 = vmatprep.subr.bf16.mxu1 %v5700_v6  ;;  %v8136_v63 = vsub.s32 0, %v5712_v21  ;;  %v8139_v8 = vsub.s32 1, %v5712_v21 }
  0xcb   :  { %1116 = vmatpush2.bf16.msra.mxu0 %v5704_v12  ;;  %v5718_v59 = vrot.slane %v186_v60, %v8136_v63  ;;  %v5722_v56 = vrot.slane %v186_v60, %v8139_v8  ;;  %v8144_v12 = vsub.s32 3, %v5712_v21  ;;  %v8149_v63 = vsub.s32 2, %v5712_v21 }
  0xcc   :  { %1157 = vmatpush2.bf16.msra.mxu1 %v5706_v3 }
  0xcd   :  { %8450 = vst [vmem:[#allocation72_spill] sm:$0xff] %v5718_v59  ;;  %8451 = vst [vmem:[#allocation73_spill] sm:$0xff] %v5722_v56  ;;  %v5730_v8 = vrot.slane %v186_v60, %v8144_v12 }
  0xcf   :  { %8452 = vst [vmem:[#allocation74_spill] sm:$0xff] %v5730_v8 }
 0x14e   :  { %v666_v6 = vpop.f32.mrf.mxu0  ;;  %v707_v17 = vpop.f32.mrf.mxu1 }
 0x14f   :  { %v667_v55 = vadd.f32 %v666_v6, %v5718_v59 }
 0x150   :  { %v668_v3 = vpop.f32.mrf.mxu0  ;;  %v709_v19 = vpop.f32.mrf.mxu1 }
 0x151   :  { %v3646_v52 = vmul.f32 -1.442695, %v667_v55  ;;  %v669_v9 = vadd.f32 %v668_v3, %v5722_v56  ;;  %v5734_v55 = vrot.slane %v186_v60, %v8149_v63  ;;  %v710_v3 = vadd.f32 %v709_v19, %v5730_v8 }
 0x152   :  { %v670_v51 = vpop.f32.mrf.mxu0  ;;  %v711_v6 = vpop.f32.mrf.mxu1 }
 0x153   :  { %4464 = vpow2.f32 %v3646_v52  ;;  %v3647_v16 = vmul.f32 -1.442695, %v669_v9  ;;  %8453 = vst [vmem:[#allocation75_spill] sm:$0xff] %v5734_v55  ;;  %v708_v52 = vadd.f32 %v707_v17, %v5734_v55  ;;  %v3648_v9 = vmul.f32 -1.442695, %v710_v3 }
 0x154   :  { %v671_v10 = vpop.f32.mrf.mxu0  ;;  %v712_v51 = vpop.f32.mrf.mxu1 }
 0x155   :  { %4466 = vpow2.f32 %v3647_v16 }
 0x156   :  { %4468 = vtanh.f32 %v708_v52 }
 0x157   :  { %4470 = vpow2.f32 %v3648_v9  ;;  %v5770_v9 = vld [vmem:[#allocation14 + $0x10] sm:$0xff]  }
 0x158   :  { %8460 = vst [vmem:[#allocation82_spill] sm:$0xff] %v5770_v9 }
 0x160   :  { %v4465_v10 = vpop.eup %4464 }
 0x161   :  { %v717_v16 = vadd.f32 1.0, %v4465_v10  ;;  %v5774_v10 = vld [vmem:[#allocation14 + $0x8] sm:$0xff]  }
 0x162   :  { %v4467_v56 = vpop.eup %4466  ;;  %8461 = vst [vmem:[#allocation83_spill] sm:$0xff] %v5774_v10 }
 0x163   :  { %4472 = vrcp.f32 %v717_v16  ;;  %v723_v59 = vadd.f32 1.0, %v4467_v56  ;;  %v4469_v12 = vpop.eup %4468  ;;  %v5745_v56 = vld [vmem:[#allocation14 + $0x38] sm:$0xff]   ;;  %v5778_v16 = vld [vmem:[#allocation14] sm:$0xff]  }
 0x164   :  { %v4471_v6 = vpop.eup %4470  ;;  %8455 = vst [vmem:[#allocation77_spill] sm:$0xff] %v5745_v56  ;;  %8462 = vst [vmem:[#allocation84_spill] sm:$0xff] %v5778_v16 }
 0x165   :  { %4474 = vrcp.f32 %v723_v59  ;;  %v730_v60 = vadd.f32 1.0, %v4471_v6  ;;  %v8152_v59 = vmov 0.0   ;;  %v251_v6 = vld [vmem:[%s8081_s4] sm:$0xf] }
 0x166   :  { %3920 = vmatprep.subr.bf16.mxu0 %v8152_v59  ;;  %3940 = vmatprep.subr.bf16.mxu1 %v8152_v59 }
 0x167   :  { %4476 = vrcp.f32 %v730_v60  ;;  %v5786_v60 = vld [vmem:[#allocation15 + $0x38] sm:$0xff]  }
 0x168   :  { %8463 = vst [vmem:[#allocation85_spill] sm:$0xff] %v5786_v60 }
 0x170   :  { %v4473_v14 = vpop.eup %4472 }
 0x171   :  { %v734_v51 = vmul.f32 %v4473_v14, %v4469_v12  ;;  %v5755_v12 = vld [vmem:[#allocation14 + $0x28] sm:$0xff]   ;;  %v5759_v14 = vld [vmem:[#allocation14 + $0x20] sm:$0xff]  }
 0x172   :  { %v4475_v23 = vpop.eup %4474  ;;  %8457 = vst [vmem:[#allocation79_spill] sm:$0xff] %v5755_v12  ;;  %8458 = vst [vmem:[#allocation80_spill] sm:$0xff] %v5759_v14 }
 0x173   :  { %v733_v63 = vmul.f32 0.0, %v4475_v23  ;;  %v5763_v23 = vld [vmem:[#allocation14 + $0x18] sm:$0xff]  }
 0x174   :  { %v4477_v17 = vpop.eup %4476  ;;  %8459 = vst [vmem:[#allocation81_spill] sm:$0xff] %v5763_v23 }
 0x175   :  { %v5738_v27 = vadd.f32 %v734_v51, %v733_v63  ;;  %v5751_v63 = vld [vmem:[#allocation14 + $0x30] sm:$0xff]   ;;  %v8464_v51 = vsub.s32 0, %v5712_v21 }
 0x176   :  { %8456 = vst [vmem:[#allocation78_spill] sm:$0xff] %v5751_v63 }
 0x177   :  { %8454 = vst [vmem:[#allocation76_spill] sm:$0xff] %v5738_v27  ;;  %4478 = vtanh.f32 %v5738_v27 }
 0x184   :  { %v4479_v19 = vpop.eup %4478 }
 0x185   :  { %v737_v3 = vmul.f32 %v4479_v19, %v4477_v17  ;;  %v5790_v17 = vrot.slane %v251_v6, %v8464_v51  ;;  %v5793_v19 = vld [vmem:[#allocation15 + $0x30] sm:$0xff]   ;;  %v5802_v51 = vld [vmem:[#allocation15 + $0x28] sm:$0xff]  }
 0x187   :  { %v5741_v52 = vpack.c.bf16 %v737_v3, %v737_v3  ;;  %8465 = vst [vmem:[#allocation86_spill] sm:$0xff] %v5790_v17  ;;  %v8466_v3 = vsub.s32 1, %v5712_v21 }
 0x189   :  { %1118 = vmatmul.mubr.bf16.vlgmr.msra.gmra.mxu0 %v5741_v52  ;;  %1159 = vmatmul.mubr.bf16.vlgmr.msra.gmra.mxu1 %v5741_v52 }
 0x18a   :  { %3921 = vmatpush3.bf16.msra.mxu0 %v5745_v56  ;;  %3936 = vmatprep.mubr.msk.bf16.mxu0 %vm5356_vm0, %v8152_v59 }
 0x18b   :  { %3922 = vmatprep.subr.bf16.mxu0 %v8152_v59  ;;  %3956 = vmatprep.mubr.msk.bf16.mxu1 %vm5356_vm0, %v8152_v59 }
 0x18c   :  { %3941 = vmatpush3.bf16.msra.mxu1 %v5786_v60 }
 0x18e   :  { %3923 = vmatpush3.bf16.msra.mxu0 %v5751_v63 }
 0x18f   :  { %3924 = vmatprep.subr.bf16.mxu0 %v8152_v59 }
 0x192   :  { %3925 = vmatpush3.bf16.msra.mxu0 %v5755_v12 }
 0x193   :  { %3926 = vmatprep.subr.bf16.mxu0 %v8152_v59 }
 0x196   :  { %3927 = vmatpush3.bf16.msra.mxu0 %v5759_v14 }
 0x197   :  { %3928 = vmatprep.subr.bf16.mxu0 %v8152_v59 }
 0x19a   :  { %3929 = vmatpush3.bf16.msra.mxu0 %v5763_v23 }
 0x19b   :  { %3930 = vmatprep.subr.bf16.mxu0 %v8152_v59 }
 0x19e   :  { %3931 = vmatpush3.bf16.msra.mxu0 %v5770_v9 }
 0x19f   :  { %3932 = vmatprep.subr.bf16.mxu0 %v8152_v59 }
 0x1a2   :  { %3933 = vmatpush3.bf16.msra.mxu0 %v5774_v10 }
 0x1a3   :  { %3934 = vmatprep.subr.bf16.mxu0 %v8152_v59  ;;  %v5797_v59 = vrot.slane %v251_v6, %v8466_v3 }
 0x1a5   :  { %8467 = vst [vmem:[#allocation87_spill] sm:$0xff] %v5797_v59 }
 0x1a6   :  { %3935 = vmatpush3.bf16.msra.mxu0 %v5778_v16  ;;  %v8468_v16 = vmov 0.0  }
 0x1a7   :  { %1391 = vmatprep.subr.bf16.mxu0 %v5431_v1  ;;  %3942 = vmatprep.subr.bf16.mxu1 %v8468_v16 }
 0x1a8   :  { %3943 = vmatpush3.bf16.msra.mxu1 %v5793_v19 }
 0x1a9   :  { %3944 = vmatprep.subr.bf16.mxu1 %v8468_v16 }
 0x1ac   :  { %3945 = vmatpush3.bf16.msra.mxu1 %v5802_v51 }
 0x1ad   :  { %3946 = vmatprep.subr.bf16.mxu1 %v8468_v16 }
 0x249   :  { %v1119_v1 = vpop.f32.mrf.mxu0  ;;  %v1160_v10 = vpop.f32.mrf.mxu1 }
 0x24a   :  { %v1120_v9 = vadd.f32 %v1119_v1, %v5790_v17  ;;  %v5807_v1 = vld [vmem:[#allocation15 + $0x20] sm:$0xff]   ;;  %v8469_v17 = vsub.s32 3, %v5712_v21 }
 0x24b   :  { %v1121_v23 = vpop.f32.mrf.mxu0  ;;  %v1162_v14 = vpop.f32.mrf.mxu1  ;;  %3947 = vmatpush3.bf16.msra.mxu1 %v5807_v1 }
 0x24c   :  { %v3713_v12 = vmul.f32 -1.442695, %v1120_v9  ;;  %v1122_v63 = vadd.f32 %v1121_v23, %v5797_v59  ;;  %v5812_v9 = vrot.slane %v251_v6, %v8469_v17  ;;  %v5815_v23 = vld [vmem:[#allocation15 + $0x18] sm:$0xff]   ;;  %3948 = vmatprep.subr.bf16.mxu1 %v8468_v16 }
 0x24d   :  { %v1123_v60 = vpop.f32.mrf.mxu0  ;;  %v1164_v3 = vpop.f32.mrf.mxu1 }
 0x24e   :  { %4480 = vpow2.f32 %v3713_v12  ;;  %v3714_v56 = vmul.f32 -1.442695, %v1122_v63  ;;  %8470 = vst [vmem:[#allocation88_spill] sm:$0xff] %v5812_v9  ;;  %v5829_v3 = vld [vmem:[#allocation15 + $0x8] sm:$0xff]  }
 0x24f   :  { %v1124_v27 = vpop.f32.mrf.mxu0  ;;  %v1165_v8 = vpop.f32.mrf.mxu1  ;;  %3949 = vmatpush3.bf16.msra.mxu1 %v5815_v23 }
 0x250   :  { %4482 = vpow2.f32 %v3714_v56  ;;  %v1163_v27 = vadd.f32 %v1162_v14, %v5812_v9  ;;  %v8471_v8 = vsub.s32 2, %v5712_v21  ;;  %v5824_v56 = vld [vmem:[#allocation15 + $0x10] sm:$0xff]   ;;  %3950 = vmatprep.subr.bf16.mxu1 %v8468_v16 }
 0x251   :  { %8473 = vst [vmem:[#allocation90_spill] sm:$0xff] %v5824_v56 }
 0x252   :  { %v5821_v63 = vrot.slane %v251_v6, %v8471_v8  ;;  %v3715_v12 = vmul.f32 -1.442695, %v1163_v27 }
 0x253   :  { %3951 = vmatpush3.bf16.msra.mxu1 %v5824_v56 }
 0x254   :  { %8472 = vst [vmem:[#allocation89_spill] sm:$0xff] %v5821_v63  ;;  %v1161_v17 = vadd.f32 %v1160_v10, %v5821_v63  ;;  %3952 = vmatprep.subr.bf16.mxu1 %v8468_v16  ;;  %4484 = vpow2.f32 %v3715_v12 }
 0x257   :  { %3953 = vmatpush3.bf16.msra.mxu1 %v5829_v3 }
 0x258   :  { %3954 = vmatprep.subr.bf16.mxu1 %v8468_v16 }
 0x25b   :  { %v4481_v60 = vpop.eup %4480 }
 0x25c   :  { %v1170_v59 = vadd.f32 1.0, %v4481_v60 }
 0x25d   :  { %v4483_v21 = vpop.eup %4482 }
 0x25e   :  { %4486 = vrcp.f32 %v1170_v59  ;;  %v1176_v14 = vadd.f32 1.0, %v4483_v21 }
 0x25f   :  { %4488 = vtanh.f32 %v1161_v17 }
 0x260   :  { %4490 = vrcp.f32 %v1176_v14  ;;  %v5840_v14 = vld [vmem:[#allocation9 + $0xe0] ss:$16 sps:$4 sm:$0xff]  }
 0x261   :  { %v4485_v6 = vpop.eup %4484 }
 0x262   :  { %v1183_v63 = vadd.f32 1.0, %v4485_v6  ;;  %v5844_v6 = vld [vmem:[#allocation9 + $0xc4] ss:$16 sps:$4 sm:$0xff]  }
 0x264   :  { %4492 = vrcp.f32 %v1183_v63  ;;  %v5850_v63 = vld [vmem:[#allocation9 + $0xa4] ss:$16 sps:$4 sm:$0xff]  }
 0x26b   :  { %v4487_v27 = vpop.eup %4486 }
 0x26c   :  { %v4489_v10 = vpop.eup %4488 }
 0x26d   :  { %v4491_v8 = vpop.eup %4490  ;;  %v1187_v56 = vmul.f32 %v4489_v10, %v4487_v27  ;;  %v5856_v27 = vld [vmem:[#allocation9 + $0x84] ss:$16 sps:$4 sm:$0xff]   ;;  %v5859_v10 = vld [vmem:[#allocation9 + $0x80] ss:$16 sps:$4 sm:$0xff]  }
 0x26e   :  { %v1186_v9 = vmul.f32 0.0, %v4491_v8  ;;  %8474 = vst [vmem:[#allocation91_spill] sm:$0xff] %v5856_v27  ;;  %v5862_v8 = vld [vmem:[#allocation9 + $0x64] ss:$16 sps:$4 sm:$0xff]  }
 0x270   :  { %v5834_v60 = vadd.f32 %v1187_v56, %v1186_v9  ;;  %v5847_v9 = vld [vmem:[#allocation9 + $0xc0] ss:$16 sps:$4 sm:$0xff]  }
 0x271   :  { %v4493_v59 = vpop.eup %4492  ;;  %v5853_v56 = vld [vmem:[#allocation9 + $0xa0] ss:$16 sps:$4 sm:$0xff]  }
 0x272   :  { %4494 = vtanh.f32 %v5834_v60 }
 0x27f   :  { %v4495_v12 = vpop.eup %4494 }
 0x280   :  { %v1190_v17 = vmul.f32 %v4495_v12, %v4493_v59  ;;  %v5865_v59 = vld [vmem:[#allocation9 + $0x60] ss:$16 sps:$4 sm:$0xff]   ;;  %v5868_v12 = vld [vmem:[#allocation9 + $0x44] ss:$16 sps:$4 sm:$0xff]  }
 0x282   :  { %v5837_v21 = vpack.c.bf16 %v1190_v17, %v1190_v17  ;;  %v5871_v17 = vld [vmem:[#allocation9 + $0x40] ss:$16 sps:$4 sm:$0xff]  }
 0x284   :  { %3937 = vmatmul.mubr.bf16.vlgmr.msra.gmra.mxu0 %v5837_v21 }
 0x285   :  { %1392 = vmatpush1.bf16.msra.mxu0 %v5840_v14  ;;  %1423 = vmatprep.mubr.bf16.mxu0 %v5741_v52 }
 0x286   :  { %1393 = vmatprep.subr.bf16.mxu0 %v5844_v6 }
 0x289   :  { %1394 = vmatpush1.bf16.msra.mxu0 %v5847_v9 }
 0x28a   :  { %1395 = vmatprep.subr.bf16.mxu0 %v5850_v63 }
 0x28d   :  { %1396 = vmatpush1.bf16.msra.mxu0 %v5853_v56 }
 0x28e   :  { %1397 = vmatprep.subr.bf16.mxu0 %v5856_v27  ;;  %v5874_v27 = vld [vmem:[#allocation9 + $0x24] ss:$16 sps:$4 sm:$0xff]  }
 0x291   :  { %1398 = vmatpush1.bf16.msra.mxu0 %v5859_v10 }
 0x292   :  { %1399 = vmatprep.subr.bf16.mxu0 %v5862_v8 }
 0x295   :  { %1400 = vmatpush1.bf16.msra.mxu0 %v5865_v59 }
 0x296   :  { %1401 = vmatprep.subr.bf16.mxu0 %v5868_v12 }
 0x299   :  { %1402 = vmatpush1.bf16.msra.mxu0 %v5871_v17 }
 0x29a   :  { %1403 = vmatprep.subr.bf16.mxu0 %v5874_v27 }
 0x29d   :  { %1404 = vmatpush1.bf16.msra.mxu0 %v5434_v25  ;;  %v1386_v25 = vld [vmem:[#allocation6 + $0x8] sm:$0xff] }
 0x29e   :  { %1405 = vmatprep.subr.bf16.mxu0 %v5436_v26  ;;  %v5895_v26 = vpack.c.bf16 %v1386_v25, %v1386_v25  ;;  %v8494_v25 = vld [vmem:[#allocation25_spill] sm:$0xff] }
 0x2a1   :  { %1406 = vmatpush1.bf16.msra.mxu0 %v5439_v29  ;;  %v5902_v29 = vld [vmem:[#allocation15] sm:$0xff]  }
 0x2a2   :  { %1407 = vmatprep.subr.bf16.mxu0 %v5441_v30  ;;  %8475 = vst [vmem:[#allocation92_spill] sm:$0xff] %v5902_v29  ;;  %3955 = vmatpush3.bf16.msra.mxu1 %v5902_v29  ;;  %v5906_v30 = vld [vmem:[#allocation9 + $0xec] ss:$16 sps:$4 sm:$0xff]  }
 0x2a3   :  { %8476 = vst [vmem:[#allocation93_spill] sm:$0xff] %v5906_v30  ;;  %1432 = vmatprep.subr.bf16.mxu1 %v5906_v30 }
 0x2a5   :  { %1408 = vmatpush2.bf16.msra.mxu0 %v5445_v33  ;;  %v8477_v33 = vld [vmem:[#allocation56_spill] sm:$0xff] }
 0x2a6   :  { %1409 = vmatprep.subr.bf16.mxu0 %v5448_v34  ;;  %v8478_v34 = vld [vmem:[#allocation58_spill] sm:$0xff] }
 0x2a9   :  { %1410 = vmatpush2.bf16.msra.mxu0 %v5451_v37  ;;  %v8479_v37 = vld [vmem:[#allocation60_spill] sm:$0xff] }
 0x2aa   :  { %1411 = vmatprep.subr.bf16.mxu0 %v5453_v38  ;;  %v8480_v38 = vld [vmem:[#allocation62_spill] sm:$0xff] }
 0x2ad   :  { %1412 = vmatpush2.bf16.msra.mxu0 %v5456_v41  ;;  %v8481_v41 = vld [vmem:[#allocation64_spill] sm:$0xff] }
 0x2ae   :  { %1413 = vmatprep.subr.bf16.mxu0 %v5459_v42  ;;  %v8482_v42 = vld [vmem:[#allocation66_spill] sm:$0xff] }
 0x2b1   :  { %1414 = vmatpush2.bf16.msra.mxu0 %v5462_v45  ;;  %v8483_v45 = vld [vmem:[#allocation68_spill] sm:$0xff] }
 0x2b2   :  { %1415 = vmatprep.subr.bf16.mxu0 %v5465_v46  ;;  %v8484_v46 = vld [vmem:[#allocation70_spill] sm:$0xff] }
 0x2b5   :  { %1416 = vmatpush2.bf16.msra.mxu0 %v5468_v48  ;;  %v5942_v48 = vld [vmem:[%s8083_s6] ss:$0 sm:$0xff] }
 0x2b6   :  { %1417 = vmatprep.subr.bf16.mxu0 %v5470_v50 }
 0x2b9   :  { %1418 = vmatpush2.bf16.msra.mxu0 %v5478_v53 }
 0x2ba   :  { %1419 = vmatprep.subr.bf16.mxu0 %v5480_v54 }
 0x2bd   :  { %1420 = vmatpush2.bf16.msra.mxu0 %v5489_v57 }
 0x2be   :  { %1421 = vmatprep.subr.bf16.mxu0 %v5492_v58 }
 0x2c1   :  { %1422 = vmatpush2.bf16.msra.mxu0 %v5501_v61 }
 0x2c2   :  { %1503 = vmatprep.subr.bf16.mxu0 %v5506_v2 }
 0x2c4   :  { %1424 = vmatmul.mubr.bf16.vlgmr.msra.gmra.mxu0 %v5895_v26 }
 0x2c5   :  { %1535 = vmatprep.mubr.bf16.mxu0 %v5837_v21  ;;  %1504 = vmatpush1.bf16.msra.mxu0 %v5514_v4  ;;  %v5945_v4 = vld [vmem:[#allocation9 + $0xe8] ss:$16 sps:$4 sm:$0xff]  }
 0x2c6   :  { %1505 = vmatprep.subr.bf16.mxu0 %v5518_v7  ;;  %v5949_v7 = vld [vmem:[#allocation9 + $0xcc] ss:$16 sps:$4 sm:$0xff]  }
 0x2c9   :  { %1506 = vmatpush1.bf16.msra.mxu0 %v5538_v11  ;;  %v5952_v11 = vld [vmem:[#allocation9 + $0xc8] ss:$16 sps:$4 sm:$0xff]  }
 0x2ca   :  { %1507 = vmatprep.subr.bf16.mxu0 %v5544_v13  ;;  %v5955_v13 = vld [vmem:[#allocation9 + $0xac] ss:$16 sps:$4 sm:$0xff]  }
 0x2cd   :  { %1508 = vmatpush1.bf16.msra.mxu0 %v5548_v15  ;;  %v5958_v15 = vld [vmem:[#allocation9 + $0xa8] ss:$16 sps:$4 sm:$0xff]  }
 0x2ce   :  { %1509 = vmatprep.subr.bf16.mxu0 %v5556_v0  ;;  %v5961_v0 = vld [vmem:[#allocation9 + $0x8c] ss:$16 sps:$4 sm:$0xff]  }
 0x2d1   :  { %1510 = vmatpush1.bf16.msra.mxu0 %v5560_v18  ;;  %v5964_v18 = vld [vmem:[#allocation9 + $0x88] ss:$16 sps:$4 sm:$0xff]  }
 0x2d2   :  { %1511 = vmatprep.subr.bf16.mxu0 %v5568_v20  ;;  %v5967_v20 = vld [vmem:[#allocation9 + $0x6c] ss:$16 sps:$4 sm:$0xff]  }
 0x2d5   :  { %1512 = vmatpush1.bf16.msra.mxu0 %v5572_v22  ;;  %v5970_v22 = vld [vmem:[#allocation9 + $0x68] ss:$16 sps:$4 sm:$0xff]  }
 0x2d6   :  { %1513 = vmatprep.subr.bf16.mxu0 %v5580_v24  ;;  %v5973_v24 = vld [vmem:[#allocation9 + $0x4c] ss:$16 sps:$4 sm:$0xff]  }
 0x2d9   :  { %1514 = vmatpush1.bf16.msra.mxu0 %v5584_v28  ;;  %v5976_v28 = vld [vmem:[#allocation9 + $0x48] ss:$16 sps:$4 sm:$0xff]  }
 0x2da   :  { %1515 = vmatprep.subr.bf16.mxu0 %v5592_v32  ;;  %v5982_v32 = vld [vmem:[#allocation9 + $0x28] ss:$16 sps:$4 sm:$0xff]  }
 0x2dd   :  { %1516 = vmatpush1.bf16.msra.mxu0 %v5596_v36  ;;  %v5988_v36 = vld [vmem:[#allocation9 + $0x8] ss:$16 sps:$4 sm:$0xff]  }
 0x2de   :  { %1517 = vmatprep.subr.bf16.mxu0 %v5604_v40  ;;  %v5994_v40 = vld [vmem:[#allocation9 + $0x1e8] ss:$16 sps:$4 sm:$0xff]  }
 0x2df   :  { %8486 = vst [vmem:[#allocation58_spill] sm:$0xff] %v5994_v40 }
 0x2e1   :  { %1518 = vmatpush1.bf16.msra.mxu0 %v5608_v44  ;;  %v6000_v44 = vld [vmem:[#allocation9 + $0x1c8] ss:$16 sps:$4 sm:$0xff]  }
 0x2e2   :  { %1519 = vmatprep.subr.bf16.mxu0 %v5616_v49  ;;  %8488 = vst [vmem:[#allocation62_spill] sm:$0xff] %v6000_v44  ;;  %v6006_v49 = vld [vmem:[#allocation9 + $0x1a8] ss:$16 sps:$4 sm:$0xff]  }
 0x2e3   :  { %8490 = vst [vmem:[#allocation66_spill] sm:$0xff] %v6006_v49 }
 0x2e5   :  { %1520 = vmatpush2.bf16.msra.mxu0 %v5620_v5  ;;  %v8492_v5 = vld [vmem:[#allocation23_spill] sm:$0xff] }
 0x2e6   :  { %1521 = vmatprep.subr.bf16.mxu0 %v5628_v43  ;;  %v5997_v43 = vld [vmem:[#allocation9 + $0x1cc] ss:$16 sps:$4 sm:$0xff]  }
 0x2e7   :  { %8487 = vst [vmem:[#allocation60_spill] sm:$0xff] %v5997_v43 }
 0x2e9   :  { %1522 = vmatpush2.bf16.msra.mxu0 %v5632_v47  ;;  %v6003_v47 = vld [vmem:[#allocation9 + $0x1ac] ss:$16 sps:$4 sm:$0xff]  }
 0x2ea   :  { %1523 = vmatprep.subr.bf16.mxu0 %v5640_v62  ;;  %8489 = vst [vmem:[#allocation64_spill] sm:$0xff] %v6003_v47  ;;  %v6009_v62 = vld [vmem:[#allocation9 + $0x18c] ss:$16 sps:$4 sm:$0xff]  }
 0x2eb   :  { %8491 = vst [vmem:[#allocation68_spill] sm:$0xff] %v6009_v62 }
 0x2ed   :  { %1524 = vmatpush2.bf16.msra.mxu0 %v5644_v39  ;;  %v5991_v39 = vld [vmem:[#allocation9 + $0x1ec] ss:$16 sps:$4 sm:$0xff]  }
 0x2ee   :  { %1525 = vmatprep.subr.bf16.mxu0 %v5652_v35  ;;  %v5985_v35 = vld [vmem:[#allocation9 + $0xc] ss:$16 sps:$4 sm:$0xff]   ;;  %8485 = vst [vmem:[#allocation56_spill] sm:$0xff] %v5991_v39 }
 0x2f1   :  { %1526 = vmatpush2.bf16.msra.mxu0 %v5656_v31  ;;  %v5979_v31 = vld [vmem:[#allocation9 + $0x2c] ss:$16 sps:$4 sm:$0xff]  }
 0x2f2   :  { %1527 = vmatprep.subr.bf16.mxu0 %v8477_v33 }
 0x2f5   :  { %1528 = vmatpush2.bf16.msra.mxu0 %v8478_v34 }
 0x2f6   :  { %1529 = vmatprep.subr.bf16.mxu0 %v8479_v37 }
 0x2f9   :  { %1530 = vmatpush2.bf16.msra.mxu0 %v8480_v38 }
 0x2fa   :  { %1531 = vmatprep.subr.bf16.mxu0 %v8481_v41 }
 0x2fd   :  { %1532 = vmatpush2.bf16.msra.mxu0 %v8482_v42 }
 0x2fe   :  { %1533 = vmatprep.subr.bf16.mxu0 %v8483_v45 }
 0x301   :  { %1534 = vmatpush2.bf16.msra.mxu0 %v8484_v46 }
 0x302   :  { %3960 = vmatprep.subr.bf16.mxu0 %v8468_v16 }
 0x344   :  { %v1282_v50 = vpop.f32.mrf.mxu0 }
 0x345   :  { %v1283_v53 = vadd.f32 %v5942_v48, %v1282_v50  ;;  %v8495_v50 = vld [vmem:[#allocation26_spill] sm:$0xff] }
 0x346   :  { %v3938_v54 = vpop.f32.mrf.mxu0 }
 0x347   :  { %v1288_v57 = vmax.f32 %v1283_v53, 0.0  ;;  %v8496_v53 = vld [vmem:[#allocation27_spill] sm:$0xff]  ;;  %v8497_v54 = vld [vmem:[#allocation28_spill] sm:$0xff] }
 0x348   :  { %v1285_v58 = vpop.f32.mrf.mxu0 }
 0x349   :  { %v1289_v61 = vpack.c.bf16 %v1288_v57, %v1288_v57  ;;  %v8498_v58 = vld [vmem:[#allocation29_spill] sm:$0xff] }
 0x34a   :  { %v3939_v2 = vpop.f32.mrf.mxu0 }
 0x34b   :  { %3957 = vmatmul.mubr.bf16.vlgmr.msra.gmra.mxu1 %v1289_v61  ;;  %v8499_v61 = vld [vmem:[#allocation30_spill] sm:$0xff] }
 0x34c   :  { %1433 = vmatpush1.bf16.msra.mxu1 %v5945_v4  ;;  %1464 = vmatprep.mubr.bf16.mxu1 %v5741_v52  ;;  %v8493_v52 = vld [vmem:[#allocation24_spill] sm:$0xff] }
 0x34d   :  { %1434 = vmatprep.subr.bf16.mxu1 %v5949_v7 }
 0x350   :  { %1435 = vmatpush1.bf16.msra.mxu1 %v5952_v11 }
 0x351   :  { %1436 = vmatprep.subr.bf16.mxu1 %v5955_v13 }
 0x354   :  { %1437 = vmatpush1.bf16.msra.mxu1 %v5958_v15 }
 0x355   :  { %1438 = vmatprep.subr.bf16.mxu1 %v5961_v0 }
 0x358   :  { %1439 = vmatpush1.bf16.msra.mxu1 %v5964_v18 }
 0x359   :  { %1440 = vmatprep.subr.bf16.mxu1 %v5967_v20 }
 0x35c   :  { %1441 = vmatpush1.bf16.msra.mxu1 %v5970_v22 }
 0x35d   :  { %1442 = vmatprep.subr.bf16.mxu1 %v5973_v24 }
 0x360   :  { %1443 = vmatpush1.bf16.msra.mxu1 %v5976_v28 }
 0x361   :  { %1444 = vmatprep.subr.bf16.mxu1 %v5979_v31 }
 0x364   :  { %1445 = vmatpush1.bf16.msra.mxu1 %v5982_v32 }
 0x365   :  { %1446 = vmatprep.subr.bf16.mxu1 %v5985_v35 }
 0x368   :  { %1447 = vmatpush1.bf16.msra.mxu1 %v5988_v36 }
 0x369   :  { %1448 = vmatprep.subr.bf16.mxu1 %v5991_v39 }
 0x36c   :  { %1449 = vmatpush2.bf16.msra.mxu1 %v5994_v40 }
 0x36d   :  { %1450 = vmatprep.subr.bf16.mxu1 %v5997_v43 }
 0x370   :  { %1451 = vmatpush2.bf16.msra.mxu1 %v6000_v44 }
 0x371   :  { %1452 = vmatprep.subr.bf16.mxu1 %v6003_v47 }
 0x374   :  { %1453 = vmatpush2.bf16.msra.mxu1 %v6006_v49  ;;  %v8500_v49 = vld [vmem:[#allocation31_spill] sm:$0xff] }
 0x375   :  { %1454 = vmatprep.subr.bf16.mxu1 %v6009_v62 }
 0x378   :  { %1455 = vmatpush2.bf16.msra.mxu1 %v8492_v5  ;;  %v8501_v5 = vld [vmem:[#allocation32_spill] sm:$0xff] }
 0x379   :  { %1456 = vmatprep.subr.bf16.mxu1 %v8493_v52 }
 0x37c   :  { %1457 = vmatpush2.bf16.msra.mxu1 %v8494_v25  ;;  %v8502_v25 = vld [vmem:[#allocation33_spill] sm:$0xff] }
 0x37d   :  { %1458 = vmatprep.subr.bf16.mxu1 %v8495_v50  ;;  %v8503_v50 = vld [vmem:[#allocation34_spill] sm:$0xff] }
 0x380   :  { %1459 = vmatpush2.bf16.msra.mxu1 %v8496_v53  ;;  %v8504_v53 = vld [vmem:[#allocation35_spill] sm:$0xff] }
 0x381   :  { %1460 = vmatprep.subr.bf16.mxu1 %v8497_v54  ;;  %v8505_v54 = vld [vmem:[#allocation36_spill] sm:$0xff] }
 0x384   :  { %v1425_v57 = vpop.f32.mrf.mxu0  ;;  %1461 = vmatpush2.bf16.msra.mxu1 %v8498_v58  ;;  %v8506_v58 = vld [vmem:[#allocation37_spill] sm:$0xff] }
 0x385   :  { %1462 = vmatprep.subr.bf16.mxu1 %v8499_v61  ;;  %v8507_v61 = vld [vmem:[#allocation38_spill] sm:$0xff] }
 0x386   :  { %v1427_v2 = vpop.f32.mrf.mxu0 }
 0x388   :  { %1463 = vmatpush2.bf16.msra.mxu1 %v8500_v49  ;;  %v1429_v62 = vpop.f32.mrf.mxu0  ;;  %v8508_v49 = vld [vmem:[#allocation39_spill] sm:$0xff] }
 0x389   :  { %1544 = vmatprep.subr.bf16.mxu1 %v8501_v5  ;;  %v8509_v62 = vld [vmem:[#allocation40_spill] sm:$0xff]  ;;  %v8510_v5 = vld [vmem:[#allocation41_spill] sm:$0xff] }
 0x38a   :  { %v1430_v52 = vpop.f32.mrf.mxu0 }
 0x38b   :  { %1465 = vmatmul.mubr.bf16.vlgmr.msra.gmra.mxu1 %v5895_v26  ;;  %v8511_v26 = vld [vmem:[#allocation42_spill] sm:$0xff]  ;;  %v8513_v52 = vld [vmem:[#allocation44_spill] sm:$0xff] }
 0x38c   :  { %1576 = vmatprep.mubr.bf16.mxu1 %v5837_v21  ;;  %1545 = vmatpush1.bf16.msra.mxu1 %v8502_v25  ;;  %v8512_v21 = vld [vmem:[#allocation43_spill] sm:$0xff]  ;;  %v8514_v25 = vld [vmem:[#allocation45_spill] sm:$0xff] }
 0x38d   :  { %1546 = vmatprep.subr.bf16.mxu1 %v8503_v50  ;;  %v8515_v50 = vld [vmem:[#allocation46_spill] sm:$0xff] }
 0x390   :  { %1547 = vmatpush1.bf16.msra.mxu1 %v8504_v53  ;;  %v8516_v53 = vld [vmem:[#allocation47_spill] sm:$0xff] }
 0x391   :  { %1548 = vmatprep.subr.bf16.mxu1 %v8505_v54  ;;  %v8517_v54 = vld [vmem:[#allocation48_spill] sm:$0xff] }
 0x394   :  { %1549 = vmatpush1.bf16.msra.mxu1 %v8506_v58  ;;  %v8518_v58 = vld [vmem:[#allocation49_spill] sm:$0xff] }
 0x395   :  { %1550 = vmatprep.subr.bf16.mxu1 %v8507_v61  ;;  %v8519_v61 = vld [vmem:[#allocation50_spill] sm:$0xff] }
 0x398   :  { %1551 = vmatpush1.bf16.msra.mxu1 %v8508_v49  ;;  %v8520_v49 = vld [vmem:[#allocation51_spill] sm:$0xff] }
 0x399   :  { %1552 = vmatprep.subr.bf16.mxu1 %v8509_v62  ;;  %v8521_v62 = vld [vmem:[#allocation52_spill] sm:$0xff] }
 0x39c   :  { %1553 = vmatpush1.bf16.msra.mxu1 %v8510_v5  ;;  %v8522_v5 = vld [vmem:[#allocation53_spill] sm:$0xff] }
 0x39d   :  { %1554 = vmatprep.subr.bf16.mxu1 %v8511_v26  ;;  %v8523_v26 = vld [vmem:[#allocation54_spill] sm:$0xff] }
 0x3a0   :  { %1555 = vmatpush1.bf16.msra.mxu1 %v8512_v21  ;;  %v8524_v21 = vld [vmem:[#allocation55_spill] sm:$0xff] }
 0x3a1   :  { %1556 = vmatprep.subr.bf16.mxu1 %v8513_v52  ;;  %v8525_v52 = vld [vmem:[#allocation57_spill] sm:$0xff] }
 0x3a4   :  { %1557 = vmatpush1.bf16.msra.mxu1 %v8514_v25  ;;  %v8526_v25 = vld [vmem:[#allocation59_spill] sm:$0xff] }
 0x3a5   :  { %1558 = vmatprep.subr.bf16.mxu1 %v8515_v50  ;;  %v8527_v50 = vld [vmem:[#allocation61_spill] sm:$0xff] }
 0x3a8   :  { %1559 = vmatpush1.bf16.msra.mxu1 %v8516_v53  ;;  %v8528_v53 = vld [vmem:[#allocation63_spill] sm:$0xff] }
 0x3a9   :  { %1560 = vmatprep.subr.bf16.mxu1 %v8517_v54  ;;  %v8529_v54 = vld [vmem:[#allocation65_spill] sm:$0xff] }
 0x3ac   :  { %1561 = vmatpush2.bf16.msra.mxu1 %v8518_v58  ;;  %v8530_v58 = vld [vmem:[#allocation67_spill] sm:$0xff] }
 0x3ad   :  { %1562 = vmatprep.subr.bf16.mxu1 %v8519_v61  ;;  %v8531_v61 = vld [vmem:[#allocation69_spill] sm:$0xff] }
 0x3b0   :  { %1563 = vmatpush2.bf16.msra.mxu1 %v8520_v49  ;;  %v8532_v49 = vld [vmem:[#allocation71_spill] sm:$0xff] }
 0x3b1   :  { %1564 = vmatprep.subr.bf16.mxu1 %v8521_v62  ;;  %v6059_v62 = vld [vmem:[%s8085_s8] ss:$0 sm:$0xff] }
 0x3b4   :  { %1565 = vmatpush2.bf16.msra.mxu1 %v8522_v5 }
 0x3b5   :  { %1566 = vmatprep.subr.bf16.mxu1 %v8523_v26 }
 0x3b8   :  { %1567 = vmatpush2.bf16.msra.mxu1 %v8524_v21 }
 0x3b9   :  { %1568 = vmatprep.subr.bf16.mxu1 %v8525_v52 }
 0x3bc   :  { %1569 = vmatpush2.bf16.msra.mxu1 %v8526_v25 }
 0x3bd   :  { %1570 = vmatprep.subr.bf16.mxu1 %v8527_v50  ;;  %v8533_v50 = vld [vmem:[#allocation72_spill] sm:$0xff] }
 0x3c0   :  { %1571 = vmatpush2.bf16.msra.mxu1 %v8528_v53  ;;  %v1426_v53 = vadd.f32 %v1425_v57, %v8533_v50 }
 0x3c1   :  { %1572 = vmatprep.subr.bf16.mxu1 %v8529_v54  ;;  %v8534_v54 = vld [vmem:[#allocation73_spill] sm:$0xff] }
 0x3c4   :  { %1573 = vmatpush2.bf16.msra.mxu1 %v8530_v58  ;;  %v1428_v58 = vadd.f32 %v1427_v2, %v8534_v54 }
 0x3c5   :  { %1574 = vmatprep.subr.bf16.mxu1 %v8531_v61  ;;  %v3734_v61 = vmul.f32 -1.442695, %v1426_v53 }
 0x3c7   :  { %4496 = vpow2.f32 %v3734_v61 }
 0x3c8   :  { %1575 = vmatpush2.bf16.msra.mxu1 %v8532_v49  ;;  %v3735_v49 = vmul.f32 -1.442695, %v1428_v58 }
 0x3c9   :  { %3980 = vmatprep.subr.bf16.mxu1 %v8468_v16 }
 0x3ca   :  { %4498 = vpow2.f32 %v3735_v49  ;;  %v8536_v49 = vld [vmem:[#allocation76_spill] sm:$0xff] }
 0x3d4   :  { %v4497_v47 = vpop.eup %4496 }
 0x3d5   :  { %v1476_v43 = vadd.f32 1.0, %v4497_v47 }
 0x3d7   :  { %v4499_v44 = vpop.eup %4498  ;;  %4500 = vrcp.f32 %v1476_v43 }
 0x3d8   :  { %v1482_v40 = vadd.f32 1.0, %v4499_v44 }
 0x3da   :  { %4502 = vrcp.f32 %v1482_v40 }
 0x3e4   :  { %v4501_v53 = vpop.eup %4500 }
 0x3e7   :  { %v4503_v58 = vpop.eup %4502 }
 0x3e8   :  { %v1492_v54 = vmul.f32 %v4503_v58, %v8536_v49  ;;  %v8542_v58 = vld [vmem:[#allocation81_spill] sm:$0xff] }
 0x40b   :  { %v1378_v5 = vpop.f32.mrf.mxu1 }
 0x40c   :  { %v1379_v26 = vadd.f32 %v6059_v62, %v1378_v5 }
 0x40d   :  { %v3958_v21 = vpop.f32.mrf.mxu1 }
 0x40e   :  { %1384 = vst [vmem:[#allocation17] sm:$0xff] %v1379_v26  ;;  %v8535_v21 = vld [vmem:[#allocation74_spill] sm:$0xff] }
 0x40f   :  { %v1381_v52 = vpop.f32.mrf.mxu1 }
 0x411   :  { %v3959_v25 = vpop.f32.mrf.mxu1 }
 0x44b   :  { %v1466_v39 = vpop.f32.mrf.mxu1 }
 0x44c   :  { %v1467_v5 = vadd.f32 %v1466_v39, %v5734_v55 }
 0x44d   :  { %v1468_v26 = vpop.f32.mrf.mxu1 }
 0x44e   :  { %4504 = vtanh.f32 %v1467_v5  ;;  %v1469_v52 = vadd.f32 %v1468_v26, %v8535_v21 }
 0x44f   :  { %v1470_v57 = vpop.f32.mrf.mxu1 }
 0x450   :  { %v3736_v25 = vmul.f32 -1.442695, %v1469_v52  ;;  %v8537_v52 = vld [vmem:[#allocation77_spill] sm:$0xff] }
 0x451   :  { %v1471_v2 = vpop.f32.mrf.mxu1 }
 0x452   :  { %4506 = vpow2.f32 %v3736_v25  ;;  %v8539_v25 = vld [vmem:[#allocation78_spill] sm:$0xff]  ;;  %v8540_v2 = vld [vmem:[#allocation79_spill] sm:$0xff] }
 0x45b   :  { %v4505_v61 = vpop.eup %4504 }
 0x45c   :  { %v1493_v47 = vmul.f32 %v4505_v61, %v4501_v53  ;;  %v8541_v53 = vld [vmem:[#allocation80_spill] sm:$0xff]  ;;  %v8545_v61 = vld [vmem:[#allocation83_spill] sm:$0xff] }
 0x45e   :  { %v6067_v44 = vadd.f32 %v1493_v47, %v1492_v54  ;;  %v8538_v54 = vld [vmem:[#allocation85_spill] sm:$0xff] }
 0x45f   :  { %v4507_v43 = vpop.eup %4506 }
 0x460   :  { %v1489_v40 = vadd.f32 1.0, %v4507_v43  ;;  %4508 = vtanh.f32 %v6067_v44  ;;  %v8548_v43 = vld [vmem:[#allocation86_spill] sm:$0xff] }
 0x462   :  { %4510 = vrcp.f32 %v1489_v40 }
 0x46d   :  { %v4509_v39 = vpop.eup %4508 }
 0x46f   :  { %v4511_v5 = vpop.eup %4510 }
 0x470   :  { %v1496_v26 = vmul.f32 %v4511_v5, %v4509_v39 }
 0x472   :  { %v6070_v57 = vpack.c.bf16 %v1496_v26, %v1496_v26 }
 0x474   :  { %1536 = vmatmul.mubr.bf16.vlgmr.msra.gmra.mxu0 %v6070_v57  ;;  %1577 = vmatmul.mubr.bf16.vlgmr.msra.gmra.mxu1 %v6070_v57 }
 0x475   :  { %3961 = vmatpush3.bf16.msra.mxu0 %v8537_v52  ;;  %3976 = vmatprep.mubr.msk.bf16.mxu0 %vm5356_vm0, %v8468_v16 }
 0x476   :  { %3962 = vmatprep.subr.bf16.mxu0 %v8468_v16  ;;  %3981 = vmatpush3.bf16.msra.mxu1 %v8538_v54 }
 0x477   :  { %3982 = vmatprep.subr.bf16.mxu1 %v8468_v16  ;;  %3996 = vmatprep.mubr.msk.bf16.mxu1 %vm5356_vm0, %v8468_v16 }
 0x479   :  { %3963 = vmatpush3.bf16.msra.mxu0 %v8539_v25 }
 0x47a   :  { %3964 = vmatprep.subr.bf16.mxu0 %v8468_v16  ;;  %3983 = vmatpush3.bf16.msra.mxu1 %v5793_v19  ;;  %v8543_v19 = vld [vmem:[#allocation82_spill] sm:$0xff] }
 0x47b   :  { %3984 = vmatprep.subr.bf16.mxu1 %v8468_v16 }
 0x47d   :  { %3965 = vmatpush3.bf16.msra.mxu0 %v8540_v2 }
 0x47e   :  { %3966 = vmatprep.subr.bf16.mxu0 %v8468_v16  ;;  %3985 = vmatpush3.bf16.msra.mxu1 %v5802_v51  ;;  %v8544_v51 = vld [vmem:[#allocation90_spill] sm:$0xff] }
 0x47f   :  { %3986 = vmatprep.subr.bf16.mxu1 %v8468_v16 }
 0x481   :  { %3967 = vmatpush3.bf16.msra.mxu0 %v8541_v53 }
 0x482   :  { %3968 = vmatprep.subr.bf16.mxu0 %v8468_v16  ;;  %3987 = vmatpush3.bf16.msra.mxu1 %v5807_v1  ;;  %v8546_v1 = vld [vmem:[#allocation84_spill] sm:$0xff] }
 0x483   :  { %3988 = vmatprep.subr.bf16.mxu1 %v8468_v16 }
 0x485   :  { %3969 = vmatpush3.bf16.msra.mxu0 %v8542_v58 }
 0x486   :  { %3970 = vmatprep.subr.bf16.mxu0 %v8468_v16  ;;  %3989 = vmatpush3.bf16.msra.mxu1 %v5815_v23  ;;  %v6107_v23 = vld [vmem:[#allocation9 + $0xe4] ss:$16 sps:$4 sm:$0xff]  }
 0x487   :  { %3990 = vmatprep.subr.bf16.mxu1 %v8468_v16  ;;  %8547 = vst [vmem:[#allocation70_spill] sm:$0xff] %v6107_v23 }
 0x489   :  { %3971 = vmatpush3.bf16.msra.mxu0 %v8543_v19  ;;  %v8550_v19 = vld [vmem:[#allocation88_spill] sm:$0xff] }
 0x48a   :  { %3972 = vmatprep.subr.bf16.mxu0 %v8468_v16  ;;  %3991 = vmatpush3.bf16.msra.mxu1 %v8544_v51 }
 0x48b   :  { %3992 = vmatprep.subr.bf16.mxu1 %v8468_v16 }
 0x48d   :  { %3973 = vmatpush3.bf16.msra.mxu0 %v8545_v61 }
 0x48e   :  { %3974 = vmatprep.subr.bf16.mxu0 %v8468_v16  ;;  %3993 = vmatpush3.bf16.msra.mxu1 %v5829_v3  ;;  %v8549_v3 = vld [vmem:[#allocation87_spill] sm:$0xff] }
 0x48f   :  { %3994 = vmatprep.subr.bf16.mxu1 %v8468_v16 }
 0x491   :  { %3975 = vmatpush3.bf16.msra.mxu0 %v8546_v1 }
 0x492   :  { %1702 = vmatprep.subr.bf16.mxu0 %v6107_v23  ;;  %3995 = vmatpush3.bf16.msra.mxu1 %v5902_v29 }
 0x493   :  { %1743 = vmatprep.subr.bf16.mxu1 %v5906_v30  ;;  %v8551_v30 = vld [vmem:[#allocation89_spill] sm:$0xff] }
 0x534   :  { %v1537_v49 = vpop.f32.mrf.mxu0  ;;  %v1578_v47 = vpop.f32.mrf.mxu1 }
 0x535   :  { %v1538_v40 = vadd.f32 %v1537_v49, %v8548_v43  ;;  %v1579_v29 = vadd.f32 %v1578_v47, %v8551_v30 }
 0x536   :  { %v1539_v39 = vpop.f32.mrf.mxu0  ;;  %v1580_v5 = vpop.f32.mrf.mxu1 }
 0x537   :  { %v3737_v26 = vmul.f32 -1.442695, %v1538_v40  ;;  %v1540_v52 = vadd.f32 %v1539_v39, %v8549_v3  ;;  %v1581_v51 = vadd.f32 %v1580_v5, %v8550_v19 }
 0x538   :  { %v1541_v54 = vpop.f32.mrf.mxu0  ;;  %v1582_v25 = vpop.f32.mrf.mxu1 }
 0x539   :  { %4512 = vpow2.f32 %v3737_v26  ;;  %v3738_v2 = vmul.f32 -1.442695, %v1540_v52  ;;  %v3739_v61 = vmul.f32 -1.442695, %v1581_v51 }
 0x53a   :  { %v1542_v53 = vpop.f32.mrf.mxu0  ;;  %v1583_v58 = vpop.f32.mrf.mxu1 }
 0x53b   :  { %4514 = vpow2.f32 %v3738_v2 }
 0x53c   :  { %4516 = vpow2.f32 %v3739_v61  ;;  %v6172_v61 = vld [vmem:[#allocation9 + $0x160] ss:$16 sps:$4 sm:$0xff]  }
 0x546   :  { %v4513_v1 = vpop.eup %4512 }
 0x547   :  { %v1588_v23 = vadd.f32 1.0, %v4513_v1  ;;  %v6175_v1 = vld [vmem:[#allocation9 + $0x144] ss:$16 sps:$4 sm:$0xff]  }
 0x548   :  { %v4515_v49 = vpop.eup %4514 }
 0x549   :  { %4518 = vrcp.f32 %v1588_v23  ;;  %v1594_v40 = vadd.f32 1.0, %v4515_v49  ;;  %v4517_v39 = vpop.eup %4516  ;;  %v6178_v49 = vld [vmem:[#allocation9 + $0x140] ss:$16 sps:$4 sm:$0xff]  }
 0x54a   :  { %4520 = vtanh.f32 %v1579_v29  ;;  %v1601_v25 = vadd.f32 1.0, %v4517_v39  ;;  %v6169_v29 = vld [vmem:[#allocation9 + $0x164] ss:$16 sps:$4 sm:$0xff]   ;;  %v6184_v39 = vld [vmem:[#allocation9 + $0x120] ss:$16 sps:$4 sm:$0xff]  }
 0x54b   :  { %4522 = vrcp.f32 %v1594_v40  ;;  %v6181_v40 = vld [vmem:[#allocation9 + $0x124] ss:$16 sps:$4 sm:$0xff]  }
 0x54c   :  { %4524 = vrcp.f32 %v1601_v25  ;;  %v6192_v25 = vld [vmem:[#allocation9 + $0x100] ss:$16 sps:$4 sm:$0xff]  }
 0x556   :  { %v4519_v54 = vpop.eup %4518 }
 0x557   :  { %v4521_v26 = vpop.eup %4520 }
 0x558   :  { %v4523_v52 = vpop.eup %4522  ;;  %v1605_v53 = vmul.f32 %v4521_v26, %v4519_v54  ;;  %v1697_v54 = vld [vmem:[#allocation6 + $0x10] sm:$0xff] }
 0x559   :  { %v1604_v2 = vmul.f32 %v4523_v52, %v5834_v60  ;;  %v4525_v47 = vpop.eup %4524  ;;  %v8552_v60 = vld [vmem:[#allocation91_spill] sm:$0xff]  ;;  %v6190_v52 = vpack.c.bf16 %v1697_v54, %v1697_v54 }
 0x55a   :  { %v6187_v26 = vld [vmem:[#allocation9 + $0x104] ss:$16 sps:$4 sm:$0xff]   ;;  %v6215_v54 = vld [vmem:[#allocation12 + $0x84] ss:$16 sps:$4 sm:$0xff]  }
 0x55b   :  { %v6117_v5 = vadd.f32 %v1605_v53, %v1604_v2  ;;  %v6195_v53 = vld [vmem:[#allocation12 + $0xe4] ss:$16 sps:$4 sm:$0xff]   ;;  %v6200_v2 = vld [vmem:[#allocation12 + $0xe0] ss:$16 sps:$4 sm:$0xff]   ;;  %8558 = vst [vmem:[#allocation28_spill] sm:$0xff] %v6215_v54 }
 0x55c   :  { %8553 = vst [vmem:[#allocation23_spill] sm:$0xff] %v6200_v2 }
 0x55d   :  { %4526 = vtanh.f32 %v6117_v5 }
 0x56a   :  { %v4527_v58 = vpop.eup %4526 }
 0x56b   :  { %v1608_v51 = vmul.f32 %v4527_v58, %v4525_v47  ;;  %v6203_v47 = vld [vmem:[#allocation12 + $0xc4] ss:$16 sps:$4 sm:$0xff]   ;;  %v6206_v58 = vld [vmem:[#allocation12 + $0xc0] ss:$16 sps:$4 sm:$0xff]  }
 0x56c   :  { %8554 = vst [vmem:[#allocation24_spill] sm:$0xff] %v6203_v47  ;;  %8555 = vst [vmem:[#allocation25_spill] sm:$0xff] %v6206_v58 }
 0x56d   :  { %v6120_v23 = vpack.c.bf16 %v1608_v51, %v1608_v51  ;;  %v6209_v51 = vld [vmem:[#allocation12 + $0xa4] ss:$16 sps:$4 sm:$0xff]  }
 0x56e   :  { %8556 = vst [vmem:[#allocation26_spill] sm:$0xff] %v6209_v51 }
 0x56f   :  { %3977 = vmatmul.mubr.bf16.vlgmr.msra.gmra.mxu0 %v6120_v23 }
 0x570   :  { %1703 = vmatpush1.bf16.msra.mxu0 %v5840_v14  ;;  %1734 = vmatprep.mubr.bf16.mxu0 %v6070_v57  ;;  %v6136_v14 = vld [vmem:[#allocation9 + $0x20] ss:$16 sps:$4 sm:$0xff]  }
 0x571   :  { %1704 = vmatprep.subr.bf16.mxu0 %v5844_v6  ;;  %v6139_v6 = vld [vmem:[#allocation9 + $0x4] ss:$16 sps:$4 sm:$0xff]  }
 0x574   :  { %1705 = vmatpush1.bf16.msra.mxu0 %v5847_v9  ;;  %v6142_v9 = vld [vmem:[#allocation9] ss:$16 sps:$4 sm:$0xff]  }
 0x575   :  { %1706 = vmatprep.subr.bf16.mxu0 %v5850_v63  ;;  %v6145_v63 = vld [vmem:[#allocation9 + $0x1e4] ss:$16 sps:$4 sm:$0xff]  }
 0x578   :  { %1707 = vmatpush1.bf16.msra.mxu0 %v5853_v56  ;;  %v6148_v56 = vld [vmem:[#allocation9 + $0x1e0] ss:$16 sps:$4 sm:$0xff]  }
 0x579   :  { %1708 = vmatprep.subr.bf16.mxu0 %v8552_v60  ;;  %v6212_v60 = vld [vmem:[#allocation12 + $0xa0] ss:$16 sps:$4 sm:$0xff]  }
 0x57a   :  { %8557 = vst [vmem:[#allocation27_spill] sm:$0xff] %v6212_v60 }
 0x57c   :  { %1709 = vmatpush1.bf16.msra.mxu0 %v5859_v10  ;;  %v6154_v10 = vld [vmem:[#allocation9 + $0x1c0] ss:$16 sps:$4 sm:$0xff]  }
 0x57d   :  { %1710 = vmatprep.subr.bf16.mxu0 %v5862_v8  ;;  %v6157_v8 = vld [vmem:[#allocation9 + $0x1a4] ss:$16 sps:$4 sm:$0xff]  }
 0x580   :  { %1711 = vmatpush1.bf16.msra.mxu0 %v5865_v59  ;;  %v6160_v59 = vld [vmem:[#allocation9 + $0x1a0] ss:$16 sps:$4 sm:$0xff]  }
 0x581   :  { %1712 = vmatprep.subr.bf16.mxu0 %v5868_v12  ;;  %v6163_v12 = vld [vmem:[#allocation9 + $0x184] ss:$16 sps:$4 sm:$0xff]  }
 0x584   :  { %1713 = vmatpush1.bf16.msra.mxu0 %v5871_v17  ;;  %v6166_v17 = vld [vmem:[#allocation9 + $0x180] ss:$16 sps:$4 sm:$0xff]  }
 0x585   :  { %1714 = vmatprep.subr.bf16.mxu0 %v5874_v27  ;;  %v6151_v27 = vld [vmem:[#allocation9 + $0x1c4] ss:$16 sps:$4 sm:$0xff]  }
 0x588   :  { %1715 = vmatpush1.bf16.msra.mxu0 %v6136_v14 }
 0x589   :  { %1716 = vmatprep.subr.bf16.mxu0 %v6139_v6 }
 0x58c   :  { %1717 = vmatpush1.bf16.msra.mxu0 %v6142_v9 }
 0x58d   :  { %1718 = vmatprep.subr.bf16.mxu0 %v6145_v63 }
 0x590   :  { %1719 = vmatpush2.bf16.msra.mxu0 %v6148_v56 }
 0x591   :  { %1720 = vmatprep.subr.bf16.mxu0 %v6151_v27 }
 0x594   :  { %1721 = vmatpush2.bf16.msra.mxu0 %v6154_v10 }
 0x595   :  { %1722 = vmatprep.subr.bf16.mxu0 %v6157_v8 }
 0x598   :  { %1723 = vmatpush2.bf16.msra.mxu0 %v6160_v59 }
 0x599   :  { %1724 = vmatprep.subr.bf16.mxu0 %v6163_v12 }
 0x59c   :  { %1725 = vmatpush2.bf16.msra.mxu0 %v6166_v17 }
 0x59d   :  { %1726 = vmatprep.subr.bf16.mxu0 %v6169_v29 }
 0x5a0   :  { %1727 = vmatpush2.bf16.msra.mxu0 %v6172_v61 }
 0x5a1   :  { %1728 = vmatprep.subr.bf16.mxu0 %v6175_v1 }
 0x5a4   :  { %1729 = vmatpush2.bf16.msra.mxu0 %v6178_v49 }
 0x5a5   :  { %1730 = vmatprep.subr.bf16.mxu0 %v6181_v40 }
 0x5a8   :  { %1731 = vmatpush2.bf16.msra.mxu0 %v6184_v39 }
 0x5a9   :  { %1732 = vmatprep.subr.bf16.mxu0 %v6187_v26 }
 0x5ac   :  { %1733 = vmatpush2.bf16.msra.mxu0 %v6192_v25 }
 0x5ad   :  { %1814 = vmatprep.subr.bf16.mxu0 %v6195_v53 }
 0x5af   :  { %1735 = vmatmul.mubr.bf16.vlgmr.msra.gmra.mxu0 %v6190_v52 }
 0x5b0   :  { %1846 = vmatprep.mubr.bf16.mxu0 %v6120_v23  ;;  %1815 = vmatpush1.bf16.msra.mxu0 %v6200_v2  ;;  %v6218_v2 = vld [vmem:[#allocation12 + $0x80] ss:$16 sps:$4 sm:$0xff]  }
 0x5b1   :  { %1816 = vmatprep.subr.bf16.mxu0 %v6203_v47  ;;  %8559 = vst [vmem:[#allocation29_spill] sm:$0xff] %v6218_v2  ;;  %v6221_v47 = vld [vmem:[#allocation12 + $0x64] ss:$16 sps:$4 sm:$0xff]  }
 0x5b2   :  { %8560 = vst [vmem:[#allocation30_spill] sm:$0xff] %v6221_v47 }
 0x5b4   :  { %1817 = vmatpush1.bf16.msra.mxu0 %v6206_v58  ;;  %v6224_v58 = vld [vmem:[#allocation12 + $0x60] ss:$16 sps:$4 sm:$0xff]  }
 0x5b5   :  { %1818 = vmatprep.subr.bf16.mxu0 %v6209_v51  ;;  %8561 = vst [vmem:[#allocation31_spill] sm:$0xff] %v6224_v58  ;;  %v6227_v51 = vld [vmem:[#allocation12 + $0x44] ss:$16 sps:$4 sm:$0xff]  }
 0x5b6   :  { %8562 = vst [vmem:[#allocation32_spill] sm:$0xff] %v6227_v51 }
 0x5b8   :  { %1819 = vmatpush1.bf16.msra.mxu0 %v6212_v60  ;;  %v6230_v60 = vld [vmem:[#allocation12 + $0x40] ss:$16 sps:$4 sm:$0xff]  }
 0x5b9   :  { %1820 = vmatprep.subr.bf16.mxu0 %v6215_v54  ;;  %8563 = vst [vmem:[#allocation33_spill] sm:$0xff] %v6230_v60  ;;  %v6233_v54 = vld [vmem:[#allocation12 + $0x24] ss:$16 sps:$4 sm:$0xff]  }
 0x5ba   :  { %8564 = vst [vmem:[#allocation34_spill] sm:$0xff] %v6233_v54 }
 0x5bc   :  { %1821 = vmatpush1.bf16.msra.mxu0 %v6218_v2  ;;  %v6236_v2 = vld [vmem:[#allocation12 + $0x20] ss:$16 sps:$4 sm:$0xff]  }
 0x5bd   :  { %1822 = vmatprep.subr.bf16.mxu0 %v6221_v47  ;;  %8565 = vst [vmem:[#allocation35_spill] sm:$0xff] %v6236_v2  ;;  %v6239_v47 = vld [vmem:[#allocation12 + $0x4] ss:$16 sps:$4 sm:$0xff]  }
 0x5be   :  { %8566 = vst [vmem:[#allocation36_spill] sm:$0xff] %v6239_v47 }
 0x5c0   :  { %1823 = vmatpush1.bf16.msra.mxu0 %v6224_v58  ;;  %v6242_v58 = vld [vmem:[#allocation12] ss:$16 sps:$4 sm:$0xff]  }
 0x5c1   :  { %1824 = vmatprep.subr.bf16.mxu0 %v6227_v51  ;;  %8567 = vst [vmem:[#allocation37_spill] sm:$0xff] %v6242_v58  ;;  %v6245_v51 = vld [vmem:[#allocation12 + $0x1e4] ss:$16 sps:$4 sm:$0xff]  }
 0x5c2   :  { %8568 = vst [vmem:[#allocation38_spill] sm:$0xff] %v6245_v51 }
 0x5c4   :  { %1825 = vmatpush1.bf16.msra.mxu0 %v6230_v60  ;;  %v6248_v60 = vld [vmem:[#allocation12 + $0x1e0] ss:$16 sps:$4 sm:$0xff]  }
 0x5c5   :  { %1826 = vmatprep.subr.bf16.mxu0 %v6233_v54  ;;  %8569 = vst [vmem:[#allocation39_spill] sm:$0xff] %v6248_v60  ;;  %v6251_v54 = vld [vmem:[#allocation12 + $0x1c4] ss:$16 sps:$4 sm:$0xff]  }
 0x5c8   :  { %1827 = vmatpush1.bf16.msra.mxu0 %v6236_v2  ;;  %v6254_v2 = vld [vmem:[#allocation12 + $0x1c0] ss:$16 sps:$4 sm:$0xff]  }
 0x5c9   :  { %1828 = vmatprep.subr.bf16.mxu0 %v6239_v47  ;;  %v6257_v47 = vld [vmem:[#allocation12 + $0x1a4] ss:$16 sps:$4 sm:$0xff]  }
 0x5ca   :  { %8570 = vst [vmem:[#allocation40_spill] sm:$0xff] %v6257_v47 }
 0x5cc   :  { %1829 = vmatpush1.bf16.msra.mxu0 %v6242_v58  ;;  %v6260_v58 = vld [vmem:[#allocation12 + $0x1a0] ss:$16 sps:$4 sm:$0xff]  }
 0x5cd   :  { %1830 = vmatprep.subr.bf16.mxu0 %v6245_v51  ;;  %8571 = vst [vmem:[#allocation41_spill] sm:$0xff] %v6260_v58  ;;  %v6263_v51 = vld [vmem:[#allocation12 + $0x184] ss:$16 sps:$4 sm:$0xff]  }
 0x5ce   :  { %8572 = vst [vmem:[#allocation42_spill] sm:$0xff] %v6263_v51 }
 0x5d0   :  { %1831 = vmatpush2.bf16.msra.mxu0 %v6248_v60  ;;  %v6266_v60 = vld [vmem:[#allocation12 + $0x180] ss:$16 sps:$4 sm:$0xff]  }
 0x5d1   :  { %1832 = vmatprep.subr.bf16.mxu0 %v6251_v54  ;;  %8573 = vst [vmem:[#allocation43_spill] sm:$0xff] %v6266_v60 }
 0x5d4   :  { %1833 = vmatpush2.bf16.msra.mxu0 %v6254_v2 }
 0x5d5   :  { %1834 = vmatprep.subr.bf16.mxu0 %v6257_v47 }
 0x5d8   :  { %1835 = vmatpush2.bf16.msra.mxu0 %v6260_v58 }
 0x5d9   :  { %1836 = vmatprep.subr.bf16.mxu0 %v6263_v51 }
 0x5dc   :  { %1837 = vmatpush2.bf16.msra.mxu0 %v6266_v60 }
 0x5dd   :  { %1838 = vmatprep.subr.bf16.mxu0 %v8477_v33 }
 0x5e0   :  { %1839 = vmatpush2.bf16.msra.mxu0 %v8478_v34 }
 0x5e1   :  { %1840 = vmatprep.subr.bf16.mxu0 %v8479_v37 }
 0x5e4   :  { %1841 = vmatpush2.bf16.msra.mxu0 %v8480_v38  ;;  %v8574_v38 = vld [vmem:[#allocation56_spill] sm:$0xff] }
 0x5e5   :  { %1842 = vmatprep.subr.bf16.mxu0 %v8481_v41  ;;  %v8575_v41 = vld [vmem:[#allocation58_spill] sm:$0xff] }
 0x5e8   :  { %1843 = vmatpush2.bf16.msra.mxu0 %v8482_v42  ;;  %v8576_v42 = vld [vmem:[#allocation60_spill] sm:$0xff] }
 0x5e9   :  { %1844 = vmatprep.subr.bf16.mxu0 %v8483_v45  ;;  %v8577_v45 = vld [vmem:[#allocation62_spill] sm:$0xff] }
 0x5ec   :  { %1845 = vmatpush2.bf16.msra.mxu0 %v8484_v46  ;;  %v8578_v46 = vld [vmem:[#allocation64_spill] sm:$0xff] }
 0x5ed   :  { %4000 = vmatprep.subr.bf16.mxu0 %v8468_v16 }
 0x62f   :  { %v1646_v51 = vpop.f32.mrf.mxu0 }
 0x630   :  { %v1647_v60 = vadd.f32 %v5942_v48, %v1646_v51  ;;  %v8579_v48 = vld [vmem:[#allocation66_spill] sm:$0xff] }
 0x631   :  { %v3978_v33 = vpop.f32.mrf.mxu0  ;;  %v6347_v51 = vld [vmem:[#allocation12 + $0xac] ss:$16 sps:$4 sm:$0xff]  }
 0x632   :  { %v1652_v58 = vmax.f32 %v1647_v60, 0.0  ;;  %v6350_v60 = vld [vmem:[#allocation12 + $0xa8] ss:$16 sps:$4 sm:$0xff]   ;;  %v6359_v33 = vld [vmem:[#allocation12 + $0x6c] ss:$16 sps:$4 sm:$0xff]  }
 0x633   :  { %v1649_v34 = vpop.f32.mrf.mxu0  ;;  %8583 = vst [vmem:[#allocation46_spill] sm:$0xff] %v6359_v33 }
 0x634   :  { %v1653_v47 = vpack.c.bf16 %v1652_v58, %v1652_v58  ;;  %v6344_v58 = vld [vmem:[#allocation12 + $0xc8] ss:$16 sps:$4 sm:$0xff]  }
 0x635   :  { %v3979_v37 = vpop.f32.mrf.mxu0  ;;  %v6362_v34 = vld [vmem:[#allocation12 + $0x68] ss:$16 sps:$4 sm:$0xff]  }
 0x636   :  { %3997 = vmatmul.mubr.bf16.vlgmr.msra.gmra.mxu1 %v1653_v47  ;;  %v6341_v47 = vld [vmem:[#allocation12 + $0xcc] ss:$16 sps:$4 sm:$0xff]   ;;  %8584 = vst [vmem:[#allocation47_spill] sm:$0xff] %v6362_v34 }
 0x637   :  { %1744 = vmatpush1.bf16.msra.mxu1 %v5945_v4  ;;  %1775 = vmatprep.mubr.bf16.mxu1 %v6070_v57  ;;  %v8580_v4 = vld [vmem:[#allocation68_spill] sm:$0xff] }
 0x638   :  { %1745 = vmatprep.subr.bf16.mxu1 %v5949_v7  ;;  %v6302_v7 = vld [vmem:[#allocation9 + $0x188] ss:$16 sps:$4 sm:$0xff]   ;;  %v6338_v57 = vld [vmem:[#allocation12 + $0xe8] ss:$16 sps:$4 sm:$0xff]   ;;  %v6365_v37 = vld [vmem:[#allocation12 + $0x4c] ss:$16 sps:$4 sm:$0xff]  }
 0x639   :  { %8585 = vst [vmem:[#allocation48_spill] sm:$0xff] %v6365_v37 }
 0x63b   :  { %1746 = vmatpush1.bf16.msra.mxu1 %v5952_v11  ;;  %v6305_v11 = vld [vmem:[#allocation9 + $0x16c] ss:$16 sps:$4 sm:$0xff]  }
 0x63c   :  { %1747 = vmatprep.subr.bf16.mxu1 %v5955_v13  ;;  %v6308_v13 = vld [vmem:[#allocation9 + $0x168] ss:$16 sps:$4 sm:$0xff]  }
 0x63f   :  { %1748 = vmatpush1.bf16.msra.mxu1 %v5958_v15  ;;  %v6311_v15 = vld [vmem:[#allocation9 + $0x14c] ss:$16 sps:$4 sm:$0xff]  }
 0x640   :  { %1749 = vmatprep.subr.bf16.mxu1 %v5961_v0  ;;  %v6314_v0 = vld [vmem:[#allocation9 + $0x148] ss:$16 sps:$4 sm:$0xff]  }
 0x643   :  { %1750 = vmatpush1.bf16.msra.mxu1 %v5964_v18  ;;  %v6317_v18 = vld [vmem:[#allocation9 + $0x12c] ss:$16 sps:$4 sm:$0xff]  }
 0x644   :  { %1751 = vmatprep.subr.bf16.mxu1 %v5967_v20 }
 0x647   :  { %1752 = vmatpush1.bf16.msra.mxu1 %v5970_v22  ;;  %v6322_v22 = vld [vmem:[#allocation9 + $0x128] ss:$16 sps:$4 sm:$0xff]  }
 0x648   :  { %1753 = vmatprep.subr.bf16.mxu1 %v5973_v24  ;;  %v6325_v24 = vld [vmem:[#allocation9 + $0x10c] ss:$16 sps:$4 sm:$0xff]  }
 0x64b   :  { %1754 = vmatpush1.bf16.msra.mxu1 %v5976_v28 }
 0x64c   :  { %1755 = vmatprep.subr.bf16.mxu1 %v5979_v31  ;;  %v6330_v31 = vld [vmem:[#allocation9 + $0x108] ss:$16 sps:$4 sm:$0xff]  }
 0x64f   :  { %1756 = vmatpush1.bf16.msra.mxu1 %v5982_v32 }
 0x650   :  { %1757 = vmatprep.subr.bf16.mxu1 %v5985_v35  ;;  %v6333_v35 = vld [vmem:[#allocation12 + $0xec] ss:$16 sps:$4 sm:$0xff]  }
 0x653   :  { %1758 = vmatpush1.bf16.msra.mxu1 %v5988_v36 }
 0x654   :  { %1759 = vmatprep.subr.bf16.mxu1 %v8574_v38  ;;  %v6368_v38 = vld [vmem:[#allocation12 + $0x48] ss:$16 sps:$4 sm:$0xff]  }
 0x655   :  { %8586 = vst [vmem:[#allocation49_spill] sm:$0xff] %v6368_v38 }
 0x657   :  { %1760 = vmatpush2.bf16.msra.mxu1 %v8575_v41  ;;  %v6371_v41 = vld [vmem:[#allocation12 + $0x2c] ss:$16 sps:$4 sm:$0xff]  }
 0x658   :  { %1761 = vmatprep.subr.bf16.mxu1 %v8576_v42  ;;  %8587 = vst [vmem:[#allocation50_spill] sm:$0xff] %v6371_v41  ;;  %v6374_v42 = vld [vmem:[#allocation12 + $0x28] ss:$16 sps:$4 sm:$0xff]  }
 0x659   :  { %8588 = vst [vmem:[#allocation51_spill] sm:$0xff] %v6374_v42 }
 0x65b   :  { %1762 = vmatpush2.bf16.msra.mxu1 %v8577_v45  ;;  %v6377_v45 = vld [vmem:[#allocation12 + $0xc] ss:$16 sps:$4 sm:$0xff]  }
 0x65c   :  { %1763 = vmatprep.subr.bf16.mxu1 %v8578_v46  ;;  %8589 = vst [vmem:[#allocation52_spill] sm:$0xff] %v6377_v45  ;;  %v6380_v46 = vld [vmem:[#allocation12 + $0x8] ss:$16 sps:$4 sm:$0xff]  }
 0x65d   :  { %8590 = vst [vmem:[#allocation53_spill] sm:$0xff] %v6380_v46 }
 0x65f   :  { %1764 = vmatpush2.bf16.msra.mxu1 %v8579_v48  ;;  %v6383_v48 = vld [vmem:[#allocation12 + $0x1ec] ss:$16 sps:$4 sm:$0xff]  }
 0x660   :  { %1765 = vmatprep.subr.bf16.mxu1 %v8580_v4  ;;  %8591 = vst [vmem:[#allocation54_spill] sm:$0xff] %v6383_v48  ;;  %v6386_v4 = vld [vmem:[#allocation12 + $0x1e8] ss:$16 sps:$4 sm:$0xff]  }
 0x661   :  { %8592 = vst [vmem:[#allocation55_spill] sm:$0xff] %v6386_v4 }
 0x663   :  { %1766 = vmatpush2.bf16.msra.mxu1 %v6302_v7 }
 0x664   :  { %1767 = vmatprep.subr.bf16.mxu1 %v6305_v11 }
 0x667   :  { %1768 = vmatpush2.bf16.msra.mxu1 %v6308_v13 }
 0x668   :  { %1769 = vmatprep.subr.bf16.mxu1 %v6311_v15 }
 0x66b   :  { %1770 = vmatpush2.bf16.msra.mxu1 %v6314_v0 }
 0x66c   :  { %1771 = vmatprep.subr.bf16.mxu1 %v6317_v18 }
 0x66f   :  { %v6320_v20 = vpop.f32.mrf.mxu0  ;;  %1772 = vmatpush2.bf16.msra.mxu1 %v6322_v22 }
 0x670   :  { %1773 = vmatprep.subr.bf16.mxu1 %v6325_v24 }
 0x671   :  { %v6328_v28 = vpop.f32.mrf.mxu0 }
 0x673   :  { %1774 = vmatpush2.bf16.msra.mxu1 %v6330_v31  ;;  %v1740_v32 = vpop.f32.mrf.mxu0 }
 0x674   :  { %1855 = vmatprep.subr.bf16.mxu1 %v6333_v35  ;;  %v6389_v32 = vld [vmem:[#allocation12 + $0x1cc] ss:$16 sps:$4 sm:$0xff]  }
 0x675   :  { %v1741_v36 = vpop.f32.mrf.mxu0  ;;  %8593 = vst [vmem:[#allocation57_spill] sm:$0xff] %v6389_v32 }
 0x676   :  { %1776 = vmatmul.mubr.bf16.vlgmr.msra.gmra.mxu1 %v6190_v52  ;;  %v6356_v52 = vld [vmem:[#allocation12 + $0x88] ss:$16 sps:$4 sm:$0xff]  }
 0x677   :  { %1887 = vmatprep.mubr.bf16.mxu1 %v6120_v23  ;;  %1856 = vmatpush1.bf16.msra.mxu1 %v6338_v57  ;;  %v6353_v23 = vld [vmem:[#allocation12 + $0x8c] ss:$16 sps:$4 sm:$0xff]   ;;  %8582 = vst [vmem:[#allocation45_spill] sm:$0xff] %v6356_v52  ;;  %v6392_v36 = vld [vmem:[#allocation12 + $0x1c8] ss:$16 sps:$4 sm:$0xff]  }
 0x678   :  { %1857 = vmatprep.subr.bf16.mxu1 %v6341_v47  ;;  %8581 = vst [vmem:[#allocation44_spill] sm:$0xff] %v6353_v23  ;;  %8594 = vst [vmem:[#allocation59_spill] sm:$0xff] %v6392_v36 }
 0x67b   :  { %1858 = vmatpush1.bf16.msra.mxu1 %v6344_v58 }
 0x67c   :  { %1859 = vmatprep.subr.bf16.mxu1 %v6347_v51 }
 0x67f   :  { %1860 = vmatpush1.bf16.msra.mxu1 %v6350_v60 }
 0x680   :  { %1861 = vmatprep.subr.bf16.mxu1 %v6353_v23 }
 0x683   :  { %1862 = vmatpush1.bf16.msra.mxu1 %v6356_v52 }
 0x684   :  { %1863 = vmatprep.subr.bf16.mxu1 %v6359_v33 }
 0x687   :  { %1864 = vmatpush1.bf16.msra.mxu1 %v6362_v34 }
 0x688   :  { %1865 = vmatprep.subr.bf16.mxu1 %v6365_v37 }
 0x68b   :  { %1866 = vmatpush1.bf16.msra.mxu1 %v6368_v38  ;;  %v8607_v38 = vld [vmem:[#allocation73_spill] sm:$0xff] }
 0x68c   :  { %1867 = vmatprep.subr.bf16.mxu1 %v6371_v41  ;;  %v1739_v37 = vadd.f32 %v6328_v28, %v8607_v38 }
 0x68e   :  { %v3741_v34 = vmul.f32 -1.442695, %v1739_v37 }
 0x68f   :  { %1868 = vmatpush1.bf16.msra.mxu1 %v6374_v42 }
 0x690   :  { %1869 = vmatprep.subr.bf16.mxu1 %v6377_v45  ;;  %v6395_v45 = vld [vmem:[#allocation12 + $0x1ac] ss:$16 sps:$4 sm:$0xff]  }
 0x691   :  { %8595 = vst [vmem:[#allocation61_spill] sm:$0xff] %v6395_v45 }
 0x693   :  { %1870 = vmatpush1.bf16.msra.mxu1 %v6380_v46  ;;  %v6398_v46 = vld [vmem:[#allocation12 + $0x1a8] ss:$16 sps:$4 sm:$0xff]  }
 0x694   :  { %1871 = vmatprep.subr.bf16.mxu1 %v6383_v48  ;;  %8596 = vst [vmem:[#allocation63_spill] sm:$0xff] %v6398_v46  ;;  %v6401_v48 = vld [vmem:[#allocation12 + $0x18c] ss:$16 sps:$4 sm:$0xff]  }
 0x695   :  { %8597 = vst [vmem:[#allocation65_spill] sm:$0xff] %v6401_v48 }
 0x697   :  { %1872 = vmatpush2.bf16.msra.mxu1 %v6386_v4  ;;  %v6404_v4 = vld [vmem:[#allocation12 + $0x188] ss:$16 sps:$4 sm:$0xff]  }
 0x698   :  { %1873 = vmatprep.subr.bf16.mxu1 %v6389_v32  ;;  %8598 = vst [vmem:[#allocation67_spill] sm:$0xff] %v6404_v4  ;;  %v6407_v32 = vld [vmem:[#allocation12 + $0x16c] ss:$16 sps:$4 sm:$0xff]  }
 0x699   :  { %8599 = vst [vmem:[#allocation69_spill] sm:$0xff] %v6407_v32 }
 0x69b   :  { %1874 = vmatpush2.bf16.msra.mxu1 %v6392_v36  ;;  %v6410_v36 = vld [vmem:[#allocation12 + $0x168] ss:$16 sps:$4 sm:$0xff]  }
 0x69c   :  { %1875 = vmatprep.subr.bf16.mxu1 %v6395_v45  ;;  %8600 = vst [vmem:[#allocation71_spill] sm:$0xff] %v6410_v36  ;;  %v6413_v45 = vld [vmem:[#allocation12 + $0x14c] ss:$16 sps:$4 sm:$0xff]  }
 0x69d   :  { %8601 = vst [vmem:[#allocation72_spill] sm:$0xff] %v6413_v45 }
 0x69f   :  { %1876 = vmatpush2.bf16.msra.mxu1 %v6398_v46  ;;  %v6416_v46 = vld [vmem:[#allocation12 + $0x148] ss:$16 sps:$4 sm:$0xff]  }
 0x6a0   :  { %1877 = vmatprep.subr.bf16.mxu1 %v6401_v48  ;;  %8602 = vst [vmem:[#allocation76_spill] sm:$0xff] %v6416_v46  ;;  %v6419_v48 = vld [vmem:[#allocation12 + $0x12c] ss:$16 sps:$4 sm:$0xff]  }
 0x6a1   :  { %8603 = vst [vmem:[#allocation77_spill] sm:$0xff] %v6419_v48 }
 0x6a3   :  { %1878 = vmatpush2.bf16.msra.mxu1 %v6404_v4  ;;  %v6422_v4 = vld [vmem:[#allocation12 + $0x128] ss:$16 sps:$4 sm:$0xff]  }
 0x6a4   :  { %1879 = vmatprep.subr.bf16.mxu1 %v6407_v32  ;;  %8604 = vst [vmem:[#allocation85_spill] sm:$0xff] %v6422_v4  ;;  %v6425_v32 = vld [vmem:[#allocation12 + $0x10c] ss:$16 sps:$4 sm:$0xff]  }
 0x6a5   :  { %8605 = vst [vmem:[#allocation78_spill] sm:$0xff] %v6425_v32 }
 0x6a7   :  { %1880 = vmatpush2.bf16.msra.mxu1 %v6410_v36  ;;  %v6428_v36 = vld [vmem:[#allocation12 + $0x108] ss:$16 sps:$4 sm:$0xff]  }
 0x6a8   :  { %1881 = vmatprep.subr.bf16.mxu1 %v6413_v45  ;;  %8606 = vst [vmem:[#allocation79_spill] sm:$0xff] %v6428_v36 }
 0x6ab   :  { %1882 = vmatpush2.bf16.msra.mxu1 %v6416_v46 }
 0x6ac   :  { %1883 = vmatprep.subr.bf16.mxu1 %v6419_v48 }
 0x6af   :  { %1884 = vmatpush2.bf16.msra.mxu1 %v6422_v4  ;;  %v1737_v4 = vadd.f32 %v6320_v20, %v8533_v50 }
 0x6b0   :  { %1885 = vmatprep.subr.bf16.mxu1 %v6425_v32 }
 0x6b1   :  { %v3740_v32 = vmul.f32 -1.442695, %v1737_v4 }
 0x6b3   :  { %1886 = vmatpush2.bf16.msra.mxu1 %v6428_v36  ;;  %4528 = vpow2.f32 %v3740_v32 }
 0x6b4   :  { %4020 = vmatprep.subr.bf16.mxu1 %v8468_v16  ;;  %4530 = vpow2.f32 %v3741_v34 }
 0x6c0   :  { %v4529_v36 = vpop.eup %4528 }
 0x6c1   :  { %v4531_v33 = vpop.eup %4530  ;;  %v1787_v52 = vadd.f32 1.0, %v4529_v36 }
 0x6c2   :  { %v1793_v23 = vadd.f32 1.0, %v4531_v33 }
 0x6c3   :  { %4532 = vrcp.f32 %v1787_v52 }
 0x6c4   :  { %4534 = vrcp.f32 %v1793_v23 }
 0x6d0   :  { %v4533_v37 = vpop.eup %4532 }
 0x6f6   :  { %v1688_v45 = vpop.f32.mrf.mxu1 }
 0x6f7   :  { %v1689_v46 = vadd.f32 %v6059_v62, %v1688_v45 }
 0x6f8   :  { %v3998_v42 = vpop.f32.mrf.mxu1 }
 0x6f9   :  { %1695 = vst [vmem:[#allocation17 + $0x8] sm:$0xff] %v1689_v46 }
 0x6fa   :  { %v1691_v48 = vpop.f32.mrf.mxu1 }
 0x6fb   :  { %v4535_v48 = vpop.eup %4534 }
 0x6fc   :  { %v3999_v41 = vpop.f32.mrf.mxu1  ;;  %v1803_v4 = vmul.f32 %v4535_v48, %v6067_v44  ;;  %v6453_v44 = vld [vmem:[#allocation15 + $0x38] sm:$0xff]   ;;  %v6475_v48 = vld [vmem:[#allocation14 + $0x20] sm:$0xff]  }
 0x6fd   :  { %8610 = vst [vmem:[#allocation82_spill] sm:$0xff] %v6453_v44  ;;  %8615 = vst [vmem:[#allocation87_spill] sm:$0xff] %v6475_v48 }
 0x736   :  { %v1777_v62 = vpop.f32.mrf.mxu1 }
 0x737   :  { %v1778_v42 = vadd.f32 %v1777_v62, %v5734_v55 }
 0x738   :  { %v1779_v41 = vpop.f32.mrf.mxu1 }
 0x739   :  { %4536 = vtanh.f32 %v1778_v42  ;;  %v1780_v20 = vadd.f32 %v1779_v41, %v8535_v21 }
 0x73a   :  { %v1781_v45 = vpop.f32.mrf.mxu1 }
 0x73b   :  { %v3742_v46 = vmul.f32 -1.442695, %v1780_v20  ;;  %v6447_v20 = vld [vmem:[#allocation14 + $0x38] sm:$0xff]   ;;  %v6459_v45 = vld [vmem:[#allocation14 + $0x30] sm:$0xff]  }
 0x73c   :  { %v1782_v28 = vpop.f32.mrf.mxu1  ;;  %8609 = vst [vmem:[#allocation81_spill] sm:$0xff] %v6447_v20  ;;  %8611 = vst [vmem:[#allocation90_spill] sm:$0xff] %v6459_v45 }
 0x73d   :  { %4538 = vpow2.f32 %v3742_v46  ;;  %v6463_v46 = vld [vmem:[#allocation15 + $0x30] sm:$0xff]   ;;  %v6467_v28 = vld [vmem:[#allocation14 + $0x28] sm:$0xff]  }
 0x73e   :  { %8612 = vst [vmem:[#allocation83_spill] sm:$0xff] %v6463_v46  ;;  %8613 = vst [vmem:[#allocation84_spill] sm:$0xff] %v6467_v28 }
 0x746   :  { %v4537_v34 = vpop.eup %4536 }
 0x747   :  { %v1804_v32 = vmul.f32 %v4537_v34, %v4533_v37  ;;  %v6471_v37 = vld [vmem:[#allocation15 + $0x28] sm:$0xff]   ;;  %v6479_v34 = vld [vmem:[#allocation15 + $0x20] sm:$0xff]  }
 0x748   :  { %8614 = vst [vmem:[#allocation86_spill] sm:$0xff] %v6471_v37  ;;  %8616 = vst [vmem:[#allocation88_spill] sm:$0xff] %v6479_v34 }
 0x749   :  { %v6440_v33 = vadd.f32 %v1804_v32, %v1803_v4  ;;  %v6483_v4 = vld [vmem:[#allocation14 + $0x18] sm:$0xff]  }
 0x74a   :  { %v4539_v52 = vpop.eup %4538  ;;  %8617 = vst [vmem:[#allocation89_spill] sm:$0xff] %v6483_v4  ;;  %v6487_v32 = vld [vmem:[#allocation15 + $0x18] sm:$0xff]  }
 0x74b   :  { %8608 = vst [vmem:[#allocation80_spill] sm:$0xff] %v6440_v33  ;;  %v1800_v23 = vadd.f32 1.0, %v4539_v52  ;;  %4540 = vtanh.f32 %v6440_v33  ;;  %8618 = vst [vmem:[#allocation91_spill] sm:$0xff] %v6487_v32  ;;  %v6491_v52 = vld [vmem:[#allocation14 + $0x10] sm:$0xff]  }
 0x74c   :  { %8619 = vst [vmem:[#allocation56_spill] sm:$0xff] %v6491_v52 }
 0x74d   :  { %4542 = vrcp.f32 %v1800_v23  ;;  %v6495_v23 = vld [vmem:[#allocation15 + $0x10] sm:$0xff]  }
 0x74e   :  { %8620 = vst [vmem:[#allocation58_spill] sm:$0xff] %v6495_v23 }
 0x758   :  { %v4541_v36 = vpop.eup %4540 }
 0x75a   :  { %v4543_v62 = vpop.eup %4542 }
 0x75b   :  { %v1807_v42 = vmul.f32 %v4543_v62, %v4541_v36  ;;  %v6499_v36 = vld [vmem:[#allocation14 + $0x8] sm:$0xff]  }
 0x75c   :  { %8621 = vst [vmem:[#allocation60_spill] sm:$0xff] %v6499_v36  ;;  %v6503_v62 = vld [vmem:[#allocation15 + $0x8] sm:$0xff]  }
 0x75d   :  { %v6443_v41 = vpack.c.bf16 %v1807_v42, %v1807_v42  ;;  %8622 = vst [vmem:[#allocation62_spill] sm:$0xff] %v6503_v62  ;;  %v6507_v42 = vld [vmem:[#allocation14] sm:$0xff]  }
 0x75e   :  { %8623 = vst [vmem:[#allocation64_spill] sm:$0xff] %v6507_v42 }
 0x75f   :  { %1847 = vmatmul.mubr.bf16.vlgmr.msra.gmra.mxu0 %v6443_v41  ;;  %1888 = vmatmul.mubr.bf16.vlgmr.msra.gmra.mxu1 %v6443_v41 }
 0x760   :  { %4001 = vmatpush3.bf16.msra.mxu0 %v6447_v20  ;;  %4016 = vmatprep.mubr.msk.bf16.mxu0 %vm5356_vm0, %v8468_v16 }
 0x761   :  { %4002 = vmatprep.subr.bf16.mxu0 %v8468_v16  ;;  %4021 = vmatpush3.bf16.msra.mxu1 %v6453_v44 }
 0x762   :  { %4022 = vmatprep.subr.bf16.mxu1 %v8468_v16  ;;  %4036 = vmatprep.mubr.msk.bf16.mxu1 %vm5356_vm0, %v8468_v16 }
 0x764   :  { %4003 = vmatpush3.bf16.msra.mxu0 %v6459_v45 }
 0x765   :  { %4004 = vmatprep.subr.bf16.mxu0 %v8468_v16  ;;  %4023 = vmatpush3.bf16.msra.mxu1 %v6463_v46 }
 0x766   :  { %4024 = vmatprep.subr.bf16.mxu1 %v8468_v16 }
 0x768   :  { %4005 = vmatpush3.bf16.msra.mxu0 %v6467_v28 }
 0x769   :  { %4006 = vmatprep.subr.bf16.mxu0 %v8468_v16  ;;  %4025 = vmatpush3.bf16.msra.mxu1 %v6471_v37 }
 0x76a   :  { %4026 = vmatprep.subr.bf16.mxu1 %v8468_v16 }
 0x76c   :  { %4007 = vmatpush3.bf16.msra.mxu0 %v6475_v48 }
 0x76d   :  { %4008 = vmatprep.subr.bf16.mxu0 %v8468_v16  ;;  %4027 = vmatpush3.bf16.msra.mxu1 %v6479_v34 }
 0x76e   :  { %4028 = vmatprep.subr.bf16.mxu1 %v8468_v16 }
 0x770   :  { %4009 = vmatpush3.bf16.msra.mxu0 %v6483_v4 }
 0x771   :  { %4010 = vmatprep.subr.bf16.mxu0 %v8468_v16  ;;  %4029 = vmatpush3.bf16.msra.mxu1 %v6487_v32  ;;  %v8626_v32 = vld [vmem:[#allocation93_spill] sm:$0xff] }
 0x772   :  { %4030 = vmatprep.subr.bf16.mxu1 %v8468_v16 }
 0x774   :  { %4011 = vmatpush3.bf16.msra.mxu0 %v6491_v52  ;;  %v8624_v52 = vld [vmem:[#allocation70_spill] sm:$0xff] }
 0x775   :  { %4012 = vmatprep.subr.bf16.mxu0 %v8468_v16  ;;  %4031 = vmatpush3.bf16.msra.mxu1 %v6495_v23  ;;  %v8625_v23 = vld [vmem:[#allocation92_spill] sm:$0xff] }
 0x776   :  { %4032 = vmatprep.subr.bf16.mxu1 %v8468_v16 }
 0x778   :  { %4013 = vmatpush3.bf16.msra.mxu0 %v6499_v36 }
 0x779   :  { %4014 = vmatprep.subr.bf16.mxu0 %v8468_v16  ;;  %4033 = vmatpush3.bf16.msra.mxu1 %v6503_v62 }
 0x77a   :  { %4034 = vmatprep.subr.bf16.mxu1 %v8468_v16 }
 0x77c   :  { %4015 = vmatpush3.bf16.msra.mxu0 %v6507_v42 }
 0x77d   :  { %2013 = vmatprep.subr.bf16.mxu0 %v8624_v52  ;;  %4035 = vmatpush3.bf16.msra.mxu1 %v8625_v23 }
 0x77e   :  { %2054 = vmatprep.subr.bf16.mxu1 %v8626_v32 }
 0x81f   :  { %v1848_v4 = vpop.f32.mrf.mxu0  ;;  %v1889_v36 = vpop.f32.mrf.mxu1 }
 0x820   :  { %v1849_v34 = vadd.f32 %v1848_v4, %v8548_v43  ;;  %v1890_v33 = vadd.f32 %v1889_v36, %v8551_v30 }
 0x821   :  { %v1850_v48 = vpop.f32.mrf.mxu0  ;;  %v1891_v37 = vpop.f32.mrf.mxu1 }
 0x822   :  { %v3743_v28 = vmul.f32 -1.442695, %v1849_v34  ;;  %v1851_v62 = vadd.f32 %v1850_v48, %v8549_v3  ;;  %v1892_v52 = vadd.f32 %v1891_v37, %v8550_v19 }
 0x823   :  { %v1852_v46 = vpop.f32.mrf.mxu0  ;;  %v1893_v45 = vpop.f32.mrf.mxu1 }
 0x824   :  { %4544 = vpow2.f32 %v3743_v28  ;;  %v3744_v44 = vmul.f32 -1.442695, %v1851_v62  ;;  %v3745_v23 = vmul.f32 -1.442695, %v1892_v52 }
 0x825   :  { %v1853_v42 = vpop.f32.mrf.mxu0  ;;  %v1894_v20 = vpop.f32.mrf.mxu1 }
 0x826   :  { %4546 = vpow2.f32 %v3744_v44 }
 0x827   :  { %4548 = vpow2.f32 %v3745_v23  ;;  %v6528_v23 = vld [vmem:[#allocation9 + $0xc4] ss:$16 sps:$4 sm:$0xff]  }
 0x831   :  { %v4545_v32 = vpop.eup %4544 }
 0x832   :  { %v1899_v21 = vadd.f32 1.0, %v4545_v32  ;;  %v6534_v32 = vld [vmem:[#allocation9 + $0xa4] ss:$16 sps:$4 sm:$0xff]  }
 0x833   :  { %v4547_v4 = vpop.eup %4546 }
 0x834   :  { %4550 = vrcp.f32 %v1899_v21  ;;  %v1905_v34 = vadd.f32 1.0, %v4547_v4  ;;  %v4549_v46 = vpop.eup %4548  ;;  %v6537_v4 = vld [vmem:[#allocation9 + $0xa0] ss:$16 sps:$4 sm:$0xff]  }
 0x835   :  { %4552 = vtanh.f32 %v1890_v33  ;;  %v1912_v62 = vadd.f32 1.0, %v4549_v46  ;;  %v6524_v33 = vld [vmem:[#allocation9 + $0xe0] ss:$16 sps:$4 sm:$0xff]  }
 0x836   :  { %4554 = vrcp.f32 %v1905_v34  ;;  %v6540_v34 = vld [vmem:[#allocation9 + $0x84] ss:$16 sps:$4 sm:$0xff]   ;;  %v6543_v46 = vld [vmem:[#allocation9 + $0x80] ss:$16 sps:$4 sm:$0xff]  }
 0x837   :  { %4556 = vrcp.f32 %v1912_v62  ;;  %v6555_v62 = vld [vmem:[#allocation9 + $0x40] ss:$16 sps:$4 sm:$0xff]  }
 0x841   :  { %v4551_v45 = vpop.eup %4550 }
 0x842   :  { %v4553_v28 = vpop.eup %4552 }
 0x843   :  { %v4555_v48 = vpop.eup %4554  ;;  %v1916_v20 = vmul.f32 %v4553_v28, %v4551_v45  ;;  %v6546_v45 = vld [vmem:[#allocation9 + $0x64] ss:$16 sps:$4 sm:$0xff]   ;;  %v6549_v28 = vld [vmem:[#allocation9 + $0x60] ss:$16 sps:$4 sm:$0xff]  }
 0x844   :  { %v1915_v44 = vmul.f32 %v4555_v48, %v6117_v5  ;;  %v4557_v36 = vpop.eup %4556  ;;  %v6531_v5 = vld [vmem:[#allocation9 + $0xc0] ss:$16 sps:$4 sm:$0xff]   ;;  %v6552_v48 = vld [vmem:[#allocation9 + $0x44] ss:$16 sps:$4 sm:$0xff]  }
 0x846   :  { %v6518_v37 = vadd.f32 %v1916_v20, %v1915_v44  ;;  %v6558_v20 = vld [vmem:[#allocation9 + $0x24] ss:$16 sps:$4 sm:$0xff]  }
 0x847   :  { %v8645_v44 = vld [vmem:[#allocation41_spill] sm:$0xff] }
 0x848   :  { %4558 = vtanh.f32 %v6518_v37 }
 0x855   :  { %v4559_v42 = vpop.eup %4558 }
 0x856   :  { %v1919_v52 = vmul.f32 %v4559_v42, %v4557_v36  ;;  %v8646_v36 = vld [vmem:[#allocation42_spill] sm:$0xff]  ;;  %v8647_v42 = vld [vmem:[#allocation43_spill] sm:$0xff] }
 0x858   :  { %v6521_v21 = vpack.c.bf16 %v1919_v52, %v1919_v52  ;;  %v6608_v52 = vld [vmem:[#allocation12 + $0x164] ss:$16 sps:$4 sm:$0xff]  }
 0x85a   :  { %4017 = vmatmul.mubr.bf16.vlgmr.msra.gmra.mxu0 %v6521_v21 }
 0x85b   :  { %2014 = vmatpush1.bf16.msra.mxu0 %v6524_v33  ;;  %2045 = vmatprep.mubr.bf16.mxu0 %v6443_v41 }
 0x85c   :  { %2015 = vmatprep.subr.bf16.mxu0 %v6528_v23 }
 0x85f   :  { %2016 = vmatpush1.bf16.msra.mxu0 %v6531_v5 }
 0x860   :  { %2017 = vmatprep.subr.bf16.mxu0 %v6534_v32 }
 0x863   :  { %2018 = vmatpush1.bf16.msra.mxu0 %v6537_v4 }
 0x864   :  { %2019 = vmatprep.subr.bf16.mxu0 %v6540_v34 }
 0x867   :  { %2020 = vmatpush1.bf16.msra.mxu0 %v6543_v46 }
 0x868   :  { %2021 = vmatprep.subr.bf16.mxu0 %v6546_v45 }
 0x86b   :  { %2022 = vmatpush1.bf16.msra.mxu0 %v6549_v28 }
 0x86c   :  { %2023 = vmatprep.subr.bf16.mxu0 %v6552_v48 }
 0x86f   :  { %2024 = vmatpush1.bf16.msra.mxu0 %v6555_v62 }
 0x870   :  { %2025 = vmatprep.subr.bf16.mxu0 %v6558_v20 }
 0x873   :  { %2026 = vmatpush1.bf16.msra.mxu0 %v6136_v14  ;;  %v2008_v14 = vld [vmem:[#allocation6 + $0x18] sm:$0xff] }
 0x874   :  { %2027 = vmatprep.subr.bf16.mxu0 %v6139_v6  ;;  %v6579_v6 = vpack.c.bf16 %v2008_v14, %v2008_v14  ;;  %v6611_v14 = vld [vmem:[#allocation12 + $0x160] ss:$16 sps:$4 sm:$0xff]  }
 0x877   :  { %2028 = vmatpush1.bf16.msra.mxu0 %v6142_v9  ;;  %v8627_v9 = vld [vmem:[#allocation23_spill] sm:$0xff] }
 0x878   :  { %2029 = vmatprep.subr.bf16.mxu0 %v6145_v63  ;;  %v8628_v63 = vld [vmem:[#allocation24_spill] sm:$0xff] }
 0x87b   :  { %2030 = vmatpush2.bf16.msra.mxu0 %v6148_v56  ;;  %v8629_v56 = vld [vmem:[#allocation25_spill] sm:$0xff] }
 0x87c   :  { %2031 = vmatprep.subr.bf16.mxu0 %v6151_v27  ;;  %v8630_v27 = vld [vmem:[#allocation26_spill] sm:$0xff] }
 0x87f   :  { %2032 = vmatpush2.bf16.msra.mxu0 %v6154_v10  ;;  %v8631_v10 = vld [vmem:[#allocation27_spill] sm:$0xff] }
 0x880   :  { %2033 = vmatprep.subr.bf16.mxu0 %v6157_v8  ;;  %v8632_v8 = vld [vmem:[#allocation28_spill] sm:$0xff] }
 0x883   :  { %2034 = vmatpush2.bf16.msra.mxu0 %v6160_v59  ;;  %v8633_v59 = vld [vmem:[#allocation29_spill] sm:$0xff] }
 0x884   :  { %2035 = vmatprep.subr.bf16.mxu0 %v6163_v12  ;;  %v8634_v12 = vld [vmem:[#allocation30_spill] sm:$0xff] }
 0x887   :  { %2036 = vmatpush2.bf16.msra.mxu0 %v6166_v17  ;;  %v8635_v17 = vld [vmem:[#allocation31_spill] sm:$0xff] }
 0x888   :  { %2037 = vmatprep.subr.bf16.mxu0 %v6169_v29  ;;  %v8636_v29 = vld [vmem:[#allocation32_spill] sm:$0xff] }
 0x88b   :  { %2038 = vmatpush2.bf16.msra.mxu0 %v6172_v61  ;;  %v8637_v61 = vld [vmem:[#allocation33_spill] sm:$0xff] }
 0x88c   :  { %2039 = vmatprep.subr.bf16.mxu0 %v6175_v1  ;;  %v8638_v1 = vld [vmem:[#allocation34_spill] sm:$0xff] }
 0x88f   :  { %2040 = vmatpush2.bf16.msra.mxu0 %v6178_v49  ;;  %v8639_v49 = vld [vmem:[#allocation35_spill] sm:$0xff] }
 0x890   :  { %2041 = vmatprep.subr.bf16.mxu0 %v6181_v40  ;;  %v8640_v40 = vld [vmem:[#allocation36_spill] sm:$0xff] }
 0x893   :  { %2042 = vmatpush2.bf16.msra.mxu0 %v6184_v39  ;;  %v8641_v39 = vld [vmem:[#allocation37_spill] sm:$0xff] }
 0x894   :  { %2043 = vmatprep.subr.bf16.mxu0 %v6187_v26  ;;  %v8642_v26 = vld [vmem:[#allocation38_spill] sm:$0xff] }
 0x897   :  { %2044 = vmatpush2.bf16.msra.mxu0 %v6192_v25  ;;  %v8643_v25 = vld [vmem:[#allocation39_spill] sm:$0xff] }
 0x898   :  { %2125 = vmatprep.subr.bf16.mxu0 %v6195_v53  ;;  %v8644_v53 = vld [vmem:[#allocation40_spill] sm:$0xff] }
 0x89a   :  { %2046 = vmatmul.mubr.bf16.vlgmr.msra.gmra.mxu0 %v6579_v6 }
 0x89b   :  { %2157 = vmatprep.mubr.bf16.mxu0 %v6521_v21  ;;  %2126 = vmatpush1.bf16.msra.mxu0 %v8627_v9  ;;  %v6614_v9 = vld [vmem:[#allocation12 + $0x144] ss:$16 sps:$4 sm:$0xff]  }
 0x89c   :  { %2127 = vmatprep.subr.bf16.mxu0 %v8628_v63  ;;  %v6623_v63 = vld [vmem:[#allocation12 + $0x120] ss:$16 sps:$4 sm:$0xff]  }
 0x89f   :  { %2128 = vmatpush1.bf16.msra.mxu0 %v8629_v56  ;;  %v6626_v56 = vld [vmem:[#allocation12 + $0x104] ss:$16 sps:$4 sm:$0xff]  }
 0x8a0   :  { %2129 = vmatprep.subr.bf16.mxu0 %v8630_v27  ;;  %v6629_v27 = vld [vmem:[#allocation12 + $0x100] ss:$16 sps:$4 sm:$0xff]  }
 0x8a3   :  { %2130 = vmatpush1.bf16.msra.mxu0 %v8631_v10 }
 0x8a4   :  { %2131 = vmatprep.subr.bf16.mxu0 %v8632_v8  ;;  %v6636_v8 = vld [vmem:[%s8083_s6] ss:$0 sm:$0xff] }
 0x8a7   :  { %2132 = vmatpush1.bf16.msra.mxu0 %v8633_v59 }
 0x8a8   :  { %2133 = vmatprep.subr.bf16.mxu0 %v8634_v12 }
 0x8ab   :  { %2134 = vmatpush1.bf16.msra.mxu0 %v8635_v17 }
 0x8ac   :  { %2135 = vmatprep.subr.bf16.mxu0 %v8636_v29 }
 0x8af   :  { %2136 = vmatpush1.bf16.msra.mxu0 %v8637_v61 }
 0x8b0   :  { %2137 = vmatprep.subr.bf16.mxu0 %v8638_v1 }
 0x8b3   :  { %2138 = vmatpush1.bf16.msra.mxu0 %v8639_v49  ;;  %v6639_v49 = vld [vmem:[#allocation9 + $0xe8] ss:$16 sps:$4 sm:$0xff]  }
 0x8b4   :  { %2139 = vmatprep.subr.bf16.mxu0 %v8640_v40  ;;  %v6643_v40 = vld [vmem:[#allocation9 + $0xcc] ss:$16 sps:$4 sm:$0xff]  }
 0x8b7   :  { %2140 = vmatpush1.bf16.msra.mxu0 %v8641_v39  ;;  %v6646_v39 = vld [vmem:[#allocation9 + $0xc8] ss:$16 sps:$4 sm:$0xff]  }
 0x8b8   :  { %2141 = vmatprep.subr.bf16.mxu0 %v8642_v26  ;;  %v6649_v26 = vld [vmem:[#allocation9 + $0xac] ss:$16 sps:$4 sm:$0xff]  }
 0x8bb   :  { %2142 = vmatpush2.bf16.msra.mxu0 %v8643_v25  ;;  %v6652_v25 = vld [vmem:[#allocation9 + $0xa8] ss:$16 sps:$4 sm:$0xff]  }
 0x8bc   :  { %2143 = vmatprep.subr.bf16.mxu0 %v6251_v54  ;;  %v6620_v54 = vld [vmem:[#allocation12 + $0x124] ss:$16 sps:$4 sm:$0xff]  }
 0x8bf   :  { %2144 = vmatpush2.bf16.msra.mxu0 %v6254_v2  ;;  %v6617_v2 = vld [vmem:[#allocation12 + $0x140] ss:$16 sps:$4 sm:$0xff]  }
 0x8c0   :  { %2145 = vmatprep.subr.bf16.mxu0 %v8644_v53  ;;  %v6655_v53 = vld [vmem:[#allocation9 + $0x8c] ss:$16 sps:$4 sm:$0xff]  }
 0x8c3   :  { %2146 = vmatpush2.bf16.msra.mxu0 %v8645_v44  ;;  %v6661_v44 = vld [vmem:[#allocation9 + $0x6c] ss:$16 sps:$4 sm:$0xff]  }
 0x8c4   :  { %2147 = vmatprep.subr.bf16.mxu0 %v8646_v36  ;;  %v6664_v36 = vld [vmem:[#allocation9 + $0x68] ss:$16 sps:$4 sm:$0xff]  }
 0x8c7   :  { %2148 = vmatpush2.bf16.msra.mxu0 %v8647_v42  ;;  %v6667_v42 = vld [vmem:[#allocation9 + $0x4c] ss:$16 sps:$4 sm:$0xff]  }
 0x8c8   :  { %2149 = vmatprep.subr.bf16.mxu0 %v6608_v52 }
 0x8cb   :  { %2150 = vmatpush2.bf16.msra.mxu0 %v6611_v14 }
 0x8cc   :  { %2151 = vmatprep.subr.bf16.mxu0 %v6614_v9 }
 0x8cf   :  { %2152 = vmatpush2.bf16.msra.mxu0 %v6617_v2 }
 0x8d0   :  { %2153 = vmatprep.subr.bf16.mxu0 %v6620_v54 }
 0x8d3   :  { %2154 = vmatpush2.bf16.msra.mxu0 %v6623_v63 }
 0x8d4   :  { %2155 = vmatprep.subr.bf16.mxu0 %v6626_v56 }
 0x8d7   :  { %2156 = vmatpush2.bf16.msra.mxu0 %v6629_v27 }
 0x8d8   :  { %4040 = vmatprep.subr.bf16.mxu0 %v8468_v16 }
 0x91a   :  { %v1957_v10 = vpop.f32.mrf.mxu0 }
 0x91b   :  { %v1958_v59 = vadd.f32 %v6636_v8, %v1957_v10  ;;  %v6670_v10 = vld [vmem:[#allocation9 + $0x48] ss:$16 sps:$4 sm:$0xff]  }
 0x91c   :  { %v4018_v12 = vpop.f32.mrf.mxu0 }
 0x91d   :  { %v1963_v17 = vmax.f32 %v1958_v59, 0.0  ;;  %v6673_v59 = vld [vmem:[#allocation9 + $0x2c] ss:$16 sps:$4 sm:$0xff]   ;;  %v6676_v12 = vld [vmem:[#allocation9 + $0x28] ss:$16 sps:$4 sm:$0xff]  }
 0x91e   :  { %v1960_v29 = vpop.f32.mrf.mxu0  ;;  %8648 = vst [vmem:[#allocation66_spill] sm:$0xff] %v6673_v59  ;;  %8649 = vst [vmem:[#allocation68_spill] sm:$0xff] %v6676_v12 }
 0x91f   :  { %v1964_v61 = vpack.c.bf16 %v1963_v17, %v1963_v17  ;;  %v6679_v17 = vld [vmem:[#allocation9 + $0xc] ss:$16 sps:$4 sm:$0xff]   ;;  %v6682_v29 = vld [vmem:[#allocation9 + $0x8] ss:$16 sps:$4 sm:$0xff]  }
 0x920   :  { %v4019_v1 = vpop.f32.mrf.mxu0  ;;  %8650 = vst [vmem:[#allocation70_spill] sm:$0xff] %v6679_v17  ;;  %8651 = vst [vmem:[#allocation92_spill] sm:$0xff] %v6682_v29 }
 0x921   :  { %4037 = vmatmul.mubr.bf16.vlgmr.msra.gmra.mxu1 %v1964_v61  ;;  %v6685_v61 = vld [vmem:[#allocation9 + $0x1ec] ss:$16 sps:$4 sm:$0xff]   ;;  %v6688_v1 = vld [vmem:[#allocation9 + $0x1e8] ss:$16 sps:$4 sm:$0xff]  }
 0x922   :  { %2055 = vmatpush1.bf16.msra.mxu1 %v6639_v49  ;;  %2086 = vmatprep.mubr.bf16.mxu1 %v6443_v41  ;;  %v6658_v41 = vld [vmem:[#allocation9 + $0x88] ss:$16 sps:$4 sm:$0xff]   ;;  %8652 = vst [vmem:[#allocation93_spill] sm:$0xff] %v6685_v61 }
 0x923   :  { %2056 = vmatprep.subr.bf16.mxu1 %v6643_v40 }
 0x926   :  { %2057 = vmatpush1.bf16.msra.mxu1 %v6646_v39 }
 0x927   :  { %2058 = vmatprep.subr.bf16.mxu1 %v6649_v26 }
 0x92a   :  { %2059 = vmatpush1.bf16.msra.mxu1 %v6652_v25 }
 0x92b   :  { %2060 = vmatprep.subr.bf16.mxu1 %v6655_v53 }
 0x92e   :  { %2061 = vmatpush1.bf16.msra.mxu1 %v6658_v41 }
 0x92f   :  { %2062 = vmatprep.subr.bf16.mxu1 %v6661_v44 }
 0x932   :  { %2063 = vmatpush1.bf16.msra.mxu1 %v6664_v36 }
 0x933   :  { %2064 = vmatprep.subr.bf16.mxu1 %v6667_v42 }
 0x936   :  { %2065 = vmatpush1.bf16.msra.mxu1 %v6670_v10 }
 0x937   :  { %2066 = vmatprep.subr.bf16.mxu1 %v6673_v59  ;;  %v6691_v59 = vld [vmem:[#allocation9 + $0x1cc] ss:$16 sps:$4 sm:$0xff]  }
 0x93a   :  { %2067 = vmatpush1.bf16.msra.mxu1 %v6676_v12  ;;  %v6694_v12 = vld [vmem:[#allocation9 + $0x1c8] ss:$16 sps:$4 sm:$0xff]  }
 0x93b   :  { %2068 = vmatprep.subr.bf16.mxu1 %v6679_v17  ;;  %v6697_v17 = vld [vmem:[#allocation9 + $0x1ac] ss:$16 sps:$4 sm:$0xff]  }
 0x93c   :  { %8653 = vst [vmem:[#allocation23_spill] sm:$0xff] %v6697_v17 }
 0x93e   :  { %2069 = vmatpush1.bf16.msra.mxu1 %v6682_v29  ;;  %v6700_v29 = vld [vmem:[#allocation9 + $0x1a8] ss:$16 sps:$4 sm:$0xff]  }
 0x93f   :  { %2070 = vmatprep.subr.bf16.mxu1 %v6685_v61  ;;  %8654 = vst [vmem:[#allocation24_spill] sm:$0xff] %v6700_v29  ;;  %v6703_v61 = vld [vmem:[#allocation9 + $0x18c] ss:$16 sps:$4 sm:$0xff]  }
 0x940   :  { %8655 = vst [vmem:[#allocation25_spill] sm:$0xff] %v6703_v61 }
 0x942   :  { %2071 = vmatpush2.bf16.msra.mxu1 %v6688_v1 }
 0x943   :  { %2072 = vmatprep.subr.bf16.mxu1 %v6691_v59 }
 0x946   :  { %2073 = vmatpush2.bf16.msra.mxu1 %v6694_v12 }
 0x947   :  { %2074 = vmatprep.subr.bf16.mxu1 %v6697_v17 }
 0x94a   :  { %2075 = vmatpush2.bf16.msra.mxu1 %v6700_v29 }
 0x94b   :  { %2076 = vmatprep.subr.bf16.mxu1 %v6703_v61 }
 0x94e   :  { %2077 = vmatpush2.bf16.msra.mxu1 %v6302_v7 }
 0x94f   :  { %2078 = vmatprep.subr.bf16.mxu1 %v6305_v11  ;;  %v8656_v11 = vld [vmem:[#allocation44_spill] sm:$0xff] }
 0x952   :  { %2079 = vmatpush2.bf16.msra.mxu1 %v6308_v13  ;;  %v8657_v13 = vld [vmem:[#allocation45_spill] sm:$0xff] }
 0x953   :  { %2080 = vmatprep.subr.bf16.mxu1 %v6311_v15  ;;  %v8658_v15 = vld [vmem:[#allocation46_spill] sm:$0xff] }
 0x956   :  { %2081 = vmatpush2.bf16.msra.mxu1 %v6314_v0  ;;  %v8659_v0 = vld [vmem:[#allocation47_spill] sm:$0xff] }
 0x957   :  { %2082 = vmatprep.subr.bf16.mxu1 %v6317_v18  ;;  %v8660_v18 = vld [vmem:[#allocation48_spill] sm:$0xff] }
 0x95a   :  { %v2047_v17 = vpop.f32.mrf.mxu0  ;;  %2083 = vmatpush2.bf16.msra.mxu1 %v6322_v22  ;;  %v8661_v22 = vld [vmem:[#allocation49_spill] sm:$0xff] }
 0x95b   :  { %2084 = vmatprep.subr.bf16.mxu1 %v6325_v24  ;;  %v8662_v24 = vld [vmem:[#allocation50_spill] sm:$0xff] }
 0x95c   :  { %v2049_v29 = vpop.f32.mrf.mxu0 }
 0x95e   :  { %2085 = vmatpush2.bf16.msra.mxu1 %v6330_v31  ;;  %v2051_v61 = vpop.f32.mrf.mxu0  ;;  %v8663_v31 = vld [vmem:[#allocation51_spill] sm:$0xff] }
 0x95f   :  { %2166 = vmatprep.subr.bf16.mxu1 %v6333_v35  ;;  %v8664_v35 = vld [vmem:[#allocation52_spill] sm:$0xff]  ;;  %v8672_v61 = vld [vmem:[#allocation65_spill] sm:$0xff] }
 0x960   :  { %v2052_v7 = vpop.f32.mrf.mxu0 }
 0x961   :  { %2087 = vmatmul.mubr.bf16.vlgmr.msra.gmra.mxu1 %v6579_v6  ;;  %v8671_v6 = vld [vmem:[#allocation63_spill] sm:$0xff] }
 0x962   :  { %2198 = vmatprep.mubr.bf16.mxu1 %v6521_v21  ;;  %2167 = vmatpush1.bf16.msra.mxu1 %v6338_v57  ;;  %v8665_v57 = vld [vmem:[#allocation53_spill] sm:$0xff]  ;;  %v8673_v7 = vld [vmem:[#allocation67_spill] sm:$0xff] }
 0x963   :  { %2168 = vmatprep.subr.bf16.mxu1 %v6341_v47  ;;  %v8666_v47 = vld [vmem:[#allocation54_spill] sm:$0xff]  ;;  %v8670_v21 = vld [vmem:[#allocation61_spill] sm:$0xff] }
 0x966   :  { %2169 = vmatpush1.bf16.msra.mxu1 %v6344_v58  ;;  %v8667_v58 = vld [vmem:[#allocation55_spill] sm:$0xff] }
 0x967   :  { %2170 = vmatprep.subr.bf16.mxu1 %v6347_v51  ;;  %v8668_v51 = vld [vmem:[#allocation57_spill] sm:$0xff] }
 0x96a   :  { %2171 = vmatpush1.bf16.msra.mxu1 %v6350_v60  ;;  %v8669_v60 = vld [vmem:[#allocation59_spill] sm:$0xff] }
 0x96b   :  { %2172 = vmatprep.subr.bf16.mxu1 %v8656_v11  ;;  %v8674_v11 = vld [vmem:[#allocation69_spill] sm:$0xff] }
 0x96e   :  { %2173 = vmatpush1.bf16.msra.mxu1 %v8657_v13  ;;  %v8675_v13 = vld [vmem:[#allocation71_spill] sm:$0xff] }
 0x96f   :  { %2174 = vmatprep.subr.bf16.mxu1 %v8658_v15  ;;  %v8676_v15 = vld [vmem:[#allocation72_spill] sm:$0xff] }
 0x972   :  { %2175 = vmatpush1.bf16.msra.mxu1 %v8659_v0  ;;  %v8677_v0 = vld [vmem:[#allocation76_spill] sm:$0xff] }
 0x973   :  { %2176 = vmatprep.subr.bf16.mxu1 %v8660_v18  ;;  %v8678_v18 = vld [vmem:[#allocation77_spill] sm:$0xff] }
 0x976   :  { %2177 = vmatpush1.bf16.msra.mxu1 %v8661_v22  ;;  %v8679_v22 = vld [vmem:[#allocation85_spill] sm:$0xff] }
 0x977   :  { %2178 = vmatprep.subr.bf16.mxu1 %v8662_v24  ;;  %v8680_v24 = vld [vmem:[#allocation78_spill] sm:$0xff] }
 0x97a   :  { %2179 = vmatpush1.bf16.msra.mxu1 %v8663_v31  ;;  %v8681_v31 = vld [vmem:[#allocation79_spill] sm:$0xff] }
 0x97b   :  { %2180 = vmatprep.subr.bf16.mxu1 %v8664_v35 }
 0x97e   :  { %2181 = vmatpush1.bf16.msra.mxu1 %v8665_v57  ;;  %v6753_v57 = vld [vmem:[%s8085_s8] ss:$0 sm:$0xff] }
 0x97f   :  { %2182 = vmatprep.subr.bf16.mxu1 %v8666_v47 }
 0x982   :  { %2183 = vmatpush2.bf16.msra.mxu1 %v8667_v58 }
 0x983   :  { %2184 = vmatprep.subr.bf16.mxu1 %v8668_v51 }
 0x986   :  { %2185 = vmatpush2.bf16.msra.mxu1 %v8669_v60 }
 0x987   :  { %2186 = vmatprep.subr.bf16.mxu1 %v8670_v21  ;;  %v2048_v21 = vadd.f32 %v2047_v17, %v8533_v50 }
 0x98a   :  { %2187 = vmatpush2.bf16.msra.mxu1 %v8671_v6  ;;  %v2050_v6 = vadd.f32 %v2049_v29, %v8607_v38 }
 0x98b   :  { %2188 = vmatprep.subr.bf16.mxu1 %v8672_v61  ;;  %v3746_v61 = vmul.f32 -1.442695, %v2048_v21  ;;  %v8683_v21 = vld [vmem:[#allocation80_spill] sm:$0xff] }
 0x98d   :  { %4560 = vpow2.f32 %v3746_v61 }
 0x98e   :  { %2189 = vmatpush2.bf16.msra.mxu1 %v8673_v7  ;;  %v3747_v7 = vmul.f32 -1.442695, %v2050_v6 }
 0x98f   :  { %2190 = vmatprep.subr.bf16.mxu1 %v8674_v11 }
 0x990   :  { %4562 = vpow2.f32 %v3747_v7 }
 0x992   :  { %2191 = vmatpush2.bf16.msra.mxu1 %v8675_v13 }
 0x993   :  { %2192 = vmatprep.subr.bf16.mxu1 %v8676_v15 }
 0x996   :  { %2193 = vmatpush2.bf16.msra.mxu1 %v8677_v0 }
 0x997   :  { %2194 = vmatprep.subr.bf16.mxu1 %v8678_v18 }
 0x99a   :  { %2195 = vmatpush2.bf16.msra.mxu1 %v8679_v22  ;;  %v4561_v11 = vpop.eup %4560 }
 0x99b   :  { %2196 = vmatprep.subr.bf16.mxu1 %v8680_v24  ;;  %v2098_v15 = vadd.f32 1.0, %v4561_v11 }
 0x99d   :  { %v4563_v13 = vpop.eup %4562  ;;  %4564 = vrcp.f32 %v2098_v15 }
 0x99e   :  { %2197 = vmatpush2.bf16.msra.mxu1 %v8681_v31  ;;  %v2104_v0 = vadd.f32 1.0, %v4563_v13  ;;  %v8682_v31 = vld [vmem:[#allocation74_spill] sm:$0xff] }
 0x99f   :  { %4060 = vmatprep.subr.bf16.mxu1 %v8468_v16 }
 0x9a0   :  { %4566 = vrcp.f32 %v2104_v0 }
 0x9e1   :  { %v1999_v35 = vpop.f32.mrf.mxu1 }
 0x9e2   :  { %v2000_v47 = vadd.f32 %v6753_v57, %v1999_v35 }
 0x9e3   :  { %v4038_v58 = vpop.f32.mrf.mxu1 }
 0x9e4   :  { %2006 = vst [vmem:[#allocation17 + $0x10] sm:$0xff] %v2000_v47  ;;  %v4565_v58 = vpop.eup %4564 }
 0x9e5   :  { %v2002_v51 = vpop.f32.mrf.mxu1 }
 0x9e6   :  { %v4567_v51 = vpop.eup %4566 }
 0x9e7   :  { %v4039_v60 = vpop.f32.mrf.mxu1  ;;  %v2114_v6 = vmul.f32 %v4567_v51, %v8683_v21  ;;  %v8691_v51 = vld [vmem:[#allocation87_spill] sm:$0xff]  ;;  %v8693_v21 = vld [vmem:[#allocation89_spill] sm:$0xff] }
 0xa21   :  { %v2088_v18 = vpop.f32.mrf.mxu1 }
 0xa22   :  { %v2089_v22 = vadd.f32 %v2088_v18, %v5734_v55 }
 0xa23   :  { %v2090_v24 = vpop.f32.mrf.mxu1 }
 0xa24   :  { %4568 = vtanh.f32 %v2089_v22  ;;  %v2091_v35 = vadd.f32 %v2090_v24, %v8682_v31  ;;  %v8685_v24 = vld [vmem:[#allocation81_spill] sm:$0xff] }
 0xa25   :  { %v2092_v17 = vpop.f32.mrf.mxu1 }
 0xa26   :  { %v3748_v47 = vmul.f32 -1.442695, %v2091_v35  ;;  %v8686_v35 = vld [vmem:[#allocation82_spill] sm:$0xff] }
 0xa27   :  { %v2093_v29 = vpop.f32.mrf.mxu1  ;;  %v8687_v17 = vld [vmem:[#allocation90_spill] sm:$0xff] }
 0xa28   :  { %4570 = vpow2.f32 %v3748_v47  ;;  %v8688_v47 = vld [vmem:[#allocation83_spill] sm:$0xff]  ;;  %v8689_v29 = vld [vmem:[#allocation84_spill] sm:$0xff] }
 0xa31   :  { %v4569_v60 = vpop.eup %4568 }
 0xa32   :  { %v2115_v61 = vmul.f32 %v4569_v60, %v4565_v58  ;;  %v8690_v58 = vld [vmem:[#allocation86_spill] sm:$0xff]  ;;  %v8692_v60 = vld [vmem:[#allocation88_spill] sm:$0xff] }
 0xa34   :  { %v6761_v7 = vadd.f32 %v2115_v61, %v2114_v6  ;;  %v8694_v6 = vld [vmem:[#allocation91_spill] sm:$0xff]  ;;  %v8695_v61 = vld [vmem:[#allocation56_spill] sm:$0xff] }
 0xa35   :  { %v4571_v11 = vpop.eup %4570 }
 0xa36   :  { %8684 = vst [vmem:[#allocation26_spill] sm:$0xff] %v6761_v7  ;;  %v2111_v13 = vadd.f32 1.0, %v4571_v11  ;;  %4572 = vtanh.f32 %v6761_v7  ;;  %v8696_v11 = vld [vmem:[#allocation58_spill] sm:$0xff] }
 0xa38   :  { %4574 = vrcp.f32 %v2111_v13  ;;  %v8697_v13 = vld [vmem:[#allocation60_spill] sm:$0xff] }
 0xa43   :  { %v4573_v15 = vpop.eup %4572 }
 0xa45   :  { %v4575_v0 = vpop.eup %4574 }
 0xa46   :  { %v2118_v18 = vmul.f32 %v4575_v0, %v4573_v15  ;;  %v8698_v15 = vld [vmem:[#allocation62_spill] sm:$0xff]  ;;  %v8699_v0 = vld [vmem:[#allocation64_spill] sm:$0xff] }
 0xa48   :  { %v6764_v22 = vpack.c.bf16 %v2118_v18, %v2118_v18  ;;  %v6801_v18 = vld [vmem:[#allocation9 + $0xe4] ss:$16 sps:$4 sm:$0xff]  }
 0xa49   :  { %8700 = vst [vmem:[#allocation27_spill] sm:$0xff] %v6801_v18 }
 0xa4a   :  { %2158 = vmatmul.mubr.bf16.vlgmr.msra.gmra.mxu0 %v6764_v22  ;;  %2199 = vmatmul.mubr.bf16.vlgmr.msra.gmra.mxu1 %v6764_v22 }
 0xa4b   :  { %4041 = vmatpush3.bf16.msra.mxu0 %v8685_v24  ;;  %4056 = vmatprep.mubr.msk.bf16.mxu0 %vm5356_vm0, %v8468_v16  ;;  %v6804_v24 = vld [vmem:[#allocation15] sm:$0xff]  }
 0xa4c   :  { %4042 = vmatprep.subr.bf16.mxu0 %v8468_v16  ;;  %4061 = vmatpush3.bf16.msra.mxu1 %v8686_v35  ;;  %8701 = vst [vmem:[#allocation28_spill] sm:$0xff] %v6804_v24  ;;  %v6807_v35 = vld [vmem:[#allocation9 + $0xec] ss:$16 sps:$4 sm:$0xff]  }
 0xa4d   :  { %4062 = vmatprep.subr.bf16.mxu1 %v8468_v16  ;;  %4076 = vmatprep.mubr.msk.bf16.mxu1 %vm5356_vm0, %v8468_v16  ;;  %8702 = vst [vmem:[#allocation29_spill] sm:$0xff] %v6807_v35 }
 0xa4f   :  { %4043 = vmatpush3.bf16.msra.mxu0 %v8687_v17 }
 0xa50   :  { %4044 = vmatprep.subr.bf16.mxu0 %v8468_v16  ;;  %4063 = vmatpush3.bf16.msra.mxu1 %v8688_v47 }
 0xa51   :  { %4064 = vmatprep.subr.bf16.mxu1 %v8468_v16 }
 0xa53   :  { %4045 = vmatpush3.bf16.msra.mxu0 %v8689_v29 }
 0xa54   :  { %4046 = vmatprep.subr.bf16.mxu0 %v8468_v16  ;;  %4065 = vmatpush3.bf16.msra.mxu1 %v8690_v58 }
 0xa55   :  { %4066 = vmatprep.subr.bf16.mxu1 %v8468_v16 }
 0xa57   :  { %4047 = vmatpush3.bf16.msra.mxu0 %v8691_v51 }
 0xa58   :  { %4048 = vmatprep.subr.bf16.mxu0 %v8468_v16  ;;  %4067 = vmatpush3.bf16.msra.mxu1 %v8692_v60 }
 0xa59   :  { %4068 = vmatprep.subr.bf16.mxu1 %v8468_v16 }
 0xa5b   :  { %4049 = vmatpush3.bf16.msra.mxu0 %v8693_v21 }
 0xa5c   :  { %4050 = vmatprep.subr.bf16.mxu0 %v8468_v16  ;;  %4069 = vmatpush3.bf16.msra.mxu1 %v8694_v6 }
 0xa5d   :  { %4070 = vmatprep.subr.bf16.mxu1 %v8468_v16 }
 0xa5f   :  { %4051 = vmatpush3.bf16.msra.mxu0 %v8695_v61 }
 0xa60   :  { %4052 = vmatprep.subr.bf16.mxu0 %v8468_v16  ;;  %4071 = vmatpush3.bf16.msra.mxu1 %v8696_v11 }
 0xa61   :  { %4072 = vmatprep.subr.bf16.mxu1 %v8468_v16 }
 0xa63   :  { %4053 = vmatpush3.bf16.msra.mxu0 %v8697_v13 }
 0xa64   :  { %4054 = vmatprep.subr.bf16.mxu0 %v8468_v16  ;;  %4073 = vmatpush3.bf16.msra.mxu1 %v8698_v15 }
 0xa65   :  { %4074 = vmatprep.subr.bf16.mxu1 %v8468_v16 }
 0xa67   :  { %4055 = vmatpush3.bf16.msra.mxu0 %v8699_v0 }
 0xa68   :  { %2324 = vmatprep.subr.bf16.mxu0 %v6801_v18  ;;  %4075 = vmatpush3.bf16.msra.mxu1 %v6804_v24 }
 0xa69   :  { %2365 = vmatprep.subr.bf16.mxu1 %v6807_v35 }
 0xb0a   :  { %v2159_v17 = vpop.f32.mrf.mxu0  ;;  %v2200_v47 = vpop.f32.mrf.mxu1 }
 0xb0b   :  { %v2160_v29 = vadd.f32 %v2159_v17, %v8548_v43  ;;  %v2201_v18 = vadd.f32 %v2200_v47, %v8551_v30 }
 0xb0c   :  { %v2161_v58 = vpop.f32.mrf.mxu0  ;;  %v2202_v51 = vpop.f32.mrf.mxu1 }
 0xb0d   :  { %v3749_v60 = vmul.f32 -1.442695, %v2160_v29  ;;  %v2162_v21 = vadd.f32 %v2161_v58, %v8549_v3  ;;  %v2203_v0 = vadd.f32 %v2202_v51, %v8550_v19 }
 0xb0e   :  { %v2163_v6 = vpop.f32.mrf.mxu0  ;;  %v2204_v61 = vpop.f32.mrf.mxu1 }
 0xb0f   :  { %4576 = vpow2.f32 %v3749_v60  ;;  %v3750_v11 = vmul.f32 -1.442695, %v2162_v21  ;;  %v3751_v24 = vmul.f32 -1.442695, %v2203_v0  ;;  %v6879_v0 = vld [vmem:[#allocation9 + $0x124] ss:$16 sps:$4 sm:$0xff]  }
 0xb10   :  { %v2164_v13 = vpop.f32.mrf.mxu0  ;;  %v2205_v15 = vpop.f32.mrf.mxu1 }
 0xb11   :  { %4578 = vpow2.f32 %v3750_v11  ;;  %v6876_v15 = vld [vmem:[#allocation9 + $0x140] ss:$16 sps:$4 sm:$0xff]  }
 0xb12   :  { %4580 = vpow2.f32 %v3751_v24 }
 0xb1c   :  { %v4577_v35 = vpop.eup %4576 }
 0xb1d   :  { %v2210_v7 = vadd.f32 1.0, %v4577_v35 }
 0xb1e   :  { %v4579_v17 = vpop.eup %4578 }
 0xb1f   :  { %4582 = vrcp.f32 %v2210_v7  ;;  %v2216_v29 = vadd.f32 1.0, %v4579_v17  ;;  %v4581_v58 = vpop.eup %4580  ;;  %v6882_v17 = vld [vmem:[#allocation9 + $0x120] ss:$16 sps:$4 sm:$0xff]  }
 0xb20   :  { %4584 = vtanh.f32 %v2201_v18  ;;  %v2223_v61 = vadd.f32 1.0, %v4581_v58  ;;  %v6873_v18 = vld [vmem:[#allocation9 + $0x144] ss:$16 sps:$4 sm:$0xff]  }
 0xb21   :  { %4586 = vrcp.f32 %v2216_v29  ;;  %v2319_v29 = vld [vmem:[#allocation6 + $0x20] sm:$0xff] }
 0xb22   :  { %4588 = vrcp.f32 %v2223_v61  ;;  %v6885_v58 = vld [vmem:[#allocation9 + $0x104] ss:$16 sps:$4 sm:$0xff]  }
 0xb23   :  { %v6898_v61 = vld [vmem:[#allocation12 + $0xe0] ss:$16 sps:$4 sm:$0xff]  }
 0xb2c   :  { %v4583_v6 = vpop.eup %4582 }
 0xb2d   :  { %v4585_v60 = vpop.eup %4584 }
 0xb2e   :  { %v4587_v21 = vpop.eup %4586  ;;  %v2227_v13 = vmul.f32 %v4585_v60, %v4583_v6  ;;  %v6888_v6 = vpack.c.bf16 %v2319_v29, %v2319_v29  ;;  %v6890_v60 = vld [vmem:[#allocation9 + $0x100] ss:$16 sps:$4 sm:$0xff]   ;;  %v6916_v29 = vld [vmem:[#allocation12 + $0x80] ss:$16 sps:$4 sm:$0xff]  }
 0xb2f   :  { %v2226_v11 = vmul.f32 %v4587_v21, %v6518_v37  ;;  %v4589_v35 = vpop.eup %4588  ;;  %v6834_v37 = vld [vmem:[#allocation9 + $0x20] ss:$16 sps:$4 sm:$0xff]   ;;  %v6893_v21 = vld [vmem:[#allocation12 + $0xe4] ss:$16 sps:$4 sm:$0xff]   ;;  %8708 = vst [vmem:[#allocation35_spill] sm:$0xff] %v6916_v29 }
 0xb31   :  { %v6815_v51 = vadd.f32 %v2227_v13, %v2226_v11  ;;  %v6901_v13 = vld [vmem:[#allocation12 + $0xc4] ss:$16 sps:$4 sm:$0xff]   ;;  %v6904_v11 = vld [vmem:[#allocation12 + $0xc0] ss:$16 sps:$4 sm:$0xff]  }
 0xb32   :  { %8703 = vst [vmem:[#allocation30_spill] sm:$0xff] %v6901_v13  ;;  %8704 = vst [vmem:[#allocation31_spill] sm:$0xff] %v6904_v11 }
 0xb33   :  { %4590 = vtanh.f32 %v6815_v51 }
 0xb40   :  { %v4591_v47 = vpop.eup %4590 }
 0xb41   :  { %v2230_v24 = vmul.f32 %v4591_v47, %v4589_v35  ;;  %v6907_v35 = vld [vmem:[#allocation12 + $0xa4] ss:$16 sps:$4 sm:$0xff]   ;;  %v6910_v47 = vld [vmem:[#allocation12 + $0xa0] ss:$16 sps:$4 sm:$0xff]  }
 0xb42   :  { %8705 = vst [vmem:[#allocation32_spill] sm:$0xff] %v6907_v35  ;;  %8706 = vst [vmem:[#allocation33_spill] sm:$0xff] %v6910_v47 }
 0xb43   :  { %v6818_v7 = vpack.c.bf16 %v2230_v24, %v2230_v24  ;;  %v6913_v24 = vld [vmem:[#allocation12 + $0x84] ss:$16 sps:$4 sm:$0xff]  }
 0xb44   :  { %8707 = vst [vmem:[#allocation34_spill] sm:$0xff] %v6913_v24 }
 0xb45   :  { %4057 = vmatmul.mubr.bf16.vlgmr.msra.gmra.mxu0 %v6818_v7 }
 0xb46   :  { %2325 = vmatpush1.bf16.msra.mxu0 %v6524_v33  ;;  %2356 = vmatprep.mubr.bf16.mxu0 %v6764_v22  ;;  %v6837_v33 = vld [vmem:[#allocation9 + $0x4] ss:$16 sps:$4 sm:$0xff]  }
 0xb47   :  { %2326 = vmatprep.subr.bf16.mxu0 %v6528_v23  ;;  %v6840_v23 = vld [vmem:[#allocation9] ss:$16 sps:$4 sm:$0xff]  }
 0xb4a   :  { %2327 = vmatpush1.bf16.msra.mxu0 %v6531_v5  ;;  %v6843_v5 = vld [vmem:[#allocation9 + $0x1e4] ss:$16 sps:$4 sm:$0xff]  }
 0xb4b   :  { %2328 = vmatprep.subr.bf16.mxu0 %v6534_v32  ;;  %v6846_v32 = vld [vmem:[#allocation9 + $0x1e0] ss:$16 sps:$4 sm:$0xff]  }
 0xb4e   :  { %2329 = vmatpush1.bf16.msra.mxu0 %v6537_v4  ;;  %v6849_v4 = vld [vmem:[#allocation9 + $0x1c4] ss:$16 sps:$4 sm:$0xff]  }
 0xb4f   :  { %2330 = vmatprep.subr.bf16.mxu0 %v6540_v34  ;;  %v6852_v34 = vld [vmem:[#allocation9 + $0x1c0] ss:$16 sps:$4 sm:$0xff]  }
 0xb52   :  { %2331 = vmatpush1.bf16.msra.mxu0 %v6543_v46  ;;  %v6855_v46 = vld [vmem:[#allocation9 + $0x1a4] ss:$16 sps:$4 sm:$0xff]  }
 0xb53   :  { %2332 = vmatprep.subr.bf16.mxu0 %v6546_v45  ;;  %v6858_v45 = vld [vmem:[#allocation9 + $0x1a0] ss:$16 sps:$4 sm:$0xff]  }
 0xb56   :  { %2333 = vmatpush1.bf16.msra.mxu0 %v6549_v28  ;;  %v6861_v28 = vld [vmem:[#allocation9 + $0x184] ss:$16 sps:$4 sm:$0xff]  }
 0xb57   :  { %2334 = vmatprep.subr.bf16.mxu0 %v6552_v48  ;;  %v6864_v48 = vld [vmem:[#allocation9 + $0x180] ss:$16 sps:$4 sm:$0xff]  }
 0xb5a   :  { %2335 = vmatpush1.bf16.msra.mxu0 %v6555_v62  ;;  %v6867_v62 = vld [vmem:[#allocation9 + $0x164] ss:$16 sps:$4 sm:$0xff]  }
 0xb5b   :  { %2336 = vmatprep.subr.bf16.mxu0 %v6558_v20  ;;  %v6870_v20 = vld [vmem:[#allocation9 + $0x160] ss:$16 sps:$4 sm:$0xff]  }
 0xb5e   :  { %2337 = vmatpush1.bf16.msra.mxu0 %v6834_v37 }
 0xb5f   :  { %2338 = vmatprep.subr.bf16.mxu0 %v6837_v33 }
 0xb62   :  { %2339 = vmatpush1.bf16.msra.mxu0 %v6840_v23 }
 0xb63   :  { %2340 = vmatprep.subr.bf16.mxu0 %v6843_v5 }
 0xb66   :  { %2341 = vmatpush2.bf16.msra.mxu0 %v6846_v32 }
 0xb67   :  { %2342 = vmatprep.subr.bf16.mxu0 %v6849_v4 }
 0xb6a   :  { %2343 = vmatpush2.bf16.msra.mxu0 %v6852_v34 }
 0xb6b   :  { %2344 = vmatprep.subr.bf16.mxu0 %v6855_v46 }
 0xb6e   :  { %2345 = vmatpush2.bf16.msra.mxu0 %v6858_v45 }
 0xb6f   :  { %2346 = vmatprep.subr.bf16.mxu0 %v6861_v28 }
 0xb72   :  { %2347 = vmatpush2.bf16.msra.mxu0 %v6864_v48 }
 0xb73   :  { %2348 = vmatprep.subr.bf16.mxu0 %v6867_v62 }
 0xb76   :  { %2349 = vmatpush2.bf16.msra.mxu0 %v6870_v20 }
 0xb77   :  { %2350 = vmatprep.subr.bf16.mxu0 %v6873_v18 }
 0xb7a   :  { %2351 = vmatpush2.bf16.msra.mxu0 %v6876_v15 }
 0xb7b   :  { %2352 = vmatprep.subr.bf16.mxu0 %v6879_v0 }
 0xb7e   :  { %2353 = vmatpush2.bf16.msra.mxu0 %v6882_v17 }
 0xb7f   :  { %2354 = vmatprep.subr.bf16.mxu0 %v6885_v58 }
 0xb82   :  { %2355 = vmatpush2.bf16.msra.mxu0 %v6890_v60 }
 0xb83   :  { %2436 = vmatprep.subr.bf16.mxu0 %v6893_v21 }
 0xb85   :  { %2357 = vmatmul.mubr.bf16.vlgmr.msra.gmra.mxu0 %v6888_v6 }
 0xb86   :  { %2468 = vmatprep.mubr.bf16.mxu0 %v6818_v7  ;;  %2437 = vmatpush1.bf16.msra.mxu0 %v6898_v61 }
 0xb87   :  { %2438 = vmatprep.subr.bf16.mxu0 %v6901_v13  ;;  %v6919_v13 = vld [vmem:[#allocation12 + $0x64] ss:$16 sps:$4 sm:$0xff]  }
 0xb88   :  { %8709 = vst [vmem:[#allocation36_spill] sm:$0xff] %v6919_v13 }
 0xb8a   :  { %2439 = vmatpush1.bf16.msra.mxu0 %v6904_v11  ;;  %v6922_v11 = vld [vmem:[#allocation12 + $0x60] ss:$16 sps:$4 sm:$0xff]  }
 0xb8b   :  { %2440 = vmatprep.subr.bf16.mxu0 %v6907_v35  ;;  %8710 = vst [vmem:[#allocation37_spill] sm:$0xff] %v6922_v11  ;;  %v6925_v35 = vld [vmem:[#allocation12 + $0x44] ss:$16 sps:$4 sm:$0xff]  }
 0xb8c   :  { %8711 = vst [vmem:[#allocation38_spill] sm:$0xff] %v6925_v35 }
 0xb8e   :  { %2441 = vmatpush1.bf16.msra.mxu0 %v6910_v47  ;;  %v6928_v47 = vld [vmem:[#allocation12 + $0x40] ss:$16 sps:$4 sm:$0xff]  }
 0xb8f   :  { %2442 = vmatprep.subr.bf16.mxu0 %v6913_v24  ;;  %8712 = vst [vmem:[#allocation39_spill] sm:$0xff] %v6928_v47  ;;  %v6931_v24 = vld [vmem:[#allocation12 + $0x24] ss:$16 sps:$4 sm:$0xff]  }
 0xb90   :  { %8713 = vst [vmem:[#allocation40_spill] sm:$0xff] %v6931_v24 }
 0xb92   :  { %2443 = vmatpush1.bf16.msra.mxu0 %v6916_v29  ;;  %v6934_v29 = vld [vmem:[#allocation12 + $0x20] ss:$16 sps:$4 sm:$0xff]  }
 0xb93   :  { %2444 = vmatprep.subr.bf16.mxu0 %v6919_v13  ;;  %8714 = vst [vmem:[#allocation41_spill] sm:$0xff] %v6934_v29  ;;  %v6937_v13 = vld [vmem:[#allocation12 + $0x4] ss:$16 sps:$4 sm:$0xff]  }
 0xb94   :  { %8715 = vst [vmem:[#allocation42_spill] sm:$0xff] %v6937_v13 }
 0xb96   :  { %2445 = vmatpush1.bf16.msra.mxu0 %v6922_v11  ;;  %v6940_v11 = vld [vmem:[#allocation12] ss:$16 sps:$4 sm:$0xff]  }
 0xb97   :  { %2446 = vmatprep.subr.bf16.mxu0 %v6925_v35  ;;  %8716 = vst [vmem:[#allocation43_spill] sm:$0xff] %v6940_v11  ;;  %v6943_v35 = vld [vmem:[#allocation12 + $0x1e4] ss:$16 sps:$4 sm:$0xff]  }
 0xb98   :  { %8717 = vst [vmem:[#allocation44_spill] sm:$0xff] %v6943_v35 }
 0xb9a   :  { %2447 = vmatpush1.bf16.msra.mxu0 %v6928_v47  ;;  %v6946_v47 = vld [vmem:[#allocation12 + $0x1e0] ss:$16 sps:$4 sm:$0xff]  }
 0xb9b   :  { %2448 = vmatprep.subr.bf16.mxu0 %v6931_v24  ;;  %8718 = vst [vmem:[#allocation45_spill] sm:$0xff] %v6946_v47  ;;  %v6949_v24 = vld [vmem:[#allocation12 + $0x1c4] ss:$16 sps:$4 sm:$0xff]  }
 0xb9e   :  { %2449 = vmatpush1.bf16.msra.mxu0 %v6934_v29  ;;  %v6952_v29 = vld [vmem:[#allocation12 + $0x1c0] ss:$16 sps:$4 sm:$0xff]  }
 0xb9f   :  { %2450 = vmatprep.subr.bf16.mxu0 %v6937_v13  ;;  %v6955_v13 = vld [vmem:[#allocation12 + $0x1a4] ss:$16 sps:$4 sm:$0xff]  }
 0xba0   :  { %8719 = vst [vmem:[#allocation46_spill] sm:$0xff] %v6955_v13 }
 0xba2   :  { %2451 = vmatpush1.bf16.msra.mxu0 %v6940_v11  ;;  %v6958_v11 = vld [vmem:[#allocation12 + $0x1a0] ss:$16 sps:$4 sm:$0xff]  }
 0xba3   :  { %2452 = vmatprep.subr.bf16.mxu0 %v6943_v35  ;;  %8720 = vst [vmem:[#allocation47_spill] sm:$0xff] %v6958_v11  ;;  %v6961_v35 = vld [vmem:[#allocation12 + $0x184] ss:$16 sps:$4 sm:$0xff]  }
 0xba4   :  { %8721 = vst [vmem:[#allocation48_spill] sm:$0xff] %v6961_v35 }
 0xba6   :  { %2453 = vmatpush2.bf16.msra.mxu0 %v6946_v47  ;;  %v6964_v47 = vld [vmem:[#allocation12 + $0x180] ss:$16 sps:$4 sm:$0xff]  }
 0xba7   :  { %2454 = vmatprep.subr.bf16.mxu0 %v6949_v24  ;;  %8722 = vst [vmem:[#allocation49_spill] sm:$0xff] %v6964_v47 }
 0xbaa   :  { %2455 = vmatpush2.bf16.msra.mxu0 %v6952_v29 }
 0xbab   :  { %2456 = vmatprep.subr.bf16.mxu0 %v6955_v13 }
 0xbae   :  { %2457 = vmatpush2.bf16.msra.mxu0 %v6958_v11 }
 0xbaf   :  { %2458 = vmatprep.subr.bf16.mxu0 %v6961_v35 }
 0xbb2   :  { %2459 = vmatpush2.bf16.msra.mxu0 %v6964_v47 }
 0xbb3   :  { %2460 = vmatprep.subr.bf16.mxu0 %v6608_v52 }
 0xbb6   :  { %2461 = vmatpush2.bf16.msra.mxu0 %v6611_v14 }
 0xbb7   :  { %2462 = vmatprep.subr.bf16.mxu0 %v6614_v9 }
 0xbba   :  { %2463 = vmatpush2.bf16.msra.mxu0 %v6617_v2  ;;  %v8723_v2 = vld [vmem:[#allocation66_spill] sm:$0xff] }
 0xbbb   :  { %2464 = vmatprep.subr.bf16.mxu0 %v6620_v54  ;;  %v8724_v54 = vld [vmem:[#allocation68_spill] sm:$0xff] }
 0xbbe   :  { %2465 = vmatpush2.bf16.msra.mxu0 %v6623_v63  ;;  %v8725_v63 = vld [vmem:[#allocation70_spill] sm:$0xff] }
 0xbbf   :  { %2466 = vmatprep.subr.bf16.mxu0 %v6626_v56  ;;  %v8726_v56 = vld [vmem:[#allocation92_spill] sm:$0xff] }
 0xbc2   :  { %2467 = vmatpush2.bf16.msra.mxu0 %v6629_v27  ;;  %v8727_v27 = vld [vmem:[#allocation93_spill] sm:$0xff] }
 0xbc3   :  { %4080 = vmatprep.subr.bf16.mxu0 %v8468_v16 }
 0xc05   :  { %v2268_v35 = vpop.f32.mrf.mxu0 }
 0xc06   :  { %v2269_v47 = vadd.f32 %v6636_v8, %v2268_v35  ;;  %v8728_v8 = vld [vmem:[#allocation23_spill] sm:$0xff]  ;;  %v7039_v35 = vld [vmem:[#allocation12 + $0xcc] ss:$16 sps:$4 sm:$0xff]  }
 0xc07   :  { %v4058_v52 = vpop.f32.mrf.mxu0 }
 0xc08   :  { %v2274_v11 = vmax.f32 %v2269_v47, 0.0  ;;  %v7042_v47 = vld [vmem:[#allocation12 + $0xc8] ss:$16 sps:$4 sm:$0xff]   ;;  %v7045_v52 = vld [vmem:[#allocation12 + $0xac] ss:$16 sps:$4 sm:$0xff]  }
 0xc09   :  { %v2271_v14 = vpop.f32.mrf.mxu0 }
 0xc0a   :  { %v2275_v13 = vpack.c.bf16 %v2274_v11, %v2274_v11  ;;  %v7036_v11 = vld [vmem:[#allocation12 + $0xe8] ss:$16 sps:$4 sm:$0xff]  }
 0xc0b   :  { %v4059_v9 = vpop.f32.mrf.mxu0  ;;  %v7048_v14 = vld [vmem:[#allocation12 + $0xa8] ss:$16 sps:$4 sm:$0xff]  }
 0xc0c   :  { %4077 = vmatmul.mubr.bf16.vlgmr.msra.gmra.mxu1 %v2275_v13  ;;  %v7057_v9 = vld [vmem:[#allocation12 + $0x6c] ss:$16 sps:$4 sm:$0xff]  }
 0xc0d   :  { %2366 = vmatpush1.bf16.msra.mxu1 %v6639_v49  ;;  %2397 = vmatprep.mubr.bf16.mxu1 %v6764_v22  ;;  %v8729_v49 = vld [vmem:[#allocation24_spill] sm:$0xff]  ;;  %8733 = vst [vmem:[#allocation52_spill] sm:$0xff] %v7057_v9 }
 0xc0e   :  { %2367 = vmatprep.subr.bf16.mxu1 %v6643_v40  ;;  %v8730_v40 = vld [vmem:[#allocation25_spill] sm:$0xff]  ;;  %v7031_v22 = vld [vmem:[#allocation12 + $0xec] ss:$16 sps:$4 sm:$0xff]  }
 0xc11   :  { %2368 = vmatpush1.bf16.msra.mxu1 %v6646_v39  ;;  %v7000_v39 = vld [vmem:[#allocation9 + $0x188] ss:$16 sps:$4 sm:$0xff]  }
 0xc12   :  { %2369 = vmatprep.subr.bf16.mxu1 %v6649_v26  ;;  %v7003_v26 = vld [vmem:[#allocation9 + $0x16c] ss:$16 sps:$4 sm:$0xff]  }
 0xc15   :  { %2370 = vmatpush1.bf16.msra.mxu1 %v6652_v25  ;;  %v7006_v25 = vld [vmem:[#allocation9 + $0x168] ss:$16 sps:$4 sm:$0xff]  }
 0xc16   :  { %2371 = vmatprep.subr.bf16.mxu1 %v6655_v53  ;;  %v7009_v53 = vld [vmem:[#allocation9 + $0x14c] ss:$16 sps:$4 sm:$0xff]  }
 0xc19   :  { %2372 = vmatpush1.bf16.msra.mxu1 %v6658_v41  ;;  %v7012_v41 = vld [vmem:[#allocation9 + $0x148] ss:$16 sps:$4 sm:$0xff]  }
 0xc1a   :  { %2373 = vmatprep.subr.bf16.mxu1 %v6661_v44  ;;  %v7015_v44 = vld [vmem:[#allocation9 + $0x12c] ss:$16 sps:$4 sm:$0xff]  }
 0xc1d   :  { %2374 = vmatpush1.bf16.msra.mxu1 %v6664_v36 }
 0xc1e   :  { %2375 = vmatprep.subr.bf16.mxu1 %v6667_v42  ;;  %v7020_v42 = vld [vmem:[#allocation9 + $0x128] ss:$16 sps:$4 sm:$0xff]  }
 0xc21   :  { %2376 = vmatpush1.bf16.msra.mxu1 %v6670_v10  ;;  %v7023_v10 = vld [vmem:[#allocation9 + $0x10c] ss:$16 sps:$4 sm:$0xff]  }
 0xc22   :  { %2377 = vmatprep.subr.bf16.mxu1 %v8723_v2  ;;  %v7060_v2 = vld [vmem:[#allocation12 + $0x68] ss:$16 sps:$4 sm:$0xff]  }
 0xc23   :  { %8734 = vst [vmem:[#allocation53_spill] sm:$0xff] %v7060_v2 }
 0xc25   :  { %2378 = vmatpush1.bf16.msra.mxu1 %v8724_v54  ;;  %v7063_v54 = vld [vmem:[#allocation12 + $0x4c] ss:$16 sps:$4 sm:$0xff]  }
 0xc26   :  { %2379 = vmatprep.subr.bf16.mxu1 %v8725_v63  ;;  %8735 = vst [vmem:[#allocation54_spill] sm:$0xff] %v7063_v54  ;;  %v7066_v63 = vld [vmem:[#allocation12 + $0x48] ss:$16 sps:$4 sm:$0xff]  }
 0xc27   :  { %8736 = vst [vmem:[#allocation55_spill] sm:$0xff] %v7066_v63 }
 0xc29   :  { %2380 = vmatpush1.bf16.msra.mxu1 %v8726_v56  ;;  %v7069_v56 = vld [vmem:[#allocation12 + $0x2c] ss:$16 sps:$4 sm:$0xff]  }
 0xc2a   :  { %2381 = vmatprep.subr.bf16.mxu1 %v8727_v27  ;;  %8737 = vst [vmem:[#allocation57_spill] sm:$0xff] %v7069_v56  ;;  %v7072_v27 = vld [vmem:[#allocation12 + $0x28] ss:$16 sps:$4 sm:$0xff]  }
 0xc2b   :  { %8738 = vst [vmem:[#allocation59_spill] sm:$0xff] %v7072_v27 }
 0xc2d   :  { %2382 = vmatpush2.bf16.msra.mxu1 %v6688_v1 }
 0xc2e   :  { %2383 = vmatprep.subr.bf16.mxu1 %v6691_v59 }
 0xc31   :  { %2384 = vmatpush2.bf16.msra.mxu1 %v6694_v12  ;;  %v7028_v12 = vld [vmem:[#allocation9 + $0x108] ss:$16 sps:$4 sm:$0xff]  }
 0xc32   :  { %2385 = vmatprep.subr.bf16.mxu1 %v8728_v8  ;;  %v7075_v8 = vld [vmem:[#allocation12 + $0xc] ss:$16 sps:$4 sm:$0xff]  }
 0xc33   :  { %8739 = vst [vmem:[#allocation61_spill] sm:$0xff] %v7075_v8 }
 0xc35   :  { %2386 = vmatpush2.bf16.msra.mxu1 %v8729_v49  ;;  %v7078_v49 = vld [vmem:[#allocation12 + $0x8] ss:$16 sps:$4 sm:$0xff]  }
 0xc36   :  { %2387 = vmatprep.subr.bf16.mxu1 %v8730_v40  ;;  %8740 = vst [vmem:[#allocation63_spill] sm:$0xff] %v7078_v49  ;;  %v7081_v40 = vld [vmem:[#allocation12 + $0x1ec] ss:$16 sps:$4 sm:$0xff]  }
 0xc37   :  { %8741 = vst [vmem:[#allocation65_spill] sm:$0xff] %v7081_v40 }
 0xc39   :  { %2388 = vmatpush2.bf16.msra.mxu1 %v7000_v39 }
 0xc3a   :  { %2389 = vmatprep.subr.bf16.mxu1 %v7003_v26 }
 0xc3d   :  { %2390 = vmatpush2.bf16.msra.mxu1 %v7006_v25 }
 0xc3e   :  { %2391 = vmatprep.subr.bf16.mxu1 %v7009_v53 }
 0xc41   :  { %2392 = vmatpush2.bf16.msra.mxu1 %v7012_v41 }
 0xc42   :  { %2393 = vmatprep.subr.bf16.mxu1 %v7015_v44 }
 0xc45   :  { %v7018_v36 = vpop.f32.mrf.mxu0  ;;  %2394 = vmatpush2.bf16.msra.mxu1 %v7020_v42 }
 0xc46   :  { %2395 = vmatprep.subr.bf16.mxu1 %v7023_v10 }
 0xc47   :  { %v7026_v59 = vpop.f32.mrf.mxu0 }
 0xc49   :  { %2396 = vmatpush2.bf16.msra.mxu1 %v7028_v12  ;;  %v2362_v1 = vpop.f32.mrf.mxu0 }
 0xc4a   :  { %2477 = vmatprep.subr.bf16.mxu1 %v7031_v22  ;;  %v7084_v1 = vld [vmem:[#allocation12 + $0x1e8] ss:$16 sps:$4 sm:$0xff]  }
 0xc4b   :  { %v2363_v13 = vpop.f32.mrf.mxu0  ;;  %8742 = vst [vmem:[#allocation67_spill] sm:$0xff] %v7084_v1 }
 0xc4c   :  { %2398 = vmatmul.mubr.bf16.vlgmr.msra.gmra.mxu1 %v6888_v6  ;;  %v7054_v6 = vld [vmem:[#allocation12 + $0x88] ss:$16 sps:$4 sm:$0xff]   ;;  %v7087_v13 = vld [vmem:[#allocation12 + $0x1cc] ss:$16 sps:$4 sm:$0xff]  }
 0xc4d   :  { %2509 = vmatprep.mubr.bf16.mxu1 %v6818_v7  ;;  %2478 = vmatpush1.bf16.msra.mxu1 %v7036_v11  ;;  %v7051_v7 = vld [vmem:[#allocation12 + $0x8c] ss:$16 sps:$4 sm:$0xff]   ;;  %8732 = vst [vmem:[#allocation51_spill] sm:$0xff] %v7054_v6  ;;  %8743 = vst [vmem:[#allocation69_spill] sm:$0xff] %v7087_v13 }
 0xc4e   :  { %2479 = vmatprep.subr.bf16.mxu1 %v7039_v35  ;;  %8731 = vst [vmem:[#allocation50_spill] sm:$0xff] %v7051_v7 }
 0xc51   :  { %2480 = vmatpush1.bf16.msra.mxu1 %v7042_v47 }
 0xc52   :  { %2481 = vmatprep.subr.bf16.mxu1 %v7045_v52 }
 0xc55   :  { %2482 = vmatpush1.bf16.msra.mxu1 %v7048_v14 }
 0xc56   :  { %2483 = vmatprep.subr.bf16.mxu1 %v7051_v7 }
 0xc59   :  { %2484 = vmatpush1.bf16.msra.mxu1 %v7054_v6 }
 0xc5a   :  { %2485 = vmatprep.subr.bf16.mxu1 %v7057_v9 }
 0xc5d   :  { %2486 = vmatpush1.bf16.msra.mxu1 %v7060_v2 }
 0xc5e   :  { %2487 = vmatprep.subr.bf16.mxu1 %v7063_v54  ;;  %v2361_v54 = vadd.f32 %v7026_v59, %v8607_v38 }
 0xc60   :  { %v3753_v2 = vmul.f32 -1.442695, %v2361_v54 }
 0xc61   :  { %2488 = vmatpush1.bf16.msra.mxu1 %v7066_v63 }
 0xc62   :  { %2489 = vmatprep.subr.bf16.mxu1 %v7069_v56 }
 0xc65   :  { %2490 = vmatpush1.bf16.msra.mxu1 %v7072_v27  ;;  %v7090_v27 = vld [vmem:[#allocation12 + $0x1c8] ss:$16 sps:$4 sm:$0xff]  }
 0xc66   :  { %2491 = vmatprep.subr.bf16.mxu1 %v7075_v8  ;;  %8744 = vst [vmem:[#allocation71_spill] sm:$0xff] %v7090_v27  ;;  %v7093_v8 = vld [vmem:[#allocation12 + $0x1ac] ss:$16 sps:$4 sm:$0xff]  }
 0xc67   :  { %8745 = vst [vmem:[#allocation72_spill] sm:$0xff] %v7093_v8 }
 0xc69   :  { %2492 = vmatpush1.bf16.msra.mxu1 %v7078_v49  ;;  %v7096_v49 = vld [vmem:[#allocation12 + $0x1a8] ss:$16 sps:$4 sm:$0xff]  }
 0xc6a   :  { %2493 = vmatprep.subr.bf16.mxu1 %v7081_v40  ;;  %8746 = vst [vmem:[#allocation76_spill] sm:$0xff] %v7096_v49  ;;  %v7099_v40 = vld [vmem:[#allocation12 + $0x18c] ss:$16 sps:$4 sm:$0xff]  }
 0xc6b   :  { %8747 = vst [vmem:[#allocation77_spill] sm:$0xff] %v7099_v40 }
 0xc6d   :  { %2494 = vmatpush2.bf16.msra.mxu1 %v7084_v1  ;;  %v7102_v1 = vld [vmem:[#allocation12 + $0x188] ss:$16 sps:$4 sm:$0xff]  }
 0xc6e   :  { %2495 = vmatprep.subr.bf16.mxu1 %v7087_v13  ;;  %8748 = vst [vmem:[#allocation85_spill] sm:$0xff] %v7102_v1  ;;  %v7105_v13 = vld [vmem:[#allocation12 + $0x16c] ss:$16 sps:$4 sm:$0xff]  }
 0xc6f   :  { %8749 = vst [vmem:[#allocation78_spill] sm:$0xff] %v7105_v13 }
 0xc71   :  { %2496 = vmatpush2.bf16.msra.mxu1 %v7090_v27  ;;  %v7108_v27 = vld [vmem:[#allocation12 + $0x168] ss:$16 sps:$4 sm:$0xff]  }
 0xc72   :  { %2497 = vmatprep.subr.bf16.mxu1 %v7093_v8  ;;  %8750 = vst [vmem:[#allocation79_spill] sm:$0xff] %v7108_v27  ;;  %v7111_v8 = vld [vmem:[#allocation12 + $0x14c] ss:$16 sps:$4 sm:$0xff]  }
 0xc73   :  { %8751 = vst [vmem:[#allocation80_spill] sm:$0xff] %v7111_v8 }
 0xc75   :  { %2498 = vmatpush2.bf16.msra.mxu1 %v7096_v49  ;;  %v7114_v49 = vld [vmem:[#allocation12 + $0x148] ss:$16 sps:$4 sm:$0xff]  }
 0xc76   :  { %2499 = vmatprep.subr.bf16.mxu1 %v7099_v40  ;;  %8752 = vst [vmem:[#allocation81_spill] sm:$0xff] %v7114_v49  ;;  %v7117_v40 = vld [vmem:[#allocation12 + $0x12c] ss:$16 sps:$4 sm:$0xff]  }
 0xc77   :  { %8753 = vst [vmem:[#allocation82_spill] sm:$0xff] %v7117_v40 }
 0xc79   :  { %2500 = vmatpush2.bf16.msra.mxu1 %v7102_v1  ;;  %v7120_v1 = vld [vmem:[#allocation12 + $0x128] ss:$16 sps:$4 sm:$0xff]  }
 0xc7a   :  { %2501 = vmatprep.subr.bf16.mxu1 %v7105_v13  ;;  %8754 = vst [vmem:[#allocation90_spill] sm:$0xff] %v7120_v1  ;;  %v7123_v13 = vld [vmem:[#allocation12 + $0x10c] ss:$16 sps:$4 sm:$0xff]  }
 0xc7b   :  { %8755 = vst [vmem:[#allocation83_spill] sm:$0xff] %v7123_v13 }
 0xc7d   :  { %2502 = vmatpush2.bf16.msra.mxu1 %v7108_v27  ;;  %v7126_v27 = vld [vmem:[#allocation12 + $0x108] ss:$16 sps:$4 sm:$0xff]  }
 0xc7e   :  { %2503 = vmatprep.subr.bf16.mxu1 %v7111_v8  ;;  %8756 = vst [vmem:[#allocation84_spill] sm:$0xff] %v7126_v27 }
 0xc81   :  { %2504 = vmatpush2.bf16.msra.mxu1 %v7114_v49 }
 0xc82   :  { %2505 = vmatprep.subr.bf16.mxu1 %v7117_v40 }
 0xc85   :  { %2506 = vmatpush2.bf16.msra.mxu1 %v7120_v1  ;;  %v2359_v1 = vadd.f32 %v7018_v36, %v8533_v50 }
 0xc86   :  { %2507 = vmatprep.subr.bf16.mxu1 %v7123_v13 }
 0xc87   :  { %v3752_v13 = vmul.f32 -1.442695, %v2359_v1  ;;  %v8757_v1 = vld [vmem:[#allocation26_spill] sm:$0xff] }
 0xc89   :  { %2508 = vmatpush2.bf16.msra.mxu1 %v7126_v27  ;;  %4592 = vpow2.f32 %v3752_v13 }
 0xc8a   :  { %4100 = vmatprep.subr.bf16.mxu1 %v8468_v16  ;;  %4594 = vpow2.f32 %v3753_v2 }
 0xc96   :  { %v4593_v27 = vpop.eup %4592 }
 0xc97   :  { %v4595_v9 = vpop.eup %4594  ;;  %v2409_v6 = vadd.f32 1.0, %v4593_v27 }
 0xc98   :  { %v2415_v7 = vadd.f32 1.0, %v4595_v9 }
 0xc99   :  { %4596 = vrcp.f32 %v2409_v6 }
 0xc9a   :  { %4598 = vrcp.f32 %v2415_v7 }
 0xca6   :  { %v4597_v54 = vpop.eup %4596 }
 0xccc   :  { %v2310_v8 = vpop.f32.mrf.mxu1 }
 0xccd   :  { %v2311_v49 = vadd.f32 %v6753_v57, %v2310_v8 }
 0xcce   :  { %v4078_v56 = vpop.f32.mrf.mxu1 }
 0xccf   :  { %2317 = vst [vmem:[#allocation17 + $0x18] sm:$0xff] %v2311_v49 }
 0xcd0   :  { %v2313_v40 = vpop.f32.mrf.mxu1 }
 0xcd1   :  { %v4599_v40 = vpop.eup %4598 }
 0xcd2   :  { %v4079_v63 = vpop.f32.mrf.mxu1  ;;  %v2425_v13 = vmul.f32 %v4599_v40, %v8757_v1  ;;  %v7165_v40 = vld [vmem:[#allocation14 + $0x28] sm:$0xff]   ;;  %v7173_v1 = vld [vmem:[#allocation14 + $0x20] sm:$0xff]  }
 0xcd3   :  { %8763 = vst [vmem:[#allocation56_spill] sm:$0xff] %v7165_v40  ;;  %8765 = vst [vmem:[#allocation60_spill] sm:$0xff] %v7173_v1 }
 0xd0c   :  { %v2399_v57 = vpop.f32.mrf.mxu1 }
 0xd0d   :  { %v2400_v56 = vadd.f32 %v2399_v57, %v5734_v55 }
 0xd0e   :  { %v2401_v63 = vpop.f32.mrf.mxu1 }
 0xd0f   :  { %4600 = vtanh.f32 %v2400_v56  ;;  %v2402_v36 = vadd.f32 %v2401_v63, %v8682_v31 }
 0xd10   :  { %v2403_v8 = vpop.f32.mrf.mxu1 }
 0xd11   :  { %v3754_v49 = vmul.f32 -1.442695, %v2402_v36  ;;  %v7145_v36 = vld [vmem:[#allocation14 + $0x38] sm:$0xff]  }
 0xd12   :  { %v2404_v59 = vpop.f32.mrf.mxu1  ;;  %8759 = vst [vmem:[#allocation87_spill] sm:$0xff] %v7145_v36 }
 0xd13   :  { %4602 = vpow2.f32 %v3754_v49  ;;  %v7151_v49 = vld [vmem:[#allocation15 + $0x38] sm:$0xff]   ;;  %v7157_v59 = vld [vmem:[#allocation14 + $0x30] sm:$0xff]  }
 0xd14   :  { %8760 = vst [vmem:[#allocation88_spill] sm:$0xff] %v7151_v49  ;;  %8761 = vst [vmem:[#allocation89_spill] sm:$0xff] %v7157_v59 }
 0xd1c   :  { %v4601_v2 = vpop.eup %4600 }
 0xd1d   :  { %v2426_v27 = vmul.f32 %v4601_v2, %v4597_v54  ;;  %v7161_v54 = vld [vmem:[#allocation15 + $0x30] sm:$0xff]   ;;  %v7169_v2 = vld [vmem:[#allocation15 + $0x28] sm:$0xff]  }
 0xd1e   :  { %8762 = vst [vmem:[#allocation91_spill] sm:$0xff] %v7161_v54  ;;  %8764 = vst [vmem:[#allocation58_spill] sm:$0xff] %v7169_v2 }
 0xd1f   :  { %v7138_v9 = vadd.f32 %v2426_v27, %v2425_v13  ;;  %v7177_v13 = vld [vmem:[#allocation15 + $0x20] sm:$0xff]   ;;  %v7181_v27 = vld [vmem:[#allocation14 + $0x18] sm:$0xff]  }
 0xd20   :  { %v4603_v6 = vpop.eup %4602  ;;  %8766 = vst [vmem:[#allocation62_spill] sm:$0xff] %v7177_v13  ;;  %8767 = vst [vmem:[#allocation64_spill] sm:$0xff] %v7181_v27 }
 0xd21   :  { %8758 = vst [vmem:[#allocation86_spill] sm:$0xff] %v7138_v9  ;;  %v2422_v7 = vadd.f32 1.0, %v4603_v6  ;;  %4604 = vtanh.f32 %v7138_v9  ;;  %v7185_v6 = vld [vmem:[#allocation15 + $0x18] sm:$0xff]  }
 0xd22   :  { %8768 = vst [vmem:[#allocation66_spill] sm:$0xff] %v7185_v6 }
 0xd23   :  { %4606 = vrcp.f32 %v2422_v7  ;;  %v7189_v7 = vld [vmem:[#allocation14 + $0x10] sm:$0xff]  }
 0xd24   :  { %8769 = vst [vmem:[#allocation68_spill] sm:$0xff] %v7189_v7 }
 0xd2e   :  { %v4605_v57 = vpop.eup %4604 }
 0xd30   :  { %v4607_v56 = vpop.eup %4606 }
 0xd31   :  { %v2429_v63 = vmul.f32 %v4607_v56, %v4605_v57  ;;  %v7193_v57 = vld [vmem:[#allocation15 + $0x10] sm:$0xff]   ;;  %v7197_v56 = vld [vmem:[#allocation14 + $0x8] sm:$0xff]  }
 0xd32   :  { %8770 = vst [vmem:[#allocation70_spill] sm:$0xff] %v7193_v57  ;;  %8771 = vst [vmem:[#allocation92_spill] sm:$0xff] %v7197_v56 }
 0xd33   :  { %v7141_v8 = vpack.c.bf16 %v2429_v63, %v2429_v63  ;;  %v7201_v63 = vld [vmem:[#allocation15 + $0x8] sm:$0xff]  }
 0xd34   :  { %8772 = vst [vmem:[#allocation93_spill] sm:$0xff] %v7201_v63 }
 0xd35   :  { %2469 = vmatmul.mubr.bf16.vlgmr.msra.gmra.mxu0 %v7141_v8  ;;  %2510 = vmatmul.mubr.bf16.vlgmr.msra.gmra.mxu1 %v7141_v8 }
 0xd36   :  { %4081 = vmatpush3.bf16.msra.mxu0 %v7145_v36  ;;  %4096 = vmatprep.mubr.msk.bf16.mxu0 %vm5356_vm0, %v8468_v16 }
 0xd37   :  { %4082 = vmatprep.subr.bf16.mxu0 %v8468_v16  ;;  %4101 = vmatpush3.bf16.msra.mxu1 %v7151_v49 }
 0xd38   :  { %4102 = vmatprep.subr.bf16.mxu1 %v8468_v16  ;;  %4116 = vmatprep.mubr.msk.bf16.mxu1 %vm5356_vm0, %v8468_v16 }
 0xd3a   :  { %4083 = vmatpush3.bf16.msra.mxu0 %v7157_v59 }
 0xd3b   :  { %4084 = vmatprep.subr.bf16.mxu0 %v8468_v16  ;;  %4103 = vmatpush3.bf16.msra.mxu1 %v7161_v54 }
 0xd3c   :  { %4104 = vmatprep.subr.bf16.mxu1 %v8468_v16 }
 0xd3e   :  { %4085 = vmatpush3.bf16.msra.mxu0 %v7165_v40 }
 0xd3f   :  { %4086 = vmatprep.subr.bf16.mxu0 %v8468_v16  ;;  %4105 = vmatpush3.bf16.msra.mxu1 %v7169_v2 }
 0xd40   :  { %4106 = vmatprep.subr.bf16.mxu1 %v8468_v16 }
 0xd42   :  { %4087 = vmatpush3.bf16.msra.mxu0 %v7173_v1 }
 0xd43   :  { %4088 = vmatprep.subr.bf16.mxu0 %v8468_v16  ;;  %4107 = vmatpush3.bf16.msra.mxu1 %v7177_v13 }
 0xd44   :  { %4108 = vmatprep.subr.bf16.mxu1 %v8468_v16 }
 0xd46   :  { %4089 = vmatpush3.bf16.msra.mxu0 %v7181_v27  ;;  %v8776_v27 = vld [vmem:[#allocation29_spill] sm:$0xff] }
 0xd47   :  { %4090 = vmatprep.subr.bf16.mxu0 %v8468_v16  ;;  %4109 = vmatpush3.bf16.msra.mxu1 %v7185_v6  ;;  %v8774_v6 = vld [vmem:[#allocation27_spill] sm:$0xff] }
 0xd48   :  { %4110 = vmatprep.subr.bf16.mxu1 %v8468_v16 }
 0xd4a   :  { %4091 = vmatpush3.bf16.msra.mxu0 %v7189_v7  ;;  %v7205_v7 = vld [vmem:[#allocation14] sm:$0xff]  }
 0xd4b   :  { %4092 = vmatprep.subr.bf16.mxu0 %v8468_v16  ;;  %4111 = vmatpush3.bf16.msra.mxu1 %v7193_v57  ;;  %8773 = vst [vmem:[#allocation23_spill] sm:$0xff] %v7205_v7  ;;  %v8775_v57 = vld [vmem:[#allocation28_spill] sm:$0xff] }
 0xd4c   :  { %4112 = vmatprep.subr.bf16.mxu1 %v8468_v16 }
 0xd4e   :  { %4093 = vmatpush3.bf16.msra.mxu0 %v7197_v56 }
 0xd4f   :  { %4094 = vmatprep.subr.bf16.mxu0 %v8468_v16  ;;  %4113 = vmatpush3.bf16.msra.mxu1 %v7201_v63 }
 0xd50   :  { %4114 = vmatprep.subr.bf16.mxu1 %v8468_v16 }
 0xd52   :  { %4095 = vmatpush3.bf16.msra.mxu0 %v7205_v7 }
 0xd53   :  { %2635 = vmatprep.subr.bf16.mxu0 %v8774_v6  ;;  %4115 = vmatpush3.bf16.msra.mxu1 %v8775_v57 }
 0xd54   :  { %2676 = vmatprep.subr.bf16.mxu1 %v8776_v27 }
 0xdf5   :  { %v2470_v13 = vpop.f32.mrf.mxu0  ;;  %v2511_v56 = vpop.f32.mrf.mxu1 }
 0xdf6   :  { %v2471_v1 = vadd.f32 %v2470_v13, %v8548_v43  ;;  %v2512_v31 = vadd.f32 %v2511_v56, %v8551_v30 }
 0xdf7   :  { %v2472_v2 = vpop.f32.mrf.mxu0  ;;  %v2513_v40 = vpop.f32.mrf.mxu1 }
 0xdf8   :  { %v3755_v54 = vmul.f32 -1.442695, %v2471_v1  ;;  %v2473_v63 = vadd.f32 %v2472_v2, %v8549_v3  ;;  %v2514_v6 = vadd.f32 %v2513_v40, %v8550_v19 }
 0xdf9   :  { %v2474_v59 = vpop.f32.mrf.mxu0  ;;  %v2515_v49 = vpop.f32.mrf.mxu1 }
 0xdfa   :  { %4608 = vpow2.f32 %v3755_v54  ;;  %v3756_v36 = vmul.f32 -1.442695, %v2473_v63  ;;  %v3757_v57 = vmul.f32 -1.442695, %v2514_v6 }
 0xdfb   :  { %v2475_v7 = vpop.f32.mrf.mxu0  ;;  %v2516_v9 = vpop.f32.mrf.mxu1 }
 0xdfc   :  { %4610 = vpow2.f32 %v3756_v36 }
 0xdfd   :  { %4612 = vpow2.f32 %v3757_v57  ;;  %v7226_v57 = vld [vmem:[#allocation9 + $0xc4] ss:$16 sps:$4 sm:$0xff]  }
 0xe07   :  { %v4609_v27 = vpop.eup %4608 }
 0xe08   :  { %v2521_v55 = vadd.f32 1.0, %v4609_v27  ;;  %v7232_v27 = vld [vmem:[#allocation9 + $0xa4] ss:$16 sps:$4 sm:$0xff]  }
 0xe09   :  { %v4611_v13 = vpop.eup %4610 }
 0xe0a   :  { %4614 = vrcp.f32 %v2521_v55  ;;  %v2527_v1 = vadd.f32 1.0, %v4611_v13  ;;  %v4613_v59 = vpop.eup %4612  ;;  %v7235_v13 = vld [vmem:[#allocation9 + $0xa0] ss:$16 sps:$4 sm:$0xff]  }
 0xe0b   :  { %4616 = vtanh.f32 %v2512_v31  ;;  %v2534_v7 = vadd.f32 1.0, %v4613_v59  ;;  %v7222_v31 = vld [vmem:[#allocation9 + $0xe0] ss:$16 sps:$4 sm:$0xff]  }
 0xe0c   :  { %4618 = vrcp.f32 %v2527_v1  ;;  %v7238_v1 = vld [vmem:[#allocation9 + $0x84] ss:$16 sps:$4 sm:$0xff]   ;;  %v7241_v59 = vld [vmem:[#allocation9 + $0x80] ss:$16 sps:$4 sm:$0xff]  }
 0xe0d   :  { %4620 = vrcp.f32 %v2534_v7  ;;  %v7253_v7 = vld [vmem:[#allocation9 + $0x40] ss:$16 sps:$4 sm:$0xff]  }
 0xe17   :  { %v4615_v49 = vpop.eup %4614 }
 0xe18   :  { %v4617_v54 = vpop.eup %4616 }
 0xe19   :  { %v4619_v2 = vpop.eup %4618  ;;  %v2538_v9 = vmul.f32 %v4617_v54, %v4615_v49  ;;  %v7244_v49 = vld [vmem:[#allocation9 + $0x64] ss:$16 sps:$4 sm:$0xff]   ;;  %v7247_v54 = vld [vmem:[#allocation9 + $0x60] ss:$16 sps:$4 sm:$0xff]  }
 0xe1a   :  { %v2537_v36 = vmul.f32 %v4619_v2, %v6815_v51  ;;  %v4621_v56 = vpop.eup %4620  ;;  %v7229_v51 = vld [vmem:[#allocation9 + $0xc0] ss:$16 sps:$4 sm:$0xff]   ;;  %v7250_v2 = vld [vmem:[#allocation9 + $0x44] ss:$16 sps:$4 sm:$0xff]  }
 0xe1c   :  { %v7216_v40 = vadd.f32 %v2538_v9, %v2537_v36  ;;  %v7256_v9 = vld [vmem:[#allocation9 + $0x24] ss:$16 sps:$4 sm:$0xff]  }
 0xe1d   :  { %v8796_v36 = vld [vmem:[#allocation49_spill] sm:$0xff] }
 0xe1e   :  { %4622 = vtanh.f32 %v7216_v40 }
 0xe2b   :  { %v4623_v63 = vpop.eup %4622 }
 0xe2c   :  { %v2541_v6 = vmul.f32 %v4623_v63, %v4621_v56  ;;  %v7306_v56 = vld [vmem:[#allocation12 + $0x164] ss:$16 sps:$4 sm:$0xff]   ;;  %v7309_v63 = vld [vmem:[#allocation12 + $0x160] ss:$16 sps:$4 sm:$0xff]  }
 0xe2e   :  { %v7219_v55 = vpack.c.bf16 %v2541_v6, %v2541_v6  ;;  %v7312_v6 = vld [vmem:[#allocation12 + $0x144] ss:$16 sps:$4 sm:$0xff]  }
 0xe30   :  { %4097 = vmatmul.mubr.bf16.vlgmr.msra.gmra.mxu0 %v7219_v55 }
 0xe31   :  { %2636 = vmatpush1.bf16.msra.mxu0 %v7222_v31  ;;  %2667 = vmatprep.mubr.bf16.mxu0 %v7141_v8 }
 0xe32   :  { %2637 = vmatprep.subr.bf16.mxu0 %v7226_v57 }
 0xe35   :  { %2638 = vmatpush1.bf16.msra.mxu0 %v7229_v51 }
 0xe36   :  { %2639 = vmatprep.subr.bf16.mxu0 %v7232_v27 }
 0xe39   :  { %2640 = vmatpush1.bf16.msra.mxu0 %v7235_v13 }
 0xe3a   :  { %2641 = vmatprep.subr.bf16.mxu0 %v7238_v1 }
 0xe3d   :  { %2642 = vmatpush1.bf16.msra.mxu0 %v7241_v59 }
 0xe3e   :  { %2643 = vmatprep.subr.bf16.mxu0 %v7244_v49 }
 0xe41   :  { %2644 = vmatpush1.bf16.msra.mxu0 %v7247_v54 }
 0xe42   :  { %2645 = vmatprep.subr.bf16.mxu0 %v7250_v2 }
 0xe45   :  { %2646 = vmatpush1.bf16.msra.mxu0 %v7253_v7 }
 0xe46   :  { %2647 = vmatprep.subr.bf16.mxu0 %v7256_v9 }
 0xe49   :  { %2648 = vmatpush1.bf16.msra.mxu0 %v6834_v37  ;;  %v2630_v37 = vld [vmem:[#allocation6 + $0x28] sm:$0xff] }
 0xe4a   :  { %2649 = vmatprep.subr.bf16.mxu0 %v6837_v33  ;;  %v7277_v33 = vpack.c.bf16 %v2630_v37, %v2630_v37  ;;  %v7321_v37 = vld [vmem:[#allocation12 + $0x120] ss:$16 sps:$4 sm:$0xff]  }
 0xe4d   :  { %2650 = vmatpush1.bf16.msra.mxu0 %v6840_v23  ;;  %v8777_v23 = vld [vmem:[#allocation30_spill] sm:$0xff] }
 0xe4e   :  { %2651 = vmatprep.subr.bf16.mxu0 %v6843_v5  ;;  %v8778_v5 = vld [vmem:[#allocation31_spill] sm:$0xff] }
 0xe51   :  { %2652 = vmatpush2.bf16.msra.mxu0 %v6846_v32  ;;  %v8779_v32 = vld [vmem:[#allocation32_spill] sm:$0xff] }
 0xe52   :  { %2653 = vmatprep.subr.bf16.mxu0 %v6849_v4  ;;  %v8780_v4 = vld [vmem:[#allocation33_spill] sm:$0xff] }
 0xe55   :  { %2654 = vmatpush2.bf16.msra.mxu0 %v6852_v34  ;;  %v8781_v34 = vld [vmem:[#allocation34_spill] sm:$0xff] }
 0xe56   :  { %2655 = vmatprep.subr.bf16.mxu0 %v6855_v46  ;;  %v8782_v46 = vld [vmem:[#allocation35_spill] sm:$0xff] }
 0xe59   :  { %2656 = vmatpush2.bf16.msra.mxu0 %v6858_v45  ;;  %v8783_v45 = vld [vmem:[#allocation36_spill] sm:$0xff] }
 0xe5a   :  { %2657 = vmatprep.subr.bf16.mxu0 %v6861_v28  ;;  %v8784_v28 = vld [vmem:[#allocation37_spill] sm:$0xff] }
 0xe5d   :  { %2658 = vmatpush2.bf16.msra.mxu0 %v6864_v48  ;;  %v8785_v48 = vld [vmem:[#allocation38_spill] sm:$0xff] }
 0xe5e   :  { %2659 = vmatprep.subr.bf16.mxu0 %v6867_v62  ;;  %v8786_v62 = vld [vmem:[#allocation39_spill] sm:$0xff] }
 0xe61   :  { %2660 = vmatpush2.bf16.msra.mxu0 %v6870_v20  ;;  %v8787_v20 = vld [vmem:[#allocation40_spill] sm:$0xff] }
 0xe62   :  { %2661 = vmatprep.subr.bf16.mxu0 %v6873_v18  ;;  %v8788_v18 = vld [vmem:[#allocation41_spill] sm:$0xff] }
 0xe65   :  { %2662 = vmatpush2.bf16.msra.mxu0 %v6876_v15  ;;  %v8789_v15 = vld [vmem:[#allocation42_spill] sm:$0xff] }
 0xe66   :  { %2663 = vmatprep.subr.bf16.mxu0 %v6879_v0  ;;  %v8790_v0 = vld [vmem:[#allocation43_spill] sm:$0xff] }
 0xe69   :  { %2664 = vmatpush2.bf16.msra.mxu0 %v6882_v17  ;;  %v8791_v17 = vld [vmem:[#allocation44_spill] sm:$0xff] }
 0xe6a   :  { %2665 = vmatprep.subr.bf16.mxu0 %v6885_v58  ;;  %v8792_v58 = vld [vmem:[#allocation45_spill] sm:$0xff] }
 0xe6d   :  { %2666 = vmatpush2.bf16.msra.mxu0 %v6890_v60  ;;  %v8793_v60 = vld [vmem:[#allocation46_spill] sm:$0xff] }
 0xe6e   :  { %2747 = vmatprep.subr.bf16.mxu0 %v6893_v21  ;;  %v8794_v21 = vld [vmem:[#allocation47_spill] sm:$0xff] }
 0xe70   :  { %2668 = vmatmul.mubr.bf16.vlgmr.msra.gmra.mxu0 %v7277_v33 }
 0xe71   :  { %2779 = vmatprep.mubr.bf16.mxu0 %v7219_v55  ;;  %2748 = vmatpush1.bf16.msra.mxu0 %v6898_v61  ;;  %v8795_v61 = vld [vmem:[#allocation48_spill] sm:$0xff] }
 0xe72   :  { %2749 = vmatprep.subr.bf16.mxu0 %v8777_v23  ;;  %v7324_v23 = vld [vmem:[#allocation12 + $0x104] ss:$16 sps:$4 sm:$0xff]  }
 0xe75   :  { %2750 = vmatpush1.bf16.msra.mxu0 %v8778_v5  ;;  %v7327_v5 = vld [vmem:[#allocation12 + $0x100] ss:$16 sps:$4 sm:$0xff]  }
 0xe76   :  { %2751 = vmatprep.subr.bf16.mxu0 %v8779_v32 }
 0xe79   :  { %2752 = vmatpush1.bf16.msra.mxu0 %v8780_v4  ;;  %v7334_v4 = vld [vmem:[%s8083_s6] ss:$0 sm:$0xff] }
 0xe7a   :  { %2753 = vmatprep.subr.bf16.mxu0 %v8781_v34 }
 0xe7d   :  { %2754 = vmatpush1.bf16.msra.mxu0 %v8782_v46 }
 0xe7e   :  { %2755 = vmatprep.subr.bf16.mxu0 %v8783_v45 }
 0xe81   :  { %2756 = vmatpush1.bf16.msra.mxu0 %v8784_v28 }
 0xe82   :  { %2757 = vmatprep.subr.bf16.mxu0 %v8785_v48 }
 0xe85   :  { %2758 = vmatpush1.bf16.msra.mxu0 %v8786_v62 }
 0xe86   :  { %2759 = vmatprep.subr.bf16.mxu0 %v8787_v20  ;;  %v7337_v20 = vld [vmem:[#allocation9 + $0xe8] ss:$16 sps:$4 sm:$0xff]  }
 0xe89   :  { %2760 = vmatpush1.bf16.msra.mxu0 %v8788_v18  ;;  %v7341_v18 = vld [vmem:[#allocation9 + $0xcc] ss:$16 sps:$4 sm:$0xff]  }
 0xe8a   :  { %2761 = vmatprep.subr.bf16.mxu0 %v8789_v15  ;;  %v7344_v15 = vld [vmem:[#allocation9 + $0xc8] ss:$16 sps:$4 sm:$0xff]  }
 0xe8d   :  { %2762 = vmatpush1.bf16.msra.mxu0 %v8790_v0  ;;  %v7347_v0 = vld [vmem:[#allocation9 + $0xac] ss:$16 sps:$4 sm:$0xff]  }
 0xe8e   :  { %2763 = vmatprep.subr.bf16.mxu0 %v8791_v17  ;;  %v7350_v17 = vld [vmem:[#allocation9 + $0xa8] ss:$16 sps:$4 sm:$0xff]  }
 0xe91   :  { %2764 = vmatpush2.bf16.msra.mxu0 %v8792_v58  ;;  %v7353_v58 = vld [vmem:[#allocation9 + $0x8c] ss:$16 sps:$4 sm:$0xff]  }
 0xe92   :  { %2765 = vmatprep.subr.bf16.mxu0 %v6949_v24  ;;  %v7315_v24 = vld [vmem:[#allocation12 + $0x140] ss:$16 sps:$4 sm:$0xff]  }
 0xe95   :  { %2766 = vmatpush2.bf16.msra.mxu0 %v6952_v29  ;;  %v7318_v29 = vld [vmem:[#allocation12 + $0x124] ss:$16 sps:$4 sm:$0xff]  }
 0xe96   :  { %2767 = vmatprep.subr.bf16.mxu0 %v8793_v60  ;;  %v7359_v60 = vld [vmem:[#allocation9 + $0x6c] ss:$16 sps:$4 sm:$0xff]  }
 0xe99   :  { %2768 = vmatpush2.bf16.msra.mxu0 %v8794_v21  ;;  %v7362_v21 = vld [vmem:[#allocation9 + $0x68] ss:$16 sps:$4 sm:$0xff]  }
 0xe9a   :  { %2769 = vmatprep.subr.bf16.mxu0 %v8795_v61  ;;  %v7365_v61 = vld [vmem:[#allocation9 + $0x4c] ss:$16 sps:$4 sm:$0xff]  }
 0xe9d   :  { %2770 = vmatpush2.bf16.msra.mxu0 %v8796_v36  ;;  %v7368_v36 = vld [vmem:[#allocation9 + $0x48] ss:$16 sps:$4 sm:$0xff]  }
 0xe9e   :  { %2771 = vmatprep.subr.bf16.mxu0 %v7306_v56 }
 0xea1   :  { %2772 = vmatpush2.bf16.msra.mxu0 %v7309_v63 }
 0xea2   :  { %2773 = vmatprep.subr.bf16.mxu0 %v7312_v6 }
 0xea5   :  { %2774 = vmatpush2.bf16.msra.mxu0 %v7315_v24 }
 0xea6   :  { %2775 = vmatprep.subr.bf16.mxu0 %v7318_v29 }
 0xea9   :  { %2776 = vmatpush2.bf16.msra.mxu0 %v7321_v37 }
 0xeaa   :  { %2777 = vmatprep.subr.bf16.mxu0 %v7324_v23 }
 0xead   :  { %2778 = vmatpush2.bf16.msra.mxu0 %v7327_v5 }
 0xeae   :  { %4120 = vmatprep.subr.bf16.mxu0 %v8468_v16 }
 0xef0   :  { %v2579_v32 = vpop.f32.mrf.mxu0 }
 0xef1   :  { %v2580_v34 = vadd.f32 %v7334_v4, %v2579_v32  ;;  %v7371_v32 = vld [vmem:[#allocation9 + $0x2c] ss:$16 sps:$4 sm:$0xff]  }
 0xef2   :  { %v4098_v46 = vpop.f32.mrf.mxu0 }
 0xef3   :  { %v2585_v45 = vmax.f32 %v2580_v34, 0.0  ;;  %v7374_v34 = vld [vmem:[#allocation9 + $0x28] ss:$16 sps:$4 sm:$0xff]   ;;  %v7377_v46 = vld [vmem:[#allocation9 + $0xc] ss:$16 sps:$4 sm:$0xff]  }
 0xef4   :  { %v2582_v28 = vpop.f32.mrf.mxu0  ;;  %8797 = vst [vmem:[#allocation24_spill] sm:$0xff] %v7374_v34  ;;  %8798 = vst [vmem:[#allocation25_spill] sm:$0xff] %v7377_v46 }
 0xef5   :  { %v2586_v48 = vpack.c.bf16 %v2585_v45, %v2585_v45  ;;  %v7380_v45 = vld [vmem:[#allocation9 + $0x8] ss:$16 sps:$4 sm:$0xff]   ;;  %v7383_v28 = vld [vmem:[#allocation9 + $0x1ec] ss:$16 sps:$4 sm:$0xff]  }
 0xef6   :  { %v4099_v62 = vpop.f32.mrf.mxu0  ;;  %8799 = vst [vmem:[#allocation26_spill] sm:$0xff] %v7380_v45  ;;  %8800 = vst [vmem:[#allocation27_spill] sm:$0xff] %v7383_v28 }
 0xef7   :  { %4117 = vmatmul.mubr.bf16.vlgmr.msra.gmra.mxu1 %v2586_v48  ;;  %v7386_v48 = vld [vmem:[#allocation9 + $0x1e8] ss:$16 sps:$4 sm:$0xff]   ;;  %v7389_v62 = vld [vmem:[#allocation9 + $0x1cc] ss:$16 sps:$4 sm:$0xff]  }
 0xef8   :  { %2677 = vmatpush1.bf16.msra.mxu1 %v7337_v20  ;;  %2708 = vmatprep.mubr.bf16.mxu1 %v7141_v8  ;;  %v7356_v8 = vld [vmem:[#allocation9 + $0x88] ss:$16 sps:$4 sm:$0xff]  }
 0xef9   :  { %2678 = vmatprep.subr.bf16.mxu1 %v7341_v18 }
 0xefc   :  { %2679 = vmatpush1.bf16.msra.mxu1 %v7344_v15 }
 0xefd   :  { %2680 = vmatprep.subr.bf16.mxu1 %v7347_v0 }
 0xf00   :  { %2681 = vmatpush1.bf16.msra.mxu1 %v7350_v17 }
 0xf01   :  { %2682 = vmatprep.subr.bf16.mxu1 %v7353_v58 }
 0xf04   :  { %2683 = vmatpush1.bf16.msra.mxu1 %v7356_v8 }
 0xf05   :  { %2684 = vmatprep.subr.bf16.mxu1 %v7359_v60 }
 0xf08   :  { %2685 = vmatpush1.bf16.msra.mxu1 %v7362_v21 }
 0xf09   :  { %2686 = vmatprep.subr.bf16.mxu1 %v7365_v61 }
 0xf0c   :  { %2687 = vmatpush1.bf16.msra.mxu1 %v7368_v36 }
 0xf0d   :  { %2688 = vmatprep.subr.bf16.mxu1 %v7371_v32 }
 0xf10   :  { %2689 = vmatpush1.bf16.msra.mxu1 %v7374_v34  ;;  %v7392_v34 = vld [vmem:[#allocation9 + $0x1c8] ss:$16 sps:$4 sm:$0xff]  }
 0xf11   :  { %2690 = vmatprep.subr.bf16.mxu1 %v7377_v46  ;;  %v7395_v46 = vld [vmem:[#allocation9 + $0x1ac] ss:$16 sps:$4 sm:$0xff]  }
 0xf12   :  { %8801 = vst [vmem:[#allocation28_spill] sm:$0xff] %v7395_v46 }
 0xf14   :  { %2691 = vmatpush1.bf16.msra.mxu1 %v7380_v45  ;;  %v7398_v45 = vld [vmem:[#allocation9 + $0x1a8] ss:$16 sps:$4 sm:$0xff]  }
 0xf15   :  { %2692 = vmatprep.subr.bf16.mxu1 %v7383_v28  ;;  %8802 = vst [vmem:[#allocation29_spill] sm:$0xff] %v7398_v45  ;;  %v7401_v28 = vld [vmem:[#allocation9 + $0x18c] ss:$16 sps:$4 sm:$0xff]  }
 0xf16   :  { %8803 = vst [vmem:[#allocation30_spill] sm:$0xff] %v7401_v28 }
 0xf18   :  { %2693 = vmatpush2.bf16.msra.mxu1 %v7386_v48 }
 0xf19   :  { %2694 = vmatprep.subr.bf16.mxu1 %v7389_v62 }
 0xf1c   :  { %2695 = vmatpush2.bf16.msra.mxu1 %v7392_v34 }
 0xf1d   :  { %2696 = vmatprep.subr.bf16.mxu1 %v7395_v46 }
 0xf20   :  { %2697 = vmatpush2.bf16.msra.mxu1 %v7398_v45 }
 0xf21   :  { %2698 = vmatprep.subr.bf16.mxu1 %v7401_v28 }
 0xf24   :  { %2699 = vmatpush2.bf16.msra.mxu1 %v7000_v39 }
 0xf25   :  { %2700 = vmatprep.subr.bf16.mxu1 %v7003_v26  ;;  %v8804_v26 = vld [vmem:[#allocation50_spill] sm:$0xff] }
 0xf28   :  { %2701 = vmatpush2.bf16.msra.mxu1 %v7006_v25  ;;  %v8805_v25 = vld [vmem:[#allocation51_spill] sm:$0xff] }
 0xf29   :  { %2702 = vmatprep.subr.bf16.mxu1 %v7009_v53  ;;  %v8806_v53 = vld [vmem:[#allocation52_spill] sm:$0xff] }
 0xf2c   :  { %2703 = vmatpush2.bf16.msra.mxu1 %v7012_v41  ;;  %v8807_v41 = vld [vmem:[#allocation53_spill] sm:$0xff] }
 0xf2d   :  { %2704 = vmatprep.subr.bf16.mxu1 %v7015_v44  ;;  %v8808_v44 = vld [vmem:[#allocation54_spill] sm:$0xff] }
 0xf30   :  { %v2669_v46 = vpop.f32.mrf.mxu0  ;;  %2705 = vmatpush2.bf16.msra.mxu1 %v7020_v42  ;;  %v8809_v42 = vld [vmem:[#allocation55_spill] sm:$0xff] }
 0xf31   :  { %2706 = vmatprep.subr.bf16.mxu1 %v7023_v10  ;;  %v8810_v10 = vld [vmem:[#allocation57_spill] sm:$0xff] }
 0xf32   :  { %v2671_v45 = vpop.f32.mrf.mxu0 }
 0xf34   :  { %2707 = vmatpush2.bf16.msra.mxu1 %v7028_v12  ;;  %v2673_v28 = vpop.f32.mrf.mxu0  ;;  %v8811_v12 = vld [vmem:[#allocation59_spill] sm:$0xff] }
 0xf35   :  { %2788 = vmatprep.subr.bf16.mxu1 %v7031_v22  ;;  %v8812_v22 = vld [vmem:[#allocation61_spill] sm:$0xff] }
 0xf36   :  { %v2674_v39 = vpop.f32.mrf.mxu0  ;;  %v8820_v28 = vld [vmem:[#allocation77_spill] sm:$0xff] }
 0xf37   :  { %2709 = vmatmul.mubr.bf16.vlgmr.msra.gmra.mxu1 %v7277_v33  ;;  %v8819_v33 = vld [vmem:[#allocation76_spill] sm:$0xff]  ;;  %v8821_v39 = vld [vmem:[#allocation85_spill] sm:$0xff] }
 0xf38   :  { %2820 = vmatprep.mubr.bf16.mxu1 %v7219_v55  ;;  %2789 = vmatpush1.bf16.msra.mxu1 %v7036_v11  ;;  %v8813_v11 = vld [vmem:[#allocation63_spill] sm:$0xff]  ;;  %v8818_v55 = vld [vmem:[#allocation72_spill] sm:$0xff] }
 0xf39   :  { %2790 = vmatprep.subr.bf16.mxu1 %v7039_v35  ;;  %v8814_v35 = vld [vmem:[#allocation65_spill] sm:$0xff] }
 0xf3c   :  { %2791 = vmatpush1.bf16.msra.mxu1 %v7042_v47  ;;  %v8815_v47 = vld [vmem:[#allocation67_spill] sm:$0xff] }
 0xf3d   :  { %2792 = vmatprep.subr.bf16.mxu1 %v7045_v52  ;;  %v8816_v52 = vld [vmem:[#allocation69_spill] sm:$0xff] }
 0xf40   :  { %2793 = vmatpush1.bf16.msra.mxu1 %v7048_v14  ;;  %v8817_v14 = vld [vmem:[#allocation71_spill] sm:$0xff] }
 0xf41   :  { %2794 = vmatprep.subr.bf16.mxu1 %v8804_v26  ;;  %v8822_v26 = vld [vmem:[#allocation78_spill] sm:$0xff] }
 0xf44   :  { %2795 = vmatpush1.bf16.msra.mxu1 %v8805_v25  ;;  %v8823_v25 = vld [vmem:[#allocation79_spill] sm:$0xff] }
 0xf45   :  { %2796 = vmatprep.subr.bf16.mxu1 %v8806_v53  ;;  %v8824_v53 = vld [vmem:[#allocation80_spill] sm:$0xff] }
 0xf48   :  { %2797 = vmatpush1.bf16.msra.mxu1 %v8807_v41  ;;  %v8825_v41 = vld [vmem:[#allocation81_spill] sm:$0xff] }
 0xf49   :  { %2798 = vmatprep.subr.bf16.mxu1 %v8808_v44  ;;  %v8826_v44 = vld [vmem:[#allocation82_spill] sm:$0xff] }
 0xf4c   :  { %2799 = vmatpush1.bf16.msra.mxu1 %v8809_v42  ;;  %v8827_v42 = vld [vmem:[#allocation90_spill] sm:$0xff] }
 0xf4d   :  { %2800 = vmatprep.subr.bf16.mxu1 %v8810_v10  ;;  %v8828_v10 = vld [vmem:[#allocation83_spill] sm:$0xff] }
 0xf50   :  { %2801 = vmatpush1.bf16.msra.mxu1 %v8811_v12  ;;  %v8829_v12 = vld [vmem:[#allocation84_spill] sm:$0xff] }
 0xf51   :  { %2802 = vmatprep.subr.bf16.mxu1 %v8812_v22 }
 0xf54   :  { %2803 = vmatpush1.bf16.msra.mxu1 %v8813_v11  ;;  %v7451_v11 = vld [vmem:[%s8085_s8] ss:$0 sm:$0xff] }
 0xf55   :  { %2804 = vmatprep.subr.bf16.mxu1 %v8814_v35 }
 0xf58   :  { %2805 = vmatpush2.bf16.msra.mxu1 %v8815_v47 }
 0xf59   :  { %2806 = vmatprep.subr.bf16.mxu1 %v8816_v52 }
 0xf5c   :  { %2807 = vmatpush2.bf16.msra.mxu1 %v8817_v14 }
 0xf5d   :  { %2808 = vmatprep.subr.bf16.mxu1 %v8818_v55  ;;  %v2670_v55 = vadd.f32 %v2669_v46, %v8533_v50 }
 0xf60   :  { %2809 = vmatpush2.bf16.msra.mxu1 %v8819_v33  ;;  %v2672_v33 = vadd.f32 %v2671_v45, %v8607_v38 }
 0xf61   :  { %2810 = vmatprep.subr.bf16.mxu1 %v8820_v28  ;;  %v3758_v28 = vmul.f32 -1.442695, %v2670_v55 }
 0xf63   :  { %4624 = vpow2.f32 %v3758_v28 }
 0xf64   :  { %2811 = vmatpush2.bf16.msra.mxu1 %v8821_v39  ;;  %v3759_v39 = vmul.f32 -1.442695, %v2672_v33  ;;  %v8832_v33 = vld [vmem:[#allocation86_spill] sm:$0xff] }
 0xf65   :  { %2812 = vmatprep.subr.bf16.mxu1 %v8822_v26 }
 0xf66   :  { %4626 = vpow2.f32 %v3759_v39 }
 0xf68   :  { %2813 = vmatpush2.bf16.msra.mxu1 %v8823_v25 }
 0xf69   :  { %2814 = vmatprep.subr.bf16.mxu1 %v8824_v53 }
 0xf6c   :  { %2815 = vmatpush2.bf16.msra.mxu1 %v8825_v41 }
 0xf6d   :  { %2816 = vmatprep.subr.bf16.mxu1 %v8826_v44 }
 0xf70   :  { %2817 = vmatpush2.bf16.msra.mxu1 %v8827_v42  ;;  %v4625_v26 = vpop.eup %4624  ;;  %v8830_v42 = vld [vmem:[#allocation75_spill] sm:$0xff] }
 0xf71   :  { %2818 = vmatprep.subr.bf16.mxu1 %v8828_v10  ;;  %v2720_v53 = vadd.f32 1.0, %v4625_v26 }
 0xf73   :  { %v4627_v25 = vpop.eup %4626  ;;  %4628 = vrcp.f32 %v2720_v53 }
 0xf74   :  { %2819 = vmatpush2.bf16.msra.mxu1 %v8829_v12  ;;  %v2726_v41 = vadd.f32 1.0, %v4627_v25 }
 0xf75   :  { %4140 = vmatprep.subr.bf16.mxu1 %v8468_v16 }
 0xf76   :  { %4630 = vrcp.f32 %v2726_v41 }
 0xfb7   :  { %v2621_v22 = vpop.f32.mrf.mxu1 }
 0xfb8   :  { %v2622_v35 = vadd.f32 %v7451_v11, %v2621_v22  ;;  %v8831_v22 = vld [vmem:[#allocation74_spill] sm:$0xff] }
 0xfb9   :  { %v4118_v47 = vpop.f32.mrf.mxu1 }
 0xfba   :  { %2628 = vst [vmem:[#allocation17 + $0x20] sm:$0xff] %v2622_v35 }
 0xfbb   :  { %v2624_v52 = vpop.f32.mrf.mxu1 }
 0xfbc   :  { %v4629_v52 = vpop.eup %4628 }
 0xfbd   :  { %v4119_v14 = vpop.f32.mrf.mxu1 }
 0xfbe   :  { %v4631_v14 = vpop.eup %4630 }
 0xfbf   :  { %v2736_v28 = vmul.f32 %v4631_v14, %v8832_v33  ;;  %v8839_v14 = vld [vmem:[#allocation58_spill] sm:$0xff] }
 0xfc0   :  { %v8841_v33 = vld [vmem:[#allocation62_spill] sm:$0xff] }
 0xff7   :  { %v2710_v44 = vpop.f32.mrf.mxu1 }
 0xff8   :  { %v2711_v10 = vadd.f32 %v2710_v44, %v8830_v42 }
 0xff9   :  { %v2712_v12 = vpop.f32.mrf.mxu1 }
 0xffa   :  { %4632 = vtanh.f32 %v2711_v10  ;;  %v2713_v35 = vadd.f32 %v2712_v12, %v8831_v22 }
 0xffb   :  { %v2714_v46 = vpop.f32.mrf.mxu1 }
 0xffc   :  { %v3760_v47 = vmul.f32 -1.442695, %v2713_v35  ;;  %v8834_v35 = vld [vmem:[#allocation87_spill] sm:$0xff]  ;;  %v8835_v46 = vld [vmem:[#allocation88_spill] sm:$0xff] }
 0xffd   :  { %v2715_v45 = vpop.f32.mrf.mxu1 }
 0xffe   :  { %4634 = vpow2.f32 %v3760_v47  ;;  %v8836_v47 = vld [vmem:[#allocation89_spill] sm:$0xff]  ;;  %v8837_v45 = vld [vmem:[#allocation91_spill] sm:$0xff] }
0x1007   :  { %v4633_v55 = vpop.eup %4632 }
0x1008   :  { %v2737_v39 = vmul.f32 %v4633_v55, %v4629_v52  ;;  %v8838_v52 = vld [vmem:[#allocation56_spill] sm:$0xff] }
0x1009   :  { %v8840_v55 = vld [vmem:[#allocation60_spill] sm:$0xff] }
0x100a   :  { %v7459_v26 = vadd.f32 %v2737_v39, %v2736_v28  ;;  %v8842_v28 = vld [vmem:[#allocation64_spill] sm:$0xff]  ;;  %v8843_v39 = vld [vmem:[#allocation66_spill] sm:$0xff] }
0x100b   :  { %v4635_v25 = vpop.eup %4634 }
0x100c   :  { %8833 = vst [vmem:[#allocation31_spill] sm:$0xff] %v7459_v26  ;;  %v2733_v53 = vadd.f32 1.0, %v4635_v25  ;;  %4636 = vtanh.f32 %v7459_v26  ;;  %v8844_v25 = vld [vmem:[#allocation68_spill] sm:$0xff] }
0x100e   :  { %4638 = vrcp.f32 %v2733_v53  ;;  %v8845_v53 = vld [vmem:[#allocation70_spill] sm:$0xff] }
0x1019   :  { %v4637_v41 = vpop.eup %4636 }
0x101b   :  { %v4639_v44 = vpop.eup %4638 }
0x101c   :  { %v2740_v10 = vmul.f32 %v4639_v44, %v4637_v41  ;;  %v8846_v41 = vld [vmem:[#allocation92_spill] sm:$0xff]  ;;  %v8847_v44 = vld [vmem:[#allocation93_spill] sm:$0xff] }
0x101e   :  { %v7462_v12 = vpack.c.bf16 %v2740_v10, %v2740_v10  ;;  %v8848_v10 = vld [vmem:[#allocation23_spill] sm:$0xff] }
0x1020   :  { %2780 = vmatmul.mubr.bf16.vlgmr.msra.gmra.mxu0 %v7462_v12  ;;  %2821 = vmatmul.mubr.bf16.vlgmr.msra.gmra.mxu1 %v7462_v12 }
0x1021   :  { %4121 = vmatpush3.bf16.msra.mxu0 %v8834_v35  ;;  %4136 = vmatprep.mubr.msk.bf16.mxu0 %vm5356_vm0, %v8468_v16  ;;  %v7499_v35 = vld [vmem:[#allocation9 + $0xe4] ss:$16 sps:$4 sm:$0xff]  }
0x1022   :  { %4122 = vmatprep.subr.bf16.mxu0 %v8468_v16  ;;  %4141 = vmatpush3.bf16.msra.mxu1 %v8835_v46  ;;  %8849 = vst [vmem:[#allocation32_spill] sm:$0xff] %v7499_v35  ;;  %v7502_v46 = vld [vmem:[#allocation15] sm:$0xff]  }
0x1023   :  { %4142 = vmatprep.subr.bf16.mxu1 %v8468_v16  ;;  %4156 = vmatprep.mubr.msk.bf16.mxu1 %vm5356_vm0, %v8468_v16  ;;  %8850 = vst [vmem:[#allocation33_spill] sm:$0xff] %v7502_v46 }
0x1025   :  { %4123 = vmatpush3.bf16.msra.mxu0 %v8836_v47  ;;  %v7505_v47 = vld [vmem:[#allocation9 + $0xec] ss:$16 sps:$4 sm:$0xff]  }
0x1026   :  { %4124 = vmatprep.subr.bf16.mxu0 %v8468_v16  ;;  %4143 = vmatpush3.bf16.msra.mxu1 %v8837_v45  ;;  %8851 = vst [vmem:[#allocation34_spill] sm:$0xff] %v7505_v47 }
0x1027   :  { %4144 = vmatprep.subr.bf16.mxu1 %v8468_v16 }
0x1029   :  { %4125 = vmatpush3.bf16.msra.mxu0 %v8838_v52 }
0x102a   :  { %4126 = vmatprep.subr.bf16.mxu0 %v8468_v16  ;;  %4145 = vmatpush3.bf16.msra.mxu1 %v8839_v14 }
0x102b   :  { %4146 = vmatprep.subr.bf16.mxu1 %v8468_v16 }
0x102d   :  { %4127 = vmatpush3.bf16.msra.mxu0 %v8840_v55 }
0x102e   :  { %4128 = vmatprep.subr.bf16.mxu0 %v8468_v16  ;;  %4147 = vmatpush3.bf16.msra.mxu1 %v8841_v33 }
0x102f   :  { %4148 = vmatprep.subr.bf16.mxu1 %v8468_v16 }
0x1031   :  { %4129 = vmatpush3.bf16.msra.mxu0 %v8842_v28 }
0x1032   :  { %4130 = vmatprep.subr.bf16.mxu0 %v8468_v16  ;;  %4149 = vmatpush3.bf16.msra.mxu1 %v8843_v39 }
0x1033   :  { %4150 = vmatprep.subr.bf16.mxu1 %v8468_v16 }
0x1035   :  { %4131 = vmatpush3.bf16.msra.mxu0 %v8844_v25 }
0x1036   :  { %4132 = vmatprep.subr.bf16.mxu0 %v8468_v16  ;;  %4151 = vmatpush3.bf16.msra.mxu1 %v8845_v53 }
0x1037   :  { %4152 = vmatprep.subr.bf16.mxu1 %v8468_v16 }
0x1039   :  { %4133 = vmatpush3.bf16.msra.mxu0 %v8846_v41 }
0x103a   :  { %4134 = vmatprep.subr.bf16.mxu0 %v8468_v16  ;;  %4153 = vmatpush3.bf16.msra.mxu1 %v8847_v44 }
0x103b   :  { %4154 = vmatprep.subr.bf16.mxu1 %v8468_v16 }
0x103d   :  { %4135 = vmatpush3.bf16.msra.mxu0 %v8848_v10 }
0x103e   :  { %2946 = vmatprep.subr.bf16.mxu0 %v7499_v35  ;;  %4155 = vmatpush3.bf16.msra.mxu1 %v7502_v46 }
0x103f   :  { %2987 = vmatprep.subr.bf16.mxu1 %v7505_v47 }
0x10e0   :  { %v2781_v45 = vpop.f32.mrf.mxu0  ;;  %v2822_v52 = vpop.f32.mrf.mxu1 }
0x10e1   :  { %v2782_v14 = vadd.f32 %v2781_v45, %v8548_v43  ;;  %v2823_v26 = vadd.f32 %v2822_v52, %v8551_v30  ;;  %v7574_v52 = vld [vmem:[#allocation9 + $0x140] ss:$16 sps:$4 sm:$0xff]  }
0x10e2   :  { %v2783_v55 = vpop.f32.mrf.mxu0  ;;  %v2824_v33 = vpop.f32.mrf.mxu1 }
0x10e3   :  { %v3761_v28 = vmul.f32 -1.442695, %v2782_v14  ;;  %v2784_v39 = vadd.f32 %v2783_v55, %v8549_v3  ;;  %v2825_v46 = vadd.f32 %v2824_v33, %v8550_v19 }
0x10e4   :  { %v2785_v25 = vpop.f32.mrf.mxu0  ;;  %v2826_v53 = vpop.f32.mrf.mxu1 }
0x10e5   :  { %4640 = vpow2.f32 %v3761_v28  ;;  %v3762_v41 = vmul.f32 -1.442695, %v2784_v39  ;;  %v3763_v35 = vmul.f32 -1.442695, %v2825_v46 }
0x10e6   :  { %v2786_v44 = vpop.f32.mrf.mxu0  ;;  %v2827_v10 = vpop.f32.mrf.mxu1 }
0x10e7   :  { %4642 = vpow2.f32 %v3762_v41  ;;  %v7577_v10 = vld [vmem:[#allocation9 + $0x124] ss:$16 sps:$4 sm:$0xff]  }
0x10e8   :  { %4644 = vpow2.f32 %v3763_v35 }
0x10f2   :  { %v4641_v47 = vpop.eup %4640 }
0x10f3   :  { %v2832_v22 = vadd.f32 1.0, %v4641_v47 }
0x10f4   :  { %v4643_v45 = vpop.eup %4642 }
0x10f5   :  { %4646 = vrcp.f32 %v2832_v22  ;;  %v2838_v14 = vadd.f32 1.0, %v4643_v45  ;;  %v4645_v55 = vpop.eup %4644  ;;  %v7580_v45 = vld [vmem:[#allocation9 + $0x120] ss:$16 sps:$4 sm:$0xff]  }
0x10f6   :  { %4648 = vtanh.f32 %v2823_v26  ;;  %v2845_v53 = vadd.f32 1.0, %v4645_v55  ;;  %v7571_v26 = vld [vmem:[#allocation9 + $0x144] ss:$16 sps:$4 sm:$0xff]  }
0x10f7   :  { %4650 = vrcp.f32 %v2838_v14  ;;  %v2941_v14 = vld [vmem:[#allocation6 + $0x30] sm:$0xff] }
0x10f8   :  { %4652 = vrcp.f32 %v2845_v53  ;;  %v7583_v55 = vld [vmem:[#allocation9 + $0x104] ss:$16 sps:$4 sm:$0xff]  }
0x10f9   :  { %v7596_v53 = vld [vmem:[#allocation12 + $0xe0] ss:$16 sps:$4 sm:$0xff]  }
0x1102   :  { %v4647_v25 = vpop.eup %4646 }
0x1103   :  { %v4649_v28 = vpop.eup %4648 }
0x1104   :  { %v4651_v39 = vpop.eup %4650  ;;  %v2849_v44 = vmul.f32 %v4649_v28, %v4647_v25  ;;  %v7586_v25 = vpack.c.bf16 %v2941_v14, %v2941_v14  ;;  %v7588_v28 = vld [vmem:[#allocation9 + $0x100] ss:$16 sps:$4 sm:$0xff]   ;;  %v7614_v14 = vld [vmem:[#allocation12 + $0x80] ss:$16 sps:$4 sm:$0xff]  }
0x1105   :  { %v2848_v41 = vmul.f32 %v4651_v39, %v7216_v40  ;;  %v4653_v46 = vpop.eup %4652  ;;  %v7532_v40 = vld [vmem:[#allocation9 + $0x20] ss:$16 sps:$4 sm:$0xff]   ;;  %v7591_v39 = vld [vmem:[#allocation12 + $0xe4] ss:$16 sps:$4 sm:$0xff]   ;;  %8857 = vst [vmem:[#allocation40_spill] sm:$0xff] %v7614_v14 }
0x1107   :  { %v7513_v33 = vadd.f32 %v2849_v44, %v2848_v41  ;;  %v7599_v44 = vld [vmem:[#allocation12 + $0xc4] ss:$16 sps:$4 sm:$0xff]   ;;  %v7602_v41 = vld [vmem:[#allocation12 + $0xc0] ss:$16 sps:$4 sm:$0xff]  }
0x1108   :  { %8852 = vst [vmem:[#allocation35_spill] sm:$0xff] %v7599_v44  ;;  %8853 = vst [vmem:[#allocation36_spill] sm:$0xff] %v7602_v41 }
0x1109   :  { %4654 = vtanh.f32 %v7513_v33 }
0x1116   :  { %v4655_v47 = vpop.eup %4654 }
0x1117   :  { %v2852_v35 = vmul.f32 %v4655_v47, %v4653_v46  ;;  %v7605_v46 = vld [vmem:[#allocation12 + $0xa4] ss:$16 sps:$4 sm:$0xff]   ;;  %v7608_v47 = vld [vmem:[#allocation12 + $0xa0] ss:$16 sps:$4 sm:$0xff]  }
0x1118   :  { %8854 = vst [vmem:[#allocation37_spill] sm:$0xff] %v7605_v46  ;;  %8855 = vst [vmem:[#allocation38_spill] sm:$0xff] %v7608_v47 }
0x1119   :  { %v7516_v22 = vpack.c.bf16 %v2852_v35, %v2852_v35  ;;  %v7611_v35 = vld [vmem:[#allocation12 + $0x84] ss:$16 sps:$4 sm:$0xff]  }
0x111a   :  { %8856 = vst [vmem:[#allocation39_spill] sm:$0xff] %v7611_v35 }
0x111b   :  { %4137 = vmatmul.mubr.bf16.vlgmr.msra.gmra.mxu0 %v7516_v22 }
0x111c   :  { %2947 = vmatpush1.bf16.msra.mxu0 %v7222_v31  ;;  %2978 = vmatprep.mubr.bf16.mxu0 %v7462_v12  ;;  %v7535_v31 = vld [vmem:[#allocation9 + $0x4] ss:$16 sps:$4 sm:$0xff]  }
0x111d   :  { %2948 = vmatprep.subr.bf16.mxu0 %v7226_v57  ;;  %v7538_v57 = vld [vmem:[#allocation9] ss:$16 sps:$4 sm:$0xff]  }
0x1120   :  { %2949 = vmatpush1.bf16.msra.mxu0 %v7229_v51  ;;  %v7541_v51 = vld [vmem:[#allocation9 + $0x1e4] ss:$16 sps:$4 sm:$0xff]  }
0x1121   :  { %2950 = vmatprep.subr.bf16.mxu0 %v7232_v27  ;;  %v7544_v27 = vld [vmem:[#allocation9 + $0x1e0] ss:$16 sps:$4 sm:$0xff]  }
0x1124   :  { %2951 = vmatpush1.bf16.msra.mxu0 %v7235_v13  ;;  %v7547_v13 = vld [vmem:[#allocation9 + $0x1c4] ss:$16 sps:$4 sm:$0xff]  }
0x1125   :  { %2952 = vmatprep.subr.bf16.mxu0 %v7238_v1  ;;  %v7550_v1 = vld [vmem:[#allocation9 + $0x1c0] ss:$16 sps:$4 sm:$0xff]  }
0x1128   :  { %2953 = vmatpush1.bf16.msra.mxu0 %v7241_v59  ;;  %v7553_v59 = vld [vmem:[#allocation9 + $0x1a4] ss:$16 sps:$4 sm:$0xff]  }
0x1129   :  { %2954 = vmatprep.subr.bf16.mxu0 %v7244_v49  ;;  %v7556_v49 = vld [vmem:[#allocation9 + $0x1a0] ss:$16 sps:$4 sm:$0xff]  }
0x112c   :  { %2955 = vmatpush1.bf16.msra.mxu0 %v7247_v54  ;;  %v7559_v54 = vld [vmem:[#allocation9 + $0x184] ss:$16 sps:$4 sm:$0xff]  }
0x112d   :  { %2956 = vmatprep.subr.bf16.mxu0 %v7250_v2  ;;  %v7562_v2 = vld [vmem:[#allocation9 + $0x180] ss:$16 sps:$4 sm:$0xff]  }
0x1130   :  { %2957 = vmatpush1.bf16.msra.mxu0 %v7253_v7  ;;  %v7565_v7 = vld [vmem:[#allocation9 + $0x164] ss:$16 sps:$4 sm:$0xff]  }
0x1131   :  { %2958 = vmatprep.subr.bf16.mxu0 %v7256_v9  ;;  %v7568_v9 = vld [vmem:[#allocation9 + $0x160] ss:$16 sps:$4 sm:$0xff]  }
0x1134   :  { %2959 = vmatpush1.bf16.msra.mxu0 %v7532_v40 }
0x1135   :  { %2960 = vmatprep.subr.bf16.mxu0 %v7535_v31 }
0x1138   :  { %2961 = vmatpush1.bf16.msra.mxu0 %v7538_v57 }
0x1139   :  { %2962 = vmatprep.subr.bf16.mxu0 %v7541_v51 }
0x113c   :  { %2963 = vmatpush2.bf16.msra.mxu0 %v7544_v27 }
0x113d   :  { %2964 = vmatprep.subr.bf16.mxu0 %v7547_v13 }
0x1140   :  { %2965 = vmatpush2.bf16.msra.mxu0 %v7550_v1 }
0x1141   :  { %2966 = vmatprep.subr.bf16.mxu0 %v7553_v59 }
0x1144   :  { %2967 = vmatpush2.bf16.msra.mxu0 %v7556_v49 }
0x1145   :  { %2968 = vmatprep.subr.bf16.mxu0 %v7559_v54 }
0x1148   :  { %2969 = vmatpush2.bf16.msra.mxu0 %v7562_v2 }
0x1149   :  { %2970 = vmatprep.subr.bf16.mxu0 %v7565_v7 }
0x114c   :  { %2971 = vmatpush2.bf16.msra.mxu0 %v7568_v9 }
0x114d   :  { %2972 = vmatprep.subr.bf16.mxu0 %v7571_v26 }
0x1150   :  { %2973 = vmatpush2.bf16.msra.mxu0 %v7574_v52 }
0x1151   :  { %2974 = vmatprep.subr.bf16.mxu0 %v7577_v10 }
0x1154   :  { %2975 = vmatpush2.bf16.msra.mxu0 %v7580_v45 }
0x1155   :  { %2976 = vmatprep.subr.bf16.mxu0 %v7583_v55 }
0x1158   :  { %2977 = vmatpush2.bf16.msra.mxu0 %v7588_v28 }
0x1159   :  { %3058 = vmatprep.subr.bf16.mxu0 %v7591_v39 }
0x115b   :  { %2979 = vmatmul.mubr.bf16.vlgmr.msra.gmra.mxu0 %v7586_v25 }
0x115c   :  { %3090 = vmatprep.mubr.bf16.mxu0 %v7516_v22  ;;  %3059 = vmatpush1.bf16.msra.mxu0 %v7596_v53 }
0x115d   :  { %3060 = vmatprep.subr.bf16.mxu0 %v7599_v44  ;;  %v7617_v44 = vld [vmem:[#allocation12 + $0x64] ss:$16 sps:$4 sm:$0xff]  }
0x115e   :  { %8858 = vst [vmem:[#allocation41_spill] sm:$0xff] %v7617_v44 }
0x1160   :  { %3061 = vmatpush1.bf16.msra.mxu0 %v7602_v41  ;;  %v7620_v41 = vld [vmem:[#allocation12 + $0x60] ss:$16 sps:$4 sm:$0xff]  }
0x1161   :  { %3062 = vmatprep.subr.bf16.mxu0 %v7605_v46  ;;  %8859 = vst [vmem:[#allocation42_spill] sm:$0xff] %v7620_v41  ;;  %v7623_v46 = vld [vmem:[#allocation12 + $0x44] ss:$16 sps:$4 sm:$0xff]  }
0x1162   :  { %8860 = vst [vmem:[#allocation43_spill] sm:$0xff] %v7623_v46 }
0x1164   :  { %3063 = vmatpush1.bf16.msra.mxu0 %v7608_v47  ;;  %v7626_v47 = vld [vmem:[#allocation12 + $0x40] ss:$16 sps:$4 sm:$0xff]  }
0x1165   :  { %3064 = vmatprep.subr.bf16.mxu0 %v7611_v35  ;;  %8861 = vst [vmem:[#allocation44_spill] sm:$0xff] %v7626_v47  ;;  %v7629_v35 = vld [vmem:[#allocation12 + $0x24] ss:$16 sps:$4 sm:$0xff]  }
0x1166   :  { %8862 = vst [vmem:[#allocation45_spill] sm:$0xff] %v7629_v35 }
0x1168   :  { %3065 = vmatpush1.bf16.msra.mxu0 %v7614_v14  ;;  %v7632_v14 = vld [vmem:[#allocation12 + $0x20] ss:$16 sps:$4 sm:$0xff]  }
0x1169   :  { %3066 = vmatprep.subr.bf16.mxu0 %v7617_v44  ;;  %8863 = vst [vmem:[#allocation46_spill] sm:$0xff] %v7632_v14  ;;  %v7635_v44 = vld [vmem:[#allocation12 + $0x4] ss:$16 sps:$4 sm:$0xff]  }
0x116a   :  { %8864 = vst [vmem:[#allocation47_spill] sm:$0xff] %v7635_v44 }
0x116c   :  { %3067 = vmatpush1.bf16.msra.mxu0 %v7620_v41  ;;  %v7638_v41 = vld [vmem:[#allocation12] ss:$16 sps:$4 sm:$0xff]  }
0x116d   :  { %3068 = vmatprep.subr.bf16.mxu0 %v7623_v46  ;;  %8865 = vst [vmem:[#allocation48_spill] sm:$0xff] %v7638_v41  ;;  %v7641_v46 = vld [vmem:[#allocation12 + $0x1e4] ss:$16 sps:$4 sm:$0xff]  }
0x116e   :  { %8866 = vst [vmem:[#allocation49_spill] sm:$0xff] %v7641_v46 }
0x1170   :  { %3069 = vmatpush1.bf16.msra.mxu0 %v7626_v47  ;;  %v7644_v47 = vld [vmem:[#allocation12 + $0x1e0] ss:$16 sps:$4 sm:$0xff]  }
0x1171   :  { %3070 = vmatprep.subr.bf16.mxu0 %v7629_v35  ;;  %8867 = vst [vmem:[#allocation50_spill] sm:$0xff] %v7644_v47  ;;  %v7647_v35 = vld [vmem:[#allocation12 + $0x1c4] ss:$16 sps:$4 sm:$0xff]  }
0x1174   :  { %3071 = vmatpush1.bf16.msra.mxu0 %v7632_v14  ;;  %v7650_v14 = vld [vmem:[#allocation12 + $0x1c0] ss:$16 sps:$4 sm:$0xff]  }
0x1175   :  { %3072 = vmatprep.subr.bf16.mxu0 %v7635_v44  ;;  %v7653_v44 = vld [vmem:[#allocation12 + $0x1a4] ss:$16 sps:$4 sm:$0xff]  }
0x1176   :  { %8868 = vst [vmem:[#allocation51_spill] sm:$0xff] %v7653_v44 }
0x1178   :  { %3073 = vmatpush1.bf16.msra.mxu0 %v7638_v41  ;;  %v7656_v41 = vld [vmem:[#allocation12 + $0x1a0] ss:$16 sps:$4 sm:$0xff]  }
0x1179   :  { %3074 = vmatprep.subr.bf16.mxu0 %v7641_v46  ;;  %8869 = vst [vmem:[#allocation52_spill] sm:$0xff] %v7656_v41  ;;  %v7659_v46 = vld [vmem:[#allocation12 + $0x184] ss:$16 sps:$4 sm:$0xff]  }
0x117a   :  { %8870 = vst [vmem:[#allocation53_spill] sm:$0xff] %v7659_v46 }
0x117c   :  { %3075 = vmatpush2.bf16.msra.mxu0 %v7644_v47  ;;  %v7662_v47 = vld [vmem:[#allocation12 + $0x180] ss:$16 sps:$4 sm:$0xff]  }
0x117d   :  { %3076 = vmatprep.subr.bf16.mxu0 %v7647_v35  ;;  %8871 = vst [vmem:[#allocation54_spill] sm:$0xff] %v7662_v47 }
0x1180   :  { %3077 = vmatpush2.bf16.msra.mxu0 %v7650_v14 }
0x1181   :  { %3078 = vmatprep.subr.bf16.mxu0 %v7653_v44 }
0x1184   :  { %3079 = vmatpush2.bf16.msra.mxu0 %v7656_v41 }
0x1185   :  { %3080 = vmatprep.subr.bf16.mxu0 %v7659_v46 }
0x1188   :  { %3081 = vmatpush2.bf16.msra.mxu0 %v7662_v47 }
0x1189   :  { %3082 = vmatprep.subr.bf16.mxu0 %v7306_v56 }
0x118c   :  { %3083 = vmatpush2.bf16.msra.mxu0 %v7309_v63 }
0x118d   :  { %3084 = vmatprep.subr.bf16.mxu0 %v7312_v6 }
0x1190   :  { %3085 = vmatpush2.bf16.msra.mxu0 %v7315_v24  ;;  %v8872_v24 = vld [vmem:[#allocation24_spill] sm:$0xff] }
0x1191   :  { %3086 = vmatprep.subr.bf16.mxu0 %v7318_v29  ;;  %v8873_v29 = vld [vmem:[#allocation25_spill] sm:$0xff] }
0x1194   :  { %3087 = vmatpush2.bf16.msra.mxu0 %v7321_v37  ;;  %v8874_v37 = vld [vmem:[#allocation26_spill] sm:$0xff] }
0x1195   :  { %3088 = vmatprep.subr.bf16.mxu0 %v7324_v23  ;;  %v8875_v23 = vld [vmem:[#allocation27_spill] sm:$0xff] }
0x1198   :  { %3089 = vmatpush2.bf16.msra.mxu0 %v7327_v5  ;;  %v8876_v5 = vld [vmem:[#allocation28_spill] sm:$0xff] }
0x1199   :  { %4160 = vmatprep.subr.bf16.mxu0 %v8468_v16 }
0x11db   :  { %v2890_v46 = vpop.f32.mrf.mxu0 }
0x11dc   :  { %v2891_v47 = vadd.f32 %v7334_v4, %v2890_v46  ;;  %v8877_v4 = vld [vmem:[#allocation29_spill] sm:$0xff]  ;;  %v7743_v46 = vld [vmem:[#allocation12 + $0xac] ss:$16 sps:$4 sm:$0xff]  }
0x11dd   :  { %v4138_v56 = vpop.f32.mrf.mxu0 }
0x11de   :  { %v2896_v41 = vmax.f32 %v2891_v47, 0.0  ;;  %v7746_v47 = vld [vmem:[#allocation12 + $0xa8] ss:$16 sps:$4 sm:$0xff]   ;;  %v7755_v56 = vld [vmem:[#allocation12 + $0x6c] ss:$16 sps:$4 sm:$0xff]  }
0x11df   :  { %v2893_v63 = vpop.f32.mrf.mxu0  ;;  %8880 = vst [vmem:[#allocation57_spill] sm:$0xff] %v7755_v56 }
0x11e0   :  { %v2897_v44 = vpack.c.bf16 %v2896_v41, %v2896_v41  ;;  %v7740_v41 = vld [vmem:[#allocation12 + $0xc8] ss:$16 sps:$4 sm:$0xff]  }
0x11e1   :  { %v4139_v6 = vpop.f32.mrf.mxu0  ;;  %v7758_v63 = vld [vmem:[#allocation12 + $0x68] ss:$16 sps:$4 sm:$0xff]  }
0x11e2   :  { %4157 = vmatmul.mubr.bf16.vlgmr.msra.gmra.mxu1 %v2897_v44  ;;  %v7737_v44 = vld [vmem:[#allocation12 + $0xcc] ss:$16 sps:$4 sm:$0xff]   ;;  %8881 = vst [vmem:[#allocation59_spill] sm:$0xff] %v7758_v63 }
0x11e3   :  { %2988 = vmatpush1.bf16.msra.mxu1 %v7337_v20  ;;  %3019 = vmatprep.mubr.bf16.mxu1 %v7462_v12  ;;  %v8878_v20 = vld [vmem:[#allocation30_spill] sm:$0xff] }
0x11e4   :  { %2989 = vmatprep.subr.bf16.mxu1 %v7341_v18  ;;  %v7698_v18 = vld [vmem:[#allocation9 + $0x188] ss:$16 sps:$4 sm:$0xff]   ;;  %v7734_v12 = vld [vmem:[#allocation12 + $0xe8] ss:$16 sps:$4 sm:$0xff]   ;;  %v7761_v6 = vld [vmem:[#allocation12 + $0x4c] ss:$16 sps:$4 sm:$0xff]  }
0x11e5   :  { %8882 = vst [vmem:[#allocation61_spill] sm:$0xff] %v7761_v6 }
0x11e7   :  { %2990 = vmatpush1.bf16.msra.mxu1 %v7344_v15  ;;  %v7701_v15 = vld [vmem:[#allocation9 + $0x16c] ss:$16 sps:$4 sm:$0xff]  }
0x11e8   :  { %2991 = vmatprep.subr.bf16.mxu1 %v7347_v0  ;;  %v7704_v0 = vld [vmem:[#allocation9 + $0x168] ss:$16 sps:$4 sm:$0xff]  }
0x11eb   :  { %2992 = vmatpush1.bf16.msra.mxu1 %v7350_v17  ;;  %v7707_v17 = vld [vmem:[#allocation9 + $0x14c] ss:$16 sps:$4 sm:$0xff]  }
0x11ec   :  { %2993 = vmatprep.subr.bf16.mxu1 %v7353_v58  ;;  %v7710_v58 = vld [vmem:[#allocation9 + $0x148] ss:$16 sps:$4 sm:$0xff]  }
0x11ef   :  { %2994 = vmatpush1.bf16.msra.mxu1 %v7356_v8  ;;  %v7713_v8 = vld [vmem:[#allocation9 + $0x12c] ss:$16 sps:$4 sm:$0xff]  }
0x11f0   :  { %2995 = vmatprep.subr.bf16.mxu1 %v7359_v60 }
0x11f3   :  { %2996 = vmatpush1.bf16.msra.mxu1 %v7362_v21  ;;  %v7718_v21 = vld [vmem:[#allocation9 + $0x128] ss:$16 sps:$4 sm:$0xff]  }
0x11f4   :  { %2997 = vmatprep.subr.bf16.mxu1 %v7365_v61  ;;  %v7721_v61 = vld [vmem:[#allocation9 + $0x10c] ss:$16 sps:$4 sm:$0xff]  }
0x11f7   :  { %2998 = vmatpush1.bf16.msra.mxu1 %v7368_v36 }
0x11f8   :  { %2999 = vmatprep.subr.bf16.mxu1 %v7371_v32  ;;  %v7726_v32 = vld [vmem:[#allocation9 + $0x108] ss:$16 sps:$4 sm:$0xff]  }
0x11fb   :  { %3000 = vmatpush1.bf16.msra.mxu1 %v8872_v24  ;;  %v7764_v24 = vld [vmem:[#allocation12 + $0x48] ss:$16 sps:$4 sm:$0xff]  }
0x11fc   :  { %3001 = vmatprep.subr.bf16.mxu1 %v8873_v29  ;;  %8883 = vst [vmem:[#allocation63_spill] sm:$0xff] %v7764_v24  ;;  %v7767_v29 = vld [vmem:[#allocation12 + $0x2c] ss:$16 sps:$4 sm:$0xff]  }
0x11fd   :  { %8884 = vst [vmem:[#allocation65_spill] sm:$0xff] %v7767_v29 }
0x11ff   :  { %3002 = vmatpush1.bf16.msra.mxu1 %v8874_v37  ;;  %v7770_v37 = vld [vmem:[#allocation12 + $0x28] ss:$16 sps:$4 sm:$0xff]  }
0x1200   :  { %3003 = vmatprep.subr.bf16.mxu1 %v8875_v23  ;;  %8885 = vst [vmem:[#allocation67_spill] sm:$0xff] %v7770_v37  ;;  %v7773_v23 = vld [vmem:[#allocation12 + $0xc] ss:$16 sps:$4 sm:$0xff]  }
0x1201   :  { %8886 = vst [vmem:[#allocation69_spill] sm:$0xff] %v7773_v23 }
0x1203   :  { %3004 = vmatpush2.bf16.msra.mxu1 %v7386_v48  ;;  %v7729_v48 = vld [vmem:[#allocation12 + $0xec] ss:$16 sps:$4 sm:$0xff]  }
0x1204   :  { %3005 = vmatprep.subr.bf16.mxu1 %v7389_v62 }
0x1207   :  { %3006 = vmatpush2.bf16.msra.mxu1 %v7392_v34 }
0x1208   :  { %3007 = vmatprep.subr.bf16.mxu1 %v8876_v5  ;;  %v7776_v5 = vld [vmem:[#allocation12 + $0x8] ss:$16 sps:$4 sm:$0xff]  }
0x1209   :  { %8887 = vst [vmem:[#allocation71_spill] sm:$0xff] %v7776_v5 }
0x120b   :  { %3008 = vmatpush2.bf16.msra.mxu1 %v8877_v4  ;;  %v7779_v4 = vld [vmem:[#allocation12 + $0x1ec] ss:$16 sps:$4 sm:$0xff]  }
0x120c   :  { %3009 = vmatprep.subr.bf16.mxu1 %v8878_v20  ;;  %8888 = vst [vmem:[#allocation72_spill] sm:$0xff] %v7779_v4  ;;  %v7782_v20 = vld [vmem:[#allocation12 + $0x1e8] ss:$16 sps:$4 sm:$0xff]  }
0x120d   :  { %8889 = vst [vmem:[#allocation76_spill] sm:$0xff] %v7782_v20 }
0x120f   :  { %3010 = vmatpush2.bf16.msra.mxu1 %v7698_v18 }
0x1210   :  { %3011 = vmatprep.subr.bf16.mxu1 %v7701_v15 }
0x1213   :  { %3012 = vmatpush2.bf16.msra.mxu1 %v7704_v0 }
0x1214   :  { %3013 = vmatprep.subr.bf16.mxu1 %v7707_v17 }
0x1217   :  { %3014 = vmatpush2.bf16.msra.mxu1 %v7710_v58 }
0x1218   :  { %3015 = vmatprep.subr.bf16.mxu1 %v7713_v8 }
0x121b   :  { %v7716_v60 = vpop.f32.mrf.mxu0  ;;  %3016 = vmatpush2.bf16.msra.mxu1 %v7718_v21 }
0x121c   :  { %3017 = vmatprep.subr.bf16.mxu1 %v7721_v61 }
0x121d   :  { %v7724_v36 = vpop.f32.mrf.mxu0 }
0x121f   :  { %3018 = vmatpush2.bf16.msra.mxu1 %v7726_v32  ;;  %v2984_v34 = vpop.f32.mrf.mxu0 }
0x1220   :  { %3099 = vmatprep.subr.bf16.mxu1 %v7729_v48  ;;  %v7785_v34 = vld [vmem:[#allocation12 + $0x1cc] ss:$16 sps:$4 sm:$0xff]  }
0x1221   :  { %v2985_v62 = vpop.f32.mrf.mxu0  ;;  %8890 = vst [vmem:[#allocation77_spill] sm:$0xff] %v7785_v34 }
0x1222   :  { %3020 = vmatmul.mubr.bf16.vlgmr.msra.gmra.mxu1 %v7586_v25  ;;  %v7752_v25 = vld [vmem:[#allocation12 + $0x88] ss:$16 sps:$4 sm:$0xff]  }
0x1223   :  { %3131 = vmatprep.mubr.bf16.mxu1 %v7516_v22  ;;  %3100 = vmatpush1.bf16.msra.mxu1 %v7734_v12  ;;  %v7749_v22 = vld [vmem:[#allocation12 + $0x8c] ss:$16 sps:$4 sm:$0xff]   ;;  %8879 = vst [vmem:[#allocation55_spill] sm:$0xff] %v7752_v25  ;;  %v7788_v62 = vld [vmem:[#allocation12 + $0x1c8] ss:$16 sps:$4 sm:$0xff]  }
0x1224   :  { %3101 = vmatprep.subr.bf16.mxu1 %v7737_v44  ;;  %8891 = vst [vmem:[#allocation85_spill] sm:$0xff] %v7788_v62 }
0x1227   :  { %3102 = vmatpush1.bf16.msra.mxu1 %v7740_v41 }
0x1228   :  { %3103 = vmatprep.subr.bf16.mxu1 %v7743_v46 }
0x122b   :  { %3104 = vmatpush1.bf16.msra.mxu1 %v7746_v47 }
0x122c   :  { %3105 = vmatprep.subr.bf16.mxu1 %v7749_v22 }
0x122f   :  { %3106 = vmatpush1.bf16.msra.mxu1 %v7752_v25 }
0x1230   :  { %3107 = vmatprep.subr.bf16.mxu1 %v7755_v56 }
0x1233   :  { %3108 = vmatpush1.bf16.msra.mxu1 %v7758_v63 }
0x1234   :  { %3109 = vmatprep.subr.bf16.mxu1 %v7761_v6 }
0x1237   :  { %3110 = vmatpush1.bf16.msra.mxu1 %v7764_v24  ;;  %v2983_v24 = vadd.f32 %v7724_v36, %v8607_v38 }
0x1238   :  { %3111 = vmatprep.subr.bf16.mxu1 %v7767_v29 }
0x1239   :  { %v3765_v6 = vmul.f32 -1.442695, %v2983_v24 }
0x123b   :  { %3112 = vmatpush1.bf16.msra.mxu1 %v7770_v37 }
0x123c   :  { %3113 = vmatprep.subr.bf16.mxu1 %v7773_v23  ;;  %v7791_v23 = vld [vmem:[#allocation12 + $0x1ac] ss:$16 sps:$4 sm:$0xff]  }
0x123d   :  { %8892 = vst [vmem:[#allocation78_spill] sm:$0xff] %v7791_v23 }
0x123f   :  { %3114 = vmatpush1.bf16.msra.mxu1 %v7776_v5  ;;  %v7794_v5 = vld [vmem:[#allocation12 + $0x1a8] ss:$16 sps:$4 sm:$0xff]  }
0x1240   :  { %3115 = vmatprep.subr.bf16.mxu1 %v7779_v4  ;;  %8893 = vst [vmem:[#allocation79_spill] sm:$0xff] %v7794_v5  ;;  %v7797_v4 = vld [vmem:[#allocation12 + $0x18c] ss:$16 sps:$4 sm:$0xff]  }
0x1241   :  { %8894 = vst [vmem:[#allocation80_spill] sm:$0xff] %v7797_v4 }
0x1243   :  { %3116 = vmatpush2.bf16.msra.mxu1 %v7782_v20  ;;  %v7800_v20 = vld [vmem:[#allocation12 + $0x188] ss:$16 sps:$4 sm:$0xff]  }
0x1244   :  { %3117 = vmatprep.subr.bf16.mxu1 %v7785_v34  ;;  %8895 = vst [vmem:[#allocation81_spill] sm:$0xff] %v7800_v20  ;;  %v7803_v34 = vld [vmem:[#allocation12 + $0x16c] ss:$16 sps:$4 sm:$0xff]  }
0x1245   :  { %8896 = vst [vmem:[#allocation82_spill] sm:$0xff] %v7803_v34 }
0x1247   :  { %3118 = vmatpush2.bf16.msra.mxu1 %v7788_v62  ;;  %v7806_v62 = vld [vmem:[#allocation12 + $0x168] ss:$16 sps:$4 sm:$0xff]  }
0x1248   :  { %3119 = vmatprep.subr.bf16.mxu1 %v7791_v23  ;;  %8897 = vst [vmem:[#allocation90_spill] sm:$0xff] %v7806_v62  ;;  %v7809_v23 = vld [vmem:[#allocation12 + $0x14c] ss:$16 sps:$4 sm:$0xff]  }
0x1249   :  { %8898 = vst [vmem:[#allocation83_spill] sm:$0xff] %v7809_v23 }
0x124b   :  { %3120 = vmatpush2.bf16.msra.mxu1 %v7794_v5  ;;  %v7812_v5 = vld [vmem:[#allocation12 + $0x148] ss:$16 sps:$4 sm:$0xff]  }
0x124c   :  { %3121 = vmatprep.subr.bf16.mxu1 %v7797_v4  ;;  %8899 = vst [vmem:[#allocation84_spill] sm:$0xff] %v7812_v5  ;;  %v7815_v4 = vld [vmem:[#allocation12 + $0x12c] ss:$16 sps:$4 sm:$0xff]  }
0x124d   :  { %8900 = vst [vmem:[#allocation86_spill] sm:$0xff] %v7815_v4 }
0x124f   :  { %3122 = vmatpush2.bf16.msra.mxu1 %v7800_v20  ;;  %v7818_v20 = vld [vmem:[#allocation12 + $0x128] ss:$16 sps:$4 sm:$0xff]  }
0x1250   :  { %3123 = vmatprep.subr.bf16.mxu1 %v7803_v34  ;;  %8901 = vst [vmem:[#allocation87_spill] sm:$0xff] %v7818_v20  ;;  %v7821_v34 = vld [vmem:[#allocation12 + $0x10c] ss:$16 sps:$4 sm:$0xff]  }
0x1251   :  { %8902 = vst [vmem:[#allocation88_spill] sm:$0xff] %v7821_v34 }
0x1253   :  { %3124 = vmatpush2.bf16.msra.mxu1 %v7806_v62  ;;  %v7824_v62 = vld [vmem:[#allocation12 + $0x108] ss:$16 sps:$4 sm:$0xff]  }
0x1254   :  { %3125 = vmatprep.subr.bf16.mxu1 %v7809_v23  ;;  %8903 = vst [vmem:[#allocation89_spill] sm:$0xff] %v7824_v62 }
0x1257   :  { %3126 = vmatpush2.bf16.msra.mxu1 %v7812_v5 }
0x1258   :  { %3127 = vmatprep.subr.bf16.mxu1 %v7815_v4 }
0x125b   :  { %3128 = vmatpush2.bf16.msra.mxu1 %v7818_v20  ;;  %v2981_v20 = vadd.f32 %v7716_v60, %v8533_v50 }
0x125c   :  { %3129 = vmatprep.subr.bf16.mxu1 %v7821_v34 }
0x125d   :  { %v3764_v34 = vmul.f32 -1.442695, %v2981_v20 }
0x125f   :  { %3130 = vmatpush2.bf16.msra.mxu1 %v7824_v62  ;;  %4656 = vpow2.f32 %v3764_v34  ;;  %v8905_v34 = vld [vmem:[#allocation31_spill] sm:$0xff] }
0x1260   :  { %4180 = vmatprep.subr.bf16.mxu1 %v8468_v16  ;;  %4658 = vpow2.f32 %v3765_v6 }
0x126c   :  { %v4657_v62 = vpop.eup %4656 }
0x126d   :  { %v4659_v63 = vpop.eup %4658  ;;  %v3031_v56 = vadd.f32 1.0, %v4657_v62 }
0x126e   :  { %v3037_v25 = vadd.f32 1.0, %v4659_v63 }
0x126f   :  { %4660 = vrcp.f32 %v3031_v56 }
0x1270   :  { %4662 = vrcp.f32 %v3037_v25 }
0x127c   :  { %v4661_v24 = vpop.eup %4660 }
0x127d   :  { %v4663_v20 = vpop.eup %4662 }
0x127e   :  { %v3047_v38 = vmul.f32 %v4663_v20, %v8905_v34  ;;  %v7867_v20 = vld [vmem:[#allocation15 + $0x28] sm:$0xff]   ;;  %v7875_v34 = vld [vmem:[#allocation15 + $0x20] sm:$0xff]  }
0x127f   :  { %8912 = vst [vmem:[#allocation66_spill] sm:$0xff] %v7867_v20  ;;  %8914 = vst [vmem:[#allocation70_spill] sm:$0xff] %v7875_v34 }
0x12a2   :  { %v2932_v23 = vpop.f32.mrf.mxu1 }
0x12a3   :  { %v2933_v5 = vadd.f32 %v7451_v11, %v2932_v23  ;;  %v8904_v23 = vld [vmem:[#allocation74_spill] sm:$0xff] }
0x12a4   :  { %v4158_v37 = vpop.f32.mrf.mxu1 }
0x12a5   :  { %2939 = vst [vmem:[#allocation17 + $0x28] sm:$0xff] %v2933_v5 }
0x12a6   :  { %v2935_v4 = vpop.f32.mrf.mxu1 }
0x12a8   :  { %v4159_v29 = vpop.f32.mrf.mxu1 }
0x12e2   :  { %v3021_v11 = vpop.f32.mrf.mxu1 }
0x12e3   :  { %v3022_v37 = vadd.f32 %v3021_v11, %v8830_v42 }
0x12e4   :  { %v3023_v29 = vpop.f32.mrf.mxu1 }
0x12e5   :  { %4664 = vtanh.f32 %v3022_v37  ;;  %v3024_v60 = vadd.f32 %v3023_v29, %v8904_v23 }
0x12e6   :  { %v3025_v5 = vpop.f32.mrf.mxu1 }
0x12e7   :  { %v3766_v4 = vmul.f32 -1.442695, %v3024_v60  ;;  %v7843_v60 = vld [vmem:[#allocation14 + $0x38] sm:$0xff]  }
0x12e8   :  { %v3026_v36 = vpop.f32.mrf.mxu1  ;;  %8907 = vst [vmem:[#allocation56_spill] sm:$0xff] %v7843_v60 }
0x12e9   :  { %4666 = vpow2.f32 %v3766_v4  ;;  %v7855_v4 = vld [vmem:[#allocation14 + $0x30] sm:$0xff]  }
0x12ea   :  { %8909 = vst [vmem:[#allocation60_spill] sm:$0xff] %v7855_v4  ;;  %v7859_v36 = vld [vmem:[#allocation15 + $0x30] sm:$0xff]  }
0x12eb   :  { %8910 = vst [vmem:[#allocation62_spill] sm:$0xff] %v7859_v36 }
0x12f2   :  { %v4665_v6 = vpop.eup %4664 }
0x12f3   :  { %v3048_v62 = vmul.f32 %v4665_v6, %v4661_v24  ;;  %v7863_v24 = vld [vmem:[#allocation14 + $0x28] sm:$0xff]   ;;  %v7871_v6 = vld [vmem:[#allocation14 + $0x20] sm:$0xff]  }
0x12f4   :  { %8911 = vst [vmem:[#allocation64_spill] sm:$0xff] %v7863_v24  ;;  %8913 = vst [vmem:[#allocation68_spill] sm:$0xff] %v7871_v6 }
0x12f5   :  { %v7836_v63 = vadd.f32 %v3048_v62, %v3047_v38  ;;  %v7849_v38 = vld [vmem:[#allocation15 + $0x38] sm:$0xff]  }
0x12f6   :  { %v4667_v56 = vpop.eup %4666  ;;  %8908 = vst [vmem:[#allocation58_spill] sm:$0xff] %v7849_v38  ;;  %v7879_v62 = vld [vmem:[#allocation14 + $0x18] sm:$0xff]  }
0x12f7   :  { %8906 = vst [vmem:[#allocation91_spill] sm:$0xff] %v7836_v63  ;;  %v3044_v25 = vadd.f32 1.0, %v4667_v56  ;;  %4668 = vtanh.f32 %v7836_v63  ;;  %8915 = vst [vmem:[#allocation92_spill] sm:$0xff] %v7879_v62  ;;  %v7883_v56 = vld [vmem:[#allocation15 + $0x18] sm:$0xff]  }
0x12f8   :  { %8916 = vst [vmem:[#allocation93_spill] sm:$0xff] %v7883_v56 }
0x12f9   :  { %4670 = vrcp.f32 %v3044_v25  ;;  %v7887_v25 = vld [vmem:[#allocation14 + $0x10] sm:$0xff]  }
0x12fa   :  { %8917 = vst [vmem:[#allocation23_spill] sm:$0xff] %v7887_v25 }
0x1304   :  { %v4669_v11 = vpop.eup %4668 }
0x1306   :  { %v4671_v37 = vpop.eup %4670 }
0x1307   :  { %v3051_v29 = vmul.f32 %v4671_v37, %v4669_v11  ;;  %v7891_v11 = vld [vmem:[#allocation15 + $0x10] sm:$0xff]   ;;  %v7895_v37 = vld [vmem:[#allocation14 + $0x8] sm:$0xff]  }
0x1308   :  { %8918 = vst [vmem:[#allocation24_spill] sm:$0xff] %v7891_v11  ;;  %8919 = vst [vmem:[#allocation25_spill] sm:$0xff] %v7895_v37 }
0x1309   :  { %v7839_v5 = vpack.c.bf16 %v3051_v29, %v3051_v29  ;;  %v7899_v29 = vld [vmem:[#allocation15 + $0x8] sm:$0xff]  }
0x130a   :  { %8920 = vst [vmem:[#allocation26_spill] sm:$0xff] %v7899_v29 }
0x130b   :  { %3091 = vmatmul.mubr.bf16.vlgmr.msra.gmra.mxu0 %v7839_v5  ;;  %3132 = vmatmul.mubr.bf16.vlgmr.msra.gmra.mxu1 %v7839_v5 }
0x130c   :  { %4161 = vmatpush3.bf16.msra.mxu0 %v7843_v60  ;;  %4176 = vmatprep.mubr.msk.bf16.mxu0 %vm5356_vm0, %v8468_v16 }
0x130d   :  { %4162 = vmatprep.subr.bf16.mxu0 %v8468_v16  ;;  %4181 = vmatpush3.bf16.msra.mxu1 %v7849_v38 }
0x130e   :  { %4182 = vmatprep.subr.bf16.mxu1 %v8468_v16  ;;  %4196 = vmatprep.mubr.msk.bf16.mxu1 %vm5356_vm0, %v8468_v16 }
0x1310   :  { %4163 = vmatpush3.bf16.msra.mxu0 %v7855_v4 }
0x1311   :  { %4164 = vmatprep.subr.bf16.mxu0 %v8468_v16  ;;  %4183 = vmatpush3.bf16.msra.mxu1 %v7859_v36 }
0x1312   :  { %4184 = vmatprep.subr.bf16.mxu1 %v8468_v16 }
0x1314   :  { %4165 = vmatpush3.bf16.msra.mxu0 %v7863_v24 }
0x1315   :  { %4166 = vmatprep.subr.bf16.mxu0 %v8468_v16  ;;  %4185 = vmatpush3.bf16.msra.mxu1 %v7867_v20 }
0x1316   :  { %4186 = vmatprep.subr.bf16.mxu1 %v8468_v16 }
0x1318   :  { %4167 = vmatpush3.bf16.msra.mxu0 %v7871_v6 }
0x1319   :  { %4168 = vmatprep.subr.bf16.mxu0 %v8468_v16  ;;  %4187 = vmatpush3.bf16.msra.mxu1 %v7875_v34 }
0x131a   :  { %4188 = vmatprep.subr.bf16.mxu1 %v8468_v16 }
0x131c   :  { %4169 = vmatpush3.bf16.msra.mxu0 %v7879_v62  ;;  %v8924_v62 = vld [vmem:[#allocation34_spill] sm:$0xff] }
0x131d   :  { %4170 = vmatprep.subr.bf16.mxu0 %v8468_v16  ;;  %4189 = vmatpush3.bf16.msra.mxu1 %v7883_v56  ;;  %v8922_v56 = vld [vmem:[#allocation32_spill] sm:$0xff] }
0x131e   :  { %4190 = vmatprep.subr.bf16.mxu1 %v8468_v16 }
0x1320   :  { %4171 = vmatpush3.bf16.msra.mxu0 %v7887_v25  ;;  %v7903_v25 = vld [vmem:[#allocation14] sm:$0xff]  }
0x1321   :  { %4172 = vmatprep.subr.bf16.mxu0 %v8468_v16  ;;  %4191 = vmatpush3.bf16.msra.mxu1 %v7891_v11  ;;  %8921 = vst [vmem:[#allocation27_spill] sm:$0xff] %v7903_v25  ;;  %v8923_v11 = vld [vmem:[#allocation33_spill] sm:$0xff] }
0x1322   :  { %4192 = vmatprep.subr.bf16.mxu1 %v8468_v16 }
0x1324   :  { %4173 = vmatpush3.bf16.msra.mxu0 %v7895_v37 }
0x1325   :  { %4174 = vmatprep.subr.bf16.mxu0 %v8468_v16  ;;  %4193 = vmatpush3.bf16.msra.mxu1 %v7899_v29 }
0x1326   :  { %4194 = vmatprep.subr.bf16.mxu1 %v8468_v16 }
0x1328   :  { %4175 = vmatpush3.bf16.msra.mxu0 %v7903_v25 }
0x1329   :  { %3257 = vmatprep.subr.bf16.mxu0 %v8922_v56  ;;  %4195 = vmatpush3.bf16.msra.mxu1 %v8923_v11 }
0x132a   :  { %3298 = vmatprep.subr.bf16.mxu1 %v8924_v62 }
0x13cb   :  { %v3092_v34 = vpop.f32.mrf.mxu0  ;;  %v3133_v37 = vpop.f32.mrf.mxu1 }
0x13cc   :  { %v3093_v6 = vadd.f32 %v3092_v34, %v8548_v43  ;;  %v3134_v23 = vadd.f32 %v3133_v37, %v8551_v30 }
0x13cd   :  { %v3094_v20 = vpop.f32.mrf.mxu0  ;;  %v3135_v24 = vpop.f32.mrf.mxu1 }
0x13ce   :  { %v3767_v36 = vmul.f32 -1.442695, %v3093_v6  ;;  %v3095_v29 = vadd.f32 %v3094_v20, %v8549_v3  ;;  %v3136_v56 = vadd.f32 %v3135_v24, %v8550_v19 }
0x13cf   :  { %v3096_v4 = vpop.f32.mrf.mxu0  ;;  %v3137_v38 = vpop.f32.mrf.mxu1 }
0x13d0   :  { %4672 = vpow2.f32 %v3767_v36  ;;  %v3768_v60 = vmul.f32 -1.442695, %v3095_v29  ;;  %v3769_v11 = vmul.f32 -1.442695, %v3136_v56 }
0x13d1   :  { %v3097_v25 = vpop.f32.mrf.mxu0  ;;  %v3138_v63 = vpop.f32.mrf.mxu1 }
0x13d2   :  { %4674 = vpow2.f32 %v3768_v60 }
0x13d3   :  { %4676 = vpow2.f32 %v3769_v11  ;;  %v5148_v11 = vld [vmem:[#allocation9 + $0xc4] ss:$16 sps:$4 sm:$0xff]  }
0x13dd   :  { %v4673_v62 = vpop.eup %4672 }
0x13de   :  { %v3143_v42 = vadd.f32 1.0, %v4673_v62  ;;  %v5149_v62 = vld [vmem:[#allocation9 + $0xc0] ss:$16 sps:$4 sm:$0xff]  }
0x13df   :  { %v4675_v34 = vpop.eup %4674 }
0x13e0   :  { %4678 = vrcp.f32 %v3143_v42  ;;  %v3149_v6 = vadd.f32 1.0, %v4675_v34  ;;  %v4677_v4 = vpop.eup %4676  ;;  %v5151_v34 = vld [vmem:[#allocation9 + $0xa0] ss:$16 sps:$4 sm:$0xff]  }
0x13e1   :  { %4680 = vtanh.f32 %v3134_v23  ;;  %v3156_v25 = vadd.f32 1.0, %v4677_v4  ;;  %v5147_v23 = vld [vmem:[#allocation9 + $0xe0] ss:$16 sps:$4 sm:$0xff]  }
0x13e2   :  { %4682 = vrcp.f32 %v3149_v6  ;;  %v5152_v6 = vld [vmem:[#allocation9 + $0x84] ss:$16 sps:$4 sm:$0xff]   ;;  %v5153_v4 = vld [vmem:[#allocation9 + $0x80] ss:$16 sps:$4 sm:$0xff]  }
0x13e3   :  { %4684 = vrcp.f32 %v3156_v25  ;;  %v5157_v25 = vld [vmem:[#allocation9 + $0x40] ss:$16 sps:$4 sm:$0xff]  }
0x13ed   :  { %v4679_v38 = vpop.eup %4678 }
0x13ee   :  { %v4681_v36 = vpop.eup %4680 }
0x13ef   :  { %v4683_v20 = vpop.eup %4682  ;;  %v3160_v63 = vmul.f32 %v4681_v36, %v4679_v38  ;;  %v5154_v38 = vld [vmem:[#allocation9 + $0x64] ss:$16 sps:$4 sm:$0xff]   ;;  %v5155_v36 = vld [vmem:[#allocation9 + $0x60] ss:$16 sps:$4 sm:$0xff]  }
0x13f0   :  { %v3159_v60 = vmul.f32 %v4683_v20, %v7513_v33  ;;  %v4685_v37 = vpop.eup %4684  ;;  %v5150_v33 = vld [vmem:[#allocation9 + $0xa4] ss:$16 sps:$4 sm:$0xff]  }
0x13f1   :  { %v5156_v20 = vld [vmem:[#allocation9 + $0x44] ss:$16 sps:$4 sm:$0xff]  }
0x13f2   :  { %v7914_v24 = vadd.f32 %v3160_v63, %v3159_v60  ;;  %v5158_v63 = vld [vmem:[#allocation9 + $0x24] ss:$16 sps:$4 sm:$0xff]   ;;  %v8944_v60 = vld [vmem:[#allocation54_spill] sm:$0xff] }
0x13f4   :  { %4686 = vtanh.f32 %v7914_v24 }
0x1401   :  { %v4687_v29 = vpop.eup %4686 }
0x1402   :  { %v3163_v56 = vmul.f32 %v4687_v29, %v4685_v37  ;;  %v5159_v37 = vld [vmem:[#allocation12 + $0x164] ss:$16 sps:$4 sm:$0xff]   ;;  %v5160_v29 = vld [vmem:[#allocation12 + $0x160] ss:$16 sps:$4 sm:$0xff]  }
0x1404   :  { %v7917_v42 = vpack.c.bf16 %v3163_v56, %v3163_v56  ;;  %v5161_v56 = vld [vmem:[#allocation12 + $0x144] ss:$16 sps:$4 sm:$0xff]  }
0x1406   :  { %4177 = vmatmul.mubr.bf16.vlgmr.msra.gmra.mxu0 %v7917_v42 }
0x1407   :  { %3258 = vmatpush1.bf16.msra.mxu0 %v5147_v23  ;;  %3289 = vmatprep.mubr.bf16.mxu0 %v7839_v5  ;;  %v5162_v23 = vld [vmem:[#allocation12 + $0x140] ss:$16 sps:$4 sm:$0xff]  }
0x1408   :  { %3259 = vmatprep.subr.bf16.mxu0 %v5148_v11  ;;  %v5163_v11 = vld [vmem:[#allocation12 + $0x124] ss:$16 sps:$4 sm:$0xff]  }
0x140b   :  { %3260 = vmatpush1.bf16.msra.mxu0 %v5149_v62  ;;  %v5166_v62 = vld [vmem:[#allocation12 + $0x100] ss:$16 sps:$4 sm:$0xff]  }
0x140c   :  { %3261 = vmatprep.subr.bf16.mxu0 %v5150_v33 }
0x140f   :  { %3262 = vmatpush1.bf16.msra.mxu0 %v5151_v34  ;;  %v7972_v34 = vld [vmem:[%s8083_s6] ss:$0 sm:$0xff] }
0x1410   :  { %3263 = vmatprep.subr.bf16.mxu0 %v5152_v6 }
0x1413   :  { %3264 = vmatpush1.bf16.msra.mxu0 %v5153_v4 }
0x1414   :  { %3265 = vmatprep.subr.bf16.mxu0 %v5154_v38 }
0x1417   :  { %3266 = vmatpush1.bf16.msra.mxu0 %v5155_v36 }
0x1418   :  { %3267 = vmatprep.subr.bf16.mxu0 %v5156_v20 }
0x141b   :  { %3268 = vmatpush1.bf16.msra.mxu0 %v5157_v25 }
0x141c   :  { %3269 = vmatprep.subr.bf16.mxu0 %v5158_v63  ;;  %v5168_v63 = vld [vmem:[#allocation9 + $0xe8] ss:$16 sps:$4 sm:$0xff]  }
0x141f   :  { %3270 = vmatpush1.bf16.msra.mxu0 %v7532_v40  ;;  %v3252_v40 = vld [vmem:[#allocation6 + $0x38] sm:$0xff] }
0x1420   :  { %3271 = vmatprep.subr.bf16.mxu0 %v7535_v31  ;;  %v7939_v31 = vpack.c.bf16 %v3252_v40, %v3252_v40  ;;  %v5169_v40 = vld [vmem:[#allocation9 + $0xcc] ss:$16 sps:$4 sm:$0xff]  }
0x1423   :  { %3272 = vmatpush1.bf16.msra.mxu0 %v7538_v57  ;;  %v8925_v57 = vld [vmem:[#allocation35_spill] sm:$0xff] }
0x1424   :  { %3273 = vmatprep.subr.bf16.mxu0 %v7541_v51  ;;  %v8926_v51 = vld [vmem:[#allocation36_spill] sm:$0xff] }
0x1427   :  { %3274 = vmatpush2.bf16.msra.mxu0 %v7544_v27  ;;  %v8927_v27 = vld [vmem:[#allocation37_spill] sm:$0xff] }
0x1428   :  { %3275 = vmatprep.subr.bf16.mxu0 %v7547_v13  ;;  %v8928_v13 = vld [vmem:[#allocation38_spill] sm:$0xff] }
0x142b   :  { %3276 = vmatpush2.bf16.msra.mxu0 %v7550_v1  ;;  %v8929_v1 = vld [vmem:[#allocation39_spill] sm:$0xff] }
0x142c   :  { %3277 = vmatprep.subr.bf16.mxu0 %v7553_v59  ;;  %v8930_v59 = vld [vmem:[#allocation40_spill] sm:$0xff] }
0x142f   :  { %3278 = vmatpush2.bf16.msra.mxu0 %v7556_v49  ;;  %v8931_v49 = vld [vmem:[#allocation41_spill] sm:$0xff] }
0x1430   :  { %3279 = vmatprep.subr.bf16.mxu0 %v7559_v54  ;;  %v8932_v54 = vld [vmem:[#allocation42_spill] sm:$0xff] }
0x1433   :  { %3280 = vmatpush2.bf16.msra.mxu0 %v7562_v2  ;;  %v8933_v2 = vld [vmem:[#allocation43_spill] sm:$0xff] }
0x1434   :  { %3281 = vmatprep.subr.bf16.mxu0 %v7565_v7  ;;  %v8934_v7 = vld [vmem:[#allocation44_spill] sm:$0xff] }
0x1437   :  { %3282 = vmatpush2.bf16.msra.mxu0 %v7568_v9  ;;  %v8935_v9 = vld [vmem:[#allocation45_spill] sm:$0xff] }
0x1438   :  { %3283 = vmatprep.subr.bf16.mxu0 %v7571_v26  ;;  %v8936_v26 = vld [vmem:[#allocation46_spill] sm:$0xff] }
0x143b   :  { %3284 = vmatpush2.bf16.msra.mxu0 %v7574_v52  ;;  %v8937_v52 = vld [vmem:[#allocation47_spill] sm:$0xff] }
0x143c   :  { %3285 = vmatprep.subr.bf16.mxu0 %v7577_v10  ;;  %v8938_v10 = vld [vmem:[#allocation48_spill] sm:$0xff] }
0x143f   :  { %3286 = vmatpush2.bf16.msra.mxu0 %v7580_v45  ;;  %v8939_v45 = vld [vmem:[#allocation49_spill] sm:$0xff] }
0x1440   :  { %3287 = vmatprep.subr.bf16.mxu0 %v7583_v55  ;;  %v8940_v55 = vld [vmem:[#allocation50_spill] sm:$0xff] }
0x1443   :  { %3288 = vmatpush2.bf16.msra.mxu0 %v7588_v28  ;;  %v8941_v28 = vld [vmem:[#allocation51_spill] sm:$0xff] }
0x1444   :  { %3369 = vmatprep.subr.bf16.mxu0 %v7591_v39  ;;  %v8942_v39 = vld [vmem:[#allocation52_spill] sm:$0xff] }
0x1446   :  { %3290 = vmatmul.mubr.bf16.vlgmr.msra.gmra.mxu0 %v7939_v31 }
0x1447   :  { %3401 = vmatprep.mubr.bf16.mxu0 %v7917_v42  ;;  %3370 = vmatpush1.bf16.msra.mxu0 %v7596_v53  ;;  %v8943_v53 = vld [vmem:[#allocation53_spill] sm:$0xff] }
0x1448   :  { %3371 = vmatprep.subr.bf16.mxu0 %v8925_v57  ;;  %v5170_v57 = vld [vmem:[#allocation9 + $0xc8] ss:$16 sps:$4 sm:$0xff]  }
0x144b   :  { %3372 = vmatpush1.bf16.msra.mxu0 %v8926_v51  ;;  %v5171_v51 = vld [vmem:[#allocation9 + $0xac] ss:$16 sps:$4 sm:$0xff]  }
0x144c   :  { %3373 = vmatprep.subr.bf16.mxu0 %v8927_v27  ;;  %v5172_v27 = vld [vmem:[#allocation9 + $0xa8] ss:$16 sps:$4 sm:$0xff]  }
0x144f   :  { %3374 = vmatpush1.bf16.msra.mxu0 %v8928_v13  ;;  %v5173_v13 = vld [vmem:[#allocation9 + $0x8c] ss:$16 sps:$4 sm:$0xff]  }
0x1450   :  { %3375 = vmatprep.subr.bf16.mxu0 %v8929_v1  ;;  %v5174_v1 = vld [vmem:[#allocation9 + $0x88] ss:$16 sps:$4 sm:$0xff]  }
0x1453   :  { %3376 = vmatpush1.bf16.msra.mxu0 %v8930_v59  ;;  %v5175_v59 = vld [vmem:[#allocation9 + $0x6c] ss:$16 sps:$4 sm:$0xff]  }
0x1454   :  { %3377 = vmatprep.subr.bf16.mxu0 %v8931_v49  ;;  %v5176_v49 = vld [vmem:[#allocation9 + $0x68] ss:$16 sps:$4 sm:$0xff]  }
0x1457   :  { %3378 = vmatpush1.bf16.msra.mxu0 %v8932_v54  ;;  %v5177_v54 = vld [vmem:[#allocation9 + $0x4c] ss:$16 sps:$4 sm:$0xff]  }
0x1458   :  { %3379 = vmatprep.subr.bf16.mxu0 %v8933_v2  ;;  %v5178_v2 = vld [vmem:[#allocation9 + $0x48] ss:$16 sps:$4 sm:$0xff]  }
0x145b   :  { %3380 = vmatpush1.bf16.msra.mxu0 %v8934_v7  ;;  %v5180_v7 = vld [vmem:[#allocation9 + $0x28] ss:$16 sps:$4 sm:$0xff]  }
0x145c   :  { %3381 = vmatprep.subr.bf16.mxu0 %v8935_v9  ;;  %v5181_v9 = vld [vmem:[#allocation9 + $0xc] ss:$16 sps:$4 sm:$0xff]  }
0x145f   :  { %3382 = vmatpush1.bf16.msra.mxu0 %v8936_v26  ;;  %v5182_v26 = vld [vmem:[#allocation9 + $0x8] ss:$16 sps:$4 sm:$0xff]  }
0x1460   :  { %3383 = vmatprep.subr.bf16.mxu0 %v8937_v52  ;;  %v5183_v52 = vld [vmem:[#allocation9 + $0x1ec] ss:$16 sps:$4 sm:$0xff]  }
0x1463   :  { %3384 = vmatpush1.bf16.msra.mxu0 %v8938_v10  ;;  %v5184_v10 = vld [vmem:[#allocation9 + $0x1e8] ss:$16 sps:$4 sm:$0xff]  }
0x1464   :  { %3385 = vmatprep.subr.bf16.mxu0 %v8939_v45  ;;  %v5185_v45 = vld [vmem:[#allocation9 + $0x1cc] ss:$16 sps:$4 sm:$0xff]  }
0x1467   :  { %3386 = vmatpush2.bf16.msra.mxu0 %v8940_v55  ;;  %v5186_v55 = vld [vmem:[#allocation9 + $0x1c8] ss:$16 sps:$4 sm:$0xff]  }
0x1468   :  { %3387 = vmatprep.subr.bf16.mxu0 %v7647_v35  ;;  %v5164_v35 = vld [vmem:[#allocation12 + $0x120] ss:$16 sps:$4 sm:$0xff]  }
0x146b   :  { %3388 = vmatpush2.bf16.msra.mxu0 %v7650_v14  ;;  %v5165_v14 = vld [vmem:[#allocation12 + $0x104] ss:$16 sps:$4 sm:$0xff]  }
0x146c   :  { %3389 = vmatprep.subr.bf16.mxu0 %v8941_v28  ;;  %v5187_v28 = vld [vmem:[#allocation9 + $0x1ac] ss:$16 sps:$4 sm:$0xff]  }
0x146f   :  { %3390 = vmatpush2.bf16.msra.mxu0 %v8942_v39  ;;  %v5188_v39 = vld [vmem:[#allocation9 + $0x1a8] ss:$16 sps:$4 sm:$0xff]  }
0x1470   :  { %3391 = vmatprep.subr.bf16.mxu0 %v8943_v53  ;;  %v5189_v53 = vld [vmem:[#allocation9 + $0x18c] ss:$16 sps:$4 sm:$0xff]  }
0x1473   :  { %3392 = vmatpush2.bf16.msra.mxu0 %v8944_v60 }
0x1474   :  { %3393 = vmatprep.subr.bf16.mxu0 %v5159_v37 }
0x1477   :  { %3394 = vmatpush2.bf16.msra.mxu0 %v5160_v29 }
0x1478   :  { %3395 = vmatprep.subr.bf16.mxu0 %v5161_v56  ;;  %v8962_v56 = vld [vmem:[#allocation82_spill] sm:$0xff] }
0x147b   :  { %3396 = vmatpush2.bf16.msra.mxu0 %v5162_v23  ;;  %v8963_v23 = vld [vmem:[#allocation90_spill] sm:$0xff] }
0x147c   :  { %3397 = vmatprep.subr.bf16.mxu0 %v5163_v11  ;;  %v8964_v11 = vld [vmem:[#allocation83_spill] sm:$0xff] }
0x147f   :  { %3398 = vmatpush2.bf16.msra.mxu0 %v5164_v35  ;;  %v8965_v35 = vld [vmem:[#allocation84_spill] sm:$0xff] }
0x1480   :  { %3399 = vmatprep.subr.bf16.mxu0 %v5165_v14  ;;  %v8966_v14 = vld [vmem:[#allocation86_spill] sm:$0xff] }
0x1483   :  { %3400 = vmatpush2.bf16.msra.mxu0 %v5166_v62  ;;  %v8967_v62 = vld [vmem:[#allocation87_spill] sm:$0xff] }
0x1484   :  { %4200 = vmatprep.subr.bf16.mxu0 %v8468_v16 }
0x14c6   :  { %v3201_v33 = vpop.f32.mrf.mxu0 }
0x14c7   :  { %v3202_v6 = vadd.f32 %v7972_v34, %v3201_v33  ;;  %v8968_v33 = vld [vmem:[#allocation88_spill] sm:$0xff] }
0x14c8   :  { %v4178_v4 = vpop.f32.mrf.mxu0 }
0x14c9   :  { %v3207_v38 = vmax.f32 %v3202_v6, 0.0  ;;  %v8969_v6 = vld [vmem:[#allocation89_spill] sm:$0xff] }
0x14ca   :  { %v3204_v36 = vpop.f32.mrf.mxu0 }
0x14cb   :  { %v3208_v20 = vpack.c.bf16 %v3207_v38, %v3207_v38  ;;  %v8023_v38 = vld [vmem:[%s8085_s8] ss:$0 sm:$0xff]  ;;  %s5357_s8 = smov [#allocation17]  }
0x14cc   :  { %v4179_v25 = vpop.f32.mrf.mxu0  ;;  %s3567_s0 = sshll.u32 %s5357_s8, 4  ;;  %s3568_s0 = int_to_ptr.vmem [resolvable:$true] %s3567_s0 }
0x14cd   :  { %4197 = vmatmul.mubr.bf16.vlgmr.msra.gmra.mxu1 %v3208_v20  ;;  %s5312_s13 = scalar_lea.vmem %s3568_s0, 1024  ;;  %p5317_p3 = scmp.lt.s32.totalorder %s3568_s0, %s3568_s0 }
0x14ce   :  { %3299 = vmatpush1.bf16.msra.mxu1 %v5168_v63  ;;  %3330 = vmatprep.mubr.bf16.mxu1 %v7839_v5  ;;  %v5179_v5 = vld [vmem:[#allocation9 + $0x2c] ss:$16 sps:$4 sm:$0xff]   ;;  %p5313_p2 = scmp.ne.s32.totalorder %s3568_s0, %s5312_s13  ;;  %p5318_p4 = scmp.lt.s32.totalorder %s5312_s13, %s5312_s13 }
0x14cf   :  { %3300 = vmatprep.subr.bf16.mxu1 %v5169_v40 }
0x14d0   :  { %p5319_p5 = por %p5318_p4, %p5317_p3 }
0x14d2   :  { %3301 = vmatpush1.bf16.msra.mxu1 %v5170_v57  ;;  %v8970_v57 = vld [vmem:[#allocation73_spill] sm:$0xff]  ;;  %p5320_p6 = pnand %p5319_p5, %p5313_p2 }
0x14d3   :  { %3302 = vmatprep.subr.bf16.mxu1 %v5171_v51 }
0x14d6   :  { %3303 = vmatpush1.bf16.msra.mxu1 %v5172_v27 }
0x14d7   :  { %3304 = vmatprep.subr.bf16.mxu1 %v5173_v13 }
0x14da   :  { %3305 = vmatpush1.bf16.msra.mxu1 %v5174_v1 }
0x14db   :  { %3306 = vmatprep.subr.bf16.mxu1 %v5175_v59 }
0x14de   :  { %3307 = vmatpush1.bf16.msra.mxu1 %v5176_v49 }
0x14df   :  { %3308 = vmatprep.subr.bf16.mxu1 %v5177_v54 }
0x14e2   :  { %3309 = vmatpush1.bf16.msra.mxu1 %v5178_v2 }
0x14e3   :  { %3310 = vmatprep.subr.bf16.mxu1 %v5179_v5  ;;  %v8971_v5 = vld [vmem:[#allocation75_spill] sm:$0xff] }
0x14e6   :  { %3311 = vmatpush1.bf16.msra.mxu1 %v5180_v7 }
0x14e7   :  { %3312 = vmatprep.subr.bf16.mxu1 %v5181_v9 }
0x14ea   :  { %3313 = vmatpush1.bf16.msra.mxu1 %v5182_v26  ;;  %v8972_v26 = vld [vmem:[#allocation74_spill] sm:$0xff] }
0x14eb   :  { %3314 = vmatprep.subr.bf16.mxu1 %v5183_v52 }
0x14ee   :  { %3315 = vmatpush2.bf16.msra.mxu1 %v5184_v10 }
0x14ef   :  { %3316 = vmatprep.subr.bf16.mxu1 %v5185_v45 }
0x14f2   :  { %3317 = vmatpush2.bf16.msra.mxu1 %v5186_v55 }
0x14f3   :  { %3318 = vmatprep.subr.bf16.mxu1 %v5187_v28 }
0x14f6   :  { %3319 = vmatpush2.bf16.msra.mxu1 %v5188_v39 }
0x14f7   :  { %3320 = vmatprep.subr.bf16.mxu1 %v5189_v53  ;;  %v8973_v53 = vld [vmem:[#allocation91_spill] sm:$0xff] }
0x14fa   :  { %3321 = vmatpush2.bf16.msra.mxu1 %v7698_v18 }
0x14fb   :  { %3322 = vmatprep.subr.bf16.mxu1 %v7701_v15  ;;  %v8945_v15 = vld [vmem:[#allocation55_spill] sm:$0xff] }
0x14fe   :  { %3323 = vmatpush2.bf16.msra.mxu1 %v7704_v0  ;;  %v8946_v0 = vld [vmem:[#allocation57_spill] sm:$0xff] }
0x14ff   :  { %3324 = vmatprep.subr.bf16.mxu1 %v7707_v17  ;;  %v8947_v17 = vld [vmem:[#allocation59_spill] sm:$0xff] }
0x1502   :  { %3325 = vmatpush2.bf16.msra.mxu1 %v7710_v58  ;;  %v8948_v58 = vld [vmem:[#allocation61_spill] sm:$0xff] }
0x1503   :  { %3326 = vmatprep.subr.bf16.mxu1 %v7713_v8  ;;  %v8949_v8 = vld [vmem:[#allocation63_spill] sm:$0xff] }
0x1506   :  { %v3291_v60 = vpop.f32.mrf.mxu0  ;;  %3327 = vmatpush2.bf16.msra.mxu1 %v7718_v21  ;;  %v8950_v21 = vld [vmem:[#allocation65_spill] sm:$0xff] }
0x1507   :  { %3328 = vmatprep.subr.bf16.mxu1 %v7721_v61  ;;  %v8951_v61 = vld [vmem:[#allocation67_spill] sm:$0xff]  ;;  %v3292_v40 = vadd.f32 %v3291_v60, %v8533_v50 }
0x1508   :  { %v3293_v37 = vpop.f32.mrf.mxu0 }
0x1509   :  { %v3294_v51 = vadd.f32 %v3293_v37, %v8970_v57  ;;  %v3770_v27 = vmul.f32 -1.442695, %v3292_v40 }
0x150a   :  { %3329 = vmatpush2.bf16.msra.mxu1 %v7726_v32  ;;  %v3295_v29 = vpop.f32.mrf.mxu0  ;;  %v8952_v32 = vld [vmem:[#allocation69_spill] sm:$0xff] }
0x150b   :  { %3410 = vmatprep.subr.bf16.mxu1 %v7729_v48  ;;  %v8953_v48 = vld [vmem:[#allocation71_spill] sm:$0xff]  ;;  %v3771_v13 = vmul.f32 -1.442695, %v3294_v51  ;;  %4688 = vpow2.f32 %v3770_v27 }
0x150c   :  { %v3296_v18 = vpop.f32.mrf.mxu0 }
0x150d   :  { %3331 = vmatmul.mubr.bf16.vlgmr.msra.gmra.mxu1 %v7939_v31  ;;  %v8961_v31 = vld [vmem:[#allocation81_spill] sm:$0xff]  ;;  %4690 = vpow2.f32 %v3771_v13 }
0x150e   :  { %3442 = vmatprep.mubr.bf16.mxu1 %v7917_v42  ;;  %3411 = vmatpush1.bf16.msra.mxu1 %v7734_v12  ;;  %v8954_v12 = vld [vmem:[#allocation72_spill] sm:$0xff] }
0x150f   :  { %3412 = vmatprep.subr.bf16.mxu1 %v7737_v44  ;;  %v8955_v44 = vld [vmem:[#allocation76_spill] sm:$0xff] }
0x1510   :  { %v8960_v42 = vld [vmem:[#allocation80_spill] sm:$0xff] }
0x1512   :  { %3413 = vmatpush1.bf16.msra.mxu1 %v7740_v41  ;;  %v8956_v41 = vld [vmem:[#allocation77_spill] sm:$0xff] }
0x1513   :  { %3414 = vmatprep.subr.bf16.mxu1 %v7743_v46  ;;  %v8957_v46 = vld [vmem:[#allocation85_spill] sm:$0xff] }
0x1516   :  { %3415 = vmatpush1.bf16.msra.mxu1 %v7746_v47  ;;  %v8958_v47 = vld [vmem:[#allocation78_spill] sm:$0xff] }
0x1517   :  { %3416 = vmatprep.subr.bf16.mxu1 %v7749_v22  ;;  %v8959_v22 = vld [vmem:[#allocation79_spill] sm:$0xff] }
0x1518   :  { %v4689_v1 = vpop.eup %4688 }
0x1519   :  { %v3342_v49 = vadd.f32 1.0, %v4689_v1 }
0x151a   :  { %3417 = vmatpush1.bf16.msra.mxu1 %v8945_v15  ;;  %v4691_v59 = vpop.eup %4690 }
0x151b   :  { %3418 = vmatprep.subr.bf16.mxu1 %v8946_v0  ;;  %v3348_v54 = vadd.f32 1.0, %v4691_v59  ;;  %4692 = vrcp.f32 %v3342_v49 }
0x151d   :  { %4694 = vrcp.f32 %v3348_v54 }
0x151e   :  { %3419 = vmatpush1.bf16.msra.mxu1 %v8947_v17 }
0x151f   :  { %3420 = vmatprep.subr.bf16.mxu1 %v8948_v58 }
0x1522   :  { %3421 = vmatpush1.bf16.msra.mxu1 %v8949_v8 }
0x1523   :  { %3422 = vmatprep.subr.bf16.mxu1 %v8950_v21  ;;  %v8974_v21 = vld [vmem:[#allocation56_spill] sm:$0xff] }
0x1526   :  { %3423 = vmatpush1.bf16.msra.mxu1 %v8951_v61  ;;  %v8975_v61 = vld [vmem:[#allocation58_spill] sm:$0xff] }
0x1527   :  { %3424 = vmatprep.subr.bf16.mxu1 %v8952_v32  ;;  %v8976_v32 = vld [vmem:[#allocation60_spill] sm:$0xff] }
0x1528   :  { %v4693_v55 = vpop.eup %4692 }
0x152a   :  { %3425 = vmatpush1.bf16.msra.mxu1 %v8953_v48  ;;  %v4695_v28 = vpop.eup %4694  ;;  %v8977_v48 = vld [vmem:[#allocation62_spill] sm:$0xff] }
0x152b   :  { %3426 = vmatprep.subr.bf16.mxu1 %v8954_v12  ;;  %v3358_v60 = vmul.f32 %v4695_v28, %v8973_v53  ;;  %v8978_v12 = vld [vmem:[#allocation64_spill] sm:$0xff] }
0x152e   :  { %3427 = vmatpush2.bf16.msra.mxu1 %v8955_v44  ;;  %v8979_v44 = vld [vmem:[#allocation66_spill] sm:$0xff] }
0x152f   :  { %3428 = vmatprep.subr.bf16.mxu1 %v8956_v41  ;;  %v8980_v41 = vld [vmem:[#allocation68_spill] sm:$0xff] }
0x1532   :  { %3429 = vmatpush2.bf16.msra.mxu1 %v8957_v46  ;;  %v8981_v46 = vld [vmem:[#allocation70_spill] sm:$0xff] }
0x1533   :  { %3430 = vmatprep.subr.bf16.mxu1 %v8958_v47  ;;  %v8982_v47 = vld [vmem:[#allocation92_spill] sm:$0xff] }
0x1536   :  { %3431 = vmatpush2.bf16.msra.mxu1 %v8959_v22  ;;  %v8983_v22 = vld [vmem:[#allocation93_spill] sm:$0xff] }
0x1537   :  { %3432 = vmatprep.subr.bf16.mxu1 %v8960_v42  ;;  %v8984_v42 = vld [vmem:[#allocation23_spill] sm:$0xff] }
0x153a   :  { %3433 = vmatpush2.bf16.msra.mxu1 %v8961_v31  ;;  %v8985_v31 = vld [vmem:[#allocation24_spill] sm:$0xff] }
0x153b   :  { %3434 = vmatprep.subr.bf16.mxu1 %v8962_v56  ;;  %v8986_v56 = vld [vmem:[#allocation25_spill] sm:$0xff] }
0x153e   :  { %3435 = vmatpush2.bf16.msra.mxu1 %v8963_v23  ;;  %v8987_v23 = vld [vmem:[#allocation26_spill] sm:$0xff] }
0x153f   :  { %3436 = vmatprep.subr.bf16.mxu1 %v8964_v11  ;;  %v8988_v11 = vld [vmem:[#allocation27_spill] sm:$0xff] }
0x1542   :  { %3437 = vmatpush2.bf16.msra.mxu1 %v8965_v35  ;;  %v5191_v35 = vld [vmem:[#allocation15] sm:$0xff]  }
0x1543   :  { %3438 = vmatprep.subr.bf16.mxu1 %v8966_v14 }
0x1546   :  { %3439 = vmatpush2.bf16.msra.mxu1 %v8967_v62 }
0x1547   :  { %3440 = vmatprep.subr.bf16.mxu1 %v8968_v33 }
0x154a   :  { %3441 = vmatpush2.bf16.msra.mxu1 %v8969_v6 }
0x154b   :  { %4220 = vmatprep.subr.bf16.mxu1 %v8468_v16 }
0x158d   :  { %v3243_v4 = vpop.f32.mrf.mxu1 }
0x158e   :  { %v3244_v36 = vadd.f32 %v8023_v38, %v3243_v4 }
0x158f   :  { %v4198_v20 = vpop.f32.mrf.mxu1 }
0x1590   :  { %3250 = vst [vmem:[#allocation17 + $0x30] sm:$0xff] %v3244_v36 }
0x1591   :  { %v3246_v25 = vpop.f32.mrf.mxu1 }
0x1593   :  { %v4199_v63 = vpop.f32.mrf.mxu1 }
0x15cd   :  { %v3332_v2 = vpop.f32.mrf.mxu1 }
0x15ce   :  { %v3333_v7 = vadd.f32 %v3332_v2, %v8971_v5 }
0x15cf   :  { %v3334_v9 = vpop.f32.mrf.mxu1 }
0x15d0   :  { %4696 = vtanh.f32 %v3333_v7  ;;  %v3335_v52 = vadd.f32 %v3334_v9, %v8972_v26 }
0x15d1   :  { %v3336_v50 = vpop.f32.mrf.mxu1 }
0x15d2   :  { %v3772_v10 = vmul.f32 -1.442695, %v3335_v52 }
0x15d3   :  { %v3337_v45 = vpop.f32.mrf.mxu1 }
0x15d4   :  { %4698 = vpow2.f32 %v3772_v10 }
0x15dd   :  { %v4697_v39 = vpop.eup %4696 }
0x15de   :  { %v3359_v37 = vmul.f32 %v4697_v39, %v4693_v55 }
0x15e0   :  { %v3360_v29 = vadd.f32 %v3359_v37, %v3358_v60 }
0x15e1   :  { %v4699_v18 = vpop.eup %4698 }
0x15e2   :  { %v3355_v15 = vadd.f32 1.0, %v4699_v18  ;;  %4700 = vtanh.f32 %v3360_v29 }
0x15e4   :  { %4702 = vrcp.f32 %v3355_v15 }
0x15ef   :  { %v4701_v0 = vpop.eup %4700 }
0x15f1   :  { %v4703_v17 = vpop.eup %4702 }
0x15f2   :  { %v3362_v58 = vmul.f32 %v4703_v17, %v4701_v0 }
0x15f4   :  { %v3365_v8 = vpack.c.bf16 %v3362_v58, %v3362_v58 }
0x15f6   :  { %3402 = vmatmul.mubr.bf16.vlgmr.msra.gmra.mxu0 %v3365_v8  ;;  %3443 = vmatmul.mubr.bf16.vlgmr.msra.gmra.mxu1 %v3365_v8 }
0x15f7   :  { %4201 = vmatpush3.bf16.msra.mxu0 %v8974_v21  ;;  %4216 = vmatprep.mubr.msk.bf16.mxu0 %vm5356_vm0, %v8468_v16 }
0x15f8   :  { %4202 = vmatprep.subr.bf16.mxu0 %v8468_v16  ;;  %4221 = vmatpush3.bf16.msra.mxu1 %v8975_v61 }
0x15f9   :  { %4222 = vmatprep.subr.bf16.mxu1 %v8468_v16  ;;  %4236 = vmatprep.mubr.msk.bf16.mxu1 %vm5356_vm0, %v8468_v16 }
0x15fb   :  { %4203 = vmatpush3.bf16.msra.mxu0 %v8976_v32 }
0x15fc   :  { %4204 = vmatprep.subr.bf16.mxu0 %v8468_v16  ;;  %4223 = vmatpush3.bf16.msra.mxu1 %v8977_v48 }
0x15fd   :  { %4224 = vmatprep.subr.bf16.mxu1 %v8468_v16 }
0x15ff   :  { %4205 = vmatpush3.bf16.msra.mxu0 %v8978_v12 }
0x1600   :  { %4206 = vmatprep.subr.bf16.mxu0 %v8468_v16  ;;  %4225 = vmatpush3.bf16.msra.mxu1 %v8979_v44 }
0x1601   :  { %4226 = vmatprep.subr.bf16.mxu1 %v8468_v16 }
0x1603   :  { %4207 = vmatpush3.bf16.msra.mxu0 %v8980_v41 }
0x1604   :  { %4208 = vmatprep.subr.bf16.mxu0 %v8468_v16  ;;  %4227 = vmatpush3.bf16.msra.mxu1 %v8981_v46 }
0x1605   :  { %4228 = vmatprep.subr.bf16.mxu1 %v8468_v16 }
0x1607   :  { %4209 = vmatpush3.bf16.msra.mxu0 %v8982_v47 }
0x1608   :  { %4210 = vmatprep.subr.bf16.mxu0 %v8468_v16  ;;  %4229 = vmatpush3.bf16.msra.mxu1 %v8983_v22 }
0x1609   :  { %4230 = vmatprep.subr.bf16.mxu1 %v8468_v16 }
0x160b   :  { %4211 = vmatpush3.bf16.msra.mxu0 %v8984_v42 }
0x160c   :  { %4212 = vmatprep.subr.bf16.mxu0 %v8468_v16  ;;  %4231 = vmatpush3.bf16.msra.mxu1 %v8985_v31 }
0x160d   :  { %4232 = vmatprep.subr.bf16.mxu1 %v8468_v16 }
0x160f   :  { %4213 = vmatpush3.bf16.msra.mxu0 %v8986_v56 }
0x1610   :  { %4214 = vmatprep.subr.bf16.mxu0 %v8468_v16  ;;  %4233 = vmatpush3.bf16.msra.mxu1 %v8987_v23 }
0x1611   :  { %4234 = vmatprep.subr.bf16.mxu1 %v8468_v16 }
0x1613   :  { %4215 = vmatpush3.bf16.msra.mxu0 %v8988_v11 }
0x1614   :  { %4235 = vmatpush3.bf16.msra.mxu1 %v5191_v35 }
0x16b6   :  { %v3403_v14 = vpop.f32.mrf.mxu0  ;;  %v3444_v62 = vpop.f32.mrf.mxu1 }
0x16b7   :  { %v3404_v33 = vadd.f32 %v3403_v14, %v8548_v43  ;;  %v3445_v1 = vadd.f32 %v3444_v62, %v8551_v30 }
0x16b8   :  { %v3405_v6 = vpop.f32.mrf.mxu0  ;;  %v3446_v4 = vpop.f32.mrf.mxu1 }
0x16b9   :  { %v3773_v36 = vmul.f32 -1.442695, %v3404_v33  ;;  %v3406_v20 = vadd.f32 %v3405_v6, %v8549_v3  ;;  %v3447_v16 = vadd.f32 %v3446_v4, %v8550_v19 }
0x16ba   :  { %v3407_v25 = vpop.f32.mrf.mxu0  ;;  %v3448_v63 = vpop.f32.mrf.mxu1 }
0x16bb   :  { %4704 = vpow2.f32 %v3773_v36  ;;  %v3774_v40 = vmul.f32 -1.442695, %v3406_v20  ;;  %v3775_v27 = vmul.f32 -1.442695, %v3447_v16 }
0x16bc   :  { %v3408_v57 = vpop.f32.mrf.mxu0  ;;  %v3449_v51 = vpop.f32.mrf.mxu1 }
0x16bd   :  { %4706 = vpow2.f32 %v3774_v40 }
0x16be   :  { %4708 = vpow2.f32 %v3775_v27 }
0x16c8   :  { %v4705_v13 = vpop.eup %4704 }
0x16c9   :  { %v3454_v59 = vadd.f32 1.0, %v4705_v13 }
0x16ca   :  { %v4707_v43 = vpop.eup %4706 }
0x16cb   :  { %4710 = vrcp.f32 %v3454_v59  ;;  %v3460_v49 = vadd.f32 1.0, %v4707_v43  ;;  %v4709_v3 = vpop.eup %4708 }
0x16cc   :  { %4712 = vtanh.f32 %v3445_v1  ;;  %v3467_v7 = vadd.f32 1.0, %v4709_v3 }
0x16cd   :  { %4714 = vrcp.f32 %v3460_v49 }
0x16ce   :  { %4716 = vrcp.f32 %v3467_v7 }
0x16d8   :  { %v4711_v54 = vpop.eup %4710 }
0x16d9   :  { %v4713_v2 = vpop.eup %4712 }
0x16da   :  { %v4715_v5 = vpop.eup %4714  ;;  %v3471_v9 = vmul.f32 %v4713_v2, %v4711_v54 }
0x16db   :  { %v3470_v26 = vmul.f32 %v4715_v5, %v7914_v24  ;;  %v4717_v52 = vpop.eup %4716 }
0x16dd   :  { %v3472_v19 = vadd.f32 %v3471_v9, %v3470_v26 }
0x16df   :  { %4718 = vtanh.f32 %v3472_v19 }
0x16ec   :  { %v4719_v30 = vpop.eup %4718 }
0x16ed   :  { %v3474_v50 = vmul.f32 %v4719_v30, %v4717_v52 }
0x16ef   :  { %v3477_v10 = vpack.c.bf16 %v3474_v50, %v3474_v50 }
0x16f1   :  { %4217 = vmatmul.mubr.bf16.vlgmr.msra.gmra.mxu0 %v3477_v10 }
0x17b1   :  { %v3512_v45 = vpop.f32.mrf.mxu0 }
0x17b2   :  { %v3513_v55 = vadd.f32 %v7972_v34, %v3512_v45 }
0x17b3   :  { %v4218_v28 = vpop.f32.mrf.mxu0 }
0x17b4   :  { %v3518_v39 = vmax.f32 %v3513_v55, 0.0 }
0x17b5   :  { %v3515_v53 = vpop.f32.mrf.mxu0 }
0x17b6   :  { %v3519_v60 = vpack.c.bf16 %v3518_v39, %v3518_v39 }
0x17b7   :  { %v4219_v37 = vpop.f32.mrf.mxu0 }
0x17b8   :  { %4237 = vmatmul.mubr.bf16.vlgmr.msra.gmra.mxu1 %v3519_v60 }
0x1878   :  { %v3554_v24 = vpop.f32.mrf.mxu1 }
0x1879   :  { %v3555_v29 = vadd.f32 %v8023_v38, %v3554_v24 }
0x187a   :  { %v4238_v18 = vpop.f32.mrf.mxu1 }
0x187b   :  { %3561 = vst [vmem:[#allocation17 + $0x38] sm:$0xff] %v3555_v29 }
0x187c   :  { %v3557_v15 = vpop.f32.mrf.mxu1 }
0x187d   :  { %5323 = shalt.err (!%p5320_p6)
}
0x187e   :  { %3573 = dma.vmem_to_hbm [thread:$0]  %s3568_s0, 1024, %s8086_s9, [#allocation8], %s5347_s1, %s5347_s1, %s5348_s24   ;;  %v4239_v34 = vpop.f32.mrf.mxu1 }
0x187f   :  { %5340 = dma.done.wait [#allocation8], 1024  }
0x1880   :  { %5341 = vsyncadd [#allocation8], 4294966272 }
0x1881   :  { %3577 = vsyncpa [#allocation7], 1 }
0x1882   :  { %3578 = vsyncpa [#allocation10], 1 }
0x1883   :  { %3579 = vsyncpa [#allocation13], 1 }
0x1884   :  { %3580 = vsyncpa [#allocation16], 1 }
0x1885   :  { %3581 = vsyncpa [#allocation8], 1 }

</bundles_post_ra>
